<compile_context>
chip_gen: v7x
topology: tpu7x:2x2x1
jax: 0.10.0
libtpu: 0.0.40
codegen_flags: <defaults>
</compile_context>

<pallas_src>
import jax
import jax.numpy as jnp
from jax.experimental import pallas as pl
from jax.experimental.pallas import tpu as pltpu

ATOM_TILE = 128          # atoms per grid step (atom kernel)
EDGE_TILE = 256          # edges per grid step (edge kernel)
_VMEM_LIMIT = 48 * 1024 * 1024   # explicit scoped-VMEM budget (< v7x 64 MiB)


def _round_up(x, m):
    return (x + m - 1) // m * m


def _fold_bn(w, b, bn_gamma, bn_beta, bn_mean, bn_var, eps=1e-5):
    """Fold eval-mode BatchNorm1d into the preceding Linear (exact)."""
    scale = bn_gamma / jnp.sqrt(bn_var + eps)
    return w * scale, (b - bn_mean) * scale + bn_beta


# ---------------------------------------------------------------------------
# Kernel 1: per-atom work (site-energy MLP + F->H pre-projections).
# ---------------------------------------------------------------------------
def _make_atom_kernel(n_hidden):
    def kernel(x_ref, *refs):
        esite_ref, pxi_ref, pxj_ref = refs[-3], refs[-2], refs[-1]
        params = refs[:-3]

        x = x_ref[...]                                   # (TM, F) f32
        xb = x.astype(jnp.bfloat16)

        # Site-energy MLP (BN folded into W, b); bf16 MXU operands, f32 acc.
        idx = 0
        h = x
        for _ in range(n_hidden):
            w = params[idx][...]                         # bf16 (in, out)
            b = params[idx + 1][...]                     # f32  (1, out)
            idx += 2
            h = jnp.maximum(
                jnp.dot(h.astype(jnp.bfloat16), w,
                        preferred_element_type=jnp.float32) + b, 0.0)
        w_out = params[idx][...]                         # f32 (1, H_last)
        b_out = params[idx + 1][...]                     # f32 (1, 1)
        idx += 2
        # Final Linear->1, written lane-dense as a (1, TM) row.
        esite_ref[...] = jax.lax.dot_general(
            w_out, h, (((1,), (1,)), ((), ())),
            preferred_element_type=jnp.float32) + b_out

        # Pre-projection for the split first interaction layer.
        w0_i = params[idx][...]                          # bf16 (F, H0)
        w0_j = params[idx + 1][...]                      # bf16 (F, H0)
        pxi_ref[...] = jnp.dot(xb, w0_i, preferred_element_type=jnp.float32)
        pxj_ref[...] = jnp.dot(xb, w0_j, preferred_element_type=jnp.float32)

    return kernel


# ---------------------------------------------------------------------------
# Kernel 2: per-edge work (gather + RBF*cutoff + interaction MLP).
# ---------------------------------------------------------------------------
def _make_edge_kernel(n_hidden, cutoff, tile_e):
    def kernel(e0_ref, e1_ref,                           # SMEM scalar prefetch
               d_ref, mu_ref, gamma_ref, pxi_ref, pxj_ref, *refs):
        eint_ref, g_ref = refs[-2], refs[-1]
        params = refs[:-2]

        # ---- gather: g[r] = px_i[e0[r]] + px_j[e1[r]]  (O(E*H), no one-hot)
        base = pl.program_id(0) * tile_e

        def gather(r, carry):
            i0 = e0_ref[base + r]
            i1 = e1_ref[base + r]
            g_ref[pl.ds(r, 1), :] = (pxi_ref[pl.ds(i0, 1), :]
                                     + pxj_ref[pl.ds(i1, 1), :])
            return carry

        jax.lax.fori_loop(0, tile_e, gather, 0)

        # ---- Gaussian RBF * cosine cutoff (n_rbf zero-padded to 8) --------
        d = d_ref[...]                                   # (TE, 1) f32
        mu = mu_ref[...]                                 # (1, 8)
        gamma = gamma_ref[...]                           # (1, 8)
        rbf = jnp.exp(-gamma * (d - mu) ** 2)            # (TE, 8)
        c = jnp.where(d < cutoff,
                      0.5 * (jnp.cos(jnp.pi * d / cutoff) + 1.0), 0.0)
        d_emb = rbf * c                                  # (TE, 8)

        # ---- interaction MLP, first layer split (no concat) ---------------
        w0_d = params[0][...]                            # f32 (8, H0)
        b0 = params[1][...]                              # f32 (1, H0)
        h = jnp.maximum(
            g_ref[...] + jnp.dot(d_emb, w0_d,
                                 preferred_element_type=jnp.float32) + b0,
            0.0)

        idx = 2
        for _ in range(n_hidden - 1):
            w = params[idx][...]                         # bf16
            b = params[idx + 1][...]                     # f32
            idx += 2
            h = jnp.maximum(
                jnp.dot(h.astype(jnp.bfloat16), w,
                        preferred_element_type=jnp.float32) + b, 0.0)

        w_out = params[idx][...]                         # f32 (1, H_last)
        b_out = params[idx + 1][...]                     # f32 (1, 1)
        eint_ref[...] = jax.lax.dot_general(
            w_out, h, (((1,), (1,)), ((), ())),
            preferred_element_type=jnp.float32) + b_out

    return kernel


# ---------------------------------------------------------------------------
# Wrapper.
# ---------------------------------------------------------------------------
def interaction_net_forward(x, e, d, site_params, int_params, mu, gamma,
                            *, cutoff):
    x = x.astype(jnp.float32)
    n_atoms, n_feat = x.shape
    n_edges = e.shape[1]
    n_rbf = mu.shape[-1]
    bf16 = jnp.bfloat16

    site_hidden, site_ow, site_ob = site_params
    int_hidden, int_ow, int_ob = int_params
    n_hidden = len(site_hidden)
    assert n_hidden >= 1 and len(int_hidden) == n_hidden

    # Fold eval-mode BatchNorm into the Linears (exact).
    site_fold = [_fold_bn(*layer) for layer in site_hidden]
    int_fold = [_fold_bn(*layer) for layer in int_hidden]

    # Split first interaction-layer weight: removes the concat.
    w0, b0 = int_fold[0]
    w0_i, w0_j, w0_d = w0[:n_feat], w0[n_feat:2 * n_feat], w0[2 * n_feat:]
    h0 = w0.shape[1]

    # Zero-pad n_rbf-sized tensors to the 8-sublane granule (exact).
    n_rbf_pad = _round_up(n_rbf, 8)
    pad_r = n_rbf_pad - n_rbf
    mu_p = jnp.pad(mu.reshape(1, -1).astype(jnp.float32), ((0, 0), (0, pad_r)))
    gamma_p = jnp.pad(gamma.reshape(1, -1).astype(jnp.float32),
                      ((0, 0), (0, pad_r)))
    w0_d_p = jnp.pad(w0_d.astype(jnp.float32), ((0, pad_r), (0, 0)))

    # Row padding to the tile sizes (padded rows are sliced off afterwards).
    n_pad = _round_up(n_atoms, ATOM_TILE)
    e_pad = _round_up(n_edges, EDGE_TILE)
    x_p = jnp.pad(x, ((0, n_pad - n_atoms), (0, 0)))
    d_p = jnp.pad(d.reshape(-1).astype(jnp.float32),
                  (0, e_pad - n_edges)).reshape(-1, 1)
    e0 = jnp.pad(e[0].astype(jnp.int32), (0, e_pad - n_edges))
    e1 = jnp.pad(e[1].astype(jnp.int32), (0, e_pad - n_edges))

    def _const_spec(a):            # resident block: DMA'd once, never re-fetched
        return pl.BlockSpec(a.shape, lambda i, *_: (0, 0))

    compiler_params = pltpu.CompilerParams(
        dimension_semantics=("parallel",),
        vmem_limit_bytes=_VMEM_LIMIT)

    # ------------------------------ atoms ---------------------------------
    site_args = []
    for (w, b) in site_fold:
        site_args += [w.astype(bf16), b.astype(jnp.float32)]
    site_args += [site_ow.reshape(1, -1).astype(jnp.float32),
                  site_ob.reshape(1, 1).astype(jnp.float32),
                  w0_i.astype(bf16), w0_j.astype(bf16)]

    e_site_row, px_i, px_j = pl.pallas_call(
        _make_atom_kernel(n_hidden),
        out_shape=(jax.ShapeDtypeStruct((1, n_pad), jnp.float32),
                   jax.ShapeDtypeStruct((n_pad, h0), jnp.float32),
                   jax.ShapeDtypeStruct((n_pad, h0), jnp.float32)),
        grid=(n_pad // ATOM_TILE,),
        in_specs=[pl.BlockSpec((ATOM_TILE, n_feat), lambda i: (i, 0))]
                 + [_const_spec(a) for a in site_args],
        out_specs=(pl.BlockSpec((1, ATOM_TILE), lambda i: (0, i)),
                   pl.BlockSpec((ATOM_TILE, h0), lambda i: (i, 0)),
                   pl.BlockSpec((ATOM_TILE, h0), lambda i: (i, 0))),
        compiler_params=compiler_params,
    )(x_p, *site_args)

    # ------------------------------ edges ---------------------------------
    int_args = [w0_d_p, b0.reshape(1, -1).astype(jnp.float32)]
    for (w, b) in int_fold[1:]:
        int_args += [w.astype(bf16), b.astype(jnp.float32)]
    int_args += [int_ow.reshape(1, -1).astype(jnp.float32),
                 int_ob.reshape(1, 1).astype(jnp.float32)]

    e_int_row = pl.pallas_call(
        _make_edge_kernel(n_hidden, float(cutoff), EDGE_TILE),
        out_shape=jax.ShapeDtypeStruct((1, e_pad), jnp.float32),
        grid_spec=pltpu.PrefetchScalarGridSpec(
            num_scalar_prefetch=2,
            grid=(e_pad // EDGE_TILE,),
            in_specs=[pl.BlockSpec((EDGE_TILE, 1), lambda i, *_: (i, 0)),
                      _const_spec(mu_p), _const_spec(gamma_p),
                      _const_spec(px_i), _const_spec(px_j)]
                     + [_const_spec(a) for a in int_args],
            out_specs=pl.BlockSpec((1, EDGE_TILE), lambda i, *_: (0, i)),
            scratch_shapes=[pltpu.VMEM((EDGE_TILE, h0), jnp.float32)]),
        compiler_params=compiler_params,
    )(e0, e1, d_p, mu_p, gamma_p, px_i, px_j, *int_args)

    e_site = e_site_row[0, :n_atoms].reshape(-1, 1)
    e_int = e_int_row[0, :n_edges].reshape(-1, 1)
    return e_site, e_int


# ---------------------------------------------------------------------------
# Parameter construction (deterministic, synthetic).  BN kept UNfolded here so
# that the wrapper's folding is validated against an explicit BN reference.
# ---------------------------------------------------------------------------
def init_mlp(key, input_size, hidden_layers, hidden_size, size_decay=1.0):
    sizes = [max(1, int(round(hidden_size * (size_decay ** i))))
             for i in range(hidden_layers)]
    hidden = []
    fan_in = input_size
    keys = jax.random.split(key, 5 * hidden_layers + 1)
    for i, fan_out in enumerate(sizes):
        kw, kg, kb, km, kv = keys[5 * i:5 * i + 5]
        w = (jax.random.normal(kw, (fan_in, fan_out), jnp.float32)
             / jnp.sqrt(jnp.float32(fan_in)))
        b = jnp.zeros((1, fan_out), jnp.float32)
        bn_gamma = 1.0 + 0.1 * jax.random.normal(kg, (1, fan_out), jnp.float32)
        bn_beta = 0.1 * jax.random.normal(kb, (1, fan_out), jnp.float32)
        bn_mean = 0.1 * jax.random.normal(km, (1, fan_out), jnp.float32)
        bn_var = jax.random.uniform(kv, (1, fan_out), jnp.float32, 0.5, 1.5)
        hidden.append((w, b, bn_gamma, bn_beta, bn_mean, bn_var))
        fan_in = fan_out
    out_w = (jax.random.normal(keys[-1], (fan_in, 1), jnp.float32)
             / jnp.sqrt(jnp.float32(fan_in)))
    out_b = jnp.zeros((1, 1), jnp.float32)
    return hidden, out_w, out_b


def init_radial(n_rbf, cutoff):
    mu = jnp.linspace(0.0, cutoff, n_rbf, dtype=jnp.float32).reshape(1, n_rbf)
    delta = cutoff / max(n_rbf - 1, 1)
    gamma = jnp.full((1, n_rbf), 1.0 / (2.0 * delta * delta), jnp.float32)
    return mu, gamma


# ---------------------------------------------------------------------------
# Pure-JAX reference (explicit BatchNorm, unsplit concat) for correctness.
# ---------------------------------------------------------------------------
def reference_forward(x, e, d, site_params, int_params, mu, gamma, cutoff):
    def mlp(h, params):
        hidden, ow, ob = params
        for (w, b, g, beta, mean, var) in hidden:
            y = h @ w + b
            y = (y - mean) / jnp.sqrt(var + 1e-5) * g + beta   # BN eval
            h = jnp.maximum(y, 0.0)
        return h @ ow + ob

    e_site = mlp(x, site_params)
    d_col = d.reshape(-1, 1)
    rbf = jnp.exp(-gamma * (d_col - mu) ** 2)
    c = jnp.where(d_col < cutoff,
                  0.5 * (jnp.cos(jnp.pi * d_col / cutoff) + 1.0), 0.0)
    d_emb = rbf * c
    x_int = jnp.concatenate([x[e[0]], x[e[1]], d_emb], axis=1)
    e_int = mlp(x_int, int_params)
    return e_site, e_int


if __name__ == "__main__":
    input_size = 32
    hidden_layers = 2
    hidden_size = 64
    hidden_size_decay = 1.0
    n_rbf = 6
    cutoff = 6.0
    n_atoms = 8
    n_edges = 16

    key = jax.random.PRNGKey(0)
    k_x, k_e, k_d, k_site, k_int = jax.random.split(key, 5)

    x = jax.random.normal(k_x, (n_atoms, input_size), jnp.float32)
    e = jax.random.randint(k_e, (2, n_edges), 0, n_atoms, jnp.int32)
    d = jax.random.uniform(k_d, (n_edges,), jnp.float32, 0.0, cutoff * 1.2)

    site_params = init_mlp(k_site, input_size, hidden_layers, hidden_size,
                           hidden_size_decay)
    interaction_size = input_size * 2 + n_rbf
    int_params = init_mlp(k_int, interaction_size, hidden_layers, hidden_size,
                          hidden_size_decay)
    mu, gamma = init_radial(n_rbf, cutoff)

    fwd = jax.jit(interaction_net_forward, static_argnames=("cutoff",))
    e_site, e_int = fwd(x, e, d, site_params, int_params, mu, gamma,
                        cutoff=cutoff)
    jax.block_until_ready((e_site, e_int))

    assert e_site.shape == (n_atoms, 1)
    assert e_int.shape == (n_edges, 1)

    ref_site, ref_int = reference_forward(x, e, d, site_params, int_params,
                                          mu, gamma, cutoff)
    # bf16 MXU operands with f32 accumulation -> loose-ish tolerance.
    assert jnp.allclose(e_site, ref_site, rtol=5e-2, atol=7.5e-2), (
        float(jnp.max(jnp.abs(e_site - ref_site))))
    assert jnp.allclose(e_int, ref_int, rtol=5e-2, atol=7.5e-2), (
        float(jnp.max(jnp.abs(e_int - ref_int))))

    print("KERNEL_OK")
</pallas_src>

<mosaic_0001>
module attributes {stable_mosaic.version = 11 : i64} {
  func.func @kernel(%arg0: i32, %arg1: memref<128x32xf32, #tpu.memory_space<vmem>>, %arg2: memref<32x64xbf16, #tpu.memory_space<vmem>>, %arg3: memref<1x64xf32, #tpu.memory_space<vmem>>, %arg4: memref<64x64xbf16, #tpu.memory_space<vmem>>, %arg5: memref<1x64xf32, #tpu.memory_space<vmem>>, %arg6: memref<1x64xf32, #tpu.memory_space<vmem>>, %arg7: memref<1x1xf32, #tpu.memory_space<vmem>>, %arg8: memref<32x64xbf16, #tpu.memory_space<vmem>>, %arg9: memref<32x64xbf16, #tpu.memory_space<vmem>>, %arg10: memref<1x128xf32, #tpu.memory_space<vmem>>, %arg11: memref<128x64xf32, #tpu.memory_space<vmem>>, %arg12: memref<128x64xf32, #tpu.memory_space<vmem>>) attributes {dimension_semantics = [#tpu.dimension_semantics<parallel>], iteration_bounds = array<i64: 1>, scalar_prefetch = 0 : i64, scratch_operands = 0 : i64, tpu.core_type = #tpu.core_type<tc>, window_params = [{transform_indices = @transform_0, window_bounds = array<i64: 128, 32>}, {pipeline_mode = #tpu.pipeline_mode<synchronous>, transform_indices = @transform_1, window_bounds = array<i64: 32, 64>}, {pipeline_mode = #tpu.pipeline_mode<synchronous>, transform_indices = @transform_2, window_bounds = array<i64: 1, 64>}, {pipeline_mode = #tpu.pipeline_mode<synchronous>, transform_indices = @transform_3, window_bounds = array<i64: 64, 64>}, {pipeline_mode = #tpu.pipeline_mode<synchronous>, transform_indices = @transform_4, window_bounds = array<i64: 1, 64>}, {pipeline_mode = #tpu.pipeline_mode<synchronous>, transform_indices = @transform_5, window_bounds = array<i64: 1, 64>}, {pipeline_mode = #tpu.pipeline_mode<synchronous>, transform_indices = @transform_6, window_bounds = array<i64: 1, 1>}, {pipeline_mode = #tpu.pipeline_mode<synchronous>, transform_indices = @transform_7, window_bounds = array<i64: 32, 64>}, {pipeline_mode = #tpu.pipeline_mode<synchronous>, transform_indices = @transform_8, window_bounds = array<i64: 32, 64>}, {transform_indices = @transform_9, window_bounds = array<i64: 1, 128>}, {transform_indices = @transform_10, window_bounds = array<i64: 128, 64>}, {transform_indices = @transform_11, window_bounds = array<i64: 128, 64>}]} {
    %c0 = arith.constant 0 : index
    %c0_0 = arith.constant 0 : index
    %0 = vector.load %arg1[%c0, %c0_0] : memref<128x32xf32, #tpu.memory_space<vmem>>, vector<128x32xf32>
    %1 = arith.truncf %0 : vector<128x32xf32> to vector<128x32xbf16>
    %c0_1 = arith.constant 0 : index
    %c0_2 = arith.constant 0 : index
    %2 = vector.load %arg2[%c0_1, %c0_2] : memref<32x64xbf16, #tpu.memory_space<vmem>>, vector<32x64xbf16>
    %c0_3 = arith.constant 0 : index
    %c0_4 = arith.constant 0 : index
    %3 = vector.load %arg3[%c0_3, %c0_4] : memref<1x64xf32, #tpu.memory_space<vmem>>, vector<1x64xf32>
    %4 = arith.truncf %0 : vector<128x32xf32> to vector<128x32xbf16>
    %cst = arith.constant dense<0.000000e+00> : vector<128x64xf32>
    %5 = tpu.matmul %4, %2, %cst {dimension_numbers = #tpu.dot_dimension_numbers<[1], [0], [0], [1], [0, 0, 1, 1], [], []>} : vector<128x32xbf16>, vector<32x64xbf16>, vector<128x64xf32> -> vector<128x64xf32>
    %6 = vector.broadcast %3 : vector<1x64xf32> to vector<128x64xf32>
    %7 = arith.addf %5, %6 : vector<128x64xf32>
    %cst_5 = arith.constant 0.000000e+00 : f32
    %8 = vector.broadcast %cst_5 : f32 to vector<128x64xf32>
    %9 = arith.maximumf %7, %8 : vector<128x64xf32>
    %c0_6 = arith.constant 0 : index
    %c0_7 = arith.constant 0 : index
    %10 = vector.load %arg4[%c0_6, %c0_7] : memref<64x64xbf16, #tpu.memory_space<vmem>>, vector<64x64xbf16>
    %c0_8 = arith.constant 0 : index
    %c0_9 = arith.constant 0 : index
    %11 = vector.load %arg5[%c0_8, %c0_9] : memref<1x64xf32, #tpu.memory_space<vmem>>, vector<1x64xf32>
    %12 = arith.truncf %9 : vector<128x64xf32> to vector<128x64xbf16>
    %cst_10 = arith.constant dense<0.000000e+00> : vector<128x64xf32>
    %13 = tpu.matmul %12, %10, %cst_10 {dimension_numbers = #tpu.dot_dimension_numbers<[1], [0], [0], [1], [0, 0, 1, 1], [], []>} : vector<128x64xbf16>, vector<64x64xbf16>, vector<128x64xf32> -> vector<128x64xf32>
    %14 = vector.broadcast %11 : vector<1x64xf32> to vector<128x64xf32>
    %15 = arith.addf %13, %14 : vector<128x64xf32>
    %cst_11 = arith.constant 0.000000e+00 : f32
    %16 = vector.broadcast %cst_11 : f32 to vector<128x64xf32>
    %17 = arith.maximumf %15, %16 : vector<128x64xf32>
    %c0_12 = arith.constant 0 : index
    %c0_13 = arith.constant 0 : index
    %18 = vector.load %arg6[%c0_12, %c0_13] : memref<1x64xf32, #tpu.memory_space<vmem>>, vector<1x64xf32>
    %c0_14 = arith.constant 0 : index
    %c0_15 = arith.constant 0 : index
    %19 = vector.load %arg7[%c0_14, %c0_15] : memref<1x1xf32, #tpu.memory_space<vmem>>, vector<1x1xf32>
    %cst_16 = arith.constant dense<0.000000e+00> : vector<1x128xf32>
    %20 = tpu.matmul %18, %17, %cst_16 {dimension_numbers = #tpu.dot_dimension_numbers<[1], [1], [0], [0], [0, 0, 1, 0], [], []>} : vector<1x64xf32>, vector<128x64xf32>, vector<1x128xf32> -> vector<1x128xf32>
    %21 = vector.broadcast %19 : vector<1x1xf32> to vector<1x128xf32>
    %22 = arith.addf %20, %21 : vector<1x128xf32>
    %c0_17 = arith.constant 0 : index
    %c0_18 = arith.constant 0 : index
    %23 = vector.load %arg10[%c0_17, %c0_18] : memref<1x128xf32, #tpu.memory_space<vmem>>, vector<1x128xf32>
    tpu.vector_store %arg10[%c0_17, %c0_18], %22 {strides = array<i32>} : memref<1x128xf32, #tpu.memory_space<vmem>>, vector<1x128xf32>,
    %c0_19 = arith.constant 0 : index
    %c0_20 = arith.constant 0 : index
    %24 = vector.load %arg8[%c0_19, %c0_20] : memref<32x64xbf16, #tpu.memory_space<vmem>>, vector<32x64xbf16>
    %c0_21 = arith.constant 0 : index
    %c0_22 = arith.constant 0 : index
    %25 = vector.load %arg9[%c0_21, %c0_22] : memref<32x64xbf16, #tpu.memory_space<vmem>>, vector<32x64xbf16>
    %cst_23 = arith.constant dense<0.000000e+00> : vector<128x64xf32>
    %26 = tpu.matmul %1, %24, %cst_23 {dimension_numbers = #tpu.dot_dimension_numbers<[1], [0], [0], [1], [0, 0, 1, 1], [], []>} : vector<128x32xbf16>, vector<32x64xbf16>, vector<128x64xf32> -> vector<128x64xf32>
    %c0_24 = arith.constant 0 : index
    %c0_25 = arith.constant 0 : index
    %27 = vector.load %arg11[%c0_24, %c0_25] : memref<128x64xf32, #tpu.memory_space<vmem>>, vector<128x64xf32>
    tpu.vector_store %arg11[%c0_24, %c0_25], %26 {strides = array<i32>} : memref<128x64xf32, #tpu.memory_space<vmem>>, vector<128x64xf32>,
    %cst_26 = arith.constant dense<0.000000e+00> : vector<128x64xf32>
    %28 = tpu.matmul %1, %25, %cst_26 {dimension_numbers = #tpu.dot_dimension_numbers<[1], [0], [0], [1], [0, 0, 1, 1], [], []>} : vector<128x32xbf16>, vector<32x64xbf16>, vector<128x64xf32> -> vector<128x64xf32>
    %c0_27 = arith.constant 0 : index
    %c0_28 = arith.constant 0 : index
    %29 = vector.load %arg12[%c0_27, %c0_28] : memref<128x64xf32, #tpu.memory_space<vmem>>, vector<128x64xf32>
    tpu.vector_store %arg12[%c0_27, %c0_28], %28 {strides = array<i32>} : memref<128x64xf32, #tpu.memory_space<vmem>>, vector<128x64xf32>,
    return
  }
  func.func @transform_0(%arg0: i32) -> (i32, i32) {
    %c0_i32 = arith.constant 0 : i32
    %c0_i32_0 = arith.constant 0 : i32
    return %arg0, %c0_i32 : i32, i32
  }
  func.func @transform_1(%arg0: i32) -> (i32, i32) {
    %c0_i32 = arith.constant 0 : i32
    %c0_i32_0 = arith.constant 0 : i32
    %c0_i32_1 = arith.constant 0 : i32
    return %c0_i32, %c0_i32_0 : i32, i32
  }
  func.func @transform_2(%arg0: i32) -> (i32, i32) {
    %c0_i32 = arith.constant 0 : i32
    %c0_i32_0 = arith.constant 0 : i32
    %c0_i32_1 = arith.constant 0 : i32
    return %c0_i32, %c0_i32_0 : i32, i32
  }
  func.func @transform_3(%arg0: i32) -> (i32, i32) {
    %c0_i32 = arith.constant 0 : i32
    %c0_i32_0 = arith.constant 0 : i32
    %c0_i32_1 = arith.constant 0 : i32
    return %c0_i32, %c0_i32_0 : i32, i32
  }
  func.func @transform_4(%arg0: i32) -> (i32, i32) {
    %c0_i32 = arith.constant 0 : i32
    %c0_i32_0 = arith.constant 0 : i32
    %c0_i32_1 = arith.constant 0 : i32
    return %c0_i32, %c0_i32_0 : i32, i32
  }
  func.func @transform_5(%arg0: i32) -> (i32, i32) {
    %c0_i32 = arith.constant 0 : i32
    %c0_i32_0 = arith.constant 0 : i32
    %c0_i32_1 = arith.constant 0 : i32
    return %c0_i32, %c0_i32_0 : i32, i32
  }
  func.func @transform_6(%arg0: i32) -> (i32, i32) {
    %c0_i32 = arith.constant 0 : i32
    %c0_i32_0 = arith.constant 0 : i32
    %c0_i32_1 = arith.constant 0 : i32
    return %c0_i32, %c0_i32_0 : i32, i32
  }
  func.func @transform_7(%arg0: i32) -> (i32, i32) {
    %c0_i32 = arith.constant 0 : i32
    %c0_i32_0 = arith.constant 0 : i32
    %c0_i32_1 = arith.constant 0 : i32
    return %c0_i32, %c0_i32_0 : i32, i32
  }
  func.func @transform_8(%arg0: i32) -> (i32, i32) {
    %c0_i32 = arith.constant 0 : i32
    %c0_i32_0 = arith.constant 0 : i32
    %c0_i32_1 = arith.constant 0 : i32
    return %c0_i32, %c0_i32_0 : i32, i32
  }
  func.func @transform_9(%arg0: i32) -> (i32, i32) {
    %c0_i32 = arith.constant 0 : i32
    %c0_i32_0 = arith.constant 0 : i32
    return %c0_i32, %arg0 : i32, i32
  }
  func.func @transform_10(%arg0: i32) -> (i32, i32) {
    %c0_i32 = arith.constant 0 : i32
    %c0_i32_0 = arith.constant 0 : i32
    return %arg0, %c0_i32 : i32, i32
  }
  func.func @transform_11(%arg0: i32) -> (i32, i32) {
    %c0_i32 = arith.constant 0 : i32
    %c0_i32_0 = arith.constant 0 : i32
    return %arg0, %c0_i32 : i32, i32
  }
}

module attributes {stable_mosaic.version = 11 : i64} {
  func.func @kernel(%arg0: i32, %arg1: memref<256xi32, #tpu.memory_space<smem>>, %arg2: memref<256xi32, #tpu.memory_space<smem>>, %arg3: memref<256x1xf32, #tpu.memory_space<vmem>>, %arg4: memref<1x8xf32, #tpu.memory_space<vmem>>, %arg5: memref<1x8xf32, #tpu.memory_space<vmem>>, %arg6: memref<128x64xf32, #tpu.memory_space<vmem>>, %arg7: memref<128x64xf32, #tpu.memory_space<vmem>>, %arg8: memref<8x64xf32, #tpu.memory_space<vmem>>, %arg9: memref<1x64xf32, #tpu.memory_space<vmem>>, %arg10: memref<64x64xbf16, #tpu.memory_space<vmem>>, %arg11: memref<1x64xf32, #tpu.memory_space<vmem>>, %arg12: memref<1x64xf32, #tpu.memory_space<vmem>>, %arg13: memref<1x1xf32, #tpu.memory_space<vmem>>, %arg14: memref<1x256xf32, #tpu.memory_space<vmem>>, %arg15: memref<256x64xf32, #tpu.memory_space<vmem>>) attributes {dimension_semantics = [#tpu.dimension_semantics<parallel>], iteration_bounds = array<i64: 1>, scalar_prefetch = 2 : i64, scratch_operands = 1 : i64, tpu.core_type = #tpu.core_type<tc>, window_params = [{transform_indices = @transform_0, window_bounds = array<i64: 256, 1>}, {pipeline_mode = #tpu.pipeline_mode<synchronous>, transform_indices = @transform_1, window_bounds = array<i64: 1, 8>}, {pipeline_mode = #tpu.pipeline_mode<synchronous>, transform_indices = @transform_2, window_bounds = array<i64: 1, 8>}, {pipeline_mode = #tpu.pipeline_mode<synchronous>, transform_indices = @transform_3, window_bounds = array<i64: 128, 64>}, {pipeline_mode = #tpu.pipeline_mode<synchronous>, transform_indices = @transform_4, window_bounds = array<i64: 128, 64>}, {pipeline_mode = #tpu.pipeline_mode<synchronous>, transform_indices = @transform_5, window_bounds = array<i64: 8, 64>}, {pipeline_mode = #tpu.pipeline_mode<synchronous>, transform_indices = @transform_6, window_bounds = array<i64: 1, 64>}, {pipeline_mode = #tpu.pipeline_mode<synchronous>, transform_indices = @transform_7, window_bounds = array<i64: 64, 64>}, {pipeline_mode = #tpu.pipeline_mode<synchronous>, transform_indices = @transform_8, window_bounds = array<i64: 1, 64>}, {pipeline_mode = #tpu.pipeline_mode<synchronous>, transform_indices = @transform_9, window_bounds = array<i64: 1, 64>}, {pipeline_mode = #tpu.pipeline_mode<synchronous>, transform_indices = @transform_10, window_bounds = array<i64: 1, 1>}, {transform_indices = @transform_11, window_bounds = array<i64: 1, 256>}]} {
    %c256_i32 = arith.constant 256 : i32
    %0 = arith.muli %arg0, %c256_i32 : i32
    %c0_i32 = arith.constant 0 : i32
    %c256_i32_0 = arith.constant 256 : i32
    %1 = arith.addi %c0_i32, %c256_i32_0 : i32
    %c1_i32 = arith.constant 1 : i32
    scf.for %arg16 = %c0_i32 to %1 step %c1_i32  : i32 {
      %52 = arith.addi %0, %arg16 : i32
      %53 = arith.index_cast %52 : i32 to index
      %54 = memref.load %arg1[%53] : memref<256xi32, #tpu.memory_space<smem>>
      %55 = arith.addi %0, %arg16 : i32
      %56 = arith.index_cast %55 : i32 to index
      %57 = memref.load %arg2[%56] : memref<256xi32, #tpu.memory_space<smem>>
      %58 = arith.index_cast %54 : i32 to index
      %c0_34 = arith.constant 0 : index
      %59 = vector.load %arg6[%58, %c0_34] : memref<128x64xf32, #tpu.memory_space<vmem>>, vector<1x64xf32>
      %60 = arith.index_cast %57 : i32 to index
      %c0_35 = arith.constant 0 : index
      %61 = vector.load %arg7[%60, %c0_35] : memref<128x64xf32, #tpu.memory_space<vmem>>, vector<1x64xf32>
      %62 = arith.addf %59, %61 : vector<1x64xf32>
      %63 = arith.index_cast %arg16 : i32 to index
      %c0_36 = arith.constant 0 : index
      %64 = vector.load %arg15[%63, %c0_36] : memref<256x64xf32, #tpu.memory_space<vmem>>, vector<1x64xf32>
      tpu.vector_store %arg15[%63, %c0_36], %62 {strides = array<i32>} : memref<256x64xf32, #tpu.memory_space<vmem>>, vector<1x64xf32>,
    }
    %c256_i32_1 = arith.constant 256 : i32
    %c0 = arith.constant 0 : index
    %c0_2 = arith.constant 0 : index
    %2 = vector.load %arg3[%c0, %c0_2] : memref<256x1xf32, #tpu.memory_space<vmem>>, vector<256x1xf32>
    %c0_3 = arith.constant 0 : index
    %c0_4 = arith.constant 0 : index
    %3 = vector.load %arg4[%c0_3, %c0_4] : memref<1x8xf32, #tpu.memory_space<vmem>>, vector<1x8xf32>
    %c0_5 = arith.constant 0 : index
    %c0_6 = arith.constant 0 : index
    %4 = vector.load %arg5[%c0_5, %c0_6] : memref<1x8xf32, #tpu.memory_space<vmem>>, vector<1x8xf32>
    %cst = arith.constant 0.000000e+00 : f32
    %5 = vector.broadcast %cst : f32 to vector<1x8xf32>
    %6 = arith.subf %5, %4 : vector<1x8xf32>
    %7 = vector.broadcast %2 : vector<256x1xf32> to vector<256x8xf32>
    %8 = vector.broadcast %3 : vector<1x8xf32> to vector<256x8xf32>
    %9 = arith.subf %7, %8 : vector<256x8xf32>
    %10 = arith.mulf %9, %9 : vector<256x8xf32>
    %11 = vector.broadcast %6 : vector<1x8xf32> to vector<256x8xf32>
    %12 = arith.mulf %11, %10 : vector<256x8xf32>
    %13 = math.exp %12 : vector<256x8xf32>
    %cst_7 = arith.constant 6.000000e+00 : f32
    %14 = vector.broadcast %cst_7 : f32 to vector<256x1xf32>
    %15 = arith.cmpf olt, %2, %14 : vector<256x1xf32>
    %cst_8 = arith.constant 3.14159274 : f32
    %16 = vector.broadcast %cst_8 : f32 to vector<256x1xf32>
    %17 = arith.mulf %16, %2 : vector<256x1xf32>
    %cst_9 = arith.constant 6.000000e+00 : f32
    %18 = vector.broadcast %cst_9 : f32 to vector<256x1xf32>
    %19 = arith.divf %17, %18 : vector<256x1xf32>
    %20 = math.cos %19 : vector<256x1xf32>
    %cst_10 = arith.constant 1.000000e+00 : f32
    %21 = vector.broadcast %cst_10 : f32 to vector<256x1xf32>
    %22 = arith.addf %20, %21 : vector<256x1xf32>
    %cst_11 = arith.constant 5.000000e-01 : f32
    %23 = vector.broadcast %cst_11 : f32 to vector<256x1xf32>
    %24 = arith.mulf %23, %22 : vector<256x1xf32>
    %cst_12 = arith.constant 0.000000e+00 : f32
    %25 = vector.broadcast %cst_12 : f32 to vector<256x1xf32>
    %26 = arith.select %15, %24, %25 : vector<256x1xi1>, vector<256x1xf32>
    %27 = vector.broadcast %26 : vector<256x1xf32> to vector<256x8xf32>
    %28 = arith.mulf %13, %27 : vector<256x8xf32>
    %c0_13 = arith.constant 0 : index
    %c0_14 = arith.constant 0 : index
    %29 = vector.load %arg8[%c0_13, %c0_14] : memref<8x64xf32, #tpu.memory_space<vmem>>, vector<8x64xf32>
    %c0_15 = arith.constant 0 : index
    %c0_16 = arith.constant 0 : index
    %30 = vector.load %arg9[%c0_15, %c0_16] : memref<1x64xf32, #tpu.memory_space<vmem>>, vector<1x64xf32>
    %c0_17 = arith.constant 0 : index
    %c0_18 = arith.constant 0 : index
    %31 = vector.load %arg15[%c0_17, %c0_18] : memref<256x64xf32, #tpu.memory_space<vmem>>, vector<256x64xf32>
    %cst_19 = arith.constant dense<0.000000e+00> : vector<256x64xf32>
    %32 = tpu.matmul %28, %29, %cst_19 {dimension_numbers = #tpu.dot_dimension_numbers<[1], [0], [0], [1], [0, 0, 1, 1], [], []>} : vector<256x8xf32>, vector<8x64xf32>, vector<256x64xf32> -> vector<256x64xf32>
    %33 = arith.addf %31, %32 : vector<256x64xf32>
    %34 = vector.broadcast %30 : vector<1x64xf32> to vector<256x64xf32>
    %35 = arith.addf %33, %34 : vector<256x64xf32>
    %cst_20 = arith.constant 0.000000e+00 : f32
    %36 = vector.broadcast %cst_20 : f32 to vector<256x64xf32>
    %37 = arith.maximumf %35, %36 : vector<256x64xf32>
    %c0_21 = arith.constant 0 : index
    %c0_22 = arith.constant 0 : index
    %38 = vector.load %arg10[%c0_21, %c0_22] : memref<64x64xbf16, #tpu.memory_space<vmem>>, vector<64x64xbf16>
    %c0_23 = arith.constant 0 : index
    %c0_24 = arith.constant 0 : index
    %39 = vector.load %arg11[%c0_23, %c0_24] : memref<1x64xf32, #tpu.memory_space<vmem>>, vector<1x64xf32>
    %40 = arith.truncf %37 : vector<256x64xf32> to vector<256x64xbf16>
    %cst_25 = arith.constant dense<0.000000e+00> : vector<256x64xf32>
    %41 = tpu.matmul %40, %38, %cst_25 {dimension_numbers = #tpu.dot_dimension_numbers<[1], [0], [0], [1], [0, 0, 1, 1], [], []>} : vector<256x64xbf16>, vector<64x64xbf16>, vector<256x64xf32> -> vector<256x64xf32>
    %42 = vector.broadcast %39 : vector<1x64xf32> to vector<256x64xf32>
    %43 = arith.addf %41, %42 : vector<256x64xf32>
    %cst_26 = arith.constant 0.000000e+00 : f32
    %44 = vector.broadcast %cst_26 : f32 to vector<256x64xf32>
    %45 = arith.maximumf %43, %44 : vector<256x64xf32>
    %c0_27 = arith.constant 0 : index
    %c0_28 = arith.constant 0 : index
    %46 = vector.load %arg12[%c0_27, %c0_28] : memref<1x64xf32, #tpu.memory_space<vmem>>, vector<1x64xf32>
    %c0_29 = arith.constant 0 : index
    %c0_30 = arith.constant 0 : index
    %47 = vector.load %arg13[%c0_29, %c0_30] : memref<1x1xf32, #tpu.memory_space<vmem>>, vector<1x1xf32>
    %cst_31 = arith.constant dense<0.000000e+00> : vector<1x256xf32>
    %48 = tpu.matmul %46, %45, %cst_31 {dimension_numbers = #tpu.dot_dimension_numbers<[1], [1], [0], [0], [0, 0, 1, 0], [], []>} : vector<1x64xf32>, vector<256x64xf32>, vector<1x256xf32> -> vector<1x256xf32>
    %49 = vector.broadcast %47 : vector<1x1xf32> to vector<1x256xf32>
    %50 = arith.addf %48, %49 : vector<1x256xf32>
    %c0_32 = arith.constant 0 : index
    %c0_33 = arith.constant 0 : index
    %51 = vector.load %arg14[%c0_32, %c0_33] : memref<1x256xf32, #tpu.memory_space<vmem>>, vector<1x256xf32>
    tpu.vector_store %arg14[%c0_32, %c0_33], %50 {strides = array<i32>} : memref<1x256xf32, #tpu.memory_space<vmem>>, vector<1x256xf32>,
    return
  }
  func.func @transform_0(%arg0: i32, %arg1: memref<256xi32, #tpu.memory_space<smem>>, %arg2: memref<256xi32, #tpu.memory_space<smem>>) -> (i32, i32) {
    %c0_i32 = arith.constant 0 : i32
    %c0_i32_0 = arith.constant 0 : i32
    return %arg0, %c0_i32 : i32, i32
  }
  func.func @transform_1(%arg0: i32, %arg1: memref<256xi32, #tpu.memory_space<smem>>, %arg2: memref<256xi32, #tpu.memory_space<smem>>) -> (i32, i32) {
    %c0_i32 = arith.constant 0 : i32
    %c0_i32_0 = arith.constant 0 : i32
    %c0_i32_1 = arith.constant 0 : i32
    return %c0_i32, %c0_i32_0 : i32, i32
  }
  func.func @transform_2(%arg0: i32, %arg1: memref<256xi32, #tpu.memory_space<smem>>, %arg2: memref<256xi32, #tpu.memory_space<smem>>) -> (i32, i32) {
    %c0_i32 = arith.constant 0 : i32
    %c0_i32_0 = arith.constant 0 : i32
    %c0_i32_1 = arith.constant 0 : i32
    return %c0_i32, %c0_i32_0 : i32, i32
  }
  func.func @transform_3(%arg0: i32, %arg1: memref<256xi32, #tpu.memory_space<smem>>, %arg2: memref<256xi32, #tpu.memory_space<smem>>) -> (i32, i32) {
    %c0_i32 = arith.constant 0 : i32
    %c0_i32_0 = arith.constant 0 : i32
    %c0_i32_1 = arith.constant 0 : i32
    return %c0_i32, %c0_i32_0 : i32, i32
  }
  func.func @transform_4(%arg0: i32, %arg1: memref<256xi32, #tpu.memory_space<smem>>, %arg2: memref<256xi32, #tpu.memory_space<smem>>) -> (i32, i32) {
    %c0_i32 = arith.constant 0 : i32
    %c0_i32_0 = arith.constant 0 : i32
    %c0_i32_1 = arith.constant 0 : i32
    return %c0_i32, %c0_i32_0 : i32, i32
  }
  func.func @transform_5(%arg0: i32, %arg1: memref<256xi32, #tpu.memory_space<smem>>, %arg2: memref<256xi32, #tpu.memory_space<smem>>) -> (i32, i32) {
    %c0_i32 = arith.constant 0 : i32
    %c0_i32_0 = arith.constant 0 : i32
    %c0_i32_1 = arith.constant 0 : i32
    return %c0_i32, %c0_i32_0 : i32, i32
  }
  func.func @transform_6(%arg0: i32, %arg1: memref<256xi32, #tpu.memory_space<smem>>, %arg2: memref<256xi32, #tpu.memory_space<smem>>) -> (i32, i32) {
    %c0_i32 = arith.constant 0 : i32
    %c0_i32_0 = arith.constant 0 : i32
    %c0_i32_1 = arith.constant 0 : i32
    return %c0_i32, %c0_i32_0 : i32, i32
  }
  func.func @transform_7(%arg0: i32, %arg1: memref<256xi32, #tpu.memory_space<smem>>, %arg2: memref<256xi32, #tpu.memory_space<smem>>) -> (i32, i32) {
    %c0_i32 = arith.constant 0 : i32
    %c0_i32_0 = arith.constant 0 : i32
    %c0_i32_1 = arith.constant 0 : i32
    return %c0_i32, %c0_i32_0 : i32, i32
  }
  func.func @transform_8(%arg0: i32, %arg1: memref<256xi32, #tpu.memory_space<smem>>, %arg2: memref<256xi32, #tpu.memory_space<smem>>) -> (i32, i32) {
    %c0_i32 = arith.constant 0 : i32
    %c0_i32_0 = arith.constant 0 : i32
    %c0_i32_1 = arith.constant 0 : i32
    return %c0_i32, %c0_i32_0 : i32, i32
  }
  func.func @transform_9(%arg0: i32, %arg1: memref<256xi32, #tpu.memory_space<smem>>, %arg2: memref<256xi32, #tpu.memory_space<smem>>) -> (i32, i32) {
    %c0_i32 = arith.constant 0 : i32
    %c0_i32_0 = arith.constant 0 : i32
    %c0_i32_1 = arith.constant 0 : i32
    return %c0_i32, %c0_i32_0 : i32, i32
  }
  func.func @transform_10(%arg0: i32, %arg1: memref<256xi32, #tpu.memory_space<smem>>, %arg2: memref<256xi32, #tpu.memory_space<smem>>) -> (i32, i32) {
    %c0_i32 = arith.constant 0 : i32
    %c0_i32_0 = arith.constant 0 : i32
    %c0_i32_1 = arith.constant 0 : i32
    return %c0_i32, %c0_i32_0 : i32, i32
  }
  func.func @transform_11(%arg0: i32, %arg1: memref<256xi32, #tpu.memory_space<smem>>, %arg2: memref<256xi32, #tpu.memory_space<smem>>) -> (i32, i32) {
    %c0_i32 = arith.constant 0 : i32
    %c0_i32_0 = arith.constant 0 : i32
    return %c0_i32, %arg0 : i32, i32
  }
}

</mosaic_0001>

<bundles_post_ra>
// kernel: interaction_net_forward.2
= control target key start
LH: loop header
LB: loop body
LE: loop exit
PB: predicated region body
PF: predicated region fallthrough
CT: control target
= control target key end

     0   :  { %vm85_vm0 = vcmask 261120   ;;  %vm270_vm1 = vcmask 523264   ;;  %vm1102_vm2 = vmmov 0   ;;  %s1501_s1 = inlined_call_operand.vmem [shape: bf16[32,64], index: 1, kind: input, shape index: {}]   ;;  %s1502_s0 = inlined_call_operand.vmem [shape: f32[128,32], index: 0, kind: input, shape index: {}]   ;;  %s1503_s3 = inlined_call_operand.vmem [shape: bf16[64,64], index: 3, kind: input, shape index: {}]   ;;  %s1504_s2 = inlined_call_operand.vmem [shape: f32[1,64], index: 2, kind: input, shape index: {}]   ;;  %s1505_s7 = inlined_call_operand.vmem [shape: bf16[32,64], index: 7, kind: input, shape index: {}]   ;;  %s1506_s8 = inlined_call_operand.vmem [shape: bf16[32,64], index: 8, kind: input, shape index: {}]   ;;  %s1507_s6 = inlined_call_operand.<no memory space> [shape: f32[1,1], index: 6, kind: input, shape index: {}]   ;;  %s1508_s4 = inlined_call_operand.vmem [shape: f32[1,64], index: 4, kind: input, shape index: {}]   ;;  %s1509_s5 = inlined_call_operand.vmem [shape: f32[1,64], index: 5, kind: input, shape index: {}]   ;;  %s1510_s10 = inlined_call_operand.vmem [shape: f32[128,64], index: 10, kind: output, shape index: {1}]   ;;  %s1511_s11 = inlined_call_operand.vmem [shape: f32[128,64], index: 11, kind: output, shape index: {2}]   ;;  %s1512_s9 = inlined_call_operand.vmem [shape: f32[1,128], index: 9, kind: output, shape index: {0}]  }
   0x1   :  { %v1091_v0 = vld [vmem:[%s1501_s1] sm:$0xff]   ;;  %v1092_v1 = vld [vmem:[%s1501_s1 + $0x8] sm:$0xff]   ;;  %v40_v5 = vld [vmem:[%s1502_s0 + $0x10] sm:$0xff] }
   0x2   :  { %931 = vmatprep.subr.bf16.mxu0 %v1091_v0  ;;  %v38_v2 = vld [vmem:[%s1502_s0] sm:$0xff]  ;;  %v39_v3 = vld [vmem:[%s1502_s0 + $0x8] sm:$0xff]  ;;  %v41_v6 = vld [vmem:[%s1502_s0 + $0x18] sm:$0xff] }
   0x3   :  { %932 = vmatpush3.bf16.msra.mxu0 %v1091_v0  ;;  %v1177_v4 = vpack.c.bf16 %v39_v3, %v38_v2  ;;  %v42_v7 = vld [vmem:[%s1502_s0 + $0x20] sm:$0xff]  ;;  %v43_v8 = vld [vmem:[%s1502_s0 + $0x28] sm:$0xff]  ;;  %v1193_v9 = vpack.c.bf16 %v41_v6, %v40_v5  ;;  %v44_v13 = vld [vmem:[%s1502_s0 + $0x30] sm:$0xff] }
   0x4   :  { %933 = vmatprep.subr.bf16.mxu0 %v1092_v1  ;;  %v1195_v10 = vpack.c.bf16 %v43_v8, %v42_v7  ;;  %v1093_v11 = vld [vmem:[%s1503_s3] sm:$0xff]   ;;  %v1094_v12 = vld [vmem:[%s1503_s3 + $0x8] sm:$0xff]   ;;  %v45_v14 = vld [vmem:[%s1502_s0 + $0x38] sm:$0xff] }
   0x5   :  { %935 = vmatprep.mubr.msk.bf16.mxu0 %vm85_vm0, %v1177_v4  ;;  %951 = vmatprep.subr.bf16.mxu1 %v1093_v11  ;;  %v46_v15 = vld [vmem:[%s1502_s0 + $0x40] sm:$0xff]  ;;  %v47_v16 = vld [vmem:[%s1502_s0 + $0x48] sm:$0xff]  ;;  %v1219_v17 = vpack.c.bf16 %v45_v14, %v44_v13  ;;  %v48_v19 = vld [vmem:[%s1502_s0 + $0x50] sm:$0xff] }
   0x6   :  { %952 = vmatpush3.bf16.msra.mxu1 %v1093_v11  ;;  %v1221_v18 = vpack.c.bf16 %v47_v16, %v46_v15  ;;  %v49_v20 = vld [vmem:[%s1502_s0 + $0x58] sm:$0xff]  ;;  %v50_v21 = vld [vmem:[%s1502_s0 + $0x60] sm:$0xff]  ;;  %v51_v22 = vld [vmem:[%s1502_s0 + $0x68] sm:$0xff] }
   0x7   :  { %934 = vmatpush3.bf16.msra.mxu0 %v1092_v1  ;;  %953 = vmatprep.subr.bf16.mxu1 %v1094_v12  ;;  %v1239_v23 = vpack.c.bf16 %v49_v20, %v48_v19  ;;  %v1241_v24 = vpack.c.bf16 %v51_v22, %v50_v21  ;;  %v52_v25 = vld [vmem:[%s1502_s0 + $0x70] sm:$0xff]  ;;  %v53_v26 = vld [vmem:[%s1502_s0 + $0x78] sm:$0xff]  ;;  %v811_v30 = vld [vmem:[%s1504_s2] ss:$0 sm:$0xff] }
   0x8   :  { %v1253_v27 = vpack.c.bf16 %v53_v26, %v52_v25  ;;  %v1095_v28 = vld [vmem:[%s1503_s3 + $0x10] sm:$0xff]   ;;  %v1096_v29 = vld [vmem:[%s1503_s3 + $0x18] sm:$0xff]   ;;  %vm1327_vm3 = vmpackc.low %vm270_vm1, %vm270_vm1 }
   0xa   :  { %936 = vmatmul.mubr.msk.bf16.vlgmr.msra.gmra.mrb[0].mxu0 %vm85_vm0, %v1193_v9  ;;  %954 = vmatpush3.bf16.msra.mxu1 %v1094_v12 }
   0xb   :  { %939 = vmatprep.mubr.msk.bf16.mxu0 %vm85_vm0, %v1195_v10  ;;  %955 = vmatprep.subr.bf16.mxu1 %v1095_v28 }
   0xe   :  { %956 = vmatpush3.bf16.msra.mxu1 %v1095_v28 }
   0xf   :  { %957 = vmatprep.subr.bf16.mxu1 %v1096_v29 }
  0x12   :  { %940 = vmatmul.mubr.msk.bf16.gmra.mrb[4].mxu0 %vm85_vm0, %v1219_v17  ;;  %958 = vmatpush3.bf16.msra.mxu1 %v1096_v29 }
  0x13   :  { %943 = vmatprep.mubr.msk.bf16.mxu0 %vm85_vm0, %v1221_v18 }
  0x1a   :  { %944 = vmatmul.mubr.msk.bf16.gmra.mrb[8].mxu0 %vm85_vm0, %v1239_v23 }
  0x1b   :  { %947 = vmatprep.mubr.msk.bf16.mxu0 %vm85_vm0, %v1241_v24 }
  0x22   :  { %948 = vmatmul.mubr.msk.bf16.gmra.mrb[12].mxu0 %vm85_vm0, %v1253_v27 }
  0xdd   :  { %v937_v31 = vpop.f32.mrb[0].mxu0 }
  0xde   :  { %v153_v32 = vadd.f32 %v937_v31, %v811_v30  ;;  %v144_v33 = vpop.f32.mrb[1].mxu0 }
  0xdf   :  { %v145_v34 = vadd.f32 %v811_v30, %v144_v33  ;;  %v938_v35 = vpop.f32.mrb[2].mxu0  ;;  %v1097_v33 = vld [vmem:[%s1505_s7] sm:$0xff]  }
  0xe0   :  { %v156_v36 = vadd.f32 %v938_v35, %v811_v30  ;;  %v147_v37 = vpop.f32.mrb[3].mxu0  ;;  %v209_v39 = vmax.f32 %v153_v32, 0.0  ;;  %v1101_v32 = vmov 0.0|0.0   ;;  %1010 = vmatprep.subr.bf16.mxu1 %v1097_v33  ;;  %v1309_v35 = vld [vmem:[%s1506_s8 + $0x8] sm:$0xff]  }
  0xe1   :  { %v148_v38 = vadd.f32 %v811_v30, %v147_v37  ;;  %v207_v41 = vmax.f32 %v145_v34, 0.0  ;;  %1050 = vmatprep.subr.bf16.mxu0 %v1101_v32  ;;  %v1294_v34 = vld [vmem:[%s1506_s8] sm:$0xff]   ;;  %v17_v37 = vstv %s1507_s6 }
  0xe2   :  { %v210_v40 = vmax.f32 %v156_v36, 0.0  ;;  %v1103_v36 = vmov 0.0   ;;  %18 = vst [vmem:[#allocation2] sm:$0x1] %v17_v37 }
  0xe3   :  { %v208_v42 = vmax.f32 %v148_v38, 0.0  ;;  %1007 = vmatprep.mubr.msk.f32.mxu0 %vm1102_vm2, %v1103_v36 }
  0xe4   :  { %v233_v43 = vpack.c.bf16 %v210_v40, %v209_v39 }
  0xe5   :  { %v941_v44 = vpop.f32.mrb[4].mxu0  ;;  %v232_v45 = vpack.c.bf16 %v208_v42, %v207_v41 }
  0xe6   :  { %v169_v46 = vadd.f32 %v941_v44, %v811_v30  ;;  %v160_v47 = vpop.f32.mrb[5].mxu0 }
  0xe7   :  { %v161_v48 = vadd.f32 %v811_v30, %v160_v47  ;;  %959 = vmatprep.mubr.msk.bf16.mxu1 %vm270_vm1, %v232_v45  ;;  %v942_v49 = vpop.f32.mrb[6].mxu0 }
  0xe8   :  { %v213_v50 = vmax.f32 %v169_v46, 0.0  ;;  %v172_v51 = vadd.f32 %v942_v49, %v811_v30  ;;  %960 = vmatmul.mubr.msk.bf16.vlgmr.msra.gmra.mrb[0].mxu1 %vm270_vm1, %v233_v43  ;;  %v163_v52 = vpop.f32.mrb[7].mxu0 }
  0xe9   :  { %v211_v53 = vmax.f32 %v161_v48, 0.0  ;;  %v164_v54 = vadd.f32 %v811_v30, %v163_v52  ;;  %1011 = vmatpush3.bf16.msra.mxu1 %v1097_v33  ;;  %v409_v38 = vld [vmem:[#allocation2] sm:$0x1] }
  0xea   :  { %v214_v55 = vmax.f32 %v172_v51, 0.0 }
  0xeb   :  { %v212_v56 = vmax.f32 %v164_v54, 0.0 }
  0xec   :  { %v235_v57 = vpack.c.bf16 %v214_v55, %v213_v50 }
  0xed   :  { %v234_v58 = vpack.c.bf16 %v212_v56, %v211_v53  ;;  %v945_v59 = vpop.f32.mrb[8].mxu0 }
  0xee   :  { %v185_v60 = vadd.f32 %v945_v59, %v811_v30  ;;  %v176_v61 = vpop.f32.mrb[9].mxu0 }
  0xef   :  { %963 = vmatprep.mubr.msk.bf16.mxu1 %vm270_vm1, %v234_v58  ;;  %v177_v62 = vadd.f32 %v811_v30, %v176_v61  ;;  %v946_v63 = vpop.f32.mrb[10].mxu0 }
  0xf0   :  { %964 = vmatmul.mubr.msk.bf16.gmra.mrb[4].mxu1 %vm270_vm1, %v235_v57  ;;  %v217_v0 = vmax.f32 %v185_v60, 0.0  ;;  %v188_v1 = vadd.f32 %v946_v63, %v811_v30  ;;  %v179_v2 = vpop.f32.mrb[11].mxu0 }
  0xf1   :  { %v215_v3 = vmax.f32 %v177_v62, 0.0  ;;  %v180_v5 = vadd.f32 %v811_v30, %v179_v2 }
  0xf2   :  { %v218_v6 = vmax.f32 %v188_v1, 0.0 }
  0xf3   :  { %v216_v7 = vmax.f32 %v180_v5, 0.0 }
  0xf4   :  { %v237_v8 = vpack.c.bf16 %v218_v6, %v217_v0 }
  0xf5   :  { %v236_v11 = vpack.c.bf16 %v216_v7, %v215_v3  ;;  %v949_v12 = vpop.f32.mrb[12].mxu0 }
  0xf6   :  { %v201_v13 = vadd.f32 %v949_v12, %v811_v30  ;;  %v192_v14 = vpop.f32.mrb[13].mxu0 }
  0xf7   :  { %967 = vmatprep.mubr.msk.bf16.mxu1 %vm270_vm1, %v236_v11  ;;  %v193_v15 = vadd.f32 %v811_v30, %v192_v14  ;;  %v950_v16 = vpop.f32.mrb[14].mxu0 }
  0xf8   :  { %968 = vmatmul.mubr.msk.bf16.gmra.mrb[8].mxu1 %vm270_vm1, %v237_v8  ;;  %v221_v19 = vmax.f32 %v201_v13, 0.0  ;;  %v204_v20 = vadd.f32 %v950_v16, %v811_v30  ;;  %v195_v21 = vpop.f32.mrb[15].mxu0 }
  0xf9   :  { %v219_v22 = vmax.f32 %v193_v15, 0.0  ;;  %v196_v25 = vadd.f32 %v811_v30, %v195_v21  ;;  %v1098_v30 = vld [vmem:[%s1505_s7 + $0x8] sm:$0xff]  }
  0xfa   :  { %v222_v26 = vmax.f32 %v204_v20, 0.0  ;;  %1012 = vmatprep.subr.bf16.mxu1 %v1098_v30 }
  0xfb   :  { %v220_v28 = vmax.f32 %v196_v25, 0.0  ;;  %1013 = vmatpush3.bf16.msra.mxu1 %v1098_v30 }
  0xfc   :  { %v239_v29 = vpack.c.bf16 %v222_v26, %v221_v19  ;;  %1082 = vmatprep.subr.bf16.mxu1 %v1294_v34 }
  0xfd   :  { %v238_v31 = vpack.c.bf16 %v220_v28, %v219_v22 }
  0xff   :  { %971 = vmatprep.mubr.msk.bf16.mxu1 %vm270_vm1, %v238_v31 }
 0x100   :  { %972 = vmatmul.mubr.msk.bf16.gmra.mrb[12].mxu1 %vm270_vm1, %v239_v29 }
 0x101   :  { %1014 = vmatprep.mubr.msk.bf16.mxu1 %vm85_vm0, %v1177_v4 }
 0x108   :  { %1015 = vmatmul.mubr.msk.bf16.vlgmr.msra.gmra.mrb[16].mxu1 %vm85_vm0, %v1193_v9 }
 0x109   :  { %1018 = vmatprep.mubr.msk.bf16.mxu1 %vm85_vm0, %v1195_v10  ;;  %1084 = vmatpush3.bf16.msra.mxu1 %v1294_v34 }
 0x10a   :  { %1083 = vmatprep.subr.bf16.mxu1 %v1309_v35 }
 0x10d   :  { %1085 = vmatpush3.bf16.msra.mxu1 %v1309_v35 }
 0x110   :  { %1019 = vmatmul.mubr.msk.bf16.gmra.mrb[20].mxu1 %vm85_vm0, %v1219_v17 }
 0x111   :  { %1022 = vmatprep.mubr.msk.bf16.mxu1 %vm85_vm0, %v1221_v18 }
 0x118   :  { %1023 = vmatmul.mubr.msk.bf16.gmra.mrb[24].mxu1 %vm85_vm0, %v1239_v23 }
 0x119   :  { %1026 = vmatprep.mubr.msk.bf16.mxu1 %vm85_vm0, %v1241_v24 }
 0x120   :  { %1027 = vmatmul.mubr.msk.bf16.gmra.mrb[28].mxu1 %vm85_vm0, %v1253_v27 }
 0x121   :  { %1042 = vmatprep.mubr.msk.bf16.mxu1 %vm85_vm0, %v1221_v18  ;;  %v1104_v18 = vmov 0  }
 0x122   :  { %1090 = vset.pattern.permute.xlu0 %v1104_v18 }
 0x123   :  { %412 = vperm.xlu0 %1090, %v409_v38  }
 0x128   :  { %1043 = vmatmul.mubr.msk.bf16.vlgmr.msra.gmra.mrb[32].mxu1 %vm85_vm0, %v1239_v23  ;;  %v822_v23 = vld [vmem:[%s1508_s4] ss:$0 sm:$0xff] }
 0x129   :  { %1046 = vmatprep.mubr.msk.bf16.mxu1 %vm85_vm0, %v1241_v24 }
 0x130   :  { %1047 = vmatmul.mubr.msk.bf16.gmra.mrb[36].mxu1 %vm85_vm0, %v1253_v27 }
 0x1bb   :  { %v961_v24 = vpop.f32.mrb[0].mxu1 }
 0x1bc   :  { %v338_v39 = vadd.f32 %v961_v24, %v822_v23  ;;  %v329_v40 = vpop.f32.mrb[1].mxu1 }
 0x1bd   :  { %v330_v41 = vadd.f32 %v822_v23, %v329_v40  ;;  %v962_v42 = vpop.f32.mrb[2].mxu1 }
 0x1be   :  { %v341_v43 = vadd.f32 %v962_v42, %v822_v23  ;;  %v332_v27 = vpop.f32.mrb[3].mxu1  ;;  %v394_v45 = vmax.f32 %v338_v39, 0.0 }
 0x1bf   :  { %v333_v44 = vadd.f32 %v822_v23, %v332_v27  ;;  %v392_v47 = vmax.f32 %v330_v41, 0.0 }
 0x1c0   :  { %v395_v46 = vmax.f32 %v341_v43, 0.0 }
 0x1c1   :  { %v393_v48 = vmax.f32 %v333_v44, 0.0 }
 0x1c2   :  { %v1055_v49 = vpack.c.bf16 %v395_v46, %v394_v45 }
 0x1c3   :  { %v1051_v51 = vpack.c.bf16 %v393_v48, %v392_v47  ;;  %v965_v52 = vpop.f32.mrb[4].mxu1 }
 0x1c4   :  { %v354_v53 = vadd.f32 %v965_v52, %v822_v23  ;;  %v345_v54 = vpop.f32.mrb[5].mxu1 }
 0x1c5   :  { %v346_v55 = vadd.f32 %v822_v23, %v345_v54  ;;  %1053 = vmatpush3.bf16.xpose.msk.msra.mxu0 %vm1327_vm3, %v1051_v51  ;;  %v966_v56 = vpop.f32.mrb[6].mxu1 }
 0x1c6   :  { %v398_v57 = vmax.f32 %v354_v53, 0.0  ;;  %v357_v58 = vadd.f32 %v966_v56, %v822_v23  ;;  %v348_v59 = vpop.f32.mrb[7].mxu1  ;;  %1054 = vmatprep.subr.bf16.mxu0 %v1101_v32 }
 0x1c7   :  { %v396_v60 = vmax.f32 %v346_v55, 0.0  ;;  %v349_v61 = vadd.f32 %v822_v23, %v348_v59  ;;  %v415_v55 = vlaneseq }
 0x1c8   :  { %v399_v62 = vmax.f32 %v357_v58, 0.0  ;;  %v413_v58 = vpop.permute.xlu0 %412 }
 0x1c9   :  { %v397_v63 = vmax.f32 %v349_v61, 0.0  ;;  %v416_v56 = vshrl.u32 %v415_v55, 7 }
 0x1ca   :  { %v1063_v0 = vpack.c.bf16 %v399_v62, %v398_v57 }
 0x1cb   :  { %v1059_v1 = vpack.c.bf16 %v397_v63, %v396_v60  ;;  %v969_v2 = vpop.f32.mrb[8].mxu1  ;;  %v417_v57 = vsub.s32 0, %v416_v56 }
 0x1cc   :  { %v370_v3 = vadd.f32 %v969_v2, %v822_v23  ;;  %v361_v5 = vpop.f32.mrb[9].mxu1 }
 0x1cd   :  { %1057 = vmatpush3.bf16.xpose.msk.msra.mxu0 %vm1327_vm3, %v1055_v49  ;;  %v362_v6 = vadd.f32 %v822_v23, %v361_v5  ;;  %v970_v7 = vpop.f32.mrb[10].mxu1  ;;  %v418_v59 = vrot.slane %v413_v58, %v417_v57 }
 0x1ce   :  { %v402_v8 = vmax.f32 %v370_v3, 0.0  ;;  %1058 = vmatprep.subr.bf16.mxu0 %v1101_v32  ;;  %v373_v11 = vadd.f32 %v970_v7, %v822_v23  ;;  %v364_v12 = vpop.f32.mrb[11].mxu1 }
 0x1cf   :  { %v400_v13 = vmax.f32 %v362_v6, 0.0  ;;  %v365_v14 = vadd.f32 %v822_v23, %v364_v12 }
 0x1d0   :  { %v403_v15 = vmax.f32 %v373_v11, 0.0 }
 0x1d1   :  { %v401_v16 = vmax.f32 %v365_v14, 0.0 }
 0x1d2   :  { %v1071_v19 = vpack.c.bf16 %v403_v15, %v402_v8 }
 0x1d3   :  { %v1067_v20 = vpack.c.bf16 %v401_v16, %v400_v13  ;;  %v973_v21 = vpop.f32.mrb[12].mxu1 }
 0x1d4   :  { %v386_v22 = vadd.f32 %v973_v21, %v822_v23  ;;  %v377_v25 = vpop.f32.mrb[13].mxu1 }
 0x1d5   :  { %1061 = vmatpush3.bf16.xpose.msk.msra.mxu0 %vm1327_vm3, %v1059_v1  ;;  %v378_v26 = vadd.f32 %v822_v23, %v377_v25  ;;  %v974_v28 = vpop.f32.mrb[14].mxu1 }
 0x1d6   :  { %1062 = vmatprep.subr.bf16.mxu0 %v1101_v32  ;;  %v406_v29 = vmax.f32 %v386_v22, 0.0  ;;  %v389_v31 = vadd.f32 %v974_v28, %v822_v23  ;;  %v380_v33 = vpop.f32.mrb[15].mxu1 }
 0x1d7   :  { %v404_v30 = vmax.f32 %v378_v26, 0.0  ;;  %v381_v36 = vadd.f32 %v822_v23, %v380_v33  ;;  %v408_v23 = vld [vmem:[%s1509_s5] sm:$0x1] }
 0x1d8   :  { %v407_v18 = vmax.f32 %v389_v31, 0.0 }
 0x1d9   :  { %v405_v37 = vmax.f32 %v381_v36, 0.0 }
 0x1da   :  { %v1079_v38 = vpack.c.bf16 %v407_v18, %v406_v29 }
 0x1db   :  { %v1075_v24 = vpack.c.bf16 %v405_v37, %v404_v30 }
 0x1dd   :  { %1065 = vmatpush3.bf16.xpose.msk.msra.mxu0 %vm1327_vm3, %v1063_v0 }
 0x1de   :  { %1066 = vmatprep.subr.bf16.mxu0 %v1101_v32 }
 0x1e5   :  { %1069 = vmatpush3.bf16.xpose.msk.msra.mxu0 %vm1327_vm3, %v1067_v20 }
 0x1e6   :  { %1070 = vmatprep.subr.bf16.mxu0 %v1101_v32 }
 0x1ed   :  { %1073 = vmatpush3.bf16.xpose.msk.msra.mxu0 %vm1327_vm3, %v1071_v19 }
 0x1ee   :  { %1074 = vmatprep.subr.bf16.mxu0 %v1101_v32 }
 0x1f5   :  { %1077 = vmatpush3.bf16.xpose.msk.msra.mxu0 %vm1327_vm3, %v1075_v24 }
 0x1f6   :  { %1078 = vmatprep.subr.bf16.mxu0 %v1101_v32  ;;  %v1016_v32 = vpop.f32.mrb[16].mxu1 }
 0x1f7   :  { %660 = vst.msk [vmem:[%s1510_s10 + $0x10] sm:$0xff] %vm270_vm1, %v1016_v32 }
 0x1fd   :  { %1081 = vmatpush3.bf16.xpose.msk.msra.mxu0 %vm1327_vm3, %v1079_v38 }
 0x1fe   :  { %1030 = vmatprep.subr.bf16.mxu0 %v1294_v34 }
 0x204   :  { %1008 = vmatmul.mubr.msk.f32.vlgmr.msra.gmra.mrb[16].mxu0 %vm270_vm1, %v408_v23 }
 0x205   :  { %1031 = vmatpush3.bf16.msra.mxu0 %v1294_v34  ;;  %1034 = vmatprep.mubr.msk.bf16.mxu0 %vm85_vm0, %v1177_v4  ;;  %v595_v4 = vpop.f32.mrb[17].mxu1 }
 0x206   :  { %1032 = vmatprep.subr.bf16.mxu0 %v1309_v35  ;;  %658 = vst.msk [vmem:[%s1510_s10] sm:$0xff] %vm270_vm1, %v595_v4  ;;  %v1017_v34 = vpop.f32.mrb[18].mxu1 }
 0x207   :  { %661 = vst.msk [vmem:[%s1510_s10 + $0x18] sm:$0xff] %vm270_vm1, %v1017_v34 }
 0x209   :  { %1033 = vmatpush3.bf16.msra.mxu0 %v1309_v35 }
 0x20c   :  { %1035 = vmatmul.mubr.msk.bf16.vlgmr.msra.gmra.mrb[20].mxu0 %vm85_vm0, %v1193_v9  ;;  %v598_v9 = vpop.f32.mrb[19].mxu1 }
 0x20d   :  { %1038 = vmatprep.mubr.msk.bf16.mxu0 %vm85_vm0, %v1195_v10  ;;  %659 = vst.msk [vmem:[%s1510_s10 + $0x8] sm:$0xff] %vm270_vm1, %v598_v9  ;;  %v1020_v10 = vpop.f32.mrb[20].mxu1 }
 0x20e   :  { %664 = vst.msk [vmem:[%s1510_s10 + $0x30] sm:$0xff] %vm270_vm1, %v1020_v10 }
 0x214   :  { %1039 = vmatmul.mubr.msk.bf16.gmra.mrb[24].mxu0 %vm85_vm0, %v1219_v17  ;;  %v611_v17 = vpop.f32.mrb[21].mxu1 }
 0x215   :  { %662 = vst.msk [vmem:[%s1510_s10 + $0x20] sm:$0xff] %vm270_vm1, %v611_v17  ;;  %v1021_v35 = vpop.f32.mrb[22].mxu1 }
 0x216   :  { %665 = vst.msk [vmem:[%s1510_s10 + $0x38] sm:$0xff] %vm270_vm1, %v1021_v35  ;;  %v614_v39 = vpop.f32.mrb[23].mxu1 }
 0x217   :  { %663 = vst.msk [vmem:[%s1510_s10 + $0x28] sm:$0xff] %vm270_vm1, %v614_v39  ;;  %v1024_v40 = vpop.f32.mrb[24].mxu1 }
 0x218   :  { %668 = vst.msk [vmem:[%s1510_s10 + $0x50] sm:$0xff] %vm270_vm1, %v1024_v40  ;;  %v627_v41 = vpop.f32.mrb[25].mxu1 }
 0x219   :  { %666 = vst.msk [vmem:[%s1510_s10 + $0x40] sm:$0xff] %vm270_vm1, %v627_v41  ;;  %v1025_v42 = vpop.f32.mrb[26].mxu1 }
 0x21a   :  { %669 = vst.msk [vmem:[%s1510_s10 + $0x58] sm:$0xff] %vm270_vm1, %v1025_v42  ;;  %v630_v43 = vpop.f32.mrb[27].mxu1 }
 0x21b   :  { %667 = vst.msk [vmem:[%s1510_s10 + $0x48] sm:$0xff] %vm270_vm1, %v630_v43  ;;  %v1028_v27 = vpop.f32.mrb[28].mxu1 }
 0x21c   :  { %672 = vst.msk [vmem:[%s1510_s10 + $0x70] sm:$0xff] %vm270_vm1, %v1028_v27  ;;  %v643_v44 = vpop.f32.mrb[29].mxu1 }
 0x21d   :  { %670 = vst.msk [vmem:[%s1510_s10 + $0x60] sm:$0xff] %vm270_vm1, %v643_v44  ;;  %v1029_v45 = vpop.f32.mrb[30].mxu1 }
 0x21e   :  { %673 = vst.msk [vmem:[%s1510_s10 + $0x78] sm:$0xff] %vm270_vm1, %v1029_v45  ;;  %v646_v46 = vpop.f32.mrb[31].mxu1 }
 0x21f   :  { %671 = vst.msk [vmem:[%s1510_s10 + $0x68] sm:$0xff] %vm270_vm1, %v646_v46  ;;  %v1044_v47 = vpop.f32.mrb[32].mxu1 }
 0x220   :  { %793 = vst.msk [vmem:[%s1511_s11 + $0x50] sm:$0xff] %vm270_vm1, %v1044_v47  ;;  %v752_v48 = vpop.f32.mrb[33].mxu1 }
 0x221   :  { %791 = vst.msk [vmem:[%s1511_s11 + $0x40] sm:$0xff] %vm270_vm1, %v752_v48  ;;  %v1045_v49 = vpop.f32.mrb[34].mxu1 }
 0x222   :  { %794 = vst.msk [vmem:[%s1511_s11 + $0x58] sm:$0xff] %vm270_vm1, %v1045_v49  ;;  %v755_v50 = vpop.f32.mrb[35].mxu1 }
 0x223   :  { %792 = vst.msk [vmem:[%s1511_s11 + $0x48] sm:$0xff] %vm270_vm1, %v755_v50  ;;  %v1048_v51 = vpop.f32.mrb[36].mxu1 }
 0x224   :  { %797 = vst.msk [vmem:[%s1511_s11 + $0x70] sm:$0xff] %vm270_vm1, %v1048_v51  ;;  %v768_v52 = vpop.f32.mrb[37].mxu1 }
 0x225   :  { %795 = vst.msk [vmem:[%s1511_s11 + $0x60] sm:$0xff] %vm270_vm1, %v768_v52  ;;  %v1049_v53 = vpop.f32.mrb[38].mxu1 }
 0x226   :  { %798 = vst.msk [vmem:[%s1511_s11 + $0x78] sm:$0xff] %vm270_vm1, %v1049_v53  ;;  %v771_v54 = vpop.f32.mrb[39].mxu1 }
 0x227   :  { %796 = vst.msk [vmem:[%s1511_s11 + $0x68] sm:$0xff] %vm270_vm1, %v771_v54 }
 0x2d7   :  { %v536_v60 = vpop.f32.mrb[16].mxu0 }
 0x2d8   :  { %v537_v61 = vadd.f32 %v536_v60, %v418_v59  ;;  %v1009_v62 = vpop.f32.mrb[17].mxu0 }
 0x2da   :  { %540 = vst [vmem:[%s1512_s9] sm:$0x1] %v537_v61 }
 0x2df   :  { %v1036_v63 = vpop.f32.mrb[20].mxu0 }
 0x2e0   :  { %785 = vst.msk [vmem:[%s1511_s11 + $0x10] sm:$0xff] %vm270_vm1, %v1036_v63  ;;  %v720_v0 = vpop.f32.mrb[21].mxu0 }
 0x2e1   :  { %783 = vst.msk [vmem:[%s1511_s11] sm:$0xff] %vm270_vm1, %v720_v0  ;;  %v1037_v1 = vpop.f32.mrb[22].mxu0 }
 0x2e2   :  { %786 = vst.msk [vmem:[%s1511_s11 + $0x18] sm:$0xff] %vm270_vm1, %v1037_v1  ;;  %v723_v2 = vpop.f32.mrb[23].mxu0 }
 0x2e3   :  { %784 = vst.msk [vmem:[%s1511_s11 + $0x8] sm:$0xff] %vm270_vm1, %v723_v2 }
 0x2e7   :  { %v1040_v3 = vpop.f32.mrb[24].mxu0 }
 0x2e8   :  { %789 = vst.msk [vmem:[%s1511_s11 + $0x30] sm:$0xff] %vm270_vm1, %v1040_v3  ;;  %v736_v5 = vpop.f32.mrb[25].mxu0 }
 0x2e9   :  { %787 = vst.msk [vmem:[%s1511_s11 + $0x20] sm:$0xff] %vm270_vm1, %v736_v5  ;;  %v1041_v6 = vpop.f32.mrb[26].mxu0 }
 0x2ea   :  { %790 = vst.msk [vmem:[%s1511_s11 + $0x38] sm:$0xff] %vm270_vm1, %v1041_v6  ;;  %v739_v7 = vpop.f32.mrb[27].mxu0 }
 0x2eb   :  { %788 = vst.msk [vmem:[%s1511_s11 + $0x28] sm:$0xff] %vm270_vm1, %v739_v7 }

// kernel: interaction_net_forward.3
= control target key start
LH: loop header
LB: loop body
LE: loop exit
PB: predicated region body
PF: predicated region fallthrough
CT: control target
= control target key end

     0   :  { %s10775_s0 = inlined_call_operand.vmem [shape: s32[256], index: 0, kind: input, shape index: {}]   ;;  %s10776_s2 = inlined_call_operand.vmem [shape: f32[256,1], index: 2, kind: input, shape index: {}]   ;;  %s10777_s3 = inlined_call_operand.vmem [shape: f32[1,8], index: 3, kind: input, shape index: {}]   ;;  %s10778_s4 = inlined_call_operand.vmem [shape: f32[1,8], index: 4, kind: input, shape index: {}]   ;;  %s10779_s5 = inlined_call_operand.vmem [shape: f32[128,64], index: 5, kind: input, shape index: {}]   ;;  %s10780_s6 = inlined_call_operand.vmem [shape: f32[128,64], index: 6, kind: input, shape index: {}]   ;;  %s10781_s7 = inlined_call_operand.vmem [shape: f32[8,64], index: 7, kind: input, shape index: {}]   ;;  %s10782_s8 = inlined_call_operand.vmem [shape: f32[1,64], index: 8, kind: input, shape index: {}]   ;;  %s10783_s9 = inlined_call_operand.vmem [shape: bf16[64,64], index: 9, kind: input, shape index: {}]   ;;  %s10784_s10 = inlined_call_operand.vmem [shape: f32[1,64], index: 10, kind: input, shape index: {}]   ;;  %s10785_s11 = inlined_call_operand.vmem [shape: f32[1,64], index: 11, kind: input, shape index: {}]   ;;  %s10786_s13 = inlined_call_operand.vmem [shape: f32[1,256], index: 13, kind: output, shape index: {}]   ;;  %s10787_s1 = inlined_call_operand.vmem [shape: s32[256], index: 1, kind: input, shape index: {}]   ;;  %s10788_s12 = inlined_call_operand.<no memory space> [shape: f32[1,1], index: 12, kind: input, shape index: {}]  }
   0x1   :  { %s18_s27 = sshll.u32 %s10775_s0, 4  ;;  %s22_s30 = sshll.u32 %s10787_s1, 4  ;;  %v26_v0 = vstv %s10788_s12  ;;  %s19_s27 = int_to_ptr.vmem [resolvable:$true] %s18_s27  ;;  %s23_s30 = int_to_ptr.vmem [resolvable:$true] %s22_s30 }
   0x2   :  { %27 = vst [vmem:[#allocation6] sm:$0x1] %v26_v0  ;;  %s5909_s16 = scalar_lea.vmem %s19_s27, 32  ;;  %p5914_p1 = scmp.lt.s32.totalorder %s19_s27, %s19_s27 }
   0x3   :  { %p5910_p0 = scmp.ne.s32.totalorder %s19_s27, %s5909_s16  ;;  %p5915_p2 = scmp.lt.s32.totalorder %s5909_s16, %s5909_s16 }
   0x5   :  { %p5916_p3 = por %p5915_p2, %p5914_p1 }
   0x7   :  { %p5917_p4 = pnand %p5916_p3, %p5910_p0 }
   0x9   :  { %5920 = shalt.err (!%p5917_p4)  }
   0xa   :  { %s5943_s17 = smov [#allocation4]   ;;  %s5921_s0 = scalar_lea.vmem %s23_s30, 32 }
   0xb   :  { %21 = dma.vmem_to_smem %s19_s27, 32, %s5943_s17, [#allocation3] }
   0xc   :  { %p5922_p5 = scmp.ne.s32.totalorder %s23_s30, %s5921_s0  ;;  %p5926_p6 = scmp.lt.s32.totalorder %s23_s30, %s23_s30 }
   0xd   :  { %p5927_p7 = scmp.lt.s32.totalorder %s5921_s0, %s5921_s0 }
   0xf   :  { %p5928_p8 = por %p5927_p7, %p5926_p6 }
  0x11   :  { %p5929_p9 = pnand %p5928_p8, %p5922_p5 }
  0x13   :  { %5932 = shalt.err (!%p5929_p9)  }
  0x14   :  { %s5944_s1 = smov [#allocation5]  }
  0x15   :  { %25 = dma.vmem_to_smem %s23_s30, 32, %s5944_s1, [#allocation3] }
  0x16   :  { %5937 = dma.done.wait [#allocation3], 64 }
  0x17   :  { %5938 = vsyncadd [#allocation3], 4294967232 }
  0x18   :  { %29 = sfence }
  0x19   :  { %s5939_s12 = smov 0  }
  0x1a LB: > { %s61_s18 = sld [smem:[#allocation4 + %s5941_s12]]  ;;  %vm69_vm0 = vcmask 516096   ;;  %s68_s26 = scalar_lea.vmem [#allocation2], %s5941_s12  ;;  %s5941_s12 = sphi %s5939_s12, %s59_s12  }
  0x1b   : > { %s62_s19 = sld [smem:[#allocation5 + %s5941_s12]]  ;;  %s59_s12 = sadd.s32 1, %s5941_s12  }
  0x1c   : > { %p56_p10 = scmp.ge.s32.totalorder %s59_s12, 256  }
  0x1d   :  { %v73_v4 = vld [vmem:[%s10776_s2 + $0x10] sm:$0xff] (%p56_p10)  ;;  %v5945_v5 = vmov (%p56_p10), 0   ;;  %v74_v6 = vld [vmem:[%s10776_s2 + $0x18] sm:$0xff] (%p56_p10)  ;;  %v76_v9 = vld [vmem:[%s10776_s2 + $0x28] sm:$0xff] (%p56_p10) }
  0x1e   :  { %5678 = vset.pattern.permute.xlu1 (%p56_p10), %v5945_v5  ;;  %5677 = vset.pattern.permute.xlu0 (%p56_p10), %v5945_v5  ;;  %v472_v7 = vmul.f32 (%p56_p10), 3.1415927, %v73_v4  ;;  %v473_v8 = vmul.f32 (%p56_p10), 3.1415927, %v74_v6  ;;  %v475_v10 = vmul.f32 (%p56_p10), 3.1415927, %v76_v9 }
  0x1f   :  { %58 = sbr.rel (!%p56_p10) target bundleno = 26 (0x1a), region = 74  ;;  %118 = vperm.xlu1 (%p56_p10), %5678, %v73_v4   ;;  %v78_v13 = vld [vmem:[%s10776_s2 + $0x38] sm:$0xff] (%p56_p10)  ;;  %v6057_v14 = vld [vmem:[%s10776_s2] sm:$0xff] (%p56_p10)  ;;  %v80_v18 = vld [vmem:[%s10776_s2 + $0x48] sm:$0xff] (%p56_p10) }
  0x20   : > { %s63_s22 = scalar_lea.vmem %s10779_s5, %s61_s18  ;;  %v6047_v11 = vmul.f32 (%p56_p10), 0.16666667, %v472_v7  ;;  %v6049_v12 = vmul.f32 (%p56_p10), 0.16666667, %v473_v8  ;;  %v6059_v15 = vmul.f32 (%p56_p10), 0.16666667, %v475_v10  ;;  %108 = vperm.xlu0 (%p56_p10), %5677, %v6057_v14  }
  0x21   : > { %s65_s25 = scalar_lea.vmem %s10780_s6, %s62_s19  ;;  %v64_v1 = vld [vmem:[%s63_s22] sm:$0x1]  ;;  %v6070_v19 = vld [vmem:[%s10776_s2 + $0x8] sm:$0xff] (%p56_p10)  ;;  %v477_v21 = vmul.f32 (%p56_p10), 3.1415927, %v78_v13  ;;  %v81_v23 = vld [vmem:[%s10776_s2 + $0x50] sm:$0xff] (%p56_p10) }
  0x22   : > { %v66_v2 = vld [vmem:[%s65_s25] sm:$0x1]  ;;  %10966 = vst [vmem:[#allocation8_spill] sm:$0xff] (%p56_p10), %v6049_v12  ;;  %10967 = vst [vmem:[#allocation9_spill] sm:$0xff] (%p56_p10), %v6059_v15  ;;  %v744_v16 = vand.u32 (%p56_p10), 2139095040, %v6047_v11  ;;  %v847_v17 = vand.u32 (%p56_p10), 2139095040, %v6049_v12 }
  0x23   : > { %v67_v3 = vadd.f32 %v66_v2, %v64_v1  ;;  %123 = vperm.xlu1 (%p56_p10), %5678, %v74_v6   ;;  %v1053_v20 = vand.u32 (%p56_p10), 2139095040, %v6059_v15  ;;  %v6080_v25 = vld [vmem:[%s10776_s2 + $0x20] sm:$0xff] (%p56_p10)  ;;  %v479_v27 = vmul.f32 (%p56_p10), 3.1415927, %v80_v18  ;;  %v6083_v30 = vmul.f32 (%p56_p10), 0.16666667, %v477_v21 }
  0x24   :  { %113 = vperm.xlu0 (%p56_p10), %5677, %v6070_v19   ;;  %v745_v22 = vshrl.u32 (%p56_p10), %v744_v16, 23  ;;  %v848_v24 = vshrl.u32 (%p56_p10), %v847_v17, 23  ;;  %v6088_v31 = vld [vmem:[%s10776_s2 + $0x30] sm:$0xff] (%p56_p10)  ;;  %v82_v34 = vld [vmem:[%s10776_s2 + $0x58] sm:$0xff] (%p56_p10)  ;;  %v480_v36 = vmul.f32 (%p56_p10), 3.1415927, %v81_v23 }
  0x25   : > { %70 = vst.msk [vmem:[%s68_s26] sm:$0x1] %vm69_vm0, %v67_v3  ;;  %v1054_v26 = vshrl.u32 (%p56_p10), %v1053_v20, 23  ;;  %10968 = vst [vmem:[#allocation10_spill] sm:$0xff] (%p56_p10), %v6083_v30  ;;  %v6090_v33 = vmul.f32 (%p56_p10), 0.16666667, %v479_v27 }
  0x26   :  { %v5099_v28 = vadd.s32 4294967169, %v745_v22  ;;  %v5103_v29 = vadd.s32 4294967169, %v848_v24  ;;  %v1259_v38 = vand.u32 2139095040, %v6083_v30  ;;  %v83_v39 = vld [vmem:[%s10776_s2 + $0x60] sm:$0xff]  ;;  %v6107_v43 = vmul.f32 0.16666667, %v480_v36 }
  0x27   :  { %133 = vperm.xlu1 %5678, %v76_v9   ;;  %v5111_v32 = vadd.s32 4294967169, %v1054_v26  ;;  %10969 = vst [vmem:[#allocation11_spill] sm:$0xff] %v6090_v33  ;;  %v6103_v40 = vld [vmem:[%s10776_s2 + $0x40] sm:$0xff]  ;;  %v1465_v42 = vand.u32 2139095040, %v6090_v33  ;;  %v481_v44 = vmul.f32 3.1415927, %v82_v34 }
  0x28   :  { %128 = vperm.xlu0 %5677, %v6080_v25   ;;  %v751_v35 = vadd.s32 1, %v5099_v28  ;;  %v854_v37 = vadd.s32 1, %v5103_v29  ;;  %10970 = vst [vmem:[#allocation12_spill] sm:$0xff] %v6107_v43  ;;  %v1260_v45 = vshrl.u32 %v1259_v38, 23  ;;  %v84_v48 = vld [vmem:[%s10776_s2 + $0x68] sm:$0xff]  ;;  %v1568_v50 = vand.u32 2139095040, %v6107_v43 }
  0x29   :  { %v1060_v41 = vadd.s32 1, %v5111_v32  ;;  %v1466_v46 = vshrl.u32 %v1465_v42, 23  ;;  %v6113_v51 = vmul.f32 0.16666667, %v481_v44  ;;  %v482_v52 = vmul.f32 3.1415927, %v83_v39 }
  0x2a   :  { %vm752_vm1 = vcmp.gt.s32.totalorder %v751_v35, 0  ;;  %vm855_vm2 = vcmp.gt.s32.totalorder %v854_v37, 0  ;;  %v5119_v54 = vadd.s32 4294967169, %v1260_v45  ;;  %v85_v55 = vld [vmem:[%s10776_s2 + $0x70] sm:$0xff]  ;;  %v1569_v60 = vshrl.u32 %v1568_v50, 23  ;;  %v86_v0 = vld [vmem:[%s10776_s2 + $0x78] sm:$0xff] }
  0x2b   :  { %143 = vperm.xlu1 %5678, %v78_v13   ;;  %vm1061_vm3 = vcmp.gt.s32.totalorder %v1060_v41, 0  ;;  %v753_v47 = vsel %vm752_vm1, %v751_v35, 0  ;;  %v856_v49 = vsel %vm855_vm2, %v854_v37, 0  ;;  %v5127_v57 = vadd.s32 4294967169, %v1466_v46  ;;  %v87_v16 = vld [vmem:[%s10776_s2 + $0x80] sm:$0xff] }
  0x2c   :  { %138 = vperm.xlu0 %5677, %v6088_v31   ;;  %v1062_v53 = vsel %vm1061_vm3, %v1060_v41, 0  ;;  %v6118_v56 = vand.u32 31, %v753_v47  ;;  %v6120_v58 = vand.u32 31, %v856_v49  ;;  %v1671_v61 = vand.u32 2139095040, %v6113_v51 }
  0x2d   :  { %v6122_v59 = vand.u32 31, %v1062_v53  ;;  %v6125_v62 = vmul.f32 0.16666667, %v482_v52  ;;  %v1266_v63 = vadd.s32 1, %v5119_v54  ;;  %v1472_v2 = vadd.s32 1, %v5127_v57 }
  0x2e   :  { %10971 = vst [vmem:[#allocation13_spill] sm:$0xff] %v6120_v58  ;;  %v6131_v1 = vsub.s32 32, %v6118_v56  ;;  %v6134_v3 = vsub.s32 32, %v6120_v58  ;;  %v5131_v5 = vadd.s32 4294967169, %v1569_v60  ;;  %v1672_v6 = vshrl.u32 %v1671_v61, 23  ;;  %v6197_v60 = vld [vmem:[%s10776_s2 + $0x90] sm:$0xff] }
  0x2f   :  { %153 = vperm.xlu1 %5678, %v80_v18   ;;  %10972 = vst [vmem:[#allocation14_spill] sm:$0xff] %v6122_v59  ;;  %10973 = vst [vmem:[#allocation15_spill] sm:$0xff] %v6125_v62  ;;  %v6137_v4 = vsub.s32 32, %v6122_v59  ;;  %v1774_v7 = vand.u32 2139095040, %v6125_v62  ;;  %v6140_v8 = vshrl.u32 %v753_v47, 5  ;;  %v6144_v13 = vshrl.u32 %v856_v49, 5 }
  0x30   :  { %148 = vperm.xlu0 %5677, %v6103_v40   ;;  %10974 = vst [vmem:[#allocation16_spill] sm:$0xff] %v6134_v3  ;;  %v10789_v9 = vmov 2102212464   ;;  %vm1267_vm4 = vcmp.gt.s32.totalorder %v1266_v63, 0  ;;  %v10803_v17 = vmov 920167782  }
  0x31   :  { %10975 = vst [vmem:[#allocation17_spill] sm:$0xff] %v6137_v4  ;;  %v767_v10 = vshll.u32 %v10789_v9, %v6118_v56  ;;  %10976 = vst [vmem:[#allocation18_spill] sm:$0xff] %v6144_v13  ;;  %v768_v18 = vshrl.u32 %v10803_v17, %v6131_v1  ;;  %v770_v20 = vshll.u32 %v10803_v17, %v6118_v56  ;;  %v10801_v21 = vmov 1326507024  }
  0x32   :  { %v771_v22 = vshrl.u32 %v10801_v21, %v6131_v1  ;;  %vm1473_vm5 = vcmp.gt.s32.totalorder %v1472_v2, 0  ;;  %v871_v24 = vshrl.u32 %v10803_v17, %v6134_v3  ;;  %v873_v26 = vshll.u32 %v10803_v17, %v6120_v58 }
  0x33   :  { %158 = vperm.xlu1 %5678, %v81_v23   ;;  %v870_v23 = vshll.u32 %v10789_v9, %v6120_v58  ;;  %v1076_v27 = vshll.u32 %v10789_v9, %v6122_v59  ;;  %v874_v28 = vshrl.u32 %v10801_v21, %v6134_v3  ;;  %v1077_v29 = vshrl.u32 %v10803_v17, %v6137_v4 }
  0x34   :  { %v1268_v32 = vsel %vm1267_vm4, %v1266_v63, 0  ;;  %v6167_v35 = vshrl.u32 %v1062_v53, 5  ;;  %v1079_v36 = vshll.u32 %v10803_v17, %v6122_v59  ;;  %v1080_v37 = vshrl.u32 %v10801_v21, %v6137_v4 }
  0x35   :  { %v1474_v38 = vsel %vm1473_vm5, %v1472_v2, 0  ;;  %v6178_v41 = vor.u32 %v768_v18, %v767_v10  ;;  %v772_v42 = vor.u32 %v771_v22, %v770_v20  ;;  %vm776_vm6 = vcmp.lt.s32.totalorder %v6140_v8, 4 }
  0x36   :  { %10977 = vst [vmem:[#allocation19_spill] sm:$0xff] %v6167_v35  ;;  %v1775_v44 = vshrl.u32 %v1774_v7, 23  ;;  %v6181_v45 = vor.u32 %v871_v24, %v870_v23  ;;  %vm879_vm7 = vcmp.lt.s32.totalorder %v6144_v13, 4  ;;  %v6184_v46 = vand.u32 31, %v1268_v32 }
  0x37   :  { %163 = vperm.xlu1 %5678, %v82_v34   ;;  %v483_v34 = vmul.f32 3.1415927, %v84_v48  ;;  %10978 = vst [vmem:[#allocation20_spill] sm:$0xff] %v6178_v41  ;;  %v1575_v47 = vadd.s32 1, %v5131_v5  ;;  %v6186_v49 = vor.u32 %v1077_v29, %v1076_v27  ;;  %v6188_v50 = vand.u32 31, %v1474_v38 }
  0x38   :  { %10979 = vst [vmem:[#allocation21_spill] sm:$0xff] %v6181_v45  ;;  %10980 = vst [vmem:[#allocation22_spill] sm:$0xff] %v6184_v46  ;;  %v1081_v53 = vor.u32 %v1080_v37, %v1079_v36  ;;  %vm1085_vm8 = vcmp.lt.s32.totalorder %v6167_v35, 4  ;;  %v5135_v54 = vadd.s32 4294967169, %v1672_v6  ;;  %v484_v57 = vmul.f32 3.1415927, %v85_v55 }
  0x39   :  { %10981 = vst [vmem:[#allocation23_spill] sm:$0xff] %v6186_v49  ;;  %10982 = vst [vmem:[#allocation24_spill] sm:$0xff] %v6188_v50  ;;  %v6190_v52 = vmul.f32 0.16666667, %v483_v34  ;;  %v6202_v61 = vsel %vm776_vm6, %v6178_v41, 920167782  ;;  %v1285_v36 = vshll.u32 %v10803_v17, %v6184_v46 }
  0x3a   :  { %10983 = vst [vmem:[#allocation25_spill] sm:$0xff] %v6202_v61  ;;  %v6206_v63 = vsel %vm776_vm6, %v772_v42, 1326507024  ;;  %v5139_v2 = vadd.s32 4294967169, %v1775_v44  ;;  %v6211_v5 = vsel %vm879_vm7, %v6181_v45, 920167782 }
  0x3b   :  { %168 = vperm.xlu1 %5678, %v83_v39   ;;  %v6176_v39 = vld [vmem:[%s10776_s2 + $0x88] sm:$0xff]  ;;  %10984 = vst [vmem:[#allocation26_spill] sm:$0xff] %v6211_v5  ;;  %vm1576_vm9 = vcmp.gt.s32.totalorder %v1575_v47, 0  ;;  %v485_v6 = vmul.f32 3.1415927, %v86_v0  ;;  %v6226_v18 = vsub.s32 32, %v6188_v50 }
  0x3c   :  { %v6223_v10 = vsel %vm1085_vm8, %v6186_v49, 920167782  ;;  %v1877_v20 = vand.u32 2139095040, %v6190_v52  ;;  %v6232_v22 = vsel %vm1085_vm8, %v1081_v53, 1326507024  ;;  %v1678_v23 = vadd.s32 1, %v5135_v54 }
  0x3d   :  { %10987 = vst [vmem:[#allocation29_spill] sm:$0xff] %v6223_v10  ;;  %10988 = vst [vmem:[#allocation30_spill] sm:$0xff] %v6226_v18  ;;  %v6236_v24 = vmul.f32 0.16666667, %v484_v57  ;;  %v1577_v27 = vsel %vm1576_vm9, %v1575_v47, 0  ;;  %v6251_v42 = vld [vmem:[%s10776_s2 + $0x98] sm:$0xff]  ;;  %v1489_v47 = vshrl.u32 %v10803_v17, %v6226_v18 }
  0x3e   :  { %10989 = vst [vmem:[#allocation31_spill] sm:$0xff] %v6232_v22  ;;  %v486_v29 = vmul.f32 3.1415927, %v87_v16  ;;  %v6253_v44 = vshrl.u32 %v1474_v38, 5  ;;  %v6260_v53 = vand.u32 31, %v1577_v27  ;;  %vm1679_vm10 = vcmp.gt.s32.totalorder %v1678_v23, 0 }
  0x3f   :  { %173 = vperm.xlu1 %5678, %v84_v48   ;;  %v875_v48 = vor.u32 %v874_v28, %v873_v26  ;;  %10991 = vst [vmem:[#allocation33_spill] sm:$0xff] %v6236_v24  ;;  %v1282_v26 = vshll.u32 %v10789_v9, %v6184_v46  ;;  %v1781_v28 = vadd.s32 1, %v5139_v2  ;;  %v1980_v54 = vand.u32 2139095040, %v6236_v24  ;;  %v6267_v38 = vld [vmem:[%s10776_s2 + $0xa0] sm:$0xff] }
  0x40   :  { %10993 = vst [vmem:[#allocation35_spill] sm:$0xff] %v6253_v44  ;;  %10994 = vst [vmem:[#allocation36_spill] sm:$0xff] %v6260_v53  ;;  %v470_v57 = vmul.f32 3.1415927, %v6057_v14  ;;  %v1491_v2 = vshll.u32 %v10803_v17, %v6188_v50  ;;  %v1680_v43 = vsel %vm1679_vm10, %v1678_v23, 0  ;;  %vm1497_vm13 = vcmp.lt.s32.totalorder %v6253_v44, 4 }
  0x41   :  { %v6218_v7 = vsel %vm879_vm7, %v875_v48, 1326507024  ;;  %v1878_v48 = vshrl.u32 %v1877_v20, 23  ;;  %vm1782_vm11 = vcmp.gt.s32.totalorder %v1781_v28, 0  ;;  %v6273_v20 = vmul.f32 0.16666667, %v486_v29 }
  0x42   :  { %10986 = vst [vmem:[#allocation28_spill] sm:$0xff] %v6218_v7  ;;  %v1783_v29 = vsel %vm1782_vm11, %v1781_v28, 0  ;;  %v6294_v23 = vshrl.u32 %v1577_v27, 5  ;;  %v488_v30 = vmul.f32 3.1415927, %v6197_v60 }
  0x43   :  { %178 = vperm.xlu1 %5678, %v85_v55   ;;  %v6214_v55 = vsub.s32 32, %v6184_v46  ;;  %10995 = vst [vmem:[#allocation37_spill] sm:$0xff] %v6273_v20  ;;  %v5143_v33 = vadd.s32 4294967169, %v1878_v48  ;;  %v11002_v48 = vmov 2102212464  }
  0x44   :  { %10999 = vst [vmem:[#allocation41_spill] sm:$0xff] %v6294_v23  ;;  %vm1600_vm14 = vcmp.lt.s32.totalorder %v6294_v23, 4 }
  0x45   :  { %10985 = vst [vmem:[#allocation27_spill] sm:$0xff] %v6214_v55  ;;  %v1283_v34 = vshrl.u32 %v10803_v17, %v6214_v55  ;;  %v1286_v37 = vshrl.u32 %v10801_v21, %v6214_v55  ;;  %v487_v55 = vmul.f32 3.1415927, %v6176_v39  ;;  %v1981_v17 = vshrl.u32 %v1980_v54, 23 }
  0x46   :  { %v1591_v54 = vshll.u32 %v11002_v48, %v6260_v53  ;;  %v1884_v27 = vadd.s32 1, %v5143_v33 }
  0x47   :  { %183 = vperm.xlu1 %5678, %v86_v0   ;;  %v6234_v0 = vshrl.u32 %v1268_v32, 5  ;;  %v6246_v32 = vmul.f32 0.16666667, %v485_v6  ;;  %v1492_v6 = vshrl.u32 %v10801_v21, %v6226_v18  ;;  %v1287_v62 = vor.u32 %v1286_v37, %v1285_v36 }
  0x48   :  { %v6284_v21 = vsub.s32 32, %v6260_v53  ;;  %vm1885_vm15 = vcmp.gt.s32.totalorder %v1884_v27, 0 }
  0x49   :  { %10990 = vst [vmem:[#allocation32_spill] sm:$0xff] %v6234_v0  ;;  %10992 = vst [vmem:[#allocation34_spill] sm:$0xff] %v6246_v32  ;;  %vm1291_vm12 = vcmp.lt.s32.totalorder %v6234_v0, 4  ;;  %v2083_v14 = vand.u32 2139095040, %v6246_v32  ;;  %v1493_v36 = vor.u32 %v1492_v6, %v1491_v2  ;;  %v6312_v2 = vmul.f32 0.16666667, %v487_v55 }
  0x4a   :  { %10998 = vst [vmem:[#allocation40_spill] sm:$0xff] %v6284_v21  ;;  %v6304_v28 = vsel %vm1291_vm12, %v1287_v62, 1326507024  ;;  %v11006_v62 = vmov 920167782   ;;  %v5147_v32 = vadd.s32 4294967169, %v1981_v17 }
  0x4b   :  { %188 = vperm.xlu1 %5678, %v87_v16   ;;  %v1488_v16 = vshll.u32 %v10789_v9, %v6188_v50  ;;  %v6275_v9 = vor.u32 %v1283_v34, %v1282_v26  ;;  %v6286_v26 = vmul.f32 0.16666667, %v470_v57  ;;  %v6291_v34 = vld [vmem:[%s10776_s2 + $0xa8] sm:$0xff]  ;;  %11001 = vst [vmem:[#allocation43_spill] sm:$0xff] %v6304_v28  ;;  %v6310_v57 = vand.u32 31, %v1783_v29  ;;  %11004 = vst [vmem:[#allocation45_spill] sm:$0xff] %v6312_v2 }
  0x4c   :  { %v6325_v18 = vsel %vm1497_vm13, %v1493_v36, 1326507024  ;;  %v1594_v33 = vshll.u32 %v11006_v62, %v6260_v53  ;;  %v471_v50 = vmul.f32 3.1415927, %v6070_v19  ;;  %v6336_v28 = vshrl.u32 %v1680_v43, 5 }
  0x4d   :  { %10996 = vst [vmem:[#allocation38_spill] sm:$0xff] %v6275_v9  ;;  %v6279_v24 = vor.u32 %v1489_v47, %v1488_v16  ;;  %v6300_v37 = vsel %vm1291_vm12, %v6275_v9, 920167782  ;;  %v6306_v16 = vand.u32 31, %v1680_v43  ;;  %v2084_v47 = vshrl.u32 %v2083_v14, 23  ;;  %11003 = vst [vmem:[#allocation44_spill] sm:$0xff] %v6310_v57 }
  0x4e   :  { %11000 = vst [vmem:[#allocation42_spill] sm:$0xff] %v6300_v37  ;;  %v538_v14 = vand.u32 2139095040, %v6286_v26  ;;  %11007 = vst [vmem:[#allocation47_spill] sm:$0xff] %v6325_v18  ;;  %v11008_v9 = vmov 1326507024   ;;  %v6339_v36 = vsub.s32 32, %v6310_v57 }
  0x4f   :  { %193 = vperm.xlu1 %5678, %v6176_v39   ;;  %10997 = vst [vmem:[#allocation39_spill] sm:$0xff] %v6279_v24  ;;  %v2186_v39 = vand.u32 2139095040, %v6273_v20  ;;  %v6318_v6 = vsel %vm1497_vm13, %v6279_v24, 920167782  ;;  %v1592_v20 = vshrl.u32 %v11006_v62, %v6284_v21  ;;  %v1595_v24 = vshrl.u32 %v11008_v9, %v6284_v21 }
  0x50   :  { %11005 = vst [vmem:[#allocation46_spill] sm:$0xff] %v6318_v6  ;;  %v6334_v6 = vsub.s32 32, %v6306_v16  ;;  %v5151_v17 = vadd.s32 4294967169, %v2084_v47  ;;  %11009 = vst [vmem:[#allocation48_spill] sm:$0xff] %v6339_v36  ;;  %v2289_v53 = vand.u32 2139095040, %v6312_v2  ;;  %v6344_v19 = vshrl.u32 %v1783_v29, 5 }
  0x51   :  { %v2187_v55 = vshrl.u32 %v2186_v39, 23  ;;  %v6342_v39 = vor.u32 %v1592_v20, %v1591_v54  ;;  %v1987_v18 = vadd.s32 1, %v5147_v32  ;;  %v539_v21 = vshrl.u32 %v538_v14, 23 }
  0x52   :  { %11011 = vst [vmem:[#allocation50_spill] sm:$0xff] %v6344_v19  ;;  %v1694_v44 = vshll.u32 %v11002_v48, %v6306_v16  ;;  %v1697_v47 = vshll.u32 %v11006_v62, %v6306_v16  ;;  %v6350_v37 = vmul.f32 0.16666667, %v471_v50  ;;  %v1695_v0 = vshrl.u32 %v11006_v62, %v6334_v6 }
  0x53   :  { %198 = vperm.xlu1 %5678, %v6197_v60   ;;  %11010 = vst [vmem:[#allocation49_spill] sm:$0xff] %v6342_v39  ;;  %v5155_v43 = vadd.s32 4294967169, %v2187_v55  ;;  %v1797_v20 = vshll.u32 %v11002_v48, %v6310_v57  ;;  %v1886_v54 = vsel %vm1885_vm15, %v1884_v27, 0  ;;  %v2090_v29 = vadd.s32 1, %v5151_v17 }
  0x54   :  { %v1698_v32 = vshrl.u32 %v11008_v9, %v6334_v6  ;;  %v1798_v14 = vshrl.u32 %v11006_v62, %v6339_v36  ;;  %v1800_v2 = vshll.u32 %v11006_v62, %v6310_v57  ;;  %v2290_v55 = vshrl.u32 %v2289_v53, 23 }
  0x55   :  { %v1801_v50 = vshrl.u32 %v11008_v9, %v6339_v36  ;;  %vm1988_vm0 = vcmp.gt.s32.totalorder %v1987_v18, 0  ;;  %v5091_v46 = vadd.s32 4294967169, %v539_v21  ;;  %v1596_v49 = vor.u32 %v1595_v24, %v1594_v33 }
  0x56   :  { %v6365_v27 = vand.u32 31, %v1886_v54  ;;  %v2193_v17 = vadd.s32 1, %v5155_v43  ;;  %v641_v22 = vand.u32 2139095040, %v6350_v37  ;;  %v6371_v10 = vsel %vm1600_vm14, %v6342_v39, 920167782 }
  0x57   :  { %203 = vperm.xlu1 %5678, %v6251_v42   ;;  %11012 = vst [vmem:[#allocation51_spill] sm:$0xff] %v6371_v10  ;;  %v6373_v57 = vor.u32 %v1695_v0, %v1694_v44  ;;  %vm1703_vm1 = vcmp.lt.s32.totalorder %v6336_v28, 4  ;;  %vm2091_vm2 = vcmp.gt.s32.totalorder %v2090_v29, 0  ;;  %v1699_v53 = vor.u32 %v1698_v32, %v1697_v47 }
  0x58   :  { %v6376_v21 = vor.u32 %v1798_v14, %v1797_v20  ;;  %v1989_v60 = vsel %vm1988_vm0, %v1987_v18, 0  ;;  %v5159_v24 = vadd.s32 4294967169, %v2290_v55  ;;  %v1802_v33 = vor.u32 %v1801_v50, %v1800_v2 }
  0x59   :  { %vm1806_vm3 = vcmp.lt.s32.totalorder %v6344_v19, 4  ;;  %v545_v43 = vadd.s32 1, %v5091_v46  ;;  %v6379_v36 = vmul.f32 0.16666667, %v488_v30  ;;  %v6382_v35 = vsub.s32 32, %v6365_v27 }
  0x5a   :  { %11013 = vst [vmem:[#allocation52_spill] sm:$0xff] %v6376_v21  ;;  %v2092_v39 = vsel %vm2091_vm2, %v2090_v29, 0  ;;  %vm2194_vm4 = vcmp.gt.s32.totalorder %v2193_v17, 0  ;;  %v642_v0 = vshrl.u32 %v641_v22, 23  ;;  %v6386_v44 = vsel %vm1600_vm14, %v1596_v49, 1326507024 }
  0x5b   :  { %208 = vperm.xlu1 %5678, %v6267_v38   ;;  %11014 = vst [vmem:[#allocation53_spill] sm:$0xff] %v6379_v36  ;;  %11015 = vst [vmem:[#allocation54_spill] sm:$0xff] %v6386_v44  ;;  %v6391_v18 = vsel %vm1703_vm1, %v6373_v57, 920167782  ;;  %v6393_v2 = vshrl.u32 %v1886_v54, 5  ;;  %v6395_v46 = vand.u32 31, %v1989_v60  ;;  %v1900_v29 = vshll.u32 %v11002_v48, %v6365_v27 }
  0x5c   :  { %v6399_v30 = vsel %vm1703_vm1, %v1699_v53, 1326507024  ;;  %v6404_v22 = vsel %vm1806_vm3, %v6376_v21, 920167782  ;;  %v2296_v49 = vadd.s32 1, %v5159_v24  ;;  %v6410_v20 = vand.u32 31, %v2092_v39 }
  0x5d   :  { %11016 = vst [vmem:[#allocation55_spill] sm:$0xff] %v6395_v46  ;;  %11017 = vst [vmem:[#allocation56_spill] sm:$0xff] %v6404_v22  ;;  %v6408_v47 = vsel %vm1806_vm3, %v1802_v33, 1326507024  ;;  %v2195_v54 = vsel %vm2194_vm4, %v2193_v17, 0  ;;  %vm546_vm5 = vcmp.gt.s32.totalorder %v545_v43, 0  ;;  %v1901_v32 = vshrl.u32 %v11006_v62, %v6382_v35 }
  0x5e   :  { %11018 = vst [vmem:[#allocation57_spill] sm:$0xff] %v6408_v47  ;;  %11019 = vst [vmem:[#allocation58_spill] sm:$0xff] %v6410_v20  ;;  %v5095_v14 = vadd.s32 4294967169, %v642_v0  ;;  %v2392_v55 = vand.u32 2139095040, %v6379_v36  ;;  %v1903_v50 = vshll.u32 %v11006_v62, %v6365_v27  ;;  %v1904_v53 = vshrl.u32 %v11008_v9, %v6382_v35 }
  0x5f   :  { %213 = vperm.xlu1 %5678, %v6291_v34   ;;  %vm1909_vm9 = vcmp.lt.s32.totalorder %v6393_v2, 4  ;;  %v6423_v17 = vsub.s32 32, %v6395_v46  ;;  %v6425_v24 = vshrl.u32 %v1989_v60, 5  ;;  %v6427_v33 = vand.u32 31, %v2195_v54 }
  0x60   :  { %v547_v21 = vsel %vm546_vm5, %v545_v43, 0  ;;  %vm2297_vm10 = vcmp.gt.s32.totalorder %v2296_v49, 0  ;;  %v2003_v0 = vshll.u32 %v11002_v48, %v6395_v46  ;;  %v6431_v36 = vshrl.u32 %v2092_v39, 5 }
  0x61   :  { %11020 = vst [vmem:[#allocation59_spill] sm:$0xff] %v6423_v17  ;;  %11021 = vst [vmem:[#allocation60_spill] sm:$0xff] %v6425_v24  ;;  %v6434_v47 = vsub.s32 32, %v6410_v20  ;;  %v474_v22 = vmul.f32 3.1415927, %v6080_v25  ;;  %v6437_v19 = vor.u32 %v1901_v32, %v1900_v29  ;;  %v2006_v60 = vshll.u32 %v11006_v62, %v6395_v46 }
  0x62   :  { %11022 = vst [vmem:[#allocation61_spill] sm:$0xff] %v6427_v33  ;;  %11023 = vst [vmem:[#allocation62_spill] sm:$0xff] %v6431_v36  ;;  %v648_v44 = vadd.s32 1, %v5095_v14  ;;  %v2393_v10 = vshrl.u32 %v2392_v55, 23  ;;  %v1905_v23 = vor.u32 %v1904_v53, %v1903_v50  ;;  %v2004_v43 = vshrl.u32 %v11006_v62, %v6423_v17 }
  0x63   :  { %11024 = vst [vmem:[#allocation63_spill] sm:$0xff] %v6434_v47  ;;  %v6443_v4 = vand.u32 31, %v547_v21  ;;  %v2298_v39 = vsel %vm2297_vm10, %v2296_v49, 0  ;;  %v2007_v59 = vshrl.u32 %v11008_v9, %v6423_v17  ;;  %vm10917_vm11 = vcmp.lt.s32.totalorder %v6425_v24, 4 }
  0x64   :  { %v2106_v25 = vshll.u32 %v11002_v48, %v6410_v20  ;;  %v2109_v29 = vshll.u32 %v11006_v62, %v6410_v20  ;;  %v6453_v32 = vsub.s32 32, %v6427_v33  ;;  %v2107_v14 = vshrl.u32 %v11006_v62, %v6434_v47 }
  0x65   :  { %v2110_v49 = vshrl.u32 %v11008_v9, %v6434_v47  ;;  %vm10902_vm15 = vcmp.lt.s32.totalorder %v6431_v36, 4  ;;  %v6460_v55 = vmul.f32 0.16666667, %v474_v22  ;;  %v6462_v50 = vshrl.u32 %v2195_v54, 5 }
  0x66   :  { %11025 = vst [vmem:[#allocation64_spill] sm:$0xff] %v6453_v32  ;;  %v6464_v53 = vand.u32 31, %v2298_v39  ;;  %vm649_vm0 = vcmp.gt.s32.totalorder %v648_v44, 0  ;;  %v5163_v46 = vadd.s32 4294967169, %v2393_v10  ;;  %v6469_v20 = vsel %vm1909_vm9, %v6437_v19, 920167782 }
  0x67   :  { %11026 = vst [vmem:[#allocation65_spill] sm:$0xff] %v6460_v55  ;;  %11027 = vst [vmem:[#allocation66_spill] sm:$0xff] %v6462_v50  ;;  %v6473_v17 = vsel %vm1909_vm9, %v1905_v23, 1326507024  ;;  %v6475_v47 = vor.u32 %v2004_v43, %v2003_v0  ;;  %v6478_v22 = vsub.s32 32, %v6443_v4  ;;  %v2209_v54 = vshll.u32 %v11002_v48, %v6427_v33 }
  0x68   :  { %11028 = vst [vmem:[#allocation67_spill] sm:$0xff] %v6464_v53  ;;  %v2210_v10 = vshrl.u32 %v11006_v62, %v6453_v32  ;;  %v2212_v15 = vshll.u32 %v11006_v62, %v6427_v33  ;;  %v2213_v45 = vshrl.u32 %v11008_v9, %v6453_v32  ;;  %v2008_v7 = vor.u32 %v2007_v59, %v2006_v60 }
  0x69   :  { %11029 = vst [vmem:[#allocation68_spill] sm:$0xff] %v6475_v47  ;;  %v6488_v23 = vor.u32 %v2107_v14, %v2106_v25  ;;  %v650_v0 = vsel %vm649_vm0, %v648_v44, 0  ;;  %v950_v43 = vand.u32 2139095040, %v6460_v55  ;;  %v2111_v5 = vor.u32 %v2110_v49, %v2109_v29 }
  0x6a   :  { %vm10901_vm2 = vcmp.lt.s32.totalorder %v6462_v50, 4  ;;  %v6493_v13 = vsub.s32 32, %v6464_v53  ;;  %v2399_v3 = vadd.s32 1, %v5163_v46  ;;  %v6495_v58 = vshrl.u32 %v547_v21, 5 }
  0x6b   :  { %11030 = vst [vmem:[#allocation69_spill] sm:$0xff] %v6488_v23  ;;  %v561_v33 = vshll.u32 %v11002_v48, %v6443_v4  ;;  %v562_v59 = vshrl.u32 %v11006_v62, %v6478_v22  ;;  %v489_v60 = vmul.f32 3.1415927, %v6251_v42  ;;  %v6502_v44 = vor.u32 %v2210_v10, %v2209_v54 }
  0x6c   :  { %11031 = vst [vmem:[#allocation70_spill] sm:$0xff] %v6493_v13  ;;  %v2214_v25 = vor.u32 %v2213_v45, %v2212_v15  ;;  %v564_v29 = vshll.u32 %v11006_v62, %v6443_v4  ;;  %v6506_v14 = vand.u32 31, %v650_v0  ;;  %v565_v21 = vshrl.u32 %v11008_v9, %v6478_v22 }
  0x6d   :  { %11032 = vst [vmem:[#allocation71_spill] sm:$0xff] %v6502_v44  ;;  %v6510_v46 = vshrl.u32 %v2298_v39, 5  ;;  %v2312_v49 = vshll.u32 %v11002_v48, %v6464_v53  ;;  %v951_v32 = vshrl.u32 %v950_v43, 23  ;;  %v2313_v42 = vshrl.u32 %v11006_v62, %v6493_v13 }
  0x6e   :  { %v2315_v15 = vshll.u32 %v11006_v62, %v6464_v53  ;;  %v2316_v45 = vshrl.u32 %v11008_v9, %v6493_v13  ;;  %vm2400_vm4 = vcmp.gt.s32.totalorder %v2399_v3, 0  ;;  %v6523_v54 = vsel %vm10917_vm11, %v6475_v47, 920167782 }
  0x6f   :  { %11033 = vst [vmem:[#allocation72_spill] sm:$0xff] %v6510_v46  ;;  %11034 = vst [vmem:[#allocation73_spill] sm:$0xff] %v6523_v54  ;;  %v6527_v39 = vsel %vm10917_vm11, %v2008_v7, 1326507024  ;;  %v6529_v10 = vor.u32 %v562_v59, %v561_v33  ;;  %v6531_v43 = vmul.f32 0.16666667, %v489_v60 }
  0x70   :  { %11035 = vst [vmem:[#allocation74_spill] sm:$0xff] %v6527_v39  ;;  %v6536_v53 = vsel %vm10902_vm15, %v6488_v23, 920167782  ;;  %v6540_v13 = vsel %vm10902_vm15, %v2111_v5, 1326507024  ;;  %vm570_vm5 = vcmp.lt.s32.totalorder %v6495_v58, 4  ;;  %v6555_v23 = vor.u32 %v2313_v42, %v2312_v49 }
  0x71   :  { %11036 = vst [vmem:[#allocation75_spill] sm:$0xff] %v6531_v43  ;;  %11037 = vst [vmem:[#allocation76_spill] sm:$0xff] %v6536_v53  ;;  %v6544_v47 = vsub.s32 32, %v6506_v14  ;;  %v6549_v7 = vsel %vm10901_vm2, %v6502_v44, 920167782  ;;  %v2401_v59 = vsel %vm2400_vm4, %v2399_v3, 0  ;;  %v566_v53 = vor.u32 %v565_v21, %v564_v29 }
  0x72   :  { %11038 = vst [vmem:[#allocation77_spill] sm:$0xff] %v6540_v13  ;;  %11039 = vst [vmem:[#allocation78_spill] sm:$0xff] %v6549_v7  ;;  %v6553_v33 = vsel %vm10901_vm2, %v2214_v25, 1326507024  ;;  %v5107_v60 = vadd.s32 4294967169, %v951_v32  ;;  %v2317_v5 = vor.u32 %v2316_v45, %v2315_v15  ;;  %vm10899_vm10 = vcmp.lt.s32.totalorder %v6510_v46, 4 }
  0x73   :  { %11040 = vst [vmem:[#allocation79_spill] sm:$0xff] %v6553_v33  ;;  %11041 = vst [vmem:[#allocation80_spill] sm:$0xff] %v6555_v23  ;;  %v6561_v13 = vsel %vm570_vm5, %v6529_v10, 920167782  ;;  %v6563_v36 = vshrl.u32 %v650_v0, 5  ;;  %v664_v44 = vshll.u32 %v11002_v48, %v6506_v14  ;;  %v2495_v25 = vand.u32 2139095040, %v6531_v43 }
  0x74   :  { %v665_v3 = vshrl.u32 %v11006_v62, %v6544_v47  ;;  %v667_v32 = vshll.u32 %v11006_v62, %v6506_v14  ;;  %v668_v29 = vshrl.u32 %v11008_v9, %v6544_v47  ;;  %v6574_v21 = vand.u32 31, %v2401_v59 }
  0x75   :  { %v957_v49 = vadd.s32 1, %v5107_v60  ;;  %v476_v0 = vmul.f32 3.1415927, %v6088_v31  ;;  %v6580_v15 = vsel %vm570_vm5, %v566_v53, 1326507024  ;;  %v1692_v60 = vshrl.u32 %v11002_v48, %v6334_v6 }
  0x76   :  { %11042 = vst [vmem:[#allocation81_spill] sm:$0xff] %v6574_v21  ;;  %v6585_v45 = vsel %vm10899_vm10, %v6555_v23, 920167782  ;;  %v6589_v33 = vsel %vm10899_vm10, %v2317_v5, 1326507024  ;;  %vm673_vm0 = vcmp.lt.s32.totalorder %v6563_v36, 4  ;;  %v6594_v42 = vor.u32 %v665_v3, %v664_v44 }
  0x77   :  { %11043 = vst [vmem:[#allocation82_spill] sm:$0xff] %v6585_v45  ;;  %11044 = vst [vmem:[#allocation83_spill] sm:$0xff] %v6589_v33  ;;  %v2496_v31 = vshrl.u32 %v2495_v25, 23  ;;  %v669_v7 = vor.u32 %v668_v29, %v667_v32  ;;  %v6597_v53 = vsub.s32 32, %v6574_v21  ;;  %v6599_v50 = vshrl.u32 %v2401_v59, 5 }
  0x78   :  { %vm958_vm4 = vcmp.gt.s32.totalorder %v957_v49, 0  ;;  %v6601_v45 = vmul.f32 0.16666667, %v476_v0  ;;  %v11048_v5 = vand.u32 2147483647, %v6113_v51  ;;  %v2415_v33 = vshll.u32 %v11002_v48, %v6574_v21 }
  0x79   :  { %11045 = vst [vmem:[#allocation84_spill] sm:$0xff] %v6597_v53  ;;  %11046 = vst [vmem:[#allocation85_spill] sm:$0xff] %v6599_v50  ;;  %v490_v46 = vmul.f32 3.1415927, %v6267_v38  ;;  %v10883_v25 = vmov 683565275   ;;  %v6614_v32 = vshll.u32 %v11006_v62, %v6574_v21  ;;  %v2416_v21 = vshrl.u32 %v11006_v62, %v6597_v53 }
  0x7a   :  { %11047 = vst [vmem:[#allocation86_spill] sm:$0xff] %v6601_v45  ;;  %v1675_v23 = vand.u32 8388607, %v11048_v5  ;;  %v1685_v44 = vshll.u32 %v10883_v25, %v6306_v16  ;;  %v10887_v3 = vmov 2475754826   ;;  %v5167_v29 = vadd.s32 4294967169, %v2496_v31 }
  0x7b   :  { %v1686_v59 = vshrl.u32 %v10887_v3, %v6334_v6  ;;  %v1688_v0 = vshll.u32 %v10887_v3, %v6306_v16  ;;  %v10893_v5 = vmov 2131351028   ;;  %v6623_v25 = vsel %vm673_vm0, %v6594_v42, 920167782 }
  0x7c   :  { %v1689_v38 = vshrl.u32 %v10893_v5, %v6334_v6  ;;  %v6627_v39 = vsel %vm673_vm0, %v669_v7, 1326507024  ;;  %v959_v31 = vsel %vm958_vm4, %v957_v49, 0  ;;  %v1676_v54 = vor.u32 8388608, %v1675_v23 }
  0x7d   :  { %v11049_v3 = vmov 683565275   ;;  %v1687_v55 = vor.u32 %v1686_v59, %v1685_v44  ;;  %v6636_v43 = vshrl.u32 %v11008_v9, %v6597_v53  ;;  %v1156_v12 = vand.u32 2139095040, %v6601_v45 }
  0x7e   :  { %v1684_v24 = vshrl.u32 %v11049_v3, %v6334_v6  ;;  %v1690_v5 = vor.u32 %v1689_v38, %v1688_v0  ;;  %v11050_v7 = vmov 2131351028   ;;  %vm1700_vm10 = vcmp.lt.s32.totalorder %v6336_v28, 1 }
  0x7f   :  { %v1691_v61 = vshll.u32 %v11050_v7, %v6306_v16  ;;  %v6642_v41 = vshrl.u32 %v959_v31, 5  ;;  %v6644_v49 = vand.u32 31, %v959_v31  ;;  %v6646_v23 = vadd.s32 1, %v5167_v29 }
  0x80   :  { %vm1702_vm4 = vcmp.lt.s32.totalorder %v6336_v28, 3  ;;  %v6649_v6 = vmul.f32 0.16666667, %v490_v46  ;;  %vm1701_vm2 = vcmp.lt.s32.totalorder %v6336_v28, 2  ;;  %v1708_v59 = vsel %vm1700_vm10, %v1687_v55, %v1690_v5 }
  0x81   :  { %v1693_v44 = vor.u32 %v1692_v60, %v1691_v61  ;;  %v6654_v0 = vor.u32 %v2416_v21, %v2415_v33  ;;  %v1704_v16 = vsel %vm1700_vm10, %v1684_v24, %v1687_v55  ;;  %v1714_v38 = vsel %vm1702_vm4, %v6373_v57, %v6399_v30 }
  0x82   :  { %11051 = vst [vmem:[#allocation87_spill] sm:$0xff] %v6649_v6  ;;  %v1716_v29 = vshll.u32 %v1676_v54, 8  ;;  %v2420_v31 = vor.u32 %v6636_v43, %v6614_v32  ;;  %v10903_v60 = vand.u32 2147483647, %v6286_v26  ;;  %vm10916_vm15 = vcmp.lt.s32.totalorder %v6599_v50, 4 }
  0x83   :  { %11052 = vst [vmem:[#allocation88_spill] sm:$0xff] %v6654_v0  ;;  %v1705_v61 = vsel %vm1703_vm1, %v1693_v44, 2102212464  ;;  %v1710_v46 = vsel %vm1702_vm4, %v1693_v44, %v6391_v18  ;;  %v1157_v33 = vshrl.u32 %v1156_v12, 23  ;;  %v1712_v57 = vsel %vm1700_vm10, %v1690_v5, %v1693_v44 }
  0x84   :  { %v1706_v21 = vsel %vm1702_vm4, %v1690_v5, %v1705_v61  ;;  %v1711_v24 = vsel %vm1701_vm2, %v1708_v59, %v1710_v46  ;;  %v1715_v55 = vsel %vm1701_vm2, %v1712_v57, %v1714_v38  ;;  %v6680_v43 = vsub.s32 32, %v6644_v49 }
  0x85   :  { %v1707_v30 = vsel %vm1701_vm2, %v1704_v16, %v1706_v21  ;;  %v6675_v54 = vmul.u32.u64.low %v1716_v29, %v1711_v24  ;;  %v6676_v18 = vmul.u32.u64.high %v1716_v29, %v1711_v24, %v6675_v54  ;;  %v6683_v12 = vmul.f32 3.1415927, %v6103_v40 }
  0x86   :  { %v6685_v32 = vmul.u32.u64.low %v1716_v29, %v1715_v55  ;;  %v6686_v59 = vmul.u32.u64.high %v1716_v29, %v1715_v55, %v6685_v32  ;;  %v1723_v5 = vmul.u32 %v1716_v29, %v1707_v30  ;;  %v542_v44 = vand.u32 8388607, %v10903_v60 }
  0x87   :  { %v552_v28 = vshll.u32 %v11049_v3, %v6443_v4  ;;  %v11053_v16 = vmov 2475754826   ;;  %v556_v40 = vshrl.u32 %v11050_v7, %v6478_v22  ;;  %v558_v46 = vshll.u32 %v11050_v7, %v6443_v4 }
  0x88   :  { %v553_v38 = vshrl.u32 %v11053_v16, %v6478_v22  ;;  %v555_v61 = vshll.u32 %v11053_v16, %v6443_v4  ;;  %v559_v29 = vshrl.u32 %v11002_v48, %v6478_v22  ;;  %v1726_v21 = vadd.s32 1, %v6676_v18 }
  0x89   :  { %v551_v24 = vshrl.u32 %v11049_v3, %v6478_v22  ;;  %vm567_vm1 = vcmp.lt.s32.totalorder %v6495_v58, 1  ;;  %vm1725_vm2 = vc.u32 %v6686_v59, %v6675_v54  ;;  %v543_v30 = vor.u32 8388608, %v542_v44 }
  0x8a   :  { %v554_v57 = vor.u32 %v553_v38, %v552_v28  ;;  %v557_v55 = vor.u32 %v556_v40, %v555_v61  ;;  %v560_v32 = vor.u32 %v559_v29, %v558_v46  ;;  %v6710_v4 = vshll.u32 %v11002_v48, %v6644_v49 }
  0x8b   :  { %v1727_v60 = vsel %vm1725_vm2, %v1726_v21, %v6676_v18  ;;  %vm568_vm10 = vcmp.lt.s32.totalorder %v6495_v58, 2  ;;  %vm569_vm4 = vcmp.lt.s32.totalorder %v6495_v58, 3  ;;  %v1892_v58 = vshrl.u32 %v11053_v16, %v6382_v35 }
  0x8c   :  { %v1728_v22 = vadd.s32 %v1727_v60, %v1723_v5  ;;  %v572_v28 = vsel %vm570_vm5, %v560_v32, 2102212464  ;;  %v575_v38 = vsel %vm567_vm1, %v554_v57, %v557_v55  ;;  %v577_v53 = vsel %vm569_vm4, %v560_v32, %v6561_v13 }
  0x8d   :  { %v571_v44 = vsel %vm567_vm1, %v551_v24, %v554_v57  ;;  %v573_v61 = vsel %vm569_vm4, %v557_v55, %v572_v28  ;;  %v579_v40 = vsel %vm567_vm1, %v557_v55, %v560_v32  ;;  %v581_v46 = vsel %vm569_vm4, %v6529_v10, %v6580_v15 }
  0x8e   :  { %v1729_v29 = vadd.s32 536870912, %v1728_v22  ;;  %v578_v18 = vsel %vm568_vm10, %v575_v38, %v577_v53  ;;  %v582_v21 = vsel %vm568_vm10, %v579_v40, %v581_v46  ;;  %v583_v60 = vshll.u32 %v543_v30, 8 }
  0x8f   :  { %v6727_v5 = vsel %vm10916_vm15, %v6654_v0, 920167782  ;;  %v6731_v13 = vsel %vm10916_vm15, %v2420_v31, 1326507024  ;;  %v6735_v10 = vshll.u32 %v11006_v62, %v6644_v49  ;;  %v10906_v15 = vand.u32 2147483647, %v6190_v52 }
  0x90   :  { %11054 = vst [vmem:[#allocation89_spill] sm:$0xff] %v6727_v5  ;;  %11055 = vst [vmem:[#allocation90_spill] sm:$0xff] %v6731_v13  ;;  %vm2503_vm5 = vcmp.gt.s32.totalorder %v6646_v23, 0  ;;  %v6739_v53 = vshrl.u32 %v1729_v29, 30  ;;  %v6741_v24 = vmul.u32.u64.low %v583_v60, %v582_v21  ;;  %v6742_v57 = vmul.u32.u64.high %v583_v60, %v582_v21, %v6741_v24 }
  0x91   :  { %v5115_v30 = vadd.s32 4294967169, %v1157_v33  ;;  %v574_v55 = vsel %vm568_vm10, %v571_v44, %v573_v61  ;;  %v6746_v32 = vmul.u32.u64.low %v583_v60, %v578_v18  ;;  %v6747_v31 = vmul.u32.u64.high %v583_v60, %v578_v18, %v6746_v32 }
  0x92   :  { %v974_v28 = vshrl.u32 %v11006_v62, %v6680_v43  ;;  %v1731_v38 = vshll.u32 %v6739_v53, 30  ;;  %v1881_v40 = vand.u32 8388607, %v10906_v15  ;;  %v1891_v46 = vshll.u32 %v11049_v3, %v6365_v27 }
  0x93   :  { %v6759_v33 = vshrl.u32 %v11008_v9, %v6680_v43  ;;  %v1894_v44 = vshll.u32 %v11053_v16, %v6365_v27  ;;  %v1895_v61 = vshrl.u32 %v11050_v7, %v6382_v35  ;;  %v2504_v29 = vsel %vm2503_vm5, %v6646_v23, 0 }
  0x94   :  { %v6770_v18 = vsub.s32 %v1728_v22, %v1731_v38  ;;  %v590_v21 = vmul.u32 %v583_v60, %v574_v55  ;;  %vm592_vm1 = vc.u32 %v6742_v57, %v6746_v32  ;;  %v593_v24 = vadd.s32 1, %v6747_v31 }
  0x95   :  { %v1890_v15 = vshrl.u32 %v11049_v3, %v6382_v35  ;;  %v1893_v0 = vor.u32 %v1892_v58, %v1891_v46  ;;  %v1896_v13 = vor.u32 %v1895_v61, %v1894_v44  ;;  %v1882_v50 = vor.u32 8388608, %v1881_v40 }
  0x96   :  { %v1734_v5 = vsub.s32 0, %v6770_v18  ;;  %v1897_v45 = vshll.u32 %v11050_v7, %v6365_v27  ;;  %v1898_v23 = vshrl.u32 %v11002_v48, %v6382_v35  ;;  %v2598_v22 = vand.u32 2139095040, %v6649_v6 }
  0x97   :  { %v594_v60 = vsel %vm592_vm1, %v593_v24, %v6747_v31  ;;  %vm1906_vm2 = vcmp.lt.s32.totalorder %v6393_v2, 1  ;;  %vm1908_vm10 = vcmp.lt.s32.totalorder %v6393_v2, 3  ;;  %v6786_v55 = vshrl.u32 %v2504_v29, 5 }
  0x98   :  { %v6788_v38 = vand.u32 31, %v2504_v29  ;;  %v1163_v46 = vadd.s32 1, %v5115_v30  ;;  %v5136_v40 = vmin.u32 %v1734_v5, %v6770_v18  ;;  %v595_v58 = vadd.s32 %v594_v60, %v590_v21 }
  0x99   :  { %v1899_v27 = vor.u32 %v1898_v23, %v1897_v45  ;;  %vm1907_vm4 = vcmp.lt.s32.totalorder %v6393_v2, 2  ;;  %v1914_v35 = vsel %vm1906_vm2, %v1893_v0, %v1896_v13  ;;  %vm982_vm5 = vcmp.lt.s32.totalorder %v6642_v41, 4 }
  0x9a   :  { %v1736_v31 = vclz %v5136_v40  ;;  %v1910_v44 = vsel %vm1906_vm2, %v1890_v15, %v1893_v0  ;;  %v1920_v30 = vsel %vm1908_vm10, %v6437_v19, %v6473_v17  ;;  %v1922_v61 = vshll.u32 %v1882_v50, 8 }
  0x9b   :  { %v596_v5 = vadd.s32 536870912, %v595_v58  ;;  %v1911_v45 = vsel %vm1909_vm9, %v1899_v27, 2102212464  ;;  %v1916_v29 = vsel %vm1908_vm10, %v1899_v27, %v6469_v20  ;;  %v1918_v21 = vsel %vm1906_vm2, %v1896_v13, %v1899_v27 }
  0x9c   :  { %v5137_v24 = vadd.s32 4294967294, %v1736_v31  ;;  %v1912_v0 = vsel %vm1908_vm10, %v1896_v13, %v1911_v45  ;;  %v1917_v15 = vsel %vm1907_vm4, %v1914_v35, %v1916_v29  ;;  %v1921_v19 = vsel %vm1907_vm4, %v1918_v21, %v1920_v30 }
  0x9d   :  { %v6815_v17 = vmul.f32 0.16666667, %v6683_v12  ;;  %v6817_v50 = vshrl.u32 %v596_v5, 30  ;;  %v6819_v23 = vmul.u32.u64.low %v1922_v61, %v1921_v19  ;;  %v6820_v20 = vmul.u32.u64.high %v1922_v61, %v1921_v19, %v6819_v23 }
  0x9e   :  { %v1724_v60 = vadd.s32 %v6675_v54, %v6686_v59  ;;  %vm5138_vm9 = vcmp.lt.s32.totalorder %v5137_v24, 0  ;;  %v6824_v40 = vmul.u32.u64.low %v1922_v61, %v1917_v15  ;;  %v6825_v13 = vmul.u32.u64.high %v1922_v61, %v1917_v15, %v6824_v40 }
  0x9f   :  { %v6829_v27 = vor.u32 %v974_v28, %v6710_v4  ;;  %v1739_v35 = vsel %vm5138_vm9, 0, %v5137_v24  ;;  %v598_v12 = vshll.u32 %v6817_v50, 30  ;;  %v1913_v31 = vsel %vm1907_vm4, %v1910_v44, %v1912_v0 }
  0xa0   :  { %v978_v30 = vor.u32 %v6759_v33, %v6735_v10  ;;  %v1740_v5 = vsub.s32 32, %v1739_v35  ;;  %v1741_v54 = vshll.u32 %v6770_v18, %v1739_v35  ;;  %v1744_v59 = vsub.s32 4294967266, %v1739_v35 }
  0xa1   :  { %11056 = vst [vmem:[#allocation91_spill] sm:$0xff] %v6829_v27  ;;  %v6837_v45 = vshrl.u32 %v2598_v22, 23  ;;  %v6840_v29 = vmul.f32 3.1415927, %v6291_v34  ;;  %v6842_v4 = vsub.s32 %v595_v58, %v598_v12  ;;  %vm1931_vm1 = vc.u32 %v6820_v20, %v6824_v40 }
  0xa2   :  { %v1742_v28 = vshrl.u32 %v1724_v60, %v1740_v5  ;;  %v1745_v2 = vadd.s32 127, %v1744_v59  ;;  %v1929_v44 = vmul.u32 %v1922_v61, %v1913_v31  ;;  %v1932_v21 = vadd.s32 1, %v6825_v13 }
  0xa3   :  { %v6848_v10 = vsub.s32 32, %v6788_v38  ;;  %vm1164_vm2 = vcmp.gt.s32.totalorder %v1163_v46, 0  ;;  %v1754_v33 = vsub.s32 4, %v6739_v53  ;;  %v601_v18 = vsub.s32 0, %v6842_v4 }
  0xa4   :  { %v1743_v34 = vor.u32 %v1742_v28, %v1741_v54  ;;  %v1746_v22 = vshll.u32 %v1745_v2, 23  ;;  %v1933_v58 = vsel %vm1931_vm1, %v1932_v21, %v6825_v13  ;;  %v10912_v24 = vand.u32 2147483647, %v6350_v37 }
  0xa5   :  { %v6857_v61 = vsel %vm982_vm5, %v6829_v27, 920167782  ;;  %v6861_v0 = vshll.u32 %v11002_v48, %v6788_v38  ;;  %v6865_v15 = vshll.u32 %v11006_v62, %v6788_v38  ;;  %v5092_v19 = vmin.u32 %v601_v18, %v6842_v4 }
  0xa6   :  { %11057 = vst [vmem:[#allocation92_spill] sm:$0xff] %v6857_v61  ;;  %v6870_v23 = vsel %vm982_vm5, %v978_v30, 1326507024  ;;  %v1747_v60 = vor.u32 4788187, %v1746_v22  ;;  %v1750_v13 = vcvt.s32.f32 %v1743_v34  ;;  %v1934_v35 = vadd.s32 %v1933_v58, %v1929_v44 }
  0xa7   :  { %11058 = vst [vmem:[#allocation93_spill] sm:$0xff] %v6870_v23  ;;  %v6872_v12 = vsel %vm1164_vm2, %v1163_v46, 0  ;;  %v11059_v31 = vand.u32 2147483647, %v6113_v51  ;;  %vm1670_vm4 = vcmp.lt.s32.totalorder %v6113_v51, 0  ;;  %v603_v54 = vclz %v5092_v19 }
  0xa8   :  { %v1748_v59 = vand.u32 2147483647, %v1747_v60  ;;  %v1755_v30 = vsel %vm1670_vm4, %v1754_v33, %v6739_v53  ;;  %v1935_v28 = vadd.s32 536870912, %v1934_v35  ;;  %v645_v2 = vand.u32 8388607, %v10912_v24 }
  0xa9   :  { %vm6876_vm10 = vcmp.le.f32.partialorder %v11059_v31, 0.7853982  ;;  %v591_v46 = vadd.s32 %v6746_v32, %v6742_v57  ;;  %v5093_v44 = vadd.s32 4294967294, %v603_v54  ;;  %v655_v21 = vshll.u32 %v11049_v3, %v6506_v14 }
  0xaa   :  { %v656_v18 = vshrl.u32 %v11053_v16, %v6544_v47  ;;  %v1751_v34 = vmul.f32 %v1750_v13, %v1748_v59  ;;  %v6892_v22 = vshrl.u32 %v1935_v28, 30  ;;  %v658_v53 = vshll.u32 %v11053_v16, %v6506_v14 }
  0xab   :  { %v659_v33 = vshrl.u32 %v11050_v7, %v6544_v47  ;;  %v1757_v58 = vsel %vm6876_vm10, 0, %v1755_v30  ;;  %vm5094_vm9 = vcmp.lt.s32.totalorder %v5093_v44, 0  ;;  %v661_v57 = vshll.u32 %v11050_v7, %v6506_v14 }
  0xac   :  { %v662_v32 = vshrl.u32 %v11002_v48, %v6544_v47  ;;  %v1752_v19 = vxor.u32 2147483648, %v1751_v34  ;;  %v606_v60 = vsel %vm5094_vm9, 0, %v5093_v44  ;;  %v1937_v13 = vshll.u32 %v6892_v22, 30 }
  0xad   :  { %v646_v31 = vor.u32 8388608, %v645_v2  ;;  %v607_v54 = vsub.s32 32, %v606_v60  ;;  %v608_v59 = vshll.u32 %v6842_v4, %v606_v60  ;;  %v611_v28 = vsub.s32 4294967266, %v606_v60 }
  0xae   :  { %v654_v24 = vshrl.u32 %v11049_v3, %v6544_v47  ;;  %v1753_v30 = vsel %vm1670_vm4, %v1752_v19, %v1751_v34  ;;  %v6910_v6 = vsub.s32 %v1934_v35, %v1937_v13  ;;  %v657_v14 = vor.u32 %v656_v18, %v655_v21 }
  0xaf   :  { %v660_v27 = vor.u32 %v659_v33, %v658_v53  ;;  %v1756_v44 = vsel %vm6876_vm10, %v6113_v51, %v1753_v30  ;;  %v609_v23 = vshrl.u32 %v591_v46, %v607_v54  ;;  %v612_v2 = vadd.s32 127, %v611_v28 }
  0xb0   :  { %v663_v61 = vor.u32 %v662_v32, %v661_v57  ;;  %5683 = vcosq.f32 %v1756_v44  ;;  %v1940_v4 = vsub.s32 0, %v6910_v6  ;;  %vm670_vm1 = vcmp.lt.s32.totalorder %v6563_v36, 1 }
  0xb1   :  { %vm672_vm2 = vcmp.lt.s32.totalorder %v6563_v36, 3  ;;  %5685 = vsinq.f32 %v1756_v44  ;;  %v11062_v47 = vand.u32 2147483647, %v6286_v26  ;;  %v610_v21 = vor.u32 %v609_v23, %v608_v59 }
  0xb2   :  { %v613_v5 = vshll.u32 %v612_v2, 23  ;;  %v675_v46 = vsel %vm673_vm0, %v663_v61, 2102212464  ;;  %v1761_v18 = vand.u32 3, %v1757_v58  ;;  %v5144_v34 = vmin.u32 %v1940_v4, %v6910_v6 }
  0xb3   :  { %vm6920_vm4 = vcmp.le.f32.partialorder %v11062_v47, 0.7853982  ;;  %vm671_vm10 = vcmp.lt.s32.totalorder %v6563_v36, 2  ;;  %v674_v53 = vsel %vm670_vm1, %v654_v24, %v657_v14  ;;  %v617_v57 = vcvt.s32.f32 %v610_v21 }
  0xb4   :  { %v614_v33 = vor.u32 4788187, %v613_v5  ;;  %v678_v32 = vsel %vm670_vm1, %v657_v14, %v660_v27  ;;  %v680_v23 = vsel %vm672_vm2, %v663_v61, %v6623_v25  ;;  %v1942_v19 = vclz %v5144_v34 }
  0xb5   :  { %v676_v58 = vsel %vm672_vm2, %v660_v27, %v675_v46  ;;  %v682_v60 = vsel %vm670_vm1, %v660_v27, %v663_v61  ;;  %v684_v24 = vsel %vm672_vm2, %v6594_v42, %v6627_v39  ;;  %v681_v54 = vsel %vm671_vm10, %v678_v32, %v680_v23 }
  0xb6   :  { %v615_v13 = vand.u32 2147483647, %v614_v33  ;;  %v685_v59 = vsel %vm671_vm10, %v682_v60, %v684_v24  ;;  %v686_v25 = vshll.u32 %v646_v31, 8  ;;  %vm1762_vm0 = vcmp.lt.s32.totalorder %v1761_v18, 2 }
  0xb7   :  { %vm537_vm9 = vcmp.lt.s32.totalorder %v6286_v26, 0  ;;  %v621_v28 = vsub.s32 4, %v6817_v50  ;;  %v5145_v30 = vadd.s32 4294967294, %v1942_v19  ;;  %v1930_v61 = vadd.s32 %v6824_v40, %v6820_v20  ;;  %v5875_v20 = vld [vmem:[%s10776_s2 + $0x58] sm:$0xff] }
  0xb8   :  { %v618_v27 = vmul.f32 %v617_v57, %v615_v13  ;;  %v6951_v14 = vmul.u32.u64.low %v686_v25, %v685_v59  ;;  %v6952_v39 = vmul.u32.u64.high %v686_v25, %v685_v59, %v6951_v14  ;;  %v677_v42 = vsel %vm671_vm10, %v674_v53, %v676_v58 }
  0xb9   :  { %vm5146_vm1 = vcmp.lt.s32.totalorder %v5145_v30, 0  ;;  %v6956_v44 = vmul.u32.u64.low %v686_v25, %v681_v54  ;;  %v6957_v2 = vmul.u32.u64.high %v686_v25, %v681_v54, %v6956_v44  ;;  %vm1763_vm2 = vcmp.eq.s32.totalorder %v1761_v18, 0 }
  0xba   :  { %vm1766_vm15 = vcmp.eq.s32.totalorder %v1761_v18, 2  ;;  %v619_v31 = vxor.u32 2147483648, %v618_v27  ;;  %v1945_v4 = vsel %vm5146_vm1, 0, %v5145_v30  ;;  %v5684_v47 = vpop.eup %5683  ;;  %vm449_vm11 = vcmp.lt.f32.partialorder %v5875_v20, 6.0 }
  0xbb   :  { %v622_v40 = vsel %vm537_vm9, %v621_v28, %v6817_v50  ;;  %v1946_v36 = vsub.s32 32, %v1945_v4  ;;  %v1947_v21 = vshll.u32 %v6910_v6, %v1945_v4  ;;  %v1950_v5 = vsub.s32 4294967266, %v1945_v4  ;;  %v5686_v46 = vpop.eup %5685 }
  0xbc   :  { %v1767_v34 = vxor.u32 2147483648, %v5684_v47  ;;  %v620_v53 = vsel %vm537_vm9, %v619_v31, %v618_v27  ;;  %v693_v33 = vmul.u32 %v686_v25, %v677_v42  ;;  %vm695_vm10 = vc.u32 %v6952_v39, %v6956_v44 }
  0xbd   :  { %v1764_v57 = vxor.u32 2147483648, %v5686_v46  ;;  %v623_v32 = vsel %vm6920_vm4, %v6286_v26, %v620_v53  ;;  %v1948_v23 = vshrl.u32 %v1930_v61, %v1946_v36  ;;  %v1951_v50 = vadd.s32 127, %v1950_v5 }
  0xbe   :  { %vm1760_vm1 = vweird.f32 %v6113_v51  ;;  %v1768_v6 = vsel %vm1766_vm15, %v1767_v34, %v5686_v46  ;;  %5687 = vcosq.f32 %v623_v32  ;;  %v696_v19 = vadd.s32 1, %v6957_v2 }
  0xbf   :  { %v1765_v58 = vsel %vm1763_vm2, %v5684_v47, %v1764_v57  ;;  %5689 = vsinq.f32 %v623_v32  ;;  %v1949_v60 = vor.u32 %v1948_v23, %v1947_v21  ;;  %v1952_v24 = vshll.u32 %v1951_v50, 23 }
  0xc0   :  { %v1769_v13 = vsel %vm1762_vm0, %v1765_v58, %v1768_v6  ;;  %v624_v54 = vsel %vm6920_vm4, 0, %v622_v40  ;;  %v1960_v59 = vsub.s32 4, %v6892_v22  ;;  %v697_v51 = vsel %vm695_vm10, %v696_v19, %v6957_v2 }
  0xc1   :  { %v1770_v25 = vsel %vm1760_vm1, nan, %v1769_v13  ;;  %v1953_v28 = vor.u32 4788187, %v1952_v24  ;;  %v1956_v30 = vcvt.s32.f32 %v1949_v60  ;;  %v698_v27 = vadd.s32 %v697_v51, %v693_v33 }
  0xc2   :  { %v6988_v61 = vshrl.u32 %v11006_v62, %v6848_v10  ;;  %v6992_v18 = vshrl.u32 %v11008_v9, %v6848_v10  ;;  %v5171_v35 = vadd.s32 4294967169, %v6837_v45  ;;  %v3842_v14 = vadd.f32 1.0, %v1770_v25 }
  0xc3   :  { %v1362_v42 = vand.u32 2139095040, %v6815_v17  ;;  %v628_v31 = vand.u32 3, %v624_v54  ;;  %v1954_v4 = vand.u32 2147483647, %v1953_v28  ;;  %v699_v2 = vadd.s32 536870912, %v698_v27 }
  0xc4   :  { %v6997_v47 = vshrl.u32 %v6872_v12, 5  ;;  %v7000_v40 = vand.u32 31, %v6872_v12  ;;  %v3874_v36 = vmul.f32 0.5, %v3842_v14  ;;  %vm1876_vm15 = vcmp.lt.s32.totalorder %v6190_v52, 0 }
  0xc5   :  { %v7004_v21 = vmul.f32 0.16666667, %v6840_v29  ;;  %v1957_v5 = vmul.f32 %v1956_v30, %v1954_v4  ;;  %v1961_v45 = vsel %vm1876_vm15, %v1960_v59, %v6892_v22  ;;  %v7009_v46 = vshrl.u32 %v699_v2, 30 }
  0xc6   :  { %v7011_v34 = vadd.s32 1, %v5171_v35  ;;  %v3906_v53 = vsel %vm449_vm11, %v3874_v36, 0.0  ;;  %v11066_v12 = vand.u32 2147483647, %v6190_v52  ;;  %v741_v29 = vand.u32 2147483647, %v6047_v11 }
  0xc7   :  { %11065 = vst [vmem:[#allocation94_spill] sm:$0xff] %v7004_v21  ;;  %3984 = vperm.xlu1 %5678, %v3906_v53   ;;  %vm630_vm0 = vcmp.eq.s32.totalorder %v628_v31, 0  ;;  %vm633_vm9 = vcmp.eq.s32.totalorder %v628_v31, 2  ;;  %v1958_v57 = vxor.u32 2147483648, %v1957_v5  ;;  %v701_v22 = vshll.u32 %v7009_v46, 30 }
  0xc8   :  { %vm7016_vm4 = vcmp.le.f32.partialorder %v11066_v12, 0.7853982  ;;  %v5688_v32 = vpop.eup %5687  ;;  %v758_v20 = vshll.u32 %v11049_v3, %v6118_v56  ;;  %v759_v50 = vshrl.u32 %v11053_v16, %v6131_v1  ;;  %v761_v6 = vshll.u32 %v11053_v16, %v6118_v56 }
  0xc9   :  { %v1963_v23 = vsel %vm7016_vm4, 0, %v1961_v45  ;;  %v5690_v19 = vpop.eup %5689  ;;  %v634_v58 = vxor.u32 2147483648, %v5688_v32  ;;  %v1959_v60 = vsel %vm1876_vm15, %v1958_v57, %v1957_v5  ;;  %v7032_v24 = vsub.s32 %v698_v27, %v701_v22 }
  0xca   :  { %v762_v13 = vshrl.u32 %v11050_v7, %v6131_v1  ;;  %vm629_vm11 = vcmp.lt.s32.totalorder %v628_v31, 2  ;;  %v631_v54 = vxor.u32 2147483648, %v5690_v19  ;;  %v1962_v59 = vsel %vm7016_vm4, %v6190_v52, %v1959_v60  ;;  %v11070_v60 = vld [vmem:[#allocation25_spill] sm:$0xff] }
  0xcb   :  { %v748_v51 = vand.u32 8388607, %v741_v29  ;;  %vm627_vm2 = vweird.f32 %v6286_v26  ;;  %v635_v25 = vsel %vm633_vm9, %v634_v58, %v5690_v19  ;;  %5691 = vcosq.f32 %v1962_v59  ;;  %v5876_v26 = vld [vmem:[%s10776_s2] sm:$0xff] }
  0xcc   :  { %v704_v28 = vsub.s32 0, %v7032_v24  ;;  %v632_v30 = vsel %vm630_vm0, %v5688_v32, %v631_v54  ;;  %5693 = vsinq.f32 %v1962_v59  ;;  %v1967_v27 = vand.u32 3, %v1963_v23 }
  0xcd   :  { %v760_v35 = vor.u32 %v759_v50, %v758_v20  ;;  %v636_v14 = vsel %vm629_vm11, %v632_v30, %v635_v25  ;;  %v763_v2 = vor.u32 %v762_v13, %v761_v6  ;;  %v764_v36 = vshll.u32 %v11050_v7, %v6118_v56  ;;  %v11069_v20 = vld [vmem:[#allocation20_spill] sm:$0xff] }
  0xce   :  { %v5096_v4 = vmin.u32 %v704_v28, %v7032_v24  ;;  %vm438_vm10 = vcmp.lt.f32.partialorder %v5876_v26, 6.0  ;;  %v637_v5 = vsel %vm627_vm2, nan, %v636_v14  ;;  %v749_v45 = vor.u32 8388608, %v748_v51 }
  0xcf   :  { %v757_v31 = vshrl.u32 %v11049_v3, %v6131_v1  ;;  %v3831_v53 = vadd.f32 1.0, %v637_v5  ;;  %v765_v33 = vshrl.u32 %v11002_v48, %v6131_v1  ;;  %vm773_vm1 = vcmp.lt.s32.totalorder %v6140_v8, 1 }
  0xd0   :  { %v706_v12 = vclz %v5096_v4  ;;  %vm1968_vm15 = vcmp.lt.s32.totalorder %v1967_v27, 2  ;;  %vm1969_vm4 = vcmp.eq.s32.totalorder %v1967_v27, 0  ;;  %vm774_vm0 = vcmp.lt.s32.totalorder %v6140_v8, 2 }
  0xd1   :  { %vm775_vm9 = vcmp.lt.s32.totalorder %v6140_v8, 3  ;;  %v3863_v56 = vmul.f32 0.5, %v3831_v53  ;;  %v766_v22 = vor.u32 %v765_v33, %v764_v36  ;;  %v781_v32 = vsel %vm773_vm1, %v760_v35, %v763_v2 }
  0xd2   :  { %v5097_v57 = vadd.s32 4294967294, %v706_v12  ;;  %v694_v23 = vadd.s32 %v6956_v44, %v6952_v39  ;;  %v777_v1 = vsel %vm773_vm1, %v757_v31, %v760_v35  ;;  %v787_v50 = vsel %vm775_vm9, %v11069_v20, %v6206_v63 }
  0xd3   :  { %v789_v6 = vshll.u32 %v749_v45, 8  ;;  %v3895_v19 = vsel %vm438_vm10, %v3863_v56, 0.0  ;;  %v778_v58 = vsel %vm776_vm6, %v766_v22, 2102212464  ;;  %v783_v13 = vsel %vm775_vm9, %v766_v22, %v11070_v60 }
  0xd4   :  { %vm5098_vm11 = vcmp.lt.s32.totalorder %v5097_v57, 0  ;;  %3929 = vperm.xlu0 %5677, %v3895_v19   ;;  %v779_v59 = vsel %vm775_vm9, %v763_v2, %v778_v58  ;;  %v784_v39 = vsel %vm774_vm0, %v781_v32, %v783_v13  ;;  %v785_v44 = vsel %vm773_vm1, %v763_v2, %v766_v22 }
  0xd5   :  { %v709_v54 = vsel %vm5098_vm11, 0, %v5097_v57  ;;  %v5692_v51 = vpop.eup %5691  ;;  %vm1972_vm2 = vcmp.eq.s32.totalorder %v1967_v27, 2  ;;  %v788_v14 = vsel %vm774_vm0, %v785_v44, %v787_v50  ;;  %vm2527_vm6 = vcmp.lt.s32.totalorder %v6786_v55, 4 }
  0xd6   :  { %v710_v63 = vsub.s32 32, %v709_v54  ;;  %v711_v25 = vshll.u32 %v7032_v24, %v709_v54  ;;  %v714_v28 = vsub.s32 4294967266, %v709_v54  ;;  %v5694_v30 = vpop.eup %5693  ;;  %v1973_v35 = vxor.u32 2147483648, %v5692_v51 }
  0xd7   :  { %v7077_v4 = vmul.u32.u64.low %v789_v6, %v784_v39  ;;  %v7078_v36 = vmul.u32.u64.high %v789_v6, %v784_v39, %v7077_v4  ;;  %v1970_v26 = vxor.u32 2147483648, %v5694_v30  ;;  %v780_v45 = vsel %vm774_vm0, %v777_v1, %v779_v59 }
  0xd8   :  { %v712_v5 = vshrl.u32 %v694_v23, %v710_v63  ;;  %v715_v2 = vadd.s32 127, %v714_v28  ;;  %vm1966_vm10 = vweird.f32 %v6190_v52  ;;  %v1974_v24 = vsel %vm1972_vm2, %v1973_v35, %v5694_v30  ;;  %v11074_v63 = vld [vmem:[#allocation8_spill] sm:$0xff]  ;;  %v11075_v28 = vld [vmem:[#allocation13_spill] sm:$0xff] }
  0xd9   :  { %v7085_v31 = vmul.u32.u64.low %v789_v6, %v788_v14  ;;  %v7086_v53 = vmul.u32.u64.high %v789_v6, %v788_v14, %v7085_v31  ;;  %v7090_v12 = vor.u32 %v6988_v61, %v6861_v0  ;;  %v1971_v33 = vsel %vm1969_vm4, %v5692_v51, %v1970_v26  ;;  %v11076_v14 = vld [vmem:[#allocation16_spill] sm:$0xff] }
  0xda   :  { %v713_v56 = vor.u32 %v712_v5, %v711_v25  ;;  %v716_v57 = vshll.u32 %v715_v2, 23  ;;  %v2523_v22 = vor.u32 %v6992_v18, %v6865_v15  ;;  %v1975_v8 = vsel %vm1968_vm15, %v1971_v33, %v1974_v24  ;;  %v5877_v18 = vld [vmem:[%s10776_s2 + $0x68] sm:$0xff] }
  0xdb   :  { %v796_v32 = vmul.u32 %v789_v6, %v780_v45  ;;  %v799_v52 = vadd.s32 1, %v7078_v36  ;;  %v1976_v23 = vsel %vm1966_vm10, nan, %v1975_v8  ;;  %v724_v50 = vsub.s32 4, %v7009_v46 }
  0xdc   :  { %v717_v1 = vor.u32 4788187, %v716_v57  ;;  %v720_v20 = vcvt.s32.f32 %v713_v56  ;;  %v7099_v0 = vsub.s32 32, %v7000_v40  ;;  %v1363_v61 = vshrl.u32 %v1362_v42, 23 }
  0xdd   :  { %v3844_v19 = vadd.f32 1.0, %v1976_v23  ;;  %vm798_vm1 = vc.u32 %v7086_v53, %v7077_v4  ;;  %v1179_v15 = vshll.u32 %v11002_v48, %v7000_v40  ;;  %vm451_vm15 = vcmp.lt.f32.partialorder %v5877_v18, 6.0  ;;  %v7165_v23 = vld [vmem:[%s10776_s2 + $0xb0] sm:$0xff] }
  0xde   :  { %v718_v27 = vand.u32 2147483647, %v717_v1  ;;  %v800_v6 = vsel %vm798_vm1, %v799_v52, %v7078_v36  ;;  %v7113_v58 = vshll.u32 %v11006_v62, %v7000_v40  ;;  %vm640_vm4 = vcmp.lt.s32.totalorder %v6350_v37, 0  ;;  %v11077_v18 = vld [vmem:[#allocation18_spill] sm:$0xff] }
  0xdf   :  { %v3876_v42 = vmul.f32 0.5, %v3844_v19  ;;  %v801_v60 = vadd.s32 %v800_v6, %v796_v32  ;;  %vm2606_vm0 = vcmp.gt.s32.totalorder %v7011_v34, 0  ;;  %v11071_v13 = vand.u32 2147483647, %v6350_v37 }
  0xe0   :  { %v721_v59 = vmul.f32 %v720_v20, %v718_v27  ;;  %v725_v39 = vsel %vm640_vm4, %v724_v50, %v7009_v46  ;;  %v844_v25 = vand.u32 2147483647, %v11074_v63  ;;  %v861_v30 = vshll.u32 %v11049_v3, %v11075_v28 }
  0xe1   :  { %vm7119_vm9 = vcmp.le.f32.partialorder %v11071_v13, 0.7853982  ;;  %v3908_v44 = vsel %vm451_vm15, %v3876_v42, 0.0  ;;  %v802_v51 = vadd.s32 536870912, %v801_v60  ;;  %v862_v36 = vshrl.u32 %v11053_v16, %v11076_v14 }
  0xe2   :  { %3994 = vperm.xlu1 %5678, %v3908_v44   ;;  %v722_v35 = vxor.u32 2147483648, %v721_v59  ;;  %v864_v26 = vshll.u32 %v11053_v16, %v11075_v28  ;;  %v865_v5 = vshrl.u32 %v11050_v7, %v11076_v14  ;;  %v7138_v46 = vsel %vm2527_vm6, %v7090_v12, 920167782 }
  0xe3   :  { %v7140_v2 = vshrl.u32 %v802_v51, 30  ;;  %v867_v45 = vshll.u32 %v11050_v7, %v11075_v28  ;;  %v868_v24 = vshrl.u32 %v11002_v48, %v11076_v14  ;;  %v1180_v31 = vshrl.u32 %v11006_v62, %v7099_v0 }
  0xe4   :  { %v7150_v33 = vshrl.u32 %v11008_v9, %v7099_v0  ;;  %v5123_v56 = vadd.s32 4294967169, %v1363_v61  ;;  %v723_v57 = vsel %vm640_vm4, %v722_v35, %v721_v59  ;;  %v2607_v8 = vsel %vm2606_vm0, %v7011_v34, 0 }
  0xe5   :  { %v726_v32 = vsel %vm7119_vm9, %v6350_v37, %v723_v57  ;;  %v727_v52 = vsel %vm7119_vm9, 0, %v725_v39  ;;  %v804_v1 = vshll.u32 %v7140_v2, 30  ;;  %v851_v34 = vand.u32 8388607, %v844_v25  ;;  %v11080_v57 = vld [vmem:[#allocation28_spill] sm:$0xff] }
  0xe6   :  { %5695 = vcosq.f32 %v726_v32  ;;  %218 = vperm.xlu1 %5678, %v7165_v23   ;;  %v863_v20 = vor.u32 %v862_v36, %v861_v30  ;;  %v866_v50 = vor.u32 %v865_v5, %v864_v26  ;;  %v869_v19 = vor.u32 %v868_v24, %v867_v45  ;;  %v11079_v45 = vld [vmem:[#allocation26_spill] sm:$0xff] }
  0xe7   :  { %5697 = vsinq.f32 %v726_v32  ;;  %v7171_v61 = vsub.s32 %v801_v60, %v804_v1  ;;  %vm876_vm11 = vcmp.lt.s32.totalorder %v11077_v18, 1  ;;  %v7176_v27 = vsel %vm2527_vm6, %v2523_v22, 1326507024  ;;  %v7189_v60 = vld [vmem:[%s10776_s2 + $0xb8] sm:$0xff] }
  0xe8   :  { %v7178_v6 = vshrl.u32 %v2607_v8, 5  ;;  %v2701_v42 = vand.u32 2139095040, %v7004_v21  ;;  %v860_v13 = vshrl.u32 %v11049_v3, %v11076_v14  ;;  %v7183_v54 = vand.u32 31, %v2607_v8  ;;  %v11081_v8 = vld [vmem:[#allocation21_spill] sm:$0xff] }
  0xe9   :  { %v807_v59 = vsub.s32 0, %v7171_v61  ;;  %vm878_vm2 = vcmp.lt.s32.totalorder %v11077_v18, 3  ;;  %v881_v22 = vsel %vm879_vm7, %v869_v19, 2102212464  ;;  %v731_v39 = vand.u32 3, %v727_v52 }
  0xea   :  { %11078 = vst [vmem:[#allocation20_spill] sm:$0xff] %v7178_v6  ;;  %223 = vperm.xlu1 %5678, %v7189_v60   ;;  %v852_v44 = vor.u32 8388608, %v851_v34  ;;  %vm877_vm10 = vcmp.lt.s32.totalorder %v11077_v18, 2  ;;  %v884_v51 = vsel %vm876_vm11, %v863_v20, %v866_v50  ;;  %v7198_v28 = vor.u32 %v1180_v31, %v1179_v15 }
  0xeb   :  { %v1184_v30 = vor.u32 %v7150_v33, %v7113_v58  ;;  %v7202_v35 = vadd.s32 1, %v5123_v56  ;;  %v5100_v14 = vmin.u32 %v807_v59, %v7171_v61  ;;  %v7205_v36 = vshrl.u32 %v2701_v42, 23  ;;  %v11082_v42 = vld [vmem:[#allocation75_spill] sm:$0xff] }
  0xec   :  { %v880_v26 = vsel %vm876_vm11, %v860_v13, %v863_v20  ;;  %v882_v5 = vsel %vm878_vm2, %v866_v50, %v881_v22  ;;  %v886_v15 = vsel %vm878_vm2, %v869_v19, %v11079_v45  ;;  %v888_v56 = vsel %vm876_vm11, %v866_v50, %v869_v19  ;;  %v5878_v19 = vld [vmem:[%s10776_s2 + $0x8] sm:$0xff] }
  0xed   :  { %v809_v24 = vclz %v5100_v14  ;;  %v887_v31 = vsel %vm877_vm10, %v884_v51, %v886_v15  ;;  %v890_v32 = vsel %vm878_vm2, %v11081_v8, %v11080_v57  ;;  %vm730_vm7 = vweird.f32 %v6350_v37 }
  0xee   :  { %vm732_vm1 = vcmp.lt.s32.totalorder %v731_v39, 2  ;;  %v891_v52 = vsel %vm877_vm10, %v888_v56, %v890_v32  ;;  %v892_v1 = vshll.u32 %v852_v44, 8  ;;  %vm736_vm15 = vcmp.eq.s32.totalorder %v731_v39, 2 }
  0xef   :  { %v5101_v34 = vadd.s32 4294967294, %v809_v24  ;;  %v883_v20 = vsel %vm877_vm10, %v880_v26, %v882_v5  ;;  %v10919_v13 = vand.u32 2147483647, %v11082_v42  ;;  %vm439_vm4 = vcmp.lt.f32.partialorder %v5878_v19, 6.0 }
  0xf0   :  { %v5696_v50 = vpop.eup %5695  ;;  %v7231_v59 = vmul.u32.u64.low %v892_v1, %v891_v52  ;;  %v7232_v22 = vmul.u32.u64.high %v892_v1, %v891_v52, %v7231_v59  ;;  %v7234_v51 = vmul.u32.u64.low %v892_v1, %v887_v31  ;;  %v7235_v14 = vmul.u32.u64.high %v892_v1, %v887_v31, %v7234_v51 }
  0xf1   :  { %v5698_v44 = vpop.eup %5697  ;;  %vm733_vm0 = vcmp.eq.s32.totalorder %v731_v39, 0  ;;  %v737_v45 = vxor.u32 2147483648, %v5696_v50  ;;  %v797_v18 = vadd.s32 %v7077_v4, %v7086_v53  ;;  %vm5102_vm9 = vcmp.lt.s32.totalorder %v5101_v34, 0 }
  0xf2   :  { %v734_v26 = vxor.u32 2147483648, %v5698_v44  ;;  %v812_v5 = vsel %vm5102_vm9, 0, %v5101_v34  ;;  %v899_v15 = vmul.u32 %v892_v1, %v883_v20  ;;  %v2499_v24 = vand.u32 8388607, %v10919_v13 }
  0xf3   :  { %v738_v56 = vsel %vm736_vm15, %v737_v45, %v5698_v44  ;;  %v813_v57 = vsub.s32 32, %v812_v5  ;;  %v814_v31 = vshll.u32 %v7171_v61, %v812_v5  ;;  %v817_v8 = vsub.s32 4294967266, %v812_v5 }
  0xf4   :  { %v735_v32 = vsel %vm733_vm0, %v5696_v50, %v734_v26  ;;  %vm743_vm11 = vcmp.lt.s32.totalorder %v6047_v11, 0  ;;  %vm901_vm2 = vc.u32 %v7232_v22, %v7234_v51  ;;  %v902_v4 = vadd.s32 1, %v7235_v14 }
  0xf5   :  { %v739_v53 = vsel %vm732_vm1, %v735_v32, %v738_v56  ;;  %v815_v52 = vshrl.u32 %v797_v18, %v813_v57  ;;  %v818_v1 = vadd.s32 127, %v817_v8  ;;  %v827_v34 = vsub.s32 4, %v7140_v2 }
  0xf6   :  { %v740_v20 = vsel %vm730_vm7, nan, %v739_v53  ;;  %vm7254_vm10 = vcmp.le.f32.partialorder %v741_v29, 0.7853982  ;;  %v903_v50 = vsel %vm901_vm2, %v902_v4, %v7235_v14  ;;  %v2500_v59 = vor.u32 8388608, %v2499_v24 }
  0xf7   :  { %v2509_v39 = vshll.u32 %v11049_v3, %v6788_v38  ;;  %v3832_v44 = vadd.f32 1.0, %v740_v20  ;;  %v816_v45 = vor.u32 %v815_v52, %v814_v31  ;;  %v819_v18 = vshll.u32 %v818_v1, 23 }
  0xf8   :  { %v904_v26 = vadd.s32 %v903_v50, %v899_v15  ;;  %v2510_v37 = vshrl.u32 %v11053_v16, %v6848_v10  ;;  %v2512_v5 = vshll.u32 %v11053_v16, %v6788_v38  ;;  %v2513_v29 = vshrl.u32 %v11050_v7, %v6848_v10 }
  0xf9   :  { %v2515_v14 = vshll.u32 %v11050_v7, %v6788_v38  ;;  %vm1188_vm7 = vcmp.lt.s32.totalorder %v6997_v47, 4  ;;  %v3864_v24 = vmul.f32 0.5, %v3832_v44  ;;  %v820_v56 = vor.u32 4788187, %v819_v18 }
  0xfa   :  { %v823_v57 = vcvt.s32.f32 %v816_v45  ;;  %v905_v31 = vadd.s32 536870912, %v904_v26  ;;  %v2511_v8 = vor.u32 %v2510_v37, %v2509_v39  ;;  %v2514_v15 = vor.u32 %v2513_v29, %v2512_v5 }
  0xfb   :  { %v2516_v32 = vshrl.u32 %v11002_v48, %v6848_v10  ;;  %vm2524_vm1 = vcmp.lt.s32.totalorder %v6786_v55, 1  ;;  %v3896_v4 = vsel %vm439_vm4, %v3864_v24, 0.0  ;;  %v821_v53 = vand.u32 2147483647, %v820_v56 }
  0xfc   :  { %v828_v38 = vsel %vm743_vm11, %v827_v34, %v7140_v2  ;;  %v7277_v52 = vshrl.u32 %v905_v31, 30  ;;  %3934 = vperm.xlu0 %5677, %v3896_v4   ;;  %v2508_v1 = vshrl.u32 %v11049_v3, %v6848_v10  ;;  %vm2525_vm15 = vcmp.lt.s32.totalorder %v6786_v55, 2 }
  0xfd   :  { %v2517_v20 = vor.u32 %v2516_v32, %v2515_v14  ;;  %vm2526_vm0 = vcmp.lt.s32.totalorder %v6786_v55, 3  ;;  %v824_v50 = vmul.f32 %v823_v57, %v821_v53  ;;  %v2532_v39 = vsel %vm2524_vm1, %v2511_v8, %v2514_v15 }
  0xfe   :  { %v907_v19 = vshll.u32 %v7277_v52, 30  ;;  %v2538_v2 = vsel %vm2526_vm0, %v7090_v12, %v7176_v27  ;;  %v2540_v45 = vshll.u32 %v2500_v59, 8  ;;  %v7294_v18 = vsub.s32 32, %v7183_v54 }
  0xff   :  { %v2529_v34 = vsel %vm2527_vm6, %v2517_v20, 2102212464  ;;  %v2534_v44 = vsel %vm2526_vm0, %v2517_v20, %v7138_v46  ;;  %v2536_v10 = vsel %vm2524_vm1, %v2514_v15, %v2517_v20  ;;  %v825_v37 = vxor.u32 2147483648, %v824_v50 }
 0x100   :  { %11085 = vst [vmem:[#allocation25_spill] sm:$0xff] %v7294_v18  ;;  %v830_v5 = vsel %vm7254_vm10, 0, %v828_v38  ;;  %v7298_v29 = vsub.s32 %v904_v26, %v907_v19  ;;  %v7302_v12 = vshll.u32 %v11002_v48, %v7183_v54  ;;  %v2528_v46 = vsel %vm2524_vm1, %v2508_v1, %v2511_v8 }
 0x101   :  { %v2530_v27 = vsel %vm2526_vm0, %v2514_v15, %v2529_v34  ;;  %v2539_v59 = vsel %vm2525_vm15, %v2536_v10, %v2538_v2  ;;  %v7310_v14 = vshll.u32 %v11006_v62, %v7183_v54  ;;  %v826_v24 = vsel %vm743_vm11, %v825_v37, %v824_v50  ;;  %v11086_v50 = vld [vmem:[#allocation65_spill] sm:$0xff] }
 0x102   :  { %v910_v26 = vsub.s32 0, %v7298_v29  ;;  %v2535_v56 = vsel %vm2525_vm15, %v2532_v39, %v2534_v44  ;;  %v829_v57 = vsel %vm7254_vm10, %v6047_v11, %v826_v24  ;;  %v7320_v31 = vand.u32 3, %v830_v5 }
 0x103   :  { %v7322_v8 = vmul.u32.u64.low %v2540_v45, %v2539_v59  ;;  %v7323_v15 = vmul.u32.u64.high %v2540_v45, %v2539_v59, %v7322_v8  ;;  %vm1370_vm6 = vcmp.gt.s32.totalorder %v7202_v35, 0  ;;  %5699 = vcosq.f32 %v829_v57 }
 0x104   :  { %v5104_v32 = vmin.u32 %v910_v26, %v7298_v29  ;;  %v2531_v4 = vsel %vm2525_vm15, %v2528_v46, %v2530_v27  ;;  %v7332_v53 = vsel %vm1188_vm7, %v7198_v28, 920167782  ;;  %5701 = vsinq.f32 %v829_v57 }
 0x105   :  { %v7334_v61 = vmul.u32.u64.low %v2540_v45, %v2535_v56  ;;  %v7335_v38 = vmul.u32.u64.high %v2540_v45, %v2535_v56, %v7334_v61  ;;  %v7343_v1 = vsel %vm1188_vm7, %v1184_v30, 1326507024  ;;  %v7346_v55 = vadd.s32 4294967169, %v7205_v36 }
 0x106   :  { %v912_v20 = vclz %v5104_v32  ;;  %v10918_v19 = vand.u32 2147483647, %v11086_v50  ;;  %v7350_v39 = vsel %vm1370_vm6, %v7202_v35, 0  ;;  %vm836_vm4 = vcmp.eq.s32.totalorder %v7320_v31, 0 }
 0x107   :  { %v2547_v2 = vmul.u32 %v2540_v45, %v2531_v4  ;;  %vm2549_vm9 = vc.u32 %v7323_v15, %v7334_v61  ;;  %vm835_vm11 = vcmp.lt.s32.totalorder %v7320_v31, 2  ;;  %v964_v30 = vshll.u32 %v11049_v3, %v6644_v49 }
 0x108   :  { %v5105_v58 = vadd.s32 4294967294, %v912_v20  ;;  %v954_v33 = vand.u32 8388607, %v10918_v19  ;;  %v965_v36 = vshrl.u32 %v11053_v16, %v6680_v43  ;;  %vm833_vm2 = vweird.f32 %v6047_v11 }
 0x109   :  { %v2550_v35 = vadd.s32 1, %v7335_v38  ;;  %v967_v34 = vshll.u32 %v11053_v16, %v6644_v49  ;;  %v968_v44 = vshrl.u32 %v11050_v7, %v6680_v43  ;;  %v970_v10 = vshll.u32 %v11050_v7, %v6644_v49 }
 0x10a   :  { %vm839_vm10 = vcmp.eq.s32.totalorder %v7320_v31, 2  ;;  %v900_v45 = vadd.s32 %v7234_v51, %v7232_v22  ;;  %vm5106_vm1 = vcmp.lt.s32.totalorder %v5105_v58, 0  ;;  %v971_v37 = vshrl.u32 %v11002_v48, %v6680_v43  ;;  %v5879_v31 = vld [vmem:[%s10776_s2 + $0x10] sm:$0xff] }
 0x10b   :  { %v915_v5 = vsel %vm5106_vm1, 0, %v5105_v58  ;;  %v2551_v46 = vsel %vm2549_vm9, %v2550_v35, %v7335_v38  ;;  %v969_v27 = vor.u32 %v968_v44, %v967_v34  ;;  %vm979_vm15 = vcmp.lt.s32.totalorder %v6642_v41, 1  ;;  %v11087_v44 = vld [vmem:[#allocation92_spill] sm:$0xff] }
 0x10c   :  { %v916_v59 = vsub.s32 32, %v915_v5  ;;  %v917_v49 = vshll.u32 %v7298_v29, %v915_v5  ;;  %v920_v24 = vsub.s32 4294967266, %v915_v5  ;;  %v2552_v26 = vadd.s32 %v2551_v46, %v2547_v2 }
 0x10d   :  { %v955_v56 = vor.u32 8388608, %v954_v33  ;;  %v963_v22 = vshrl.u32 %v11049_v3, %v6680_v43  ;;  %v966_v51 = vor.u32 %v965_v36, %v964_v30  ;;  %v972_v57 = vor.u32 %v971_v37, %v970_v10  ;;  %v5700_v8 = vpop.eup %5699  ;;  %v11089_v37 = vld [vmem:[#allocation91_spill] sm:$0xff] }
 0x10e   :  { %v918_v32 = vshrl.u32 %v900_v45, %v916_v59  ;;  %v921_v4 = vadd.s32 127, %v920_v24  ;;  %v2553_v20 = vadd.s32 536870912, %v2552_v26  ;;  %vm981_vm0 = vcmp.lt.s32.totalorder %v6642_v41, 3  ;;  %v5702_v38 = vpop.eup %5701  ;;  %v11088_v45 = vld [vmem:[#allocation93_spill] sm:$0xff] }
 0x10f   :  { %v840_v58 = vxor.u32 2147483648, %v5700_v8  ;;  %vm980_vm6 = vcmp.lt.s32.totalorder %v6642_v41, 2  ;;  %v984_v29 = vsel %vm982_vm5, %v972_v57, 2102212464  ;;  %v991_v2 = vsel %vm979_vm15, %v969_v27, %v972_v57 }
 0x110   :  { %v837_v33 = vxor.u32 2147483648, %v5702_v38  ;;  %v919_v43 = vor.u32 %v918_v32, %v917_v49  ;;  %v922_v30 = vshll.u32 %v921_v4, 23  ;;  %v7389_v36 = vshrl.u32 %v2553_v20, 30 }
 0x111   :  { %v841_v35 = vsel %vm839_vm10, %v840_v58, %v5702_v38  ;;  %v987_v34 = vsel %vm979_vm15, %v966_v51, %v969_v27  ;;  %v989_v10 = vsel %vm981_vm0, %v972_v57, %v11087_v44  ;;  %v993_v5 = vsel %vm981_vm0, %v11089_v37, %v11088_v45 }
 0x112   :  { %v838_v46 = vsel %vm836_vm4, %v5700_v8, %v837_v33  ;;  %v923_v59 = vor.u32 4788187, %v922_v30  ;;  %v926_v49 = vcvt.s32.f32 %v919_v43  ;;  %v2555_v24 = vshll.u32 %v7389_v36, 30 }
 0x113   :  { %v842_v32 = vsel %vm835_vm11, %v838_v46, %v841_v35  ;;  %v983_v4 = vsel %vm979_vm15, %v963_v22, %v966_v51  ;;  %v985_v57 = vsel %vm981_vm0, %v969_v27, %v984_v29  ;;  %v994_v20 = vsel %vm980_vm6, %v991_v2, %v993_v5 }
 0x114   :  { %v843_v38 = vsel %vm833_vm2, nan, %v842_v32  ;;  %v924_v8 = vand.u32 2147483647, %v923_v59  ;;  %v7415_v58 = vsub.s32 %v2552_v26, %v2555_v24  ;;  %v995_v33 = vshll.u32 %v955_v56, 8 }
 0x115   :  { %vm440_vm5 = vcmp.lt.f32.partialorder %v5879_v31, 6.0  ;;  %v3833_v43 = vadd.f32 1.0, %v843_v38  ;;  %vm846_vm4 = vcmp.lt.s32.totalorder %v11074_v63, 0  ;;  %v990_v27 = vsel %vm980_vm6, %v987_v34, %v989_v10 }
 0x116   :  { %vm2630_vm9 = vcmp.lt.s32.totalorder %v7178_v6, 4  ;;  %vm7426_vm11 = vcmp.le.f32.partialorder %v844_v25, 0.7853982  ;;  %v927_v26 = vmul.f32 %v926_v49, %v924_v8  ;;  %v930_v56 = vsub.s32 4, %v7277_v52 }
 0x117   :  { %v2558_v22 = vsub.s32 0, %v7415_v58  ;;  %v3865_v51 = vmul.f32 0.5, %v3833_v43  ;;  %v986_v29 = vsel %vm980_vm6, %v983_v4, %v985_v57  ;;  %v2622_v10 = vshrl.u32 %v11006_v62, %v7294_v18 }
 0x118   :  { %v7434_v2 = vmul.u32.u64.low %v995_v33, %v994_v20  ;;  %v7435_v30 = vmul.u32.u64.high %v995_v33, %v994_v20, %v7434_v2  ;;  %v928_v35 = vxor.u32 2147483648, %v927_v26  ;;  %v7446_v45 = vshrl.u32 %v11008_v9, %v7294_v18 }
 0x119   :  { %v5168_v34 = vmin.u32 %v2558_v22, %v7415_v58  ;;  %v7438_v44 = vmul.u32.u64.low %v995_v33, %v990_v27  ;;  %v7439_v25 = vmul.u32.u64.high %v995_v33, %v990_v27, %v7438_v44  ;;  %v7449_v41 = vand.u32 31, %v7350_v39 }
 0x11a   :  { %v3897_v37 = vsel %vm440_vm5, %v3865_v51, 0.0  ;;  %v2708_v5 = vadd.s32 1, %v7346_v55  ;;  %v929_v46 = vsel %vm846_vm4, %v928_v35, %v927_v26  ;;  %v931_v59 = vsel %vm846_vm4, %v930_v56, %v7277_v52 }
 0x11b   :  { %3939 = vperm.xlu0 %5677, %v3897_v37   ;;  %v2560_v49 = vclz %v5168_v34  ;;  %v493_v24 = vmul.f32 3.1415927, %v7189_v60  ;;  %v932_v32 = vsel %vm7426_vm11, %v11074_v63, %v929_v46  ;;  %v1002_v4 = vmul.u32 %v995_v33, %v986_v29 }
 0x11c   :  { %vm1004_vm2 = vc.u32 %v7435_v30, %v7438_v44  ;;  %v7465_v55 = vshrl.u32 %v7350_v39, 5  ;;  %5703 = vcosq.f32 %v932_v32  ;;  %v1005_v20 = vadd.s32 1, %v7439_v25 }
 0x11d   :  { %v5169_v57 = vadd.s32 4294967294, %v2560_v49  ;;  %v7469_v52 = vor.u32 %v2622_v10, %v7302_v12  ;;  %v933_v38 = vsel %vm7426_vm11, 0, %v931_v59  ;;  %5705 = vsinq.f32 %v932_v32  ;;  %v11094_v32 = vld [vmem:[#allocation9_spill] sm:$0xff] }
 0x11e   :  { %v7476_v8 = vsub.s32 32, %v7449_v41  ;;  %v2548_v39 = vadd.s32 %v7334_v61, %v7323_v15  ;;  %v1006_v33 = vsel %vm1004_vm2, %v1005_v20, %v7439_v25  ;;  %vm2709_vm1 = vcmp.gt.s32.totalorder %v2708_v5, 0 }
 0x11f   :  { %11092 = vst [vmem:[#allocation8_spill] sm:$0xff] %v7469_v52  ;;  %vm5170_vm10 = vcmp.lt.s32.totalorder %v5169_v57, 0  ;;  %v7481_v31 = vmul.f32 0.16666667, %v493_v24  ;;  %v1007_v43 = vadd.s32 %v1006_v33, %v1002_v4  ;;  %v937_v27 = vand.u32 3, %v933_v38  ;;  %v11095_v38 = vld [vmem:[#allocation14_spill] sm:$0xff] }
 0x120   :  { %v2563_v12 = vsel %vm5170_vm10, 0, %v5169_v57  ;;  %v7487_v22 = vsel %vm2630_vm9, %v7469_v52, 920167782  ;;  %v7491_v15 = vshll.u32 %v11002_v48, %v7449_v41  ;;  %v7495_v61 = vshll.u32 %v11006_v62, %v7449_v41  ;;  %v11096_v33 = vld [vmem:[#allocation17_spill] sm:$0xff] }
 0x121   :  { %v2564_v26 = vsub.s32 32, %v2563_v12  ;;  %v2565_v11 = vshll.u32 %v7415_v58, %v2563_v12  ;;  %v2568_v56 = vsub.s32 4294967266, %v2563_v12  ;;  %11093 = vst [vmem:[#allocation13_spill] sm:$0xff] %v7487_v22  ;;  %v1008_v51 = vadd.s32 536870912, %v1007_v43 }
 0x122   :  { %v7499_v29 = vshrl.u32 %v11006_v62, %v7476_v8  ;;  %v7503_v58 = vshrl.u32 %v11008_v9, %v7476_v8  ;;  %v7506_v34 = vsel %vm2709_vm1, %v2708_v5, 0  ;;  %v7509_v25 = vmul.f32 3.1415927, %v7165_v23  ;;  %v5880_v23 = vld [vmem:[%s10776_s2 + $0x18] sm:$0xff] }
 0x123   :  { %v2566_v2 = vshrl.u32 %v2548_v39, %v2564_v26  ;;  %v2569_v35 = vadd.s32 127, %v2568_v56  ;;  %v7512_v37 = vshrl.u32 %v1008_v51, 30  ;;  %vm938_vm15 = vcmp.lt.s32.totalorder %v937_v27, 2 }
 0x124   :  { %vm939_vm0 = vcmp.eq.s32.totalorder %v937_v27, 0  ;;  %vm942_vm6 = vcmp.eq.s32.totalorder %v937_v27, 2  ;;  %v2578_v49 = vsub.s32 4, %v7389_v36  ;;  %v1050_v4 = vand.u32 2147483647, %v11094_v32  ;;  %v11100_v27 = vld [vmem:[#allocation19_spill] sm:$0xff] }
 0x125   :  { %v2567_v46 = vor.u32 %v2566_v2, %v2565_v11  ;;  %v2570_v59 = vshll.u32 %v2569_v35, 23  ;;  %v1010_v24 = vshll.u32 %v7512_v37, 30  ;;  %vm441_vm5 = vcmp.lt.f32.partialorder %v5880_v23, 6.0 }
 0x126   :  { %v5704_v5 = vpop.eup %5703  ;;  %v1067_v39 = vshll.u32 %v11049_v3, %v11095_v38  ;;  %v1068_v12 = vshrl.u32 %v11053_v16, %v11096_v33  ;;  %v1070_v51 = vshll.u32 %v11053_v16, %v11095_v38  ;;  %v1071_v2 = vshrl.u32 %v11050_v7, %v11096_v33 }
 0x127   :  { %v2571_v57 = vor.u32 4788187, %v2570_v59  ;;  %v2574_v20 = vcvt.s32.f32 %v2567_v46  ;;  %v5706_v26 = vpop.eup %5705  ;;  %v943_v11 = vxor.u32 2147483648, %v5704_v5  ;;  %v7524_v56 = vsub.s32 %v1007_v43, %v1010_v24 }
 0x128   :  { %v940_v35 = vxor.u32 2147483648, %v5706_v26  ;;  %v1073_v46 = vshll.u32 %v11050_v7, %v11095_v38  ;;  %v1074_v59 = vshrl.u32 %v11002_v48, %v11096_v33  ;;  %vm936_vm4 = vweird.f32 %v11074_v63 }
 0x129   :  { %v2572_v19 = vand.u32 2147483647, %v2571_v57  ;;  %v944_v60 = vsel %vm942_vm6, %v943_v11, %v5706_v26  ;;  %vm2494_vm11 = vcmp.lt.s32.totalorder %v11082_v42, 0  ;;  %v1013_v43 = vsub.s32 0, %v7524_v56 }
 0x12a   :  { %v941_v24 = vsel %vm939_vm0, %v5704_v5, %v940_v35  ;;  %v2579_v57 = vsel %vm2494_vm11, %v2578_v49, %v7389_v36  ;;  %v1057_v38 = vand.u32 8388607, %v1050_v4  ;;  %v11097_v63 = vand.u32 2147483647, %v11082_v42 }
 0x12b   :  { %v2575_v10 = vmul.f32 %v2574_v20, %v2572_v19  ;;  %v945_v13 = vsel %vm938_vm15, %v941_v24, %v944_v60  ;;  %v5108_v11 = vmin.u32 %v1013_v43, %v7524_v56  ;;  %v1069_v21 = vor.u32 %v1068_v12, %v1067_v39 }
 0x12c   :  { %vm7547_vm2 = vcmp.le.f32.partialorder %v11097_v63, 0.7853982  ;;  %v946_v5 = vsel %vm936_vm4, nan, %v945_v13  ;;  %v1072_v20 = vor.u32 %v1071_v2, %v1070_v51  ;;  %v1075_v35 = vor.u32 %v1074_v59, %v1073_v46  ;;  %v11101_v2 = vld [vmem:[#allocation29_spill] sm:$0xff] }
 0x12d   :  { %v2576_v19 = vxor.u32 2147483648, %v2575_v10  ;;  %v3834_v52 = vadd.f32 1.0, %v946_v5  ;;  %v2581_v36 = vsel %vm7547_vm2, 0, %v2579_v57  ;;  %v1015_v49 = vclz %v5108_v11 }
 0x12e   :  { %vm1082_vm10 = vcmp.lt.s32.totalorder %v11100_v27, 1  ;;  %v1058_v24 = vor.u32 8388608, %v1057_v38  ;;  %v1066_v63 = vshrl.u32 %v11049_v3, %v11096_v33  ;;  %vm1084_vm1 = vcmp.lt.s32.totalorder %v11100_v27, 3 }
 0x12f   :  { %v2577_v60 = vsel %vm2494_vm11, %v2576_v19, %v2575_v10  ;;  %v3866_v13 = vmul.f32 0.5, %v3834_v52  ;;  %v5109_v12 = vadd.s32 4294967294, %v1015_v49  ;;  %vm1083_vm15 = vcmp.lt.s32.totalorder %v11100_v27, 2  ;;  %v11103_v49 = vld [vmem:[#allocation31_spill] sm:$0xff] }
 0x130   :  { %v2580_v39 = vsel %vm7547_vm2, %v11082_v42, %v2577_v60  ;;  %v1087_v51 = vsel %vm1085_vm8, %v1075_v35, 2102212464  ;;  %v1090_v10 = vsel %vm1082_vm10, %v1069_v21, %v1072_v20  ;;  %v1092_v33 = vsel %vm1084_vm1, %v1075_v35, %v11101_v2  ;;  %v11104_v60 = vld [vmem:[#allocation23_spill] sm:$0xff] }
 0x131   :  { %5707 = vcosq.f32 %v2580_v39  ;;  %v3898_v52 = vsel %vm441_vm5, %v3866_v13, 0.0  ;;  %v1003_v46 = vadd.s32 %v7438_v44, %v7435_v30  ;;  %vm5110_vm0 = vcmp.lt.s32.totalorder %v5109_v12, 0 }
 0x132   :  { %5709 = vsinq.f32 %v2580_v39  ;;  %3944 = vperm.xlu0 %5677, %v3898_v52   ;;  %v1018_v59 = vsel %vm5110_vm0, 0, %v5109_v12  ;;  %v1086_v43 = vsel %vm1082_vm10, %v1066_v63, %v1069_v21  ;;  %v1088_v57 = vsel %vm1084_vm1, %v1072_v20, %v1087_v51 }
 0x133   :  { %v1094_v38 = vsel %vm1082_vm10, %v1072_v20, %v1075_v35  ;;  %v1019_v26 = vsub.s32 32, %v1018_v59  ;;  %v1020_v23 = vshll.u32 %v7524_v56, %v1018_v59  ;;  %v1023_v11 = vsub.s32 4294967266, %v1018_v59 }
 0x134   :  { %v1093_v5 = vsel %vm1083_vm15, %v1090_v10, %v1092_v33  ;;  %v11102_v30 = vand.u32 2139095040, %v7481_v31  ;;  %v2585_v19 = vand.u32 3, %v2581_v36  ;;  %v1096_v21 = vsel %vm1084_vm1, %v11104_v60, %v11103_v49 }
 0x135   :  { %v1098_v63 = vshll.u32 %v1058_v24, 8  ;;  %v1021_v13 = vshrl.u32 %v1003_v46, %v1019_v26  ;;  %v1024_v39 = vadd.s32 127, %v1023_v11  ;;  %v1089_v20 = vsel %vm1083_vm15, %v1086_v43, %v1088_v57 }
 0x136   :  { %v2908_v44 = vshrl.u32 %v11102_v30, 23  ;;  %v1097_v56 = vsel %vm1083_vm15, %v1094_v38, %v1096_v21  ;;  %v11105_v36 = vor.u32 %v7446_v45, %v7310_v14  ;;  %v7608_v2 = vmul.f32 0.16666667, %v7509_v25 }
 0x137   :  { %v7593_v35 = vmul.u32.u64.low %v1098_v63, %v1097_v56  ;;  %v7594_v12 = vmul.u32.u64.high %v1098_v63, %v1097_v56, %v7593_v35  ;;  %v7596_v51 = vmul.u32.u64.low %v1098_v63, %v1093_v5  ;;  %v7597_v10 = vmul.u32.u64.high %v1098_v63, %v1093_v5, %v7596_v51 }
 0x138   :  { %v7605_v24 = vsel %vm2630_vm9, %v11105_v36, 1326507024  ;;  %11107 = vst [vmem:[#allocation18_spill] sm:$0xff] %v7608_v2  ;;  %v1022_v33 = vor.u32 %v1021_v13, %v1020_v23  ;;  %v1025_v27 = vshll.u32 %v1024_v39, 23  ;;  %v7612_v52 = vor.u32 %v7499_v29, %v7491_v15 }
 0x139   :  { %11106 = vst [vmem:[#allocation16_spill] sm:$0xff] %v7605_v24  ;;  %v7617_v59 = vshrl.u32 %v7506_v34, 5  ;;  %v7620_v14 = vand.u32 31, %v7506_v34  ;;  %v5183_v45 = vadd.s32 4294967169, %v2908_v44  ;;  %v1105_v25 = vmul.u32 %v1098_v63, %v1089_v20 }
 0x13a   :  { %v1026_v43 = vor.u32 4788187, %v1025_v27  ;;  %v1029_v57 = vcvt.s32.f32 %v1022_v33  ;;  %vm2590_vm8 = vcmp.eq.s32.totalorder %v2585_v19, 2  ;;  %v1033_v26 = vsub.s32 4, %v7512_v37 }
 0x13b   :  { %11108 = vst [vmem:[#allocation26_spill] sm:$0xff] %v7617_v59  ;;  %11109 = vst [vmem:[#allocation28_spill] sm:$0xff] %v7620_v14  ;;  %v5708_v38 = vpop.eup %5707  ;;  %vm1107_vm6 = vc.u32 %v7594_v12, %v7596_v51  ;;  %v1108_v15 = vadd.s32 1, %v7597_v10  ;;  %v2804_v23 = vand.u32 2139095040, %v7608_v2  ;;  %vm2587_vm5 = vcmp.eq.s32.totalorder %v2585_v19, 0 }
 0x13c   :  { %v5710_v29 = vpop.eup %5709  ;;  %v2591_v11 = vxor.u32 2147483648, %v5708_v38  ;;  %v1027_v34 = vand.u32 2147483647, %v1026_v43  ;;  %vm2584_vm4 = vweird.f32 %v11082_v42  ;;  %vm2586_vm11 = vcmp.lt.s32.totalorder %v2585_v19, 2  ;;  %v5881_v42 = vld [vmem:[%s10776_s2 + $0x98] sm:$0xff] }
 0x13d   :  { %v2588_v5 = vxor.u32 2147483648, %v5710_v29  ;;  %v1109_v30 = vsel %vm1107_vm6, %v1108_v15, %v7597_v10  ;;  %vm949_vm2 = vcmp.lt.s32.totalorder %v11086_v50, 0  ;;  %vm1394_vm10 = vcmp.lt.s32.totalorder %v7465_v55, 4  ;;  %v11113_v10 = vld [vmem:[#allocation86_spill] sm:$0xff] }
 0x13e   :  { %v2592_v44 = vsel %vm2590_vm8, %v2591_v11, %v5710_v29  ;;  %v1030_v49 = vmul.f32 %v1029_v57, %v1027_v34  ;;  %v1110_v60 = vadd.s32 %v1109_v30, %v1105_v25  ;;  %v2914_v21 = vadd.s32 1, %v5183_v45 }
 0x13f   :  { %v2589_v63 = vsel %vm2587_vm5, %v5708_v38, %v2588_v5  ;;  %v11110_v13 = vand.u32 2147483647, %v11086_v50  ;;  %v1034_v19 = vsel %vm949_vm2, %v1033_v26, %v7512_v37  ;;  %v10923_v36 = vand.u32 2147483647, %v11113_v10 }
 0x140   :  { %v2593_v20 = vsel %vm2586_vm11, %v2589_v63, %v2592_v44  ;;  %v1031_v56 = vxor.u32 2147483648, %v1030_v49  ;;  %v1111_v35 = vadd.s32 536870912, %v1110_v60  ;;  %v1170_v27 = vshll.u32 %v11049_v3, %v7000_v40 }
 0x141   :  { %vm7633_vm1 = vcmp.le.f32.partialorder %v11110_v13, 0.7853982  ;;  %v2594_v33 = vsel %vm2584_vm4, nan, %v2593_v20  ;;  %v1171_v45 = vshrl.u32 %v11053_v16, %v7099_v0  ;;  %v1173_v43 = vshll.u32 %v11053_v16, %v7000_v40 }
 0x142   :  { %v3850_v57 = vadd.f32 1.0, %v2594_v33  ;;  %v1032_v37 = vsel %vm949_vm2, %v1031_v56, %v1030_v49  ;;  %v7651_v25 = vshrl.u32 %v1111_v35, 30  ;;  %v1174_v38 = vshrl.u32 %v11050_v7, %v7099_v0 }
 0x143   :  { %vm457_vm15 = vcmp.lt.f32.partialorder %v5881_v42, 6.0  ;;  %v1035_v26 = vsel %vm7633_vm1, %v11086_v50, %v1032_v37  ;;  %v1176_v15 = vshll.u32 %v11050_v7, %v7000_v40  ;;  %v1177_v29 = vshrl.u32 %v11002_v48, %v7099_v0 }
 0x144   :  { %v7666_v11 = vsub.s32 32, %v7620_v14  ;;  %v3882_v34 = vmul.f32 0.5, %v3850_v57  ;;  %5711 = vcosq.f32 %v1035_v26  ;;  %v1113_v5 = vshll.u32 %v7651_v25, 30 }
 0x145   :  { %vm2915_vm0 = vcmp.gt.s32.totalorder %v2914_v21, 0  ;;  %v1036_v30 = vsel %vm7633_vm1, 0, %v1034_v19  ;;  %5713 = vsinq.f32 %v1035_v26  ;;  %v1160_v44 = vand.u32 8388607, %v10923_v36 }
 0x146   :  { %11114 = vst [vmem:[#allocation21_spill] sm:$0xff] %v7666_v11  ;;  %v3914_v49 = vsel %vm457_vm15, %v3882_v34, 0.0  ;;  %v7673_v40 = vsub.s32 %v1110_v60, %v1113_v5  ;;  %v1172_v63 = vor.u32 %v1171_v45, %v1170_v27  ;;  %v1175_v13 = vor.u32 %v1174_v38, %v1173_v43 }
 0x147   :  { %v2805_v20 = vshrl.u32 %v2804_v23, 23  ;;  %4024 = vperm.xlu1 %5678, %v3914_v49   ;;  %v1169_v56 = vshrl.u32 %v11049_v3, %v7099_v0  ;;  %v1178_v35 = vor.u32 %v1177_v29, %v1176_v15  ;;  %vm1185_vm8 = vcmp.lt.s32.totalorder %v6997_v47, 1 }
 0x148   :  { %v7680_v39 = vshll.u32 %v11002_v48, %v7620_v14  ;;  %v2916_v19 = vsel %vm2915_vm0, %v2914_v21, 0  ;;  %v1116_v33 = vsub.s32 0, %v7673_v40  ;;  %vm1187_vm6 = vcmp.lt.s32.totalorder %v6997_v47, 3  ;;  %v7698_v21 = vld [vmem:[%s10776_s2 + $0xc8] sm:$0xff] }
 0x149   :  { %v7686_v60 = vshll.u32 %v11006_v62, %v7620_v14  ;;  %v1040_v23 = vand.u32 3, %v1036_v30  ;;  %v1161_v27 = vor.u32 8388608, %v1160_v44  ;;  %v1190_v0 = vsel %vm1188_vm7, %v1178_v35, 2102212464 }
 0x14a   :  { %v7693_v45 = vsel %vm1394_vm10, %v7612_v52, 920167782  ;;  %v5112_v43 = vmin.u32 %v1116_v33, %v7673_v40  ;;  %vm1186_vm5 = vcmp.lt.s32.totalorder %v6997_v47, 2  ;;  %v1193_v57 = vsel %vm1185_vm8, %v1172_v63, %v1175_v13 }
 0x14b   :  { %v5179_v37 = vadd.s32 4294967169, %v2805_v20  ;;  %v7704_v38 = vand.u32 31, %v2916_v19  ;;  %233 = vperm.xlu1 %5678, %v7698_v21   ;;  %v1189_v42 = vsel %vm1185_vm8, %v1169_v56, %v1172_v63  ;;  %v1195_v26 = vsel %vm1187_vm6, %v1178_v35, %v7332_v53  ;;  %v7729_v20 = vld [vmem:[%s10776_s2 + $0xd0] sm:$0xff] }
 0x14c   :  { %v1118_v15 = vclz %v5112_v43  ;;  %v1191_v29 = vsel %vm1187_vm6, %v1175_v13, %v1190_v0  ;;  %v1197_v34 = vsel %vm1185_vm8, %v1175_v13, %v1178_v35  ;;  %v1199_v5 = vsel %vm1187_vm6, %v7198_v28, %v7343_v1 }
 0x14d   :  { %vm1041_vm7 = vcmp.lt.s32.totalorder %v1040_v23, 2  ;;  %v1196_v30 = vsel %vm1186_vm5, %v1193_v57, %v1195_v26  ;;  %v1200_v44 = vsel %vm1186_vm5, %v1197_v34, %v1199_v5  ;;  %v1201_v53 = vshll.u32 %v1161_v27, 8 }
 0x14e   :  { %v5712_v49 = vpop.eup %5711  ;;  %vm1042_vm4 = vcmp.eq.s32.totalorder %v1040_v23, 0  ;;  %vm1045_vm11 = vcmp.eq.s32.totalorder %v1040_v23, 2  ;;  %v1106_v63 = vadd.s32 %v7596_v51, %v7594_v12  ;;  %v5113_v13 = vadd.s32 4294967294, %v1118_v15 }
 0x14f   :  { %v5714_v28 = vpop.eup %5713  ;;  %v1046_v1 = vxor.u32 2147483648, %v5712_v49  ;;  %238 = vperm.xlu1 %5678, %v7729_v20   ;;  %v1192_v56 = vsel %vm1186_vm5, %v1189_v42, %v1191_v29  ;;  %v7734_v35 = vmul.u32.u64.low %v1201_v53, %v1200_v44  ;;  %v7735_v33 = vmul.u32.u64.high %v1201_v53, %v1200_v44, %v7734_v35  ;;  %v7750_v29 = vld [vmem:[%s10776_s2 + $0xd8] sm:$0xff] }
 0x150   :  { %v1043_v27 = vxor.u32 2147483648, %v5714_v28  ;;  %vm5114_vm2 = vcmp.lt.s32.totalorder %v5113_v13, 0  ;;  %v7737_v0 = vmul.u32.u64.low %v1201_v53, %v1196_v30  ;;  %v7738_v12 = vmul.u32.u64.high %v1201_v53, %v1196_v30, %v7737_v0 }
 0x151   :  { %v7742_v51 = vsub.s32 32, %v7704_v38  ;;  %vm1039_vm1 = vweird.f32 %v11086_v50  ;;  %v1047_v43 = vsel %vm1045_vm11, %v1046_v1, %v5714_v28  ;;  %v1121_v57 = vsel %vm5114_vm2, 0, %v5113_v13 }
 0x152   :  { %v1044_v26 = vsel %vm1042_vm4, %v5712_v49, %v1043_v27  ;;  %v1122_v47 = vsub.s32 32, %v1121_v57  ;;  %v1123_v42 = vshll.u32 %v7673_v40, %v1121_v57  ;;  %v1126_v15 = vsub.s32 4294967266, %v1121_v57 }
 0x153   :  { %v1048_v34 = vsel %vm1041_vm7, %v1044_v26, %v1047_v43  ;;  %v1136_v5 = vsub.s32 4, %v7651_v25  ;;  %v1208_v30 = vmul.u32 %v1201_v53, %v1192_v56  ;;  %vm1210_vm15 = vc.u32 %v7735_v33, %v7737_v0  ;;  %243 = vperm.xlu1 %5678, %v7750_v29   ;;  %v5882_v53 = vld [vmem:[%s10776_s2 + $0x20] sm:$0xff] }
 0x154   :  { %v1049_v50 = vsel %vm1039_vm1, nan, %v1048_v34  ;;  %v1124_v44 = vshrl.u32 %v1106_v63, %v1122_v47  ;;  %v1127_v49 = vadd.s32 127, %v1126_v15  ;;  %v1211_v40 = vadd.s32 1, %v7738_v12 }
 0x155   :  { %v2811_v13 = vadd.s32 1, %v5179_v37  ;;  %v7758_v28 = vshrl.u32 %v2916_v19, 5  ;;  %v2930_v23 = vshll.u32 %v11002_v48, %v7704_v38  ;;  %v3835_v1 = vadd.f32 1.0, %v1049_v50 }
 0x156   :  { %vm442_vm0 = vcmp.lt.f32.partialorder %v5882_v53, 6.0  ;;  %v1125_v56 = vor.u32 %v1124_v44, %v1123_v42  ;;  %v1128_v35 = vshll.u32 %v1127_v49, 23  ;;  %v1212_v27 = vsel %vm1210_vm15, %v1211_v40, %v7738_v12  ;;  %v11117_v49 = vld [vmem:[#allocation10_spill] sm:$0xff] }
 0x157   :  { %v2931_v63 = vshrl.u32 %v11006_v62, %v7742_v51  ;;  %v3867_v43 = vmul.f32 0.5, %v3835_v1  ;;  %vm1052_vm8 = vcmp.lt.s32.totalorder %v11094_v32, 0  ;;  %v1213_v19 = vadd.s32 %v1212_v27, %v1208_v30  ;;  %v11118_v53 = vld [vmem:[#allocation22_spill] sm:$0xff] }
 0x158   :  { %v2725_v37 = vshrl.u32 %v11006_v62, %v7666_v11  ;;  %v1129_v57 = vor.u32 4788187, %v1128_v35  ;;  %v1132_v26 = vcvt.s32.f32 %v1125_v56  ;;  %v1137_v47 = vsel %vm1052_vm8, %v1136_v5, %v7651_v25  ;;  %v11119_v35 = vld [vmem:[#allocation27_spill] sm:$0xff] }
 0x159   :  { %vm2812_vm6 = vcmp.gt.s32.totalorder %v2811_v13, 0  ;;  %vm2939_vm5 = vcmp.lt.s32.totalorder %v7758_v28, 4  ;;  %v3899_v12 = vsel %vm442_vm0, %v3867_v43, 0.0  ;;  %v1214_v42 = vadd.s32 536870912, %v1213_v19 }
 0x15a   :  { %v2933_v15 = vshll.u32 %v11006_v62, %v7704_v38  ;;  %v2934_v34 = vshrl.u32 %v11008_v9, %v7742_v51  ;;  %3949 = vperm.xlu0 %5677, %v3899_v12   ;;  %vm7781_vm7 = vcmp.le.f32.partialorder %v1050_v4, 0.7853982  ;;  %v1130_v50 = vand.u32 2147483647, %v1129_v57 }
 0x15b   :  { %v7785_v25 = vor.u32 %v2931_v63, %v2930_v23  ;;  %v1139_v5 = vsel %vm7781_vm7, 0, %v1137_v47  ;;  %v7789_v44 = vshrl.u32 %v1214_v42, 30  ;;  %v10928_v40 = vand.u32 2147483647, %v11117_v49 }
 0x15c   :  { %v1133_v1 = vmul.f32 %v1132_v26, %v1130_v50  ;;  %v1273_v56 = vshll.u32 %v11049_v3, %v11118_v53  ;;  %v1274_v4 = vshrl.u32 %v11053_v16, %v11119_v35  ;;  %v1276_v27 = vshll.u32 %v11053_v16, %v11118_v53 }
 0x15d   :  { %v1216_v23 = vshll.u32 %v7789_v44, 30  ;;  %v1277_v63 = vshrl.u32 %v11050_v7, %v11119_v35  ;;  %v1279_v43 = vshll.u32 %v11050_v7, %v11118_v53  ;;  %v1280_v57 = vshrl.u32 %v11002_v48, %v11119_v35 }
 0x15e   :  { %v7806_v26 = vor.u32 %v2725_v37, %v7680_v39  ;;  %v7810_v47 = vshrl.u32 %v11008_v9, %v7666_v11  ;;  %v7813_v12 = vsel %vm2812_vm6, %v2811_v13, 0  ;;  %v1134_v42 = vxor.u32 2147483648, %v1133_v1 }
 0x15f   :  { %v2935_v50 = vor.u32 %v2934_v34, %v2933_v15  ;;  %v7818_v46 = vsel %vm2939_vm5, %v7785_v25, 920167782  ;;  %v7820_v53 = vsub.s32 %v1213_v19, %v1216_v23  ;;  %v1263_v39 = vand.u32 8388607, %v10928_v40  ;;  %v11121_v40 = vld [vmem:[#allocation32_spill] sm:$0xff] }
 0x160   :  { %11120 = vst [vmem:[#allocation75_spill] sm:$0xff] %v7806_v26  ;;  %v495_v37 = vmul.f32 3.1415927, %v7698_v21  ;;  %v1135_v36 = vsel %vm1052_vm8, %v1134_v42, %v1133_v1  ;;  %v7827_v2 = vand.u32 3, %v1139_v5  ;;  %v1275_v13 = vor.u32 %v1274_v4, %v1273_v56 }
 0x161   :  { %v1138_v15 = vsel %vm7781_vm7, %v11094_v32, %v1135_v36  ;;  %v1219_v34 = vsub.s32 0, %v7820_v53  ;;  %v1278_v11 = vor.u32 %v1277_v63, %v1276_v27  ;;  %v1281_v19 = vor.u32 %v1280_v57, %v1279_v43  ;;  %v11124_v27 = vld [vmem:[#allocation42_spill] sm:$0xff] }
 0x162   :  { %5715 = vcosq.f32 %v1138_v15  ;;  %v1272_v23 = vshrl.u32 %v11049_v3, %v11119_v35  ;;  %vm1288_vm4 = vcmp.lt.s32.totalorder %v11121_v40, 1  ;;  %vm1290_vm11 = vcmp.lt.s32.totalorder %v11121_v40, 3 }
 0x163   :  { %5717 = vsinq.f32 %v1138_v15  ;;  %v5116_v21 = vmin.u32 %v1219_v34, %v7820_v53  ;;  %v1264_v5 = vor.u32 8388608, %v1263_v39  ;;  %v1293_v30 = vsel %vm1291_vm12, %v1281_v19, 2102212464  ;;  %v11126_v15 = vld [vmem:[#allocation38_spill] sm:$0xff] }
 0x164   :  { %v7841_v36 = vand.u32 31, %v7813_v12  ;;  %v7845_v1 = vsel %vm2939_vm5, %v2935_v50, 1326507024  ;;  %v7847_v56 = vmul.f32 0.16666667, %v495_v37  ;;  %vm1289_vm2 = vcmp.lt.s32.totalorder %v11121_v40, 2 }
 0x165   :  { %vm1155_vm1 = vcmp.lt.s32.totalorder %v11113_v10, 0  ;;  %v1221_v35 = vclz %v5116_v21  ;;  %v1296_v4 = vsel %vm1288_vm4, %v1275_v13, %v1278_v11  ;;  %v1298_v63 = vsel %vm1290_vm11, %v1281_v19, %v11124_v27  ;;  %v11125_v37 = vld [vmem:[#allocation43_spill] sm:$0xff]  ;;  %v5883_v40 = vld [vmem:[%s10776_s2 + $0x28] sm:$0xff] }
 0x166   :  { %11122 = vst [vmem:[#allocation65_spill] sm:$0xff] %v7841_v36  ;;  %11123 = vst [vmem:[#allocation92_spill] sm:$0xff] %v7847_v56  ;;  %vm1144_vm12 = vcmp.lt.s32.totalorder %v7827_v2, 2  ;;  %vm1145_vm15 = vcmp.eq.s32.totalorder %v7827_v2, 0  ;;  %v1292_v43 = vsel %vm1288_vm4, %v1272_v23, %v1275_v13  ;;  %v1294_v57 = vsel %vm1290_vm11, %v1278_v11, %v1293_v30 }
 0x167   :  { %v1300_v42 = vsel %vm1288_vm4, %v1278_v11, %v1281_v19  ;;  %vm1142_vm0 = vweird.f32 %v11094_v32  ;;  %v5117_v50 = vadd.s32 4294967294, %v1221_v35  ;;  %v1299_v39 = vsel %vm1289_vm2, %v1296_v4, %v1298_v63 }
 0x168   :  { %v1302_v34 = vsel %vm1290_vm11, %v11126_v15, %v11125_v37  ;;  %v1304_v21 = vshll.u32 %v1264_v5, 8  ;;  %v1209_v13 = vadd.s32 %v7737_v0, %v7735_v33  ;;  %v1239_v23 = vsub.s32 4, %v7789_v44 }
 0x169   :  { %v1303_v11 = vsel %vm1289_vm2, %v1300_v42, %v1302_v34  ;;  %v10929_v19 = vand.u32 2147483647, %v7481_v31  ;;  %vm5118_vm8 = vcmp.lt.s32.totalorder %v5117_v50, 0  ;;  %v1295_v30 = vsel %vm1289_vm2, %v1292_v43, %v1294_v57 }
 0x16a   :  { %v7879_v35 = vmul.u32.u64.low %v1304_v21, %v1303_v11  ;;  %v7880_v4 = vmul.u32.u64.high %v1304_v21, %v1303_v11, %v7879_v35  ;;  %vm1148_vm6 = vcmp.eq.s32.totalorder %v7827_v2, 2  ;;  %v1224_v5 = vsel %vm5118_vm8, 0, %v5117_v50 }
 0x16b   :  { %v7883_v27 = vmul.u32.u64.low %v1304_v21, %v1299_v39  ;;  %v7884_v63 = vmul.u32.u64.high %v1304_v21, %v1299_v39, %v7883_v27  ;;  %v1225_v33 = vsub.s32 32, %v1224_v5  ;;  %v1226_v0 = vshll.u32 %v7820_v53, %v1224_v5 }
 0x16c   :  { %v1229_v42 = vsub.s32 4294967266, %v1224_v5  ;;  %v2911_v37 = vand.u32 8388607, %v10929_v19  ;;  %v5716_v15 = vpop.eup %5715  ;;  %vm443_vm7 = vcmp.lt.f32.partialorder %v5883_v40, 6.0  ;;  %v7896_v43 = vsel %vm1155_vm1, %v1239_v23, %v7789_v44 }
 0x16d   :  { %v1311_v57 = vmul.u32 %v1304_v21, %v1295_v30  ;;  %v2921_v50 = vshll.u32 %v11049_v3, %v7704_v38  ;;  %v2922_v53 = vshrl.u32 %v11053_v16, %v7742_v51  ;;  %v5718_v39 = vpop.eup %5717  ;;  %v1149_v34 = vxor.u32 2147483648, %v5716_v15 }
 0x16e   :  { %v1227_v11 = vshrl.u32 %v1209_v13, %v1225_v33  ;;  %v1230_v35 = vadd.s32 127, %v1229_v42  ;;  %v2924_v5 = vshll.u32 %v11053_v16, %v7704_v38  ;;  %v1146_v19 = vxor.u32 2147483648, %v5718_v39 }
 0x16f   :  { %vm1313_vm4 = vc.u32 %v7880_v4, %v7883_v27  ;;  %v1314_v44 = vadd.s32 1, %v7884_v63  ;;  %v2912_v21 = vor.u32 8388608, %v2911_v37  ;;  %v1150_v23 = vsel %vm1148_vm6, %v1149_v34, %v5718_v39 }
 0x170   :  { %v1228_v30 = vor.u32 %v1227_v11, %v1226_v0  ;;  %v1231_v14 = vshll.u32 %v1230_v35, 23  ;;  %v2923_v24 = vor.u32 %v2922_v53, %v2921_v50  ;;  %v1147_v13 = vsel %vm1145_vm15, %v5716_v15, %v1146_v19 }
 0x171   :  { %v1315_v33 = vsel %vm1313_vm4, %v1314_v44, %v7884_v63  ;;  %v2925_v42 = vshrl.u32 %v11050_v7, %v7742_v51  ;;  %v2927_v22 = vshll.u32 %v11050_v7, %v7704_v38  ;;  %v1151_v37 = vsel %vm1144_vm12, %v1147_v13, %v1150_v23 }
 0x172   :  { %v1232_v6 = vor.u32 4788187, %v1231_v14  ;;  %v1235_v18 = vcvt.s32.f32 %v1228_v30  ;;  %v1316_v39 = vadd.s32 %v1315_v33, %v1311_v57  ;;  %vm2733_vm11 = vcmp.lt.s32.totalorder %v7617_v59, 4  ;;  %v11179_v59 = vld [vmem:[#allocation60_spill] sm:$0xff] }
 0x173   :  { %v1152_v0 = vsel %vm1142_vm0, nan, %v1151_v37  ;;  %v2926_v19 = vor.u32 %v2925_v42, %v2924_v5  ;;  %v2928_v63 = vshrl.u32 %v11002_v48, %v7742_v51  ;;  %vm2936_vm2 = vcmp.lt.s32.totalorder %v7758_v28, 1 }
 0x174   :  { %v3836_v15 = vadd.f32 1.0, %v1152_v0  ;;  %v1233_v50 = vand.u32 2147483647, %v1232_v6  ;;  %v1317_v38 = vadd.s32 536870912, %v1316_v39  ;;  %v2920_v2 = vshrl.u32 %v11049_v3, %v7742_v51 }
 0x175   :  { %v2929_v14 = vor.u32 %v2928_v63, %v2927_v22  ;;  %vm2937_vm12 = vcmp.lt.s32.totalorder %v7758_v28, 2  ;;  %vm2938_vm15 = vcmp.lt.s32.totalorder %v7758_v28, 3  ;;  %v2944_v32 = vsel %vm2936_vm2, %v2923_v24, %v2926_v19 }
 0x176   :  { %v3868_v57 = vmul.f32 0.5, %v3836_v15  ;;  %v1236_v53 = vmul.f32 %v1235_v18, %v1233_v50  ;;  %v7930_v34 = vshrl.u32 %v1317_v38, 30  ;;  %v2950_v6 = vsel %vm2938_vm15, %v7785_v25, %v7845_v1 }
 0x177   :  { %v2941_v51 = vsel %vm2939_vm5, %v2929_v14, 2102212464  ;;  %v2946_v22 = vsel %vm2938_vm15, %v2929_v14, %v7818_v46  ;;  %v2948_v11 = vsel %vm2936_vm2, %v2926_v19, %v2929_v14  ;;  %v2952_v35 = vshll.u32 %v2912_v21, 8 }
 0x178   :  { %v3900_v18 = vsel %vm443_vm7, %v3868_v57, 0.0  ;;  %v11127_v5 = vand.u32 2147483647, %v11113_v10  ;;  %v1237_v25 = vxor.u32 2147483648, %v1236_v53  ;;  %v1319_v1 = vshll.u32 %v7930_v34, 30 }
 0x179   :  { %3954 = vperm.xlu0 %5677, %v3900_v18   ;;  %v2940_v23 = vsel %vm2936_vm2, %v2920_v2, %v2923_v24  ;;  %v2942_v40 = vsel %vm2938_vm15, %v2926_v19, %v2941_v51  ;;  %v2951_v21 = vsel %vm2937_vm12, %v2948_v11, %v2950_v6  ;;  %v3113_v30 = vand.u32 2139095040, %v7847_v56 }
 0x17a   :  { %vm7946_vm0 = vcmp.le.f32.partialorder %v11127_v5, 0.7853982  ;;  %v1238_v13 = vsel %vm1155_vm1, %v1237_v25, %v1236_v53  ;;  %v7963_v33 = vsub.s32 %v1316_v39, %v1319_v1  ;;  %v2947_v42 = vsel %vm2937_vm12, %v2944_v32, %v2946_v22 }
 0x17b   :  { %v1242_v46 = vsel %vm7946_vm0, 0, %v7896_v43  ;;  %v1241_v24 = vsel %vm7946_vm0, %v11113_v10, %v1238_v13  ;;  %v497_v43 = vmul.f32 3.1415927, %v7750_v29  ;;  %v2943_v39 = vsel %vm2937_vm12, %v2940_v23, %v2942_v40 }
 0x17c   :  { %v7971_v37 = vmul.u32.u64.low %v2952_v35, %v2951_v21  ;;  %v7972_v0 = vmul.u32.u64.high %v2952_v35, %v2951_v21, %v7971_v37  ;;  %5719 = vcosq.f32 %v1241_v24  ;;  %v7974_v19 = vand.u32 3, %v1242_v46 }
 0x17d   :  { %v1322_v63 = vsub.s32 0, %v7963_v33  ;;  %v11130_v15 = vor.u32 %v7503_v58, %v7495_v61  ;;  %5721 = vsinq.f32 %v1241_v24  ;;  %v2729_v2 = vor.u32 %v7810_v47, %v7686_v60 }
 0x17e   :  { %v7986_v29 = vmul.u32.u64.low %v2952_v35, %v2947_v42  ;;  %v7987_v38 = vmul.u32.u64.high %v2952_v35, %v2947_v42, %v7986_v29  ;;  %v7995_v28 = vsel %vm2733_vm11, %v7806_v26, 920167782  ;;  %v7998_v14 = vsub.s32 32, %v7841_v36 }
 0x17f   :  { %v7984_v50 = vsel %vm1394_vm10, %v11130_v15, 1326507024  ;;  %11131 = vst [vmem:[#allocation93_spill] sm:$0xff] %v7995_v28  ;;  %v5120_v61 = vmin.u32 %v1322_v63, %v7963_v33  ;;  %v8001_v58 = vshrl.u32 %v3113_v30, 23  ;;  %v8003_v32 = vmul.f32 0.16666667, %v497_v43 }
 0x180   :  { %11132 = vst [vmem:[#allocation91_spill] sm:$0xff] %v7998_v14  ;;  %v2959_v57 = vmul.u32 %v2952_v35, %v2943_v39  ;;  %v1359_v53 = vand.u32 2147483647, %v6815_v17  ;;  %vm1247_vm5 = vcmp.lt.s32.totalorder %v7974_v19, 2  ;;  %vm2961_vm1 = vc.u32 %v7972_v0, %v7986_v29 }
 0x181   :  { %v1324_v6 = vclz %v5120_v61  ;;  %v1376_v51 = vshll.u32 %v11049_v3, %v7449_v41  ;;  %v1377_v22 = vshrl.u32 %v11053_v16, %v7476_v8  ;;  %vm1245_vm8 = vweird.f32 %v11113_v10 }
 0x182   :  { %vm1248_vm6 = vcmp.eq.s32.totalorder %v7974_v19, 0  ;;  %vm1251_vm7 = vcmp.eq.s32.totalorder %v7974_v19, 2  ;;  %v2962_v11 = vadd.s32 1, %v7987_v38  ;;  %v1379_v35 = vshll.u32 %v11053_v16, %v7449_v41 }
 0x183   :  { %v1312_v18 = vadd.s32 %v7883_v27, %v7880_v4  ;;  %v5121_v5 = vadd.s32 4294967294, %v1324_v6  ;;  %v1380_v44 = vshrl.u32 %v11050_v7, %v7476_v8  ;;  %v1382_v25 = vshll.u32 %v11050_v7, %v7449_v41 }
 0x184   :  { %v2963_v1 = vsel %vm2961_vm1, %v2962_v11, %v7987_v38  ;;  %v1366_v46 = vand.u32 8388607, %v1359_v53  ;;  %v1375_v23 = vshrl.u32 %v11049_v3, %v7476_v8  ;;  %v1383_v40 = vshrl.u32 %v11002_v48, %v7476_v8 }
 0x185   :  { %vm5122_vm4 = vcmp.lt.s32.totalorder %v5121_v5, 0  ;;  %v2964_v4 = vadd.s32 %v2963_v1, %v2959_v57  ;;  %v1378_v27 = vor.u32 %v1377_v22, %v1376_v51  ;;  %vm1391_vm2 = vcmp.lt.s32.totalorder %v7465_v55, 1 }
 0x186   :  { %v1327_v21 = vsel %vm5122_vm4, 0, %v5121_v5  ;;  %v1381_v30 = vor.u32 %v1380_v44, %v1379_v35  ;;  %v1384_v13 = vor.u32 %v1383_v40, %v1382_v25  ;;  %vm1393_vm12 = vcmp.lt.s32.totalorder %v7465_v55, 3  ;;  %v5720_v41 = vpop.eup %5719 }
 0x187   :  { %v1328_v42 = vsub.s32 32, %v1327_v21  ;;  %v1329_v24 = vshll.u32 %v7963_v33, %v1327_v21  ;;  %v1332_v43 = vsub.s32 4294967266, %v1327_v21  ;;  %v2965_v37 = vadd.s32 536870912, %v2964_v4  ;;  %v5722_v63 = vpop.eup %5721 }
 0x188   :  { %v1252_v39 = vxor.u32 2147483648, %v5720_v41  ;;  %v1367_v15 = vor.u32 8388608, %v1366_v46  ;;  %vm1392_vm15 = vcmp.lt.s32.totalorder %v7465_v55, 2  ;;  %v1396_v8 = vsel %vm1394_vm10, %v1384_v13, 2102212464 }
 0x189   :  { %v1249_v38 = vxor.u32 2147483648, %v5722_v63  ;;  %v1330_v61 = vshrl.u32 %v1312_v18, %v1328_v42  ;;  %v1333_v57 = vadd.s32 127, %v1332_v43  ;;  %v8038_v6 = vshrl.u32 %v2965_v37, 30 }
 0x18a   :  { %v1253_v51 = vsel %vm1251_vm7, %v1252_v39, %v5722_v63  ;;  %v1399_v33 = vsel %vm1391_vm2, %v1378_v27, %v1381_v30  ;;  %v1401_v22 = vsel %vm1393_vm12, %v1384_v13, %v7693_v45  ;;  %v1403_v11 = vsel %vm1391_vm2, %v1381_v30, %v1384_v13 }
 0x18b   :  { %v1250_v35 = vsel %vm1248_vm6, %v5720_v41, %v1249_v38  ;;  %v1331_v18 = vor.u32 %v1330_v61, %v1329_v24  ;;  %v1334_v5 = vshll.u32 %v1333_v57, 23  ;;  %v2967_v44 = vshll.u32 %v8038_v6, 30 }
 0x18c   :  { %v1254_v25 = vsel %vm1247_vm5, %v1250_v35, %v1253_v51  ;;  %v1395_v1 = vsel %vm1391_vm2, %v1375_v23, %v1378_v27  ;;  %v1397_v46 = vsel %vm1393_vm12, %v1381_v30, %v1396_v8  ;;  %v1405_v45 = vsel %vm1393_vm12, %v7612_v52, %v7984_v50  ;;  %v5884_v30 = vld [vmem:[%s10776_s2 + $0x30] sm:$0xff] }
 0x18d   :  { %v1255_v40 = vsel %vm1245_vm8, nan, %v1254_v25  ;;  %v1335_v21 = vor.u32 4788187, %v1334_v5  ;;  %v1338_v13 = vcvt.s32.f32 %v1331_v18  ;;  %v8064_v41 = vsub.s32 %v2964_v4, %v2967_v44 }
 0x18e   :  { %v3837_v19 = vadd.f32 1.0, %v1255_v40  ;;  %v1402_v42 = vsel %vm1392_vm15, %v1399_v33, %v1401_v22  ;;  %v1406_v23 = vsel %vm1392_vm15, %v1403_v11, %v1405_v45  ;;  %v1407_v27 = vshll.u32 %v1367_v15, 8 }
 0x18f   :  { %vm444_vm10 = vcmp.lt.f32.partialorder %v5884_v30, 6.0  ;;  %v1336_v52 = vand.u32 2147483647, %v1335_v21  ;;  %v1342_v10 = vsub.s32 4, %v7930_v34  ;;  %v2970_v50 = vsub.s32 0, %v8064_v41 }
 0x190   :  { %v3869_v4 = vmul.f32 0.5, %v3837_v19  ;;  %v1398_v24 = vsel %vm1392_vm15, %v1395_v1, %v1397_v46  ;;  %v8077_v43 = vmul.u32.u64.low %v1407_v27, %v1406_v23  ;;  %v8078_v37 = vmul.u32.u64.high %v1407_v27, %v1406_v23, %v8077_v43 }
 0x191   :  { %v1339_v63 = vmul.f32 %v1338_v13, %v1336_v52  ;;  %v5184_v39 = vmin.u32 %v2970_v50, %v8064_v41  ;;  %v8081_v15 = vmul.u32.u64.low %v1407_v27, %v1402_v42  ;;  %v8082_v8 = vmul.u32.u64.high %v1407_v27, %v1402_v42, %v8081_v15 }
 0x192   :  { %v5191_v38 = vadd.s32 4294967169, %v8001_v58  ;;  %v3901_v61 = vsel %vm444_vm10, %v3869_v4, 0.0  ;;  %v3319_v57 = vand.u32 2139095040, %v8003_v32  ;;  %vm1258_vm0 = vcmp.lt.s32.totalorder %v11117_v49, 0 }
 0x193   :  { %v2827_v55 = vshll.u32 %v11002_v48, %v7841_v36  ;;  %3959 = vperm.xlu0 %5677, %v3901_v61   ;;  %v11133_v51 = vand.u32 2147483647, %v11117_v49  ;;  %v1340_v22 = vxor.u32 2147483648, %v1339_v63  ;;  %v2972_v11 = vclz %v5184_v39 }
 0x194   :  { %v2828_v58 = vshrl.u32 %v11006_v62, %v7998_v14  ;;  %v8100_v35 = vshll.u32 %v11006_v62, %v7841_v36  ;;  %v1414_v18 = vmul.u32 %v1407_v27, %v1398_v24  ;;  %vm1416_vm1 = vc.u32 %v8078_v37, %v8081_v15  ;;  %v11169_v36 = vld [vmem:[#allocation50_spill] sm:$0xff] }
 0x195   :  { %vm8092_vm5 = vcmp.le.f32.partialorder %v11133_v51, 0.7853982  ;;  %v1341_v5 = vsel %vm1258_vm0, %v1340_v22, %v1339_v63  ;;  %v1343_v44 = vsel %vm1258_vm0, %v1342_v10, %v7930_v34  ;;  %v5185_v25 = vadd.s32 4294967294, %v2972_v11 }
 0x196   :  { %v1417_v1 = vadd.s32 1, %v8082_v8  ;;  %v3120_v46 = vadd.s32 1, %v5191_v38  ;;  %v496_v45 = vmul.f32 3.1415927, %v7729_v20  ;;  %v3320_v40 = vshrl.u32 %v3319_v57, 23 }
 0x197   :  { %v1344_v21 = vsel %vm8092_vm5, %v11117_v49, %v1341_v5  ;;  %v2960_v13 = vadd.s32 %v7986_v29, %v7972_v0  ;;  %vm5186_vm8 = vcmp.lt.s32.totalorder %v5185_v25, 0  ;;  %v1345_v34 = vsel %vm8092_vm5, 0, %v1343_v44  ;;  %v5885_v5 = vld [vmem:[%s10776_s2 + $0x38] sm:$0xff] }
 0x198   :  { %5723 = vcosq.f32 %v1344_v21  ;;  %v1418_v19 = vsel %vm1416_vm1, %v1417_v1, %v8082_v8  ;;  %v2975_v42 = vsel %vm5186_vm8, 0, %v5185_v25  ;;  %v8117_v20 = vshrl.u32 %v11008_v9, %v7998_v14  ;;  %v11143_v25 = vld [vmem:[#allocation11_spill] sm:$0xff] }
 0x199   :  { %5725 = vsinq.f32 %v1344_v21  ;;  %v1419_v23 = vadd.s32 %v1418_v19, %v1414_v18  ;;  %v2976_v27 = vsub.s32 32, %v2975_v42  ;;  %v2977_v30 = vshll.u32 %v8064_v41, %v2975_v42 }
 0x19a   :  { %v2980_v52 = vsub.s32 4294967266, %v2975_v42  ;;  %vm3121_vm6 = vcmp.gt.s32.totalorder %v3120_v46, 0  ;;  %v8120_v10 = vmul.f32 0.16666667, %v496_v45  ;;  %v5199_v0 = vadd.s32 4294967169, %v3320_v40  ;;  %v11145_v40 = vld [vmem:[#allocation30_spill] sm:$0xff] }
 0x19b   :  { %v1420_v29 = vadd.s32 536870912, %v1419_v23  ;;  %v8127_v50 = vsel %vm2733_vm11, %v2729_v2, 1326507024  ;;  %v1349_v4 = vand.u32 3, %v1345_v34  ;;  %v2978_v24 = vshrl.u32 %v2960_v13, %v2976_v27 }
 0x19c   :  { %11136 = vst [vmem:[#allocation9_spill] sm:$0xff] %v8120_v10  ;;  %11137 = vst [vmem:[#allocation14_spill] sm:$0xff] %v8127_v50  ;;  %v2981_v43 = vadd.s32 127, %v2980_v52  ;;  %v8130_v63 = vshrl.u32 %v7813_v12, 5  ;;  %v8132_v41 = vor.u32 %v2828_v58, %v2827_v55  ;;  %v2990_v39 = vsub.s32 4, %v8038_v6 }
 0x19d   :  { %v8135_v8 = vshrl.u32 %v1420_v29, 30  ;;  %v2832_v38 = vor.u32 %v8117_v20, %v8100_v35  ;;  %v8139_v60 = vsel %vm3121_vm6, %v3120_v46, 0  ;;  %v2979_v47 = vor.u32 %v2978_v24, %v2977_v30  ;;  %v11144_v46 = vld [vmem:[#allocation24_spill] sm:$0xff] }
 0x19e   :  { %11138 = vst [vmem:[#allocation17_spill] sm:$0xff] %v8130_v63  ;;  %11139 = vst [vmem:[#allocation19_spill] sm:$0xff] %v8132_v41  ;;  %v2982_v2 = vshll.u32 %v2981_v43, 23  ;;  %v3216_v61 = vand.u32 2139095040, %v8120_v10  ;;  %v8142_v57 = vadd.s32 1, %v5199_v0  ;;  %vm2906_vm7 = vcmp.lt.s32.totalorder %v7481_v31, 0 }
 0x19f   :  { %v1422_v12 = vshll.u32 %v8135_v8, 30  ;;  %vm1350_vm4 = vcmp.lt.s32.totalorder %v1349_v4, 2  ;;  %v11140_v55 = vand.u32 2147483647, %v7481_v31  ;;  %v2986_v22 = vcvt.s32.f32 %v2979_v47 }
 0x1a0   :  { %v2983_v33 = vor.u32 4788187, %v2982_v2  ;;  %vm1351_vm12 = vcmp.eq.s32.totalorder %v1349_v4, 0  ;;  %vm1354_vm15 = vcmp.eq.s32.totalorder %v1349_v4, 2  ;;  %v8155_v11 = vsel %vm2906_vm7, %v2990_v39, %v8038_v6 }
 0x1a1   :  { %vm8148_vm2 = vcmp.le.f32.partialorder %v11140_v55, 0.7853982  ;;  %v8157_v58 = vsub.s32 %v1419_v23, %v1422_v12  ;;  %vm445_vm10 = vcmp.lt.f32.partialorder %v5885_v5, 6.0  ;;  %v1462_v1 = vand.u32 2147483647, %v11143_v25 }
 0x1a2   :  { %v5724_v18 = vpop.eup %5723  ;;  %v2984_v44 = vand.u32 2147483647, %v2983_v33  ;;  %v1479_v45 = vshll.u32 %v11049_v3, %v11144_v46  ;;  %v1480_v21 = vshrl.u32 %v11053_v16, %v11145_v40  ;;  %v1482_v34 = vshll.u32 %v11053_v16, %v11144_v46 }
 0x1a3   :  { %v5726_v13 = vpop.eup %5725  ;;  %v1355_v6 = vxor.u32 2147483648, %v5724_v18  ;;  %v1425_v19 = vsub.s32 0, %v8157_v58  ;;  %v1483_v42 = vshrl.u32 %v11050_v7, %v11145_v40  ;;  %v1485_v30 = vshll.u32 %v11050_v7, %v11144_v46  ;;  %v11146_v46 = vld [vmem:[#allocation35_spill] sm:$0xff] }
 0x1a4   :  { %v1352_v23 = vxor.u32 2147483648, %v5726_v13  ;;  %v2987_v27 = vmul.f32 %v2986_v22, %v2984_v44  ;;  %v1486_v52 = vshrl.u32 %v11002_v48, %v11145_v40  ;;  %vm2836_vm0 = vcmp.lt.s32.totalorder %v8130_v63, 4 }
 0x1a5   :  { %vm1348_vm5 = vweird.f32 %v11117_v49  ;;  %v1356_v0 = vsel %vm1354_vm15, %v1355_v6, %v5726_v13  ;;  %v2993_v29 = vsel %vm8148_vm2, 0, %v8155_v11  ;;  %v5124_v24 = vmin.u32 %v1425_v19, %v8157_v58 }
 0x1a6   :  { %v1353_v43 = vsel %vm1351_vm12, %v5724_v18, %v1352_v23  ;;  %v2988_v39 = vxor.u32 2147483648, %v2987_v27  ;;  %v1469_v47 = vand.u32 8388607, %v1462_v1  ;;  %v1478_v2 = vshrl.u32 %v11049_v3, %v11145_v40 }
 0x1a7   :  { %v1357_v12 = vsel %vm1350_vm4, %v1353_v43, %v1356_v0  ;;  %v1427_v49 = vclz %v5124_v24  ;;  %v1481_v55 = vor.u32 %v1480_v21, %v1479_v45  ;;  %v1484_v33 = vor.u32 %v1483_v42, %v1482_v34  ;;  %v11147_v42 = vld [vmem:[#allocation46_spill] sm:$0xff]  ;;  %v11148_v43 = vld [vmem:[#allocation47_spill] sm:$0xff] }
 0x1a8   :  { %v1358_v22 = vsel %vm1348_vm5, nan, %v1357_v12  ;;  %v2989_v11 = vsel %vm2906_vm7, %v2988_v39, %v2987_v27  ;;  %v1487_v44 = vor.u32 %v1486_v52, %v1485_v30  ;;  %vm1494_vm1 = vcmp.lt.s32.totalorder %v11146_v46, 1  ;;  %v8213_v52 = vld [vmem:[%s10776_s2 + $0xe8] sm:$0xff]  ;;  %v11149_v39 = vld [vmem:[#allocation39_spill] sm:$0xff] }
 0x1a9   :  { %v3838_v18 = vadd.f32 1.0, %v1358_v22  ;;  %v2992_v13 = vsel %vm8148_vm2, %v7481_v31, %v2989_v11  ;;  %v5125_v6 = vadd.s32 4294967294, %v1427_v49  ;;  %vm1496_vm8 = vcmp.lt.s32.totalorder %v11146_v46, 3 }
 0x1aa   :  { %5727 = vcosq.f32 %v2992_v13  ;;  %v1415_v4 = vadd.s32 %v8081_v15, %v8078_v37  ;;  %v1470_v45 = vor.u32 8388608, %v1469_v47  ;;  %vm1495_vm6 = vcmp.lt.s32.totalorder %v11146_v46, 2 }
 0x1ab   :  { %v3870_v40 = vmul.f32 0.5, %v3838_v18  ;;  %5729 = vsinq.f32 %v2992_v13  ;;  %vm5126_vm7 = vcmp.lt.s32.totalorder %v5125_v6, 0  ;;  %v1499_v21 = vsel %vm1497_vm13, %v1487_v44, 2102212464 }
 0x1ac   :  { %v1430_v19 = vsel %vm5126_vm7, 0, %v5125_v6  ;;  %v1498_v51 = vsel %vm1494_vm1, %v1478_v2, %v1481_v55  ;;  %v1502_v34 = vsel %vm1494_vm1, %v1481_v55, %v1484_v33  ;;  %v1504_v37 = vsel %vm1496_vm8, %v1487_v44, %v11147_v42 }
 0x1ad   :  { %v3902_v15 = vsel %vm445_vm10, %v3870_v40, 0.0  ;;  %v1431_v23 = vsub.s32 32, %v1430_v19  ;;  %v1432_v27 = vshll.u32 %v8157_v58, %v1430_v19  ;;  %v1435_v30 = vsub.s32 4294967266, %v1430_v19 }
 0x1ae   :  { %3964 = vperm.xlu0 %5677, %v3902_v15   ;;  %v1500_v0 = vsel %vm1496_vm8, %v1484_v33, %v1499_v21  ;;  %v1505_v24 = vsel %vm1495_vm6, %v1502_v34, %v1504_v37  ;;  %v1506_v5 = vsel %vm1494_vm1, %v1484_v33, %v1487_v44  ;;  %v1508_v58 = vsel %vm1496_vm8, %v11149_v39, %v11148_v43 }
 0x1af   :  { %v1433_v47 = vshrl.u32 %v1415_v4, %v1431_v23  ;;  %v1436_v2 = vadd.s32 127, %v1435_v30  ;;  %v1509_v12 = vsel %vm1495_vm6, %v1506_v5, %v1508_v58  ;;  %v1510_v49 = vshll.u32 %v1470_v45, 8 }
 0x1b0   :  { %v8230_v55 = vsel %vm2836_vm0, %v8132_v41, 920167782  ;;  %vm3327_vm13 = vcmp.gt.s32.totalorder %v8142_v57, 0  ;;  %v2997_v22 = vand.u32 3, %v2993_v29  ;;  %v499_v33 = vmul.f32 3.1415927, %v8213_v52 }
 0x1b1   :  { %11150 = vst [vmem:[#allocation29_spill] sm:$0xff] %v8230_v55  ;;  %v1434_v11 = vor.u32 %v1433_v47, %v1432_v27  ;;  %v1437_v44 = vshll.u32 %v1436_v2, 23  ;;  %v8234_v18 = vmul.u32.u64.low %v1510_v49, %v1509_v12  ;;  %v8235_v13 = vmul.u32.u64.high %v1510_v49, %v1509_v12, %v8234_v18 }
 0x1b2   :  { %v8238_v6 = vand.u32 31, %v8139_v60  ;;  %v1501_v4 = vsel %vm1495_vm6, %v1498_v51, %v1500_v0  ;;  %v8242_v45 = vmul.u32.u64.low %v1510_v49, %v1505_v24  ;;  %v8243_v40 = vmul.u32.u64.high %v1510_v49, %v1505_v24, %v8242_v45  ;;  %v11156_v18 = vld [vmem:[#allocation40_spill] sm:$0xff] }
 0x1b3   :  { %v3217_v29 = vshrl.u32 %v3216_v61, 23  ;;  %v8249_v21 = vsel %vm3327_vm13, %v8142_v57, 0  ;;  %v1438_v19 = vor.u32 4788187, %v1437_v44  ;;  %v1441_v34 = vcvt.s32.f32 %v1434_v11  ;;  %v5886_v61 = vld [vmem:[%s10776_s2 + $0xb8] sm:$0xff] }
 0x1b4   :  { %11151 = vst [vmem:[#allocation31_spill] sm:$0xff] %v8238_v6  ;;  %v5728_v42 = vpop.eup %5727  ;;  %vm2999_vm4 = vcmp.eq.s32.totalorder %v2997_v22, 0  ;;  %vm3002_vm2 = vcmp.eq.s32.totalorder %v2997_v22, 2  ;;  %v1445_v37 = vsub.s32 4, %v8135_v8  ;;  %v8252_v15 = vmul.f32 0.16666667, %v499_v33 }
 0x1b5   :  { %v5730_v46 = vpop.eup %5729  ;;  %v3003_v51 = vxor.u32 2147483648, %v5728_v42  ;;  %v1439_v23 = vand.u32 2147483647, %v1438_v19  ;;  %v1517_v27 = vmul.u32 %v1510_v49, %v1501_v4  ;;  %vm1519_vm12 = vc.u32 %v8235_v13, %v8242_v45  ;;  %v11154_v33 = vld [vmem:[#allocation12_spill] sm:$0xff] }
 0x1b6   :  { %vm461_vm15 = vcmp.lt.f32.partialorder %v5886_v61, 6.0  ;;  %vm2998_vm10 = vcmp.lt.s32.totalorder %v2997_v22, 2  ;;  %v3000_v57 = vxor.u32 2147483648, %v5730_v46  ;;  %v1520_v30 = vadd.s32 1, %v8243_v40  ;;  %v11155_v22 = vld [vmem:[#allocation36_spill] sm:$0xff] }
 0x1b7   :  { %vm2996_vm5 = vweird.f32 %v7481_v31  ;;  %v3004_v0 = vsel %vm3002_vm2, %v3003_v51, %v5730_v46  ;;  %vm1361_vm1 = vcmp.lt.s32.totalorder %v6815_v17, 0  ;;  %v1442_v24 = vmul.f32 %v1441_v34, %v1439_v23 }
 0x1b8   :  { %v3001_v5 = vsel %vm2999_vm4, %v5728_v42, %v3000_v57  ;;  %vm8265_vm8 = vcmp.le.f32.partialorder %v1359_v53, 0.7853982  ;;  %v3525_v39 = vand.u32 2139095040, %v8252_v15  ;;  %v1521_v58 = vsel %vm1519_vm12, %v1520_v30, %v8243_v40 }
 0x1b9   :  { %v3005_v47 = vsel %vm2998_vm10, %v3001_v5, %v3004_v0  ;;  %v1443_v2 = vxor.u32 2147483648, %v1442_v24  ;;  %v1446_v31 = vsel %vm1361_vm1, %v1445_v37, %v8135_v8  ;;  %v1522_v12 = vadd.s32 %v1521_v58, %v1517_v27 }
 0x1ba   :  { %v3006_v49 = vsel %vm2996_vm5, nan, %v3005_v47  ;;  %v10936_v11 = vand.u32 2147483647, %v11154_v33  ;;  %v1582_v44 = vshll.u32 %v11049_v3, %v11155_v22  ;;  %v1583_v53 = vshrl.u32 %v11053_v16, %v11156_v18 }
 0x1bb   :  { %v3854_v4 = vadd.f32 1.0, %v3006_v49  ;;  %v1444_v19 = vsel %vm1361_vm1, %v1443_v2, %v1442_v24  ;;  %v1523_v34 = vadd.s32 536870912, %v1522_v12  ;;  %v1585_v40 = vshll.u32 %v11053_v16, %v11155_v22 }
 0x1bc   :  { %v1447_v8 = vsel %vm8265_vm8, %v6815_v17, %v1444_v19  ;;  %v1586_v42 = vshrl.u32 %v11050_v7, %v11156_v18  ;;  %v1588_v37 = vshll.u32 %v11050_v7, %v11155_v22  ;;  %v1589_v46 = vshrl.u32 %v11002_v48, %v11156_v18  ;;  %v11159_v19 = vld [vmem:[#allocation51_spill] sm:$0xff] }
 0x1bd   :  { %v8293_v51 = vsel %vm2836_vm0, %v2832_v38, 1326507024  ;;  %v3886_v23 = vmul.f32 0.5, %v3854_v4  ;;  %5731 = vcosq.f32 %v1447_v8  ;;  %v8295_v27 = vshrl.u32 %v1523_v34, 30 }
 0x1be   :  { %11157 = vst [vmem:[#allocation23_spill] sm:$0xff] %v8293_v51  ;;  %v8298_v57 = vsub.s32 32, %v8238_v6  ;;  %v8301_v30 = vand.u32 31, %v8249_v21  ;;  %5733 = vsinq.f32 %v1447_v8  ;;  %v3526_v0 = vshrl.u32 %v3525_v39, 23  ;;  %v11158_v39 = vld [vmem:[#allocation41_spill] sm:$0xff] }
 0x1bf   :  { %v3918_v24 = vsel %vm461_vm15, %v3886_v23, 0.0  ;;  %v1448_v35 = vsel %vm8265_vm8, 0, %v1446_v31  ;;  %v1525_v20 = vshll.u32 %v8295_v27, 30  ;;  %v1572_v38 = vand.u32 8388607, %v10936_v11  ;;  %v11160_v23 = vld [vmem:[#allocation54_spill] sm:$0xff] }
 0x1c0   :  { %v8309_v5 = vadd.s32 4294967169, %v3217_v29  ;;  %4044 = vperm.xlu1 %5678, %v3918_v24   ;;  %v1584_v58 = vor.u32 %v1583_v53, %v1582_v44  ;;  %v1587_v47 = vor.u32 %v1586_v42, %v1585_v40  ;;  %v1590_v2 = vor.u32 %v1589_v46, %v1588_v37 }
 0x1c1   :  { %v8311_v49 = vsub.s32 %v1522_v12, %v1525_v20  ;;  %v1581_v61 = vshrl.u32 %v11049_v3, %v11156_v18  ;;  %vm1597_vm6 = vcmp.lt.s32.totalorder %v11158_v39, 1  ;;  %vm1599_vm7 = vcmp.lt.s32.totalorder %v11158_v39, 3 }
 0x1c2   :  { %v8318_v43 = vsub.s32 32, %v8301_v30  ;;  %v1452_v31 = vand.u32 3, %v1448_v35  ;;  %v5207_v22 = vadd.s32 4294967169, %v3526_v0  ;;  %v1602_v29 = vsel %vm1600_vm14, %v1590_v2, 2102212464  ;;  %v11161_v0 = vld [vmem:[#allocation49_spill] sm:$0xff] }
 0x1c3   :  { %v8323_v44 = vshrl.u32 %v8249_v21, 5  ;;  %v3342_v12 = vshll.u32 %v11002_v48, %v8301_v30  ;;  %v1528_v18 = vsub.s32 0, %v8311_v49  ;;  %v1573_v53 = vor.u32 8388608, %v1572_v38  ;;  %v8355_v38 = vld [vmem:[%s10776_s2 + $0xf0] sm:$0xff] }
 0x1c4   :  { %253 = vperm.xlu1 %5678, %v8213_v52   ;;  %vm1598_vm13 = vcmp.lt.s32.totalorder %v11158_v39, 2  ;;  %v1605_v4 = vsel %vm1597_vm6, %v1584_v58, %v1587_v47  ;;  %v1607_v34 = vsel %vm1599_vm7, %v1590_v2, %v11159_v19  ;;  %v1609_v21 = vsel %vm1597_vm6, %v1587_v47, %v1590_v2 }
 0x1c5   :  { %v8339_v40 = vshll.u32 %v11006_v62, %v8301_v30  ;;  %v5128_v8 = vmin.u32 %v1528_v18, %v8311_v49  ;;  %v1601_v52 = vsel %vm1597_vm6, %v1581_v61, %v1584_v58  ;;  %v1603_v42 = vsel %vm1599_vm7, %v1587_v47, %v1602_v29 }
 0x1c6   :  { %v3343_v37 = vshrl.u32 %v11006_v62, %v8318_v43  ;;  %vm1457_vm14 = vcmp.eq.s32.totalorder %v1452_v31, 2  ;;  %v3532_v46 = vadd.s32 1, %v5207_v22  ;;  %v1611_v24 = vsel %vm1599_vm7, %v11161_v0, %v11160_v23 }
 0x1c7   :  { %v5732_v35 = vpop.eup %5731  ;;  %v1530_v20 = vclz %v5128_v8  ;;  %v1608_v58 = vsel %vm1598_vm13, %v1605_v4, %v1607_v34  ;;  %v1612_v47 = vsel %vm1598_vm13, %v1609_v21, %v1611_v24  ;;  %v1613_v2 = vshll.u32 %v1573_v53, 8 }
 0x1c8   :  { %v5734_v61 = vpop.eup %5733  ;;  %vm1453_vm4 = vcmp.lt.s32.totalorder %v1452_v31, 2  ;;  %vm1454_vm2 = vcmp.eq.s32.totalorder %v1452_v31, 0  ;;  %v1458_v22 = vxor.u32 2147483648, %v5732_v35  ;;  %258 = vperm.xlu1 %5678, %v8355_v38   ;;  %v1604_v29 = vsel %vm1598_vm13, %v1601_v52, %v1603_v42  ;;  %v102_v52 = vld [vmem:[%s10776_s2 + $0xf8] sm:$0xff] }
 0x1c9   :  { %v1455_v18 = vxor.u32 2147483648, %v5734_v61  ;;  %v5129_v19 = vadd.s32 4294967294, %v1530_v20  ;;  %v8364_v8 = vmul.u32.u64.low %v1613_v2, %v1612_v47  ;;  %v8365_v23 = vmul.u32.u64.high %v1613_v2, %v1612_v47, %v8364_v8 }
 0x1ca   :  { %vm1451_vm12 = vweird.f32 %v6815_v17  ;;  %v1459_v4 = vsel %vm1457_vm14, %v1458_v22, %v5734_v61  ;;  %v8369_v34 = vmul.u32.u64.low %v1613_v2, %v1608_v58  ;;  %v8370_v53 = vmul.u32.u64.high %v1613_v2, %v1608_v58, %v8369_v34 }
 0x1cb   :  { %v3346_v21 = vshrl.u32 %v11008_v9, %v8318_v43  ;;  %v1456_v0 = vsel %vm1454_vm2, %v5732_v35, %v1455_v18  ;;  %v1518_v39 = vadd.s32 %v8242_v45, %v8235_v13  ;;  %vm5130_vm15 = vcmp.lt.s32.totalorder %v5129_v19, 0  ;;  %v5887_v45 = vld [vmem:[%s10776_s2 + $0x40] sm:$0xff] }
 0x1cc   :  { %v1460_v17 = vsel %vm1453_vm4, %v1456_v0, %v1459_v4  ;;  %vm3533_vm10 = vcmp.gt.s32.totalorder %v3532_v46, 0  ;;  %v1533_v42 = vsel %vm5130_vm15, 0, %v5129_v19  ;;  %v1620_v24 = vmul.u32 %v1613_v2, %v1604_v29  ;;  %263 = vperm.xlu1 %5678, %v102_v52  }
 0x1cd   :  { %v1461_v20 = vsel %vm1451_vm12, nan, %v1460_v17  ;;  %v1534_v58 = vsub.s32 32, %v1533_v42  ;;  %v1535_v47 = vshll.u32 %v8311_v49, %v1533_v42  ;;  %v1538_v61 = vsub.s32 4294967266, %v1533_v42 }
 0x1ce   :  { %v3223_v35 = vadd.s32 1, %v8309_v5  ;;  %v3839_v22 = vadd.f32 1.0, %v1461_v20  ;;  %vm1622_vm5 = vc.u32 %v8365_v23, %v8369_v34  ;;  %v1623_v13 = vadd.s32 1, %v8370_v53 }
 0x1cf   :  { %vm446_vm1 = vcmp.lt.f32.partialorder %v5887_v45, 6.0  ;;  %v3534_v31 = vsel %vm3533_vm10, %v3532_v46, 0  ;;  %v1536_v2 = vshrl.u32 %v1518_v39, %v1534_v58  ;;  %v1539_v29 = vadd.s32 127, %v1538_v61 }
 0x1d0   :  { %v8389_v18 = vor.u32 %v3343_v37, %v3342_v12  ;;  %vm3351_vm8 = vcmp.lt.s32.totalorder %v8323_v44, 4  ;;  %v3871_v49 = vmul.f32 0.5, %v3839_v22  ;;  %v1624_v5 = vsel %vm1622_vm5, %v1623_v13, %v8370_v53 }
 0x1d1   :  { %v3347_v19 = vor.u32 %v3346_v21, %v8339_v40  ;;  %v1537_v8 = vor.u32 %v1536_v2, %v1535_v47  ;;  %v1540_v4 = vshll.u32 %v1539_v29, 23  ;;  %v1625_v0 = vadd.s32 %v1624_v5, %v1620_v24 }
 0x1d2   :  { %v8395_v17 = vshrl.u32 %v8139_v60, 5  ;;  %vm3224_vm6 = vcmp.gt.s32.totalorder %v3223_v35, 0  ;;  %v3903_v42 = vsel %vm446_vm1, %v3871_v49, 0.0  ;;  %v8397_v46 = vand.u32 31, %v3534_v31  ;;  %v11164_v49 = vld [vmem:[#allocation15_spill] sm:$0xff] }
 0x1d3   :  { %3969 = vperm.xlu0 %5677, %v3903_v42   ;;  %v1541_v12 = vor.u32 4788187, %v1540_v4  ;;  %v1544_v37 = vcvt.s32.f32 %v1537_v8  ;;  %v1548_v39 = vsub.s32 4, %v8295_v27  ;;  %v1626_v20 = vadd.s32 536870912, %v1625_v0  ;;  %v11166_v8 = vld [vmem:[#allocation48_spill] sm:$0xff] }
 0x1d4   :  { %v8402_v53 = vshll.u32 %v11002_v48, %v8238_v6  ;;  %v8406_v40 = vshrl.u32 %v11006_v62, %v8298_v57  ;;  %v8411_v60 = vsel %vm3351_vm8, %v8389_v18, 920167782  ;;  %v501_v21 = vmul.f32 3.1415927, %v102_v52 }
 0x1d5   :  { %v8413_v24 = vsel %vm3224_vm6, %v3223_v35, 0  ;;  %v8417_v58 = vsel %vm3351_vm8, %v3347_v19, 1326507024  ;;  %v1542_v47 = vand.u32 2147483647, %v1541_v12  ;;  %v8419_v61 = vshrl.u32 %v1626_v20, 30 }
 0x1d6   :  { %v8421_v22 = vshrl.u32 %v3534_v31, 5  ;;  %v8424_v13 = vsub.s32 32, %v8397_v46  ;;  %vm8428_vm7 = vcmp.le.f32.partialorder %v1462_v1, 0.7853982  ;;  %vm1464_vm13 = vcmp.lt.s32.totalorder %v11143_v25, 0  ;;  %v11165_v1 = vld [vmem:[#allocation44_spill] sm:$0xff] }
 0x1d7   :  { %v3548_v52 = vshll.u32 %v11002_v48, %v8397_v46  ;;  %v1545_v35 = vmul.f32 %v1544_v37, %v1542_v47  ;;  %v1549_v31 = vsel %vm1464_vm13, %v1548_v39, %v8295_v27  ;;  %v1628_v2 = vshll.u32 %v8419_v61, 30 }
 0x1d8   :  { %v8439_v29 = vmul.f32 0.16666667, %v501_v21  ;;  %v1788_v19 = vshll.u32 %v11049_v3, %v11165_v1  ;;  %v1789_v4 = vshrl.u32 %v11053_v16, %v11166_v8  ;;  %v1791_v37 = vshll.u32 %v11053_v16, %v11165_v1 }
 0x1d9   :  { %v1546_v42 = vxor.u32 2147483648, %v1545_v35  ;;  %v8446_v12 = vsub.s32 %v1625_v0, %v1628_v2  ;;  %v1792_v27 = vshrl.u32 %v11050_v7, %v11166_v8  ;;  %v3549_v39 = vshrl.u32 %v11006_v62, %v8424_v13 }
 0x1da   :  { %v8456_v20 = vshll.u32 %v11006_v62, %v8397_v46  ;;  %v1551_v21 = vsel %vm8428_vm7, 0, %v1549_v31  ;;  %v500_v47 = vmul.f32 3.1415927, %v8355_v38  ;;  %v1794_v11 = vshll.u32 %v11050_v7, %v11165_v1 }
 0x1db   :  { %v1547_v0 = vsel %vm1464_vm13, %v1546_v42, %v1545_v35  ;;  %v1631_v2 = vsub.s32 0, %v8446_v12  ;;  %v1795_v5 = vshrl.u32 %v11002_v48, %v11166_v8  ;;  %v8470_v10 = vshrl.u32 %v11008_v9, %v8424_v13 }
 0x1dc   :  { %v1550_v31 = vsel %vm8428_vm7, %v11143_v25, %v1547_v0  ;;  %v3731_v38 = vand.u32 2139095040, %v8439_v29  ;;  %v11167_v35 = vand.u32 2147483647, %v11164_v49  ;;  %v1790_v1 = vor.u32 %v1789_v4, %v1788_v19 }
 0x1dd   :  { %5735 = vcosq.f32 %v1550_v31  ;;  %v5132_v56 = vmin.u32 %v1631_v2, %v8446_v12  ;;  %v1793_v41 = vor.u32 %v1792_v27, %v1791_v37  ;;  %v8479_v51 = vor.u32 %v3549_v39, %v3548_v52 }
 0x1de   :  { %v1778_v42 = vand.u32 8388607, %v11167_v35  ;;  %5737 = vsinq.f32 %v1550_v31  ;;  %v8481_v55 = vand.u32 3, %v1551_v21  ;;  %v1787_v63 = vshrl.u32 %v11049_v3, %v11166_v8  ;;  %v11170_v8 = vld [vmem:[#allocation56_spill] sm:$0xff]  ;;  %v11171_v21 = vld [vmem:[#allocation57_spill] sm:$0xff] }
 0x1df   :  { %v8485_v45 = vmul.f32 0.16666667, %v500_v47  ;;  %v1633_v0 = vclz %v5132_v56  ;;  %v1796_v14 = vor.u32 %v1795_v5, %v1794_v11  ;;  %vm1803_vm14 = vcmp.lt.s32.totalorder %v11169_v36, 1  ;;  %v11172_v47 = vld [vmem:[#allocation52_spill] sm:$0xff] }
 0x1e0   :  { %v3732_v35 = vshrl.u32 %v3731_v38, 23  ;;  %v1779_v26 = vor.u32 8388608, %v1778_v42  ;;  %vm1804_vm4 = vcmp.lt.s32.totalorder %v11169_v36, 2  ;;  %vm1805_vm2 = vcmp.lt.s32.totalorder %v11169_v36, 3 }
 0x1e1   :  { %11168 = vst [vmem:[#allocation86_spill] sm:$0xff] %v8485_v45  ;;  %v5133_v52 = vadd.s32 4294967294, %v1633_v0  ;;  %v1808_v19 = vsel %vm1806_vm3, %v1796_v14, 2102212464  ;;  %v1811_v4 = vsel %vm1803_vm14, %v1790_v1, %v1793_v41  ;;  %v1813_v37 = vsel %vm1805_vm2, %v1796_v14, %v11170_v8 }
 0x1e2   :  { %vm1554_vm12 = vweird.f32 %v11143_v25  ;;  %vm1556_vm15 = vcmp.lt.s32.totalorder %v8481_v55, 2  ;;  %v1621_v56 = vadd.s32 %v8369_v34, %v8365_v23  ;;  %v1807_v11 = vsel %vm1803_vm14, %v1787_v63, %v1790_v1 }
 0x1e3   :  { %v1809_v5 = vsel %vm1805_vm2, %v1793_v41, %v1808_v19  ;;  %vm5134_vm10 = vcmp.lt.s32.totalorder %v5133_v52, 0  ;;  %v1814_v27 = vsel %vm1804_vm4, %v1811_v4, %v1813_v37  ;;  %v1815_v39 = vsel %vm1803_vm14, %v1793_v41, %v1796_v14 }
 0x1e4   :  { %v1817_v2 = vsel %vm1805_vm2, %v11172_v47, %v11171_v21  ;;  %v1636_v31 = vsel %vm5134_vm10, 0, %v5133_v52  ;;  %v5215_v38 = vadd.s32 4294967169, %v3732_v35  ;;  %v1819_v23 = vshll.u32 %v1779_v26, 8  ;;  %v5888_v35 = vld [vmem:[%s10776_s2 + $0x48] sm:$0xff] }
 0x1e5   :  { %v1818_v42 = vsel %vm1804_vm4, %v1815_v39, %v1817_v2  ;;  %v1637_v34 = vsub.s32 32, %v1636_v31  ;;  %v1638_v63 = vshll.u32 %v8446_v12, %v1636_v31  ;;  %v1641_v1 = vsub.s32 4294967266, %v1636_v31 }
 0x1e6   :  { %v1810_v0 = vsel %vm1804_vm4, %v1807_v11, %v1809_v5  ;;  %v8512_v19 = vmul.u32.u64.low %v1819_v23, %v1818_v42  ;;  %v8513_v4 = vmul.u32.u64.high %v1819_v23, %v1818_v42, %v8512_v19  ;;  %vm447_vm3 = vcmp.lt.f32.partialorder %v5888_v35, 6.0 }
 0x1e7   :  { %v8515_v14 = vmul.u32.u64.low %v1819_v23, %v1814_v27  ;;  %v8516_v41 = vmul.u32.u64.high %v1819_v23, %v1814_v27, %v8515_v14  ;;  %v5736_v52 = vpop.eup %5735  ;;  %vm1560_vm5 = vcmp.eq.s32.totalorder %v8481_v55, 2  ;;  %vm1567_vm1 = vcmp.lt.s32.totalorder %v11154_v33, 0 }
 0x1e8   :  { %v1639_v26 = vshrl.u32 %v1621_v56, %v1637_v34  ;;  %v1642_v36 = vadd.s32 127, %v1641_v1  ;;  %v10949_v12 = vand.u32 2147483647, %v8003_v32  ;;  %v5738_v8 = vpop.eup %5737  ;;  %vm1557_vm6 = vcmp.eq.s32.totalorder %v8481_v55, 0 }
 0x1e9   :  { %v1561_v37 = vxor.u32 2147483648, %v5736_v52  ;;  %v1651_v11 = vsub.s32 4, %v8419_v61  ;;  %v8527_v5 = vadd.s32 1, %v5215_v38  ;;  %v1558_v27 = vxor.u32 2147483648, %v5738_v8 }
 0x1ea   :  { %v11173_v39 = vand.u32 2147483647, %v11154_v33  ;;  %v1640_v47 = vor.u32 %v1639_v26, %v1638_v63  ;;  %v1643_v56 = vshll.u32 %v1642_v36, 23  ;;  %v1826_v2 = vmul.u32 %v1819_v23, %v1810_v0 }
 0x1eb   :  { %v1562_v31 = vsel %vm1560_vm5, %v1561_v37, %v5738_v8  ;;  %vm1828_vm13 = vc.u32 %v8513_v4, %v8515_v14  ;;  %v1829_v42 = vadd.s32 1, %v8516_v41  ;;  %v3333_v38 = vshll.u32 %v11049_v3, %v8301_v30 }
 0x1ec   :  { %vm8531_vm7 = vcmp.le.f32.partialorder %v11173_v39, 0.7853982  ;;  %v1559_v34 = vsel %vm1557_vm6, %v5736_v52, %v1558_v27  ;;  %v1644_v1 = vor.u32 4788187, %v1643_v56  ;;  %v1647_v19 = vcvt.s32.f32 %v1640_v47 }
 0x1ed   :  { %v3323_v39 = vand.u32 8388607, %v10949_v12  ;;  %v1563_v23 = vsel %vm1556_vm15, %v1559_v34, %v1562_v31  ;;  %v1830_v63 = vsel %vm1828_vm13, %v1829_v42, %v8516_v41  ;;  %v3334_v0 = vshrl.u32 %v11053_v16, %v8318_v43 }
 0x1ee   :  { %v3336_v26 = vshll.u32 %v11053_v16, %v8301_v30  ;;  %v1564_v36 = vsel %vm1554_vm12, nan, %v1563_v23  ;;  %v1645_v52 = vand.u32 2147483647, %v1644_v1  ;;  %v1831_v8 = vadd.s32 %v1830_v63, %v1826_v2 }
 0x1ef   :  { %v3324_v37 = vor.u32 8388608, %v3323_v39  ;;  %v3840_v27 = vadd.f32 1.0, %v1564_v36  ;;  %v3335_v47 = vor.u32 %v3334_v0, %v3333_v38  ;;  %v3337_v55 = vshrl.u32 %v11050_v7, %v8318_v43 }
 0x1f0   :  { %v3339_v41 = vshll.u32 %v11050_v7, %v8301_v30  ;;  %v1648_v56 = vmul.f32 %v1647_v19, %v1645_v52  ;;  %v1832_v31 = vadd.s32 536870912, %v1831_v8  ;;  %v3340_v42 = vshrl.u32 %v11002_v48, %v8318_v43 }
 0x1f1   :  { %vm3348_vm14 = vcmp.lt.s32.totalorder %v8323_v44, 1  ;;  %v3872_v25 = vmul.f32 0.5, %v3840_v27  ;;  %v1652_v2 = vsel %vm1567_vm1, %v1651_v11, %v8419_v61  ;;  %v3338_v34 = vor.u32 %v3337_v55, %v3336_v26 }
 0x1f2   :  { %vm3350_vm4 = vcmp.lt.s32.totalorder %v8323_v44, 3  ;;  %v1649_v38 = vxor.u32 2147483648, %v1648_v56  ;;  %v8564_v1 = vshrl.u32 %v1832_v31, 30  ;;  %v3332_v30 = vshrl.u32 %v11049_v3, %v8318_v43 }
 0x1f3   :  { %v3341_v19 = vor.u32 %v3340_v42, %v3339_v41  ;;  %v3904_v39 = vsel %vm447_vm3, %v3872_v25, 0.0  ;;  %vm3349_vm2 = vcmp.lt.s32.totalorder %v8323_v44, 2  ;;  %v3356_v23 = vsel %vm3348_vm14, %v3335_v47, %v3338_v34 }
 0x1f4   :  { %v3362_v61 = vsel %vm3350_vm4, %v8389_v18, %v8417_v58  ;;  %3974 = vperm.xlu0 %5677, %v3904_v39   ;;  %v1650_v11 = vsel %vm1567_vm1, %v1649_v38, %v1648_v56  ;;  %v1834_v63 = vshll.u32 %v8564_v1, 30  ;;  %v3364_v35 = vshll.u32 %v3324_v37, 8 }
 0x1f5   :  { %v3353_v43 = vsel %vm3351_vm8, %v3341_v19, 2102212464  ;;  %v1653_v0 = vsel %vm8531_vm7, %v11154_v33, %v1650_v11  ;;  %v1654_v26 = vsel %vm8531_vm7, 0, %v1652_v2  ;;  %v3358_v18 = vsel %vm3350_vm4, %v3341_v19, %v8411_v60 }
 0x1f6   :  { %v3360_v58 = vsel %vm3348_vm14, %v3338_v34, %v3341_v19  ;;  %5739 = vcosq.f32 %v1653_v0  ;;  %v8591_v36 = vsub.s32 %v1831_v8, %v1834_v63  ;;  %v3352_v52 = vsel %vm3348_vm14, %v3332_v30, %v3335_v47 }
 0x1f7   :  { %v3354_v37 = vsel %vm3350_vm4, %v3338_v34, %v3353_v43  ;;  %v3628_v27 = vand.u32 2139095040, %v8485_v45  ;;  %5741 = vsinq.f32 %v1653_v0  ;;  %v3359_v21 = vsel %vm3349_vm2, %v3356_v23, %v3358_v18  ;;  %v11178_v18 = vld [vmem:[#allocation55_spill] sm:$0xff] }
 0x1f8   :  { %v3363_v60 = vsel %vm3349_vm2, %v3360_v58, %v3362_v61  ;;  %vm3557_vm8 = vcmp.lt.s32.totalorder %v8421_v22, 4  ;;  %v1837_v8 = vsub.s32 0, %v8591_v36  ;;  %v1658_v47 = vand.u32 3, %v1654_v26  ;;  %v11176_v61 = vld [vmem:[#allocation33_spill] sm:$0xff] }
 0x1f9   :  { %v8604_v55 = vmul.u32.u64.low %v3364_v35, %v3363_v60  ;;  %v8605_v41 = vmul.u32.u64.high %v3364_v35, %v3363_v60, %v8604_v55  ;;  %v3355_v56 = vsel %vm3349_vm2, %v3352_v52, %v3354_v37  ;;  %v8615_v25 = vor.u32 %v8406_v40, %v8402_v53  ;;  %v5889_v37 = vld [vmem:[%s10776_s2 + $0x50] sm:$0xff] }
 0x1fa   :  { %v8609_v31 = vmul.u32.u64.low %v3364_v35, %v3359_v21  ;;  %v8610_v42 = vmul.u32.u64.high %v3364_v35, %v3359_v21, %v8609_v31  ;;  %v8619_v2 = vshll.u32 %v11006_v62, %v8238_v6  ;;  %vm3739_vm12 = vcmp.gt.s32.totalorder %v8527_v5, 0 }
 0x1fb   :  { %v5140_v34 = vmin.u32 %v1837_v8, %v8591_v36  ;;  %v8624_v38 = vand.u32 31, %v8413_v24  ;;  %v8631_v30 = vsel %vm3557_vm8, %v8479_v51, 920167782  ;;  %v8633_v53 = vshrl.u32 %v3628_v27, 23 }
 0x1fc   :  { %vm1657_vm15 = vweird.f32 %v11154_v33  ;;  %v3371_v19 = vmul.u32 %v3364_v35, %v3355_v56  ;;  %vm3373_vm10 = vc.u32 %v8605_v41, %v8609_v31  ;;  %vm1659_vm3 = vcmp.lt.s32.totalorder %v1658_v47, 2  ;;  %v11177_v35 = vld [vmem:[#allocation59_spill] sm:$0xff] }
 0x1fd   :  { %v1839_v40 = vclz %v5140_v34  ;;  %v8639_v39 = vsel %vm3739_vm12, %v8527_v5, 0  ;;  %v3374_v23 = vadd.s32 1, %v8610_v42  ;;  %v10954_v11 = vand.u32 2147483647, %v11176_v61 }
 0x1fe   :  { %vm1660_vm5 = vcmp.eq.s32.totalorder %v1658_v47, 0  ;;  %vm1663_vm1 = vcmp.eq.s32.totalorder %v1658_v47, 2  ;;  %v1827_v63 = vadd.s32 %v8515_v14, %v8513_v4  ;;  %v1993_v26 = vshrl.u32 %v11049_v3, %v11177_v35 }
 0x1ff   :  { %v5141_v43 = vadd.s32 4294967294, %v1839_v40  ;;  %v3375_v0 = vsel %vm3373_vm10, %v3374_v23, %v8610_v42  ;;  %v1994_v58 = vshll.u32 %v11049_v3, %v11178_v18  ;;  %v1995_v5 = vshrl.u32 %v11053_v16, %v11177_v35 }
 0x200   :  { %v5740_v52 = vpop.eup %5739  ;;  %vm448_vm6 = vcmp.lt.f32.partialorder %v5889_v37, 6.0  ;;  %v3376_v4 = vadd.s32 %v3375_v0, %v3371_v19  ;;  %v1997_v14 = vshll.u32 %v11053_v16, %v11178_v18  ;;  %v1998_v27 = vshrl.u32 %v11050_v7, %v11177_v35 }
 0x201   :  { %vm5142_vm7 = vcmp.lt.s32.totalorder %v5141_v43, 0  ;;  %v5742_v21 = vpop.eup %5741  ;;  %v1664_v60 = vxor.u32 2147483648, %v5740_v52  ;;  %v1984_v55 = vand.u32 8388607, %v10954_v11  ;;  %v2000_v56 = vshll.u32 %v11050_v7, %v11178_v18 }
 0x202   :  { %v1842_v8 = vsel %vm5142_vm7, 0, %v5141_v43  ;;  %v1661_v42 = vxor.u32 2147483648, %v5742_v21  ;;  %v3377_v0 = vadd.s32 536870912, %v3376_v4  ;;  %v1996_v12 = vor.u32 %v1995_v5, %v1994_v58 }
 0x203   :  { %v1843_v34 = vsub.s32 32, %v1842_v8  ;;  %v1844_v40 = vshll.u32 %v8591_v36, %v1842_v8  ;;  %v1847_v19 = vsub.s32 4294967266, %v1842_v8  ;;  %v1665_v23 = vsel %vm1663_vm1, %v1664_v60, %v5742_v21  ;;  %v11181_v8 = vld [vmem:[#allocation73_spill] sm:$0xff] }
 0x204   :  { %v2001_v44 = vshrl.u32 %v11002_v48, %v11177_v35  ;;  %v1662_v43 = vsel %vm1660_vm5, %v5740_v52, %v1661_v42  ;;  %v1999_v11 = vor.u32 %v1998_v27, %v1997_v14  ;;  %v8669_v18 = vshrl.u32 %v3377_v0, 30 }
 0x205   :  { %v1845_v45 = vshrl.u32 %v1827_v63, %v1843_v34  ;;  %v1848_v6 = vadd.s32 127, %v1847_v19  ;;  %v1666_v50 = vsel %vm1659_vm3, %v1662_v43, %v1665_v23  ;;  %v1985_v28 = vor.u32 8388608, %v1984_v55  ;;  %v11183_v19 = vld [vmem:[#allocation68_spill] sm:$0xff] }
 0x206   :  { %vm2009_vm13 = vcmp.lt.s32.totalorder %v11179_v59, 1  ;;  %v1667_v36 = vsel %vm1657_vm15, nan, %v1666_v50  ;;  %v2002_v5 = vor.u32 %v2001_v44, %v2000_v56  ;;  %v3379_v35 = vshll.u32 %v8669_v18, 30 }
 0x207   :  { %v1846_v21 = vor.u32 %v1845_v45, %v1844_v40  ;;  %v1849_v58 = vshll.u32 %v1848_v6, 23  ;;  %v3841_v60 = vadd.f32 1.0, %v1667_v36  ;;  %vm2010_vm14 = vcmp.lt.s32.totalorder %v11179_v59, 2 }
 0x208   :  { %vm2011_vm4 = vcmp.lt.s32.totalorder %v11179_v59, 3  ;;  %vm11180_vm2 = vcmp.lt.s32.totalorder %v11179_v59, 4  ;;  %v2017_v14 = vsel %vm2009_vm13, %v1996_v12, %v1999_v11  ;;  %vm1773_vm12 = vcmp.lt.s32.totalorder %v11164_v49, 0 }
 0x209   :  { %v1850_v47 = vor.u32 4788187, %v1849_v58  ;;  %v1853_v63 = vcvt.s32.f32 %v1846_v21  ;;  %v2014_v52 = vsel %vm11180_vm2, %v2002_v5, 2102212464  ;;  %v3873_v33 = vmul.f32 0.5, %v3841_v60 }
 0x20a   :  { %v1857_v50 = vsub.s32 4, %v8564_v1  ;;  %v8683_v6 = vsub.s32 %v3376_v4, %v3379_v35  ;;  %v2013_v44 = vsel %vm2009_vm13, %v1993_v26, %v1996_v12  ;;  %v2015_v27 = vsel %vm2011_vm4, %v1999_v11, %v2014_v52  ;;  %v11182_v26 = vld [vmem:[#allocation74_spill] sm:$0xff] }
 0x20b   :  { %v1851_v45 = vand.u32 2147483647, %v1850_v47  ;;  %v2019_v55 = vsel %vm2011_vm4, %v2002_v5, %v11181_v8  ;;  %v3905_v56 = vsel %vm448_vm6, %v3873_v33, 0.0  ;;  %v8694_v42 = vand.u32 31, %v8639_v39 }
 0x20c   :  { %v3382_v34 = vsub.s32 0, %v8683_v6  ;;  %v2020_v4 = vsel %vm2010_vm14, %v2017_v14, %v2019_v55  ;;  %3979 = vperm.xlu0 %5677, %v3905_v56   ;;  %v2021_v12 = vsel %vm2009_vm13, %v1999_v11, %v2002_v5  ;;  %v2023_v23 = vsel %vm2011_vm4, %v11183_v19, %v11182_v26 }
 0x20d   :  { %v1854_v40 = vmul.f32 %v1853_v63, %v1851_v45  ;;  %v2025_v37 = vshll.u32 %v1985_v28, 8  ;;  %v11184_v0 = vand.u32 2147483647, %v11164_v49  ;;  %v1858_v36 = vsel %vm1773_vm12, %v1857_v50, %v8564_v1 }
 0x20e   :  { %v5200_v21 = vmin.u32 %v3382_v34, %v8683_v6  ;;  %v2016_v11 = vsel %vm2010_vm14, %v2013_v44, %v2015_v27  ;;  %v2024_v5 = vsel %vm2010_vm14, %v2021_v12, %v2023_v23  ;;  %v11187_v35 = vor.u32 %v8470_v10, %v8456_v20 }
 0x20f   :  { %vm8707_vm15 = vcmp.le.f32.partialorder %v11184_v0, 0.7853982  ;;  %v1855_v58 = vxor.u32 2147483648, %v1854_v40  ;;  %v8719_v28 = vmul.u32.u64.low %v2025_v37, %v2020_v4  ;;  %v8720_v60 = vmul.u32.u64.high %v2025_v37, %v2020_v4, %v8719_v28 }
 0x210   :  { %v8728_v47 = vsel %vm3557_vm8, %v11187_v35, 1326507024  ;;  %v3384_v1 = vclz %v5200_v21  ;;  %v8730_v63 = vmul.u32.u64.low %v2025_v37, %v2024_v5  ;;  %v8731_v52 = vmul.u32.u64.high %v2025_v37, %v2024_v5, %v8730_v63 }
 0x211   :  { %v8734_v14 = vadd.s32 4294967169, %v8633_v53  ;;  %v8737_v59 = vshrl.u32 %v8639_v39, 5  ;;  %v8740_v33 = vsub.s32 32, %v8694_v42  ;;  %v1856_v10 = vsel %vm1773_vm12, %v1855_v58, %v1854_v40 }
 0x212   :  { %v1859_v20 = vsel %vm8707_vm15, %v11164_v49, %v1856_v10  ;;  %v1860_v50 = vsel %vm8707_vm15, 0, %v1858_v36  ;;  %v5201_v45 = vadd.s32 4294967294, %v3384_v1  ;;  %v2032_v44 = vmul.u32 %v2025_v37, %v2016_v11 }
 0x213   :  { %v8751_v53 = vshll.u32 %v11002_v48, %v8694_v42  ;;  %v8755_v39 = vshll.u32 %v11006_v62, %v8694_v42  ;;  %5743 = vcosq.f32 %v1859_v20  ;;  %v2035_v27 = vadd.s32 1, %v8720_v60 }
 0x214   :  { %5745 = vsinq.f32 %v1859_v20  ;;  %v3372_v8 = vadd.s32 %v8609_v31, %v8605_v41  ;;  %vm5202_vm10 = vcmp.lt.s32.totalorder %v5201_v45, 0  ;;  %vm2034_vm3 = vc.u32 %v8731_v52, %v8719_v28 }
 0x215   :  { %v1864_v55 = vand.u32 3, %v1860_v50  ;;  %v3387_v56 = vsel %vm5202_vm10, 0, %v5201_v45  ;;  %v2036_v34 = vsel %vm2034_vm3, %v2035_v27, %v8720_v60  ;;  %v3522_v4 = vand.u32 2147483647, %v8252_v15  ;;  %v5890_v27 = vld [vmem:[%s10776_s2 + $0x60] sm:$0xff] }
 0x216   :  { %v3388_v40 = vsub.s32 32, %v3387_v56  ;;  %v3389_v12 = vshll.u32 %v8683_v6, %v3387_v56  ;;  %v3392_v26 = vsub.s32 4294967266, %v3387_v56  ;;  %v2037_v19 = vadd.s32 %v2036_v34, %v2032_v44 }
 0x217   :  { %vm3318_vm5 = vcmp.lt.s32.totalorder %v8003_v32, 0  ;;  %v3542_v41 = vshll.u32 %v11053_v16, %v8397_v46  ;;  %v3543_v31 = vshrl.u32 %v11050_v7, %v8424_v13  ;;  %v3545_v23 = vshll.u32 %v11050_v7, %v8397_v46 }
 0x218   :  { %vm1863_vm1 = vweird.f32 %v11164_v49  ;;  %v3390_v37 = vshrl.u32 %v3372_v8, %v3388_v40  ;;  %v3393_v0 = vadd.s32 127, %v3392_v26  ;;  %v2038_v43 = vadd.s32 536870912, %v2037_v19 }
 0x219   :  { %v3546_v6 = vshrl.u32 %v11002_v48, %v8424_v13  ;;  %v3402_v36 = vsub.s32 4, %v8669_v18  ;;  %v3529_v21 = vand.u32 8388607, %v3522_v4  ;;  %v3539_v11 = vshll.u32 %v11049_v3, %v8397_v46 }
 0x21a   :  { %v3540_v58 = vshrl.u32 %v11053_v16, %v8424_v13  ;;  %vm1865_vm6 = vcmp.lt.s32.totalorder %v1864_v55, 2  ;;  %v11188_v5 = vand.u32 2147483647, %v8003_v32  ;;  %v3391_v35 = vor.u32 %v3390_v37, %v3389_v12 }
 0x21b   :  { %v3394_v1 = vshll.u32 %v3393_v0, 23  ;;  %v8788_v63 = vshrl.u32 %v2038_v43, 30  ;;  %vm1866_vm13 = vcmp.eq.s32.totalorder %v1864_v55, 0  ;;  %v3544_v10 = vor.u32 %v3543_v31, %v3542_v41 }
 0x21c   :  { %vm8784_vm7 = vcmp.le.f32.partialorder %v11188_v5, 0.7853982  ;;  %v3547_v20 = vor.u32 %v3546_v6, %v3545_v23  ;;  %vm3554_vm14 = vcmp.lt.s32.totalorder %v8421_v22, 1  ;;  %v3398_v50 = vcvt.s32.f32 %v3391_v35 }
 0x21d   :  { %v3395_v46 = vor.u32 4788187, %v3394_v1  ;;  %v2040_v45 = vshll.u32 %v8788_v63, 30  ;;  %vm3556_vm4 = vcmp.lt.s32.totalorder %v8421_v22, 3  ;;  %v5744_v44 = vpop.eup %5743  ;;  %vm450_vm2 = vcmp.lt.f32.partialorder %v5890_v27, 6.0 }
 0x21e   :  { %vm1869_vm12 = vcmp.eq.s32.totalorder %v1864_v55, 2  ;;  %v3403_v8 = vsel %vm3318_vm5, %v3402_v36, %v8669_v18  ;;  %v3530_v56 = vor.u32 8388608, %v3529_v21  ;;  %v3541_v34 = vor.u32 %v3540_v58, %v3539_v11  ;;  %v5746_v40 = vpop.eup %5745 }
 0x21f   :  { %v1870_v12 = vxor.u32 2147483648, %v5744_v44  ;;  %v3396_v26 = vand.u32 2147483647, %v3395_v46  ;;  %v8799_v41 = vsub.s32 %v2037_v19, %v2040_v45  ;;  %v3538_v31 = vshrl.u32 %v11049_v3, %v8424_v13 }
 0x220   :  { %v1867_v23 = vxor.u32 2147483648, %v5746_v40  ;;  %vm3555_vm15 = vcmp.lt.s32.totalorder %v8421_v22, 2  ;;  %v3566_v37 = vsel %vm3554_vm14, %v3544_v10, %v3547_v20  ;;  %v3568_v18 = vsel %vm3556_vm4, %v8479_v51, %v8728_v47 }
 0x221   :  { %v1871_v0 = vsel %vm1869_vm12, %v1870_v12, %v5746_v40  ;;  %v3399_v43 = vmul.f32 %v3398_v50, %v3396_v26  ;;  %v2043_v6 = vsub.s32 0, %v8799_v41  ;;  %v3559_v19 = vsel %vm3557_vm8, %v3547_v20, 2102212464 }
 0x222   :  { %v1868_v13 = vsel %vm1866_vm13, %v5744_v44, %v1867_v23  ;;  %v3562_v36 = vsel %vm3554_vm14, %v3541_v34, %v3544_v10  ;;  %v3564_v21 = vsel %vm3556_vm4, %v3547_v20, %v8631_v30  ;;  %v3570_v11 = vshll.u32 %v3530_v56, 8 }
 0x223   :  { %v1872_v58 = vsel %vm1865_vm6, %v1868_v13, %v1871_v0  ;;  %v3400_v51 = vxor.u32 2147483648, %v3399_v43  ;;  %v5148_v47 = vmin.u32 %v2043_v6, %v8799_v41  ;;  %v3569_v5 = vsel %vm3555_vm15, %v3566_v37, %v3568_v18 }
 0x224   :  { %v1873_v35 = vsel %vm1863_vm1, nan, %v1872_v58  ;;  %v3405_v1 = vsel %vm8784_vm7, 0, %v3403_v8  ;;  %v3558_v46 = vsel %vm3554_vm14, %v3538_v31, %v3541_v34  ;;  %v3560_v30 = vsel %vm3556_vm4, %v3544_v10, %v3559_v19  ;;  %v11195_v58 = vld [vmem:[#allocation58_spill] sm:$0xff] }
 0x225   :  { %v3843_v55 = vadd.f32 1.0, %v1873_v35  ;;  %v3401_v20 = vsel %vm3318_vm5, %v3400_v51, %v3399_v43  ;;  %v2045_v50 = vclz %v5148_v47  ;;  %v3565_v45 = vsel %vm3555_vm15, %v3562_v36, %v3564_v21  ;;  %v11194_v36 = vld [vmem:[#allocation34_spill] sm:$0xff]  ;;  %v11196_v47 = vld [vmem:[#allocation63_spill] sm:$0xff] }
 0x226   :  { %v3755_v49 = vshrl.u32 %v11006_v62, %v8740_v33  ;;  %v3404_v44 = vsel %vm8784_vm7, %v8003_v32, %v3401_v20  ;;  %v8840_v8 = vmul.u32.u64.low %v3570_v11, %v3569_v5  ;;  %v8841_v56 = vmul.u32.u64.high %v3570_v11, %v3569_v5, %v8840_v8 }
 0x227   :  { %v3875_v34 = vmul.f32 0.5, %v3843_v55  ;;  %5747 = vcosq.f32 %v3404_v44  ;;  %v5149_v10 = vadd.s32 4294967294, %v2045_v50  ;;  %v3561_v40 = vsel %vm3555_vm15, %v3558_v46, %v3560_v30 }
 0x228   :  { %5749 = vsinq.f32 %v3404_v44  ;;  %v8845_v12 = vand.u32 3, %v3405_v1  ;;  %v8847_v26 = vmul.u32.u64.low %v3570_v11, %v3565_v45  ;;  %v8848_v31 = vmul.u32.u64.high %v3570_v11, %v3565_v45, %v8847_v26  ;;  %v5891_v44 = vld [vmem:[%s10776_s2 + $0xd8] sm:$0xff] }
 0x229   :  { %v8853_v60 = vshrl.u32 %v11008_v9, %v8740_v33  ;;  %v3907_v23 = vsel %vm450_vm2, %v3875_v34, 0.0  ;;  %v2033_v37 = vadd.s32 %v8719_v28, %v8731_v52  ;;  %vm5150_vm8 = vcmp.lt.s32.totalorder %v5149_v10, 0 }
 0x22a   :  { %v8859_v22 = vor.u32 %v3755_v49, %v8751_v53  ;;  %3989 = vperm.xlu0 %5677, %v3907_v23   ;;  %v2048_v18 = vsel %vm5150_vm8, 0, %v5149_v10  ;;  %v2063_v0 = vsub.s32 4, %v8788_v63  ;;  %v3577_v43 = vmul.u32 %v3570_v11, %v3561_v40 }
 0x22b   :  { %v2049_v6 = vsub.s32 32, %v2048_v18  ;;  %v2050_v19 = vshll.u32 %v8799_v41, %v2048_v18  ;;  %v2053_v13 = vsub.s32 4294967266, %v2048_v18  ;;  %vm3579_vm10 = vc.u32 %v8841_v56, %v8847_v26 }
 0x22c   :  { %vm3408_vm3 = vweird.f32 %v8003_v32  ;;  %vm3410_vm5 = vcmp.lt.s32.totalorder %v8845_v12, 2  ;;  %v11191_v28 = vand.u32 2147483647, %v11176_v61  ;;  %vm1979_vm6 = vcmp.lt.s32.totalorder %v11176_v61, 0 }
 0x22d   :  { %v3580_v53 = vadd.s32 1, %v8848_v31  ;;  %vm3411_vm7 = vcmp.eq.s32.totalorder %v8845_v12, 0  ;;  %v2051_v27 = vshrl.u32 %v2033_v37, %v2049_v6  ;;  %v2054_v41 = vadd.s32 127, %v2053_v13 }
 0x22e   :  { %vm8869_vm1 = vcmp.le.f32.partialorder %v11191_v28, 0.7853982  ;;  %v2080_v21 = vand.u32 2147483647, %v11194_v36  ;;  %vm3414_vm13 = vcmp.eq.s32.totalorder %v8845_v12, 2  ;;  %v2100_v51 = vshll.u32 %v11053_v16, %v11195_v58 }
 0x22f   :  { %v3581_v11 = vsel %vm3579_vm10, %v3580_v53, %v8848_v31  ;;  %v2101_v5 = vshrl.u32 %v11050_v7, %v11196_v47  ;;  %v2052_v35 = vor.u32 %v2051_v27, %v2050_v19  ;;  %v2055_v1 = vshll.u32 %v2054_v41, 23  ;;  %v11197_v19 = vld [vmem:[#allocation62_spill] sm:$0xff] }
 0x230   :  { %v2064_v46 = vsel %vm1979_vm6, %v2063_v0, %v8788_v63  ;;  %v3582_v30 = vadd.s32 %v3581_v11, %v3577_v43  ;;  %v2097_v55 = vshll.u32 %v11049_v3, %v11195_v58  ;;  %v2098_v20 = vshrl.u32 %v11053_v16, %v11196_v47 }
 0x231   :  { %v2103_v50 = vshll.u32 %v11050_v7, %v11195_v58  ;;  %v2104_v45 = vshrl.u32 %v11002_v48, %v11196_v47  ;;  %v5748_v49 = vpop.eup %5747  ;;  %vm465_vm14 = vcmp.lt.f32.partialorder %v5891_v44, 6.0  ;;  %v2056_v63 = vor.u32 4788187, %v2055_v1 }
 0x232   :  { %v2059_v8 = vcvt.s32.f32 %v2052_v35  ;;  %v3583_v34 = vadd.s32 536870912, %v3582_v30  ;;  %v2087_v10 = vand.u32 8388607, %v2080_v21  ;;  %v5750_v40 = vpop.eup %5749  ;;  %v3415_v31 = vxor.u32 2147483648, %v5748_v49 }
 0x233   :  { %v2066_v23 = vsel %vm8869_vm1, 0, %v2064_v46  ;;  %v2102_v37 = vor.u32 %v2101_v5, %v2100_v51  ;;  %v2105_v18 = vor.u32 %v2104_v45, %v2103_v50  ;;  %vm3763_vm4 = vcmp.lt.s32.totalorder %v8737_v59, 4 }
 0x234   :  { %v3412_v0 = vxor.u32 2147483648, %v5750_v40  ;;  %v2057_v43 = vand.u32 2147483647, %v2056_v63  ;;  %v8902_v6 = vshrl.u32 %v3583_v34, 30  ;;  %vm2112_vm2 = vcmp.lt.s32.totalorder %v11197_v19, 1  ;;  %v11201_v63 = vld [vmem:[#allocation76_spill] sm:$0xff] }
 0x235   :  { %v3416_v13 = vsel %vm3414_vm13, %v3415_v31, %v5750_v40  ;;  %v2096_v28 = vshrl.u32 %v11049_v3, %v11196_v47  ;;  %v2099_v53 = vor.u32 %v2098_v20, %v2097_v55  ;;  %vm2114_vm12 = vcmp.lt.s32.totalorder %v11197_v19, 3  ;;  %v11199_v55 = vld [vmem:[#allocation77_spill] sm:$0xff] }
 0x236   :  { %v3413_v27 = vsel %vm3411_vm7, %v5748_v49, %v3412_v0  ;;  %v2060_v41 = vmul.f32 %v2059_v8, %v2057_v43  ;;  %v3585_v11 = vshll.u32 %v8902_v6, 30  ;;  %v2088_v58 = vor.u32 8388608, %v2087_v10  ;;  %v11200_v20 = vld [vmem:[#allocation69_spill] sm:$0xff] }
 0x237   :  { %v3417_v51 = vsel %vm3410_vm5, %v3413_v27, %v3416_v13  ;;  %vm2113_vm15 = vcmp.lt.s32.totalorder %v11197_v19, 2  ;;  %vm11198_vm8 = vcmp.lt.s32.totalorder %v11197_v19, 4  ;;  %v2124_v47 = vsel %vm2112_vm2, %v2102_v37, %v2105_v18 }
 0x238   :  { %v2117_v5 = vsel %vm11198_vm8, %v2105_v18, 2102212464  ;;  %v3418_v35 = vsel %vm3408_vm3, nan, %v3417_v51  ;;  %v2061_v1 = vxor.u32 2147483648, %v2060_v41  ;;  %v8922_v46 = vsub.s32 %v3582_v30, %v3585_v11 }
 0x239   :  { %v2126_v12 = vsel %vm2114_vm12, %v11200_v20, %v11199_v55  ;;  %v3858_v50 = vadd.f32 1.0, %v3418_v35  ;;  %v2116_v45 = vsel %vm2112_vm2, %v2096_v28, %v2099_v53  ;;  %v2120_v49 = vsel %vm2112_vm2, %v2099_v53, %v2102_v37 }
 0x23a   :  { %v2122_v32 = vsel %vm2114_vm12, %v2105_v18, %v11201_v63  ;;  %v2062_v30 = vsel %vm1979_vm6, %v2061_v1, %v2060_v41  ;;  %v3588_v8 = vsub.s32 0, %v8922_v46  ;;  %v2118_v34 = vsel %vm2114_vm12, %v2102_v37, %v2117_v5 }
 0x23b   :  { %v2128_v10 = vshll.u32 %v2088_v58, 8  ;;  %v3759_v40 = vor.u32 %v8853_v60, %v8755_v39  ;;  %v3890_v31 = vmul.f32 0.5, %v3858_v50  ;;  %v2065_v0 = vsel %vm8869_vm1, %v11176_v61, %v2062_v30 }
 0x23c   :  { %v2127_v18 = vsel %vm2113_vm15, %v2124_v47, %v2126_v12  ;;  %5751 = vcosq.f32 %v2065_v0  ;;  %v8947_v43 = vand.u32 3, %v2066_v23  ;;  %v5208_v13 = vmin.u32 %v3588_v8, %v8922_v46  ;;  %v5892_v8 = vld [vmem:[%s10776_s2 + $0x70] sm:$0xff] }
 0x23d   :  { %v2123_v37 = vsel %vm2113_vm15, %v2120_v49, %v2122_v32  ;;  %v8953_v28 = vadd.s32 1, %v8734_v14  ;;  %v3922_v39 = vsel %vm465_vm14, %v3890_v31, 0.0  ;;  %5753 = vsinq.f32 %v2065_v0 }
 0x23e   :  { %v2119_v60 = vsel %vm2113_vm15, %v2116_v45, %v2118_v34  ;;  %4064 = vperm.xlu1 %5678, %v3922_v39   ;;  %v3590_v52 = vclz %v5208_v13  ;;  %v8958_v53 = vmul.u32.u64.low %v2128_v10, %v2127_v18  ;;  %v8959_v27 = vmul.u32.u64.high %v2128_v10, %v2127_v18, %v8958_v53 }
 0x23f   :  { %v3728_v23 = vand.u32 2147483647, %v8439_v29  ;;  %v3769_v41 = vsel %vm3763_vm4, %v8859_v22, 920167782  ;;  %v3773_v14 = vsel %vm3763_vm4, %v3759_v40, 1326507024  ;;  %v3578_v19 = vadd.s32 %v8847_v26, %v8841_v56 }
 0x240   :  { %v8967_v44 = vmul.u32.u64.low %v2128_v10, %v2123_v37  ;;  %v8968_v11 = vmul.u32.u64.high %v2128_v10, %v2123_v37, %v8967_v44  ;;  %vm2071_vm10 = vcmp.lt.s32.totalorder %v8947_v43, 2  ;;  %vm2072_vm3 = vcmp.eq.s32.totalorder %v8947_v43, 0 }
 0x241   :  { %vm2075_vm5 = vcmp.eq.s32.totalorder %v8947_v43, 2  ;;  %v5209_v58 = vadd.s32 4294967294, %v3590_v52  ;;  %vm2069_vm1 = vweird.f32 %v11176_v61  ;;  %v3608_v51 = vsub.s32 4, %v8902_v6 }
 0x242   :  { %v2135_v5 = vmul.u32 %v2128_v10, %v2119_v60  ;;  %v3748_v47 = vshll.u32 %v11053_v16, %v8694_v42  ;;  %v3749_v35 = vshrl.u32 %v11050_v7, %v8740_v33  ;;  %vm2137_vm7 = vc.u32 %v8959_v27, %v8967_v44 }
 0x243   :  { %vm5210_vm6 = vcmp.lt.s32.totalorder %v5209_v58, 0  ;;  %v3735_v1 = vand.u32 8388607, %v3728_v23  ;;  %v3751_v56 = vshll.u32 %v11050_v7, %v8694_v42  ;;  %v2138_v55 = vadd.s32 1, %v8968_v11 }
 0x244   :  { %v3593_v26 = vsel %vm5210_vm6, 0, %v5209_v58  ;;  %v3745_v20 = vshll.u32 %v11049_v3, %v8694_v42  ;;  %v3746_v12 = vshrl.u32 %v11053_v16, %v8740_v33  ;;  %vm3524_vm13 = vcmp.lt.s32.totalorder %v8252_v15, 0 }
 0x245   :  { %v3594_v50 = vsub.s32 32, %v3593_v26  ;;  %v3595_v45 = vshll.u32 %v8922_v46, %v3593_v26  ;;  %v3598_v49 = vsub.s32 4294967266, %v3593_v26  ;;  %v3752_v63 = vshrl.u32 %v11002_v48, %v8740_v33 }
 0x246   :  { %v2139_v32 = vsel %vm2137_vm7, %v2138_v55, %v8968_v11  ;;  %v3750_v30 = vor.u32 %v3749_v35, %v3748_v47  ;;  %vm3760_vm14 = vcmp.lt.s32.totalorder %v8737_v59, 1  ;;  %vm3762_vm2 = vcmp.lt.s32.totalorder %v8737_v59, 3  ;;  %v5752_v42 = vpop.eup %5751 }
 0x247   :  { %vm452_vm12 = vcmp.lt.f32.partialorder %v5892_v8, 6.0  ;;  %v3596_v34 = vshrl.u32 %v3578_v19, %v3594_v50  ;;  %v3599_v10 = vadd.s32 127, %v3598_v49  ;;  %v2140_v46 = vadd.s32 %v2139_v32, %v2135_v5  ;;  %v5754_v31 = vpop.eup %5753 }
 0x248   :  { %v3753_v40 = vor.u32 %v3752_v63, %v3751_v56  ;;  %v2076_v0 = vxor.u32 2147483648, %v5752_v42  ;;  %v3736_v18 = vor.u32 8388608, %v3735_v1  ;;  %v3744_v13 = vshrl.u32 %v11049_v3, %v8740_v33 }
 0x249   :  { %v3747_v37 = vor.u32 %v3746_v12, %v3745_v20  ;;  %v2073_v39 = vxor.u32 2147483648, %v5754_v31  ;;  %v3597_v60 = vor.u32 %v3596_v34, %v3595_v45  ;;  %v3600_v52 = vshll.u32 %v3599_v10, 23 }
 0x24a   :  { %v2141_v53 = vadd.s32 536870912, %v2140_v46  ;;  %v2077_v11 = vsel %vm2075_vm5, %v2076_v0, %v5754_v31  ;;  %vm3761_vm15 = vcmp.lt.s32.totalorder %v8737_v59, 2  ;;  %v3772_v19 = vsel %vm3760_vm14, %v3750_v30, %v3753_v40 }
 0x24b   :  { %v3774_v58 = vsel %vm3762_vm2, %v8859_v22, %v3773_v14  ;;  %v2074_v33 = vsel %vm2072_vm3, %v5752_v42, %v2073_v39  ;;  %v3601_v5 = vor.u32 4788187, %v3600_v52  ;;  %v3604_v47 = vcvt.s32.f32 %v3597_v60 }
 0x24c   :  { %v9015_v35 = vshrl.u32 %v2141_v53, 30  ;;  %v2078_v1 = vsel %vm2071_vm10, %v2074_v33, %v2077_v11  ;;  %v3765_v56 = vsel %vm3763_vm4, %v3753_v40, 2102212464  ;;  %v3768_v26 = vsel %vm3760_vm14, %v3747_v37, %v3750_v30 }
 0x24d   :  { %v3770_v55 = vsel %vm3762_vm2, %v3753_v40, %v3769_v41  ;;  %v2079_v22 = vsel %vm2069_vm1, nan, %v2078_v1  ;;  %v3602_v14 = vand.u32 2147483647, %v3601_v5  ;;  %v3775_v12 = vsel %vm3761_vm15, %v3772_v19, %v3774_v58  ;;  %v11204_v19 = vld [vmem:[#allocation37_spill] sm:$0xff] }
 0x24e   :  { %v2143_v20 = vshll.u32 %v9015_v35, 30  ;;  %v3845_v43 = vadd.f32 1.0, %v2079_v22  ;;  %v3609_v50 = vsel %vm3524_vm13, %v3608_v51, %v8902_v6  ;;  %v3764_v45 = vsel %vm3760_vm14, %v3744_v13, %v3747_v37 }
 0x24f   :  { %v3776_v49 = vshll.u32 %v3736_v18, 8  ;;  %v3605_v63 = vmul.f32 %v3604_v47, %v3602_v14  ;;  %v3766_v61 = vsel %vm3762_vm2, %v3750_v30, %v3765_v56  ;;  %v3771_v32 = vsel %vm3761_vm15, %v3768_v26, %v3770_v55 }
 0x250   :  { %v9035_v41 = vsub.s32 %v2140_v46, %v2143_v20  ;;  %v3877_v42 = vmul.f32 0.5, %v3845_v43  ;;  %vm9043_vm4 = vcmp.le.f32.partialorder %v3522_v4, 0.7853982  ;;  %vm3636_vm8 = vcmp.gt.s32.totalorder %v8953_v28, 0 }
 0x251   :  { %v9047_v6 = vmul.u32.u64.low %v3776_v49, %v3775_v12  ;;  %v9048_v51 = vmul.u32.u64.high %v3776_v49, %v3775_v12, %v9047_v6  ;;  %v3606_v10 = vxor.u32 2147483648, %v3605_v63  ;;  %v3611_v46 = vsel %vm9043_vm4, 0, %v3609_v50  ;;  %v11205_v50 = vld [vmem:[#allocation61_spill] sm:$0xff] }
 0x252   :  { %v2146_v30 = vsub.s32 0, %v9035_v41  ;;  %v3909_v40 = vsel %vm452_vm12, %v3877_v42, 0.0  ;;  %v3767_v31 = vsel %vm3761_vm15, %v3764_v45, %v3766_v61  ;;  %v9063_v18 = vshrl.u32 %v11008_v9, %v8298_v57 }
 0x253   :  { %v9057_v4 = vmul.u32.u64.low %v3776_v49, %v3771_v32  ;;  %v9058_v0 = vmul.u32.u64.high %v3776_v49, %v3771_v32, %v9057_v4  ;;  %vm3145_vm10 = vcmp.lt.s32.totalorder %v8395_v17, 4  ;;  %3999 = vperm.xlu0 %5677, %v3909_v40   ;;  %v3607_v13 = vsel %vm3524_vm13, %v3606_v10, %v3605_v63 }
 0x254   :  { %v5152_v8 = vmin.u32 %v2146_v30, %v9035_v41  ;;  %v9070_v37 = vsub.s32 32, %v8624_v38  ;;  %v9073_v59 = vsel %vm3636_vm8, %v8953_v28, 0  ;;  %v3610_v39 = vsel %vm9043_vm4, %v8252_v15, %v3607_v13 }
 0x255   :  { %v9078_v60 = vand.u32 3, %v3611_v46  ;;  %5755 = vcosq.f32 %v3610_v39  ;;  %v3783_v53 = vmul.u32 %v3776_v49, %v3767_v31  ;;  %vm3785_vm3 = vc.u32 %v9048_v51, %v9057_v4  ;;  %v11206_v49 = vld [vmem:[#allocation64_spill] sm:$0xff] }
 0x256   :  { %v2148_v52 = vclz %v5152_v8  ;;  %v9085_v11 = vsel %vm3145_vm10, %v8615_v25, 920167782  ;;  %5757 = vsinq.f32 %v3610_v39  ;;  %v3786_v28 = vadd.s32 1, %v9058_v0  ;;  %v5893_v39 = vld [vmem:[%s10776_s2 + $0xe8] sm:$0xff] }
 0x257   :  { %v2183_v58 = vand.u32 2147483647, %v11204_v19  ;;  %v3141_v33 = vor.u32 %v9063_v18, %v8619_v2  ;;  %v9093_v5 = vshll.u32 %v11002_v48, %v8624_v38  ;;  %v9097_v47 = vshll.u32 %v11006_v62, %v8624_v38 }
 0x258   :  { %v5153_v1 = vadd.s32 4294967294, %v2148_v52  ;;  %v9101_v56 = vshrl.u32 %v11006_v62, %v9070_v37  ;;  %v9105_v26 = vshrl.u32 %v11008_v9, %v9070_v37  ;;  %v9108_v55 = vand.u32 31, %v9073_v59 }
 0x259   :  { %v3787_v22 = vsel %vm3785_vm3, %v3786_v28, %v9058_v0  ;;  %vm3616_vm5 = vcmp.lt.s32.totalorder %v9078_v60, 2  ;;  %vm3617_vm1 = vcmp.eq.s32.totalorder %v9078_v60, 0  ;;  %v2136_v14 = vadd.s32 %v8967_v44, %v8959_v27 }
 0x25a   :  { %vm5154_vm6 = vcmp.lt.s32.totalorder %v5153_v1, 0  ;;  %v3788_v20 = vadd.s32 %v3787_v22, %v3783_v53  ;;  %vm3614_vm7 = vweird.f32 %v8252_v15  ;;  %v2190_v43 = vand.u32 8388607, %v2183_v58 }
 0x25b   :  { %v2151_v12 = vsel %vm5154_vm6, 0, %v5153_v1  ;;  %v2203_v45 = vshll.u32 %v11053_v16, %v11205_v50  ;;  %v2204_v63 = vshrl.u32 %v11050_v7, %v11206_v49  ;;  %v2200_v27 = vshll.u32 %v11049_v3, %v11205_v50 }
 0x25c   :  { %v2152_v61 = vsub.s32 32, %v2151_v12  ;;  %v2153_v32 = vshll.u32 %v9035_v41, %v2151_v12  ;;  %v2156_v42 = vsub.s32 4294967266, %v2151_v12  ;;  %v3789_v34 = vadd.s32 536870912, %v3788_v20 }
 0x25d   :  { %v2201_v44 = vshrl.u32 %v11053_v16, %v11206_v49  ;;  %v2206_v6 = vshll.u32 %v11050_v7, %v11205_v50  ;;  %v2207_v10 = vshrl.u32 %v11002_v48, %v11206_v49  ;;  %vm3620_vm13 = vcmp.eq.s32.totalorder %v9078_v60, 2  ;;  %v11207_v50 = vld [vmem:[#allocation66_spill] sm:$0xff] }
 0x25e   :  { %v2154_v46 = vshrl.u32 %v2136_v14, %v2152_v61  ;;  %v2157_v30 = vadd.s32 127, %v2156_v42  ;;  %v9132_v40 = vshrl.u32 %v3789_v34, 30  ;;  %v2166_v41 = vsub.s32 4, %v9015_v35 }
 0x25f   :  { %v2191_v31 = vor.u32 8388608, %v2190_v43  ;;  %v2199_v0 = vshrl.u32 %v11049_v3, %v11206_v49  ;;  %v2205_v13 = vor.u32 %v2204_v63, %v2203_v45  ;;  %v5756_v8 = vpop.eup %5755  ;;  %vm467_vm14 = vcmp.lt.f32.partialorder %v5893_v39, 6.0 }
 0x260   :  { %v2155_v52 = vor.u32 %v2154_v46, %v2153_v32  ;;  %v2158_v53 = vshll.u32 %v2157_v30, 23  ;;  %v3791_v28 = vshll.u32 %v9132_v40, 30  ;;  %v2208_v1 = vor.u32 %v2207_v10, %v2206_v6  ;;  %v5758_v22 = vpop.eup %5757  ;;  %v11209_v46 = vld [vmem:[#allocation78_spill] sm:$0xff] }
 0x261   :  { %v3621_v14 = vxor.u32 2147483648, %v5756_v8  ;;  %v2202_v12 = vor.u32 %v2201_v44, %v2200_v27  ;;  %vm2215_vm2 = vcmp.lt.s32.totalorder %v11207_v50, 1  ;;  %vm2217_vm12 = vcmp.lt.s32.totalorder %v11207_v50, 3 }
 0x262   :  { %v3618_v43 = vxor.u32 2147483648, %v5758_v22  ;;  %v2159_v45 = vor.u32 4788187, %v2158_v53  ;;  %v2162_v49 = vcvt.s32.f32 %v2155_v52  ;;  %v9143_v63 = vsub.s32 %v3788_v20, %v3791_v28  ;;  %v11210_v52 = vld [vmem:[#allocation79_spill] sm:$0xff] }
 0x263   :  { %v3622_v61 = vsel %vm3620_vm13, %v3621_v14, %v5758_v22  ;;  %vm2216_vm15 = vcmp.lt.s32.totalorder %v11207_v50, 2  ;;  %v2219_v32 = vsel %vm2215_vm2, %v2199_v0, %v2202_v12  ;;  %vm11208_vm4 = vcmp.lt.s32.totalorder %v11207_v50, 4  ;;  %v11211_v0 = vld [vmem:[#allocation71_spill] sm:$0xff] }
 0x264   :  { %v2220_v42 = vsel %vm11208_vm4, %v2208_v1, 2102212464  ;;  %v3619_v34 = vsel %vm3617_vm1, %v5756_v8, %v3618_v43  ;;  %v2160_v27 = vand.u32 2147483647, %v2159_v45  ;;  %v3794_v44 = vsub.s32 0, %v9143_v63 }
 0x265   :  { %v2227_v6 = vsel %vm2215_vm2, %v2205_v13, %v2208_v1  ;;  %v3623_v20 = vsel %vm3616_vm5, %v3619_v34, %v3622_v61  ;;  %v2223_v10 = vsel %vm2215_vm2, %v2202_v12, %v2205_v13  ;;  %v2225_v30 = vsel %vm2217_vm12, %v2208_v1, %v11209_v46 }
 0x266   :  { %v2229_v53 = vsel %vm2217_vm12, %v11211_v0, %v11210_v52  ;;  %v3624_v8 = vsel %vm3614_vm7, nan, %v3623_v20  ;;  %v2163_v28 = vmul.f32 %v2162_v49, %v2160_v27  ;;  %v5216_v22 = vmin.u32 %v3794_v44, %v9143_v63 }
 0x267   :  { %v2221_v60 = vsel %vm2217_vm12, %v2205_v13, %v2220_v42  ;;  %v3860_v14 = vadd.f32 1.0, %v3624_v8  ;;  %vm9169_vm8 = vcmp.le.f32.partialorder %v2080_v21, 0.7853982  ;;  %vm2082_vm3 = vcmp.lt.s32.totalorder %v11194_v36, 0 }
 0x268   :  { %v2230_v1 = vsel %vm2216_vm15, %v2227_v6, %v2229_v53  ;;  %v2164_v15 = vxor.u32 2147483648, %v2163_v28  ;;  %v3796_v43 = vclz %v5216_v22  ;;  %v2226_v45 = vsel %vm2216_vm15, %v2223_v10, %v2225_v30  ;;  %v11214_v30 = vld [vmem:[#allocation45_spill] sm:$0xff] }
 0x269   :  { %v2231_v49 = vshll.u32 %v2191_v31, 8  ;;  %v10957_v61 = vlaneseq  ;;  %v3892_v13 = vmul.f32 0.5, %v3860_v14  ;;  %v2167_v42 = vsel %vm2082_vm3, %v2166_v41, %v9015_v35  ;;  %v9195_v35 = vld [vmem:[%s10778_s4] sm:$0x1] }
 0x26a   :  { %v2222_v21 = vsel %vm2216_vm15, %v2219_v32, %v2221_v60  ;;  %v2165_v34 = vsel %vm2082_vm3, %v2164_v15, %v2163_v28  ;;  %v5217_v27 = vadd.s32 4294967294, %v3796_v43  ;;  %v2169_v41 = vsel %vm9169_vm8, 0, %v2167_v42 }
 0x26b   :  { %v9181_v44 = vmul.u32.u64.low %v2231_v49, %v2230_v1  ;;  %v9182_v20 = vmul.u32.u64.high %v2231_v49, %v2230_v1, %v9181_v44  ;;  %v3924_v6 = vsel %vm467_vm14, %v3892_v13, 0.0  ;;  %v2168_v46 = vsel %vm9169_vm8, %v11194_v36, %v2165_v34  ;;  %v11218_v13 = vld [vmem:[#allocation67_spill] sm:$0xff]  ;;  %v11219_v34 = vld [vmem:[#allocation70_spill] sm:$0xff] }
 0x26c   :  { %v9188_v10 = vmul.u32.u64.low %v2231_v49, %v2226_v45  ;;  %v9189_v31 = vmul.u32.u64.high %v2231_v49, %v2226_v45, %v9188_v10  ;;  %4074 = vperm.xlu1 %5678, %v3924_v6   ;;  %5759 = vcosq.f32 %v2168_v46  ;;  %v3784_v39 = vadd.s32 %v9057_v4, %v9048_v51 }
 0x26d   :  { %vm5218_vm5 = vcmp.lt.s32.totalorder %v5217_v27, 0  ;;  %5761 = vsinq.f32 %v2168_v46  ;;  %v3814_v32 = vsub.s32 4, %v9132_v40  ;;  %v2286_v52 = vand.u32 2147483647, %v11214_v30 }
 0x26e   :  { %v3799_v50 = vsel %vm5218_vm5, 0, %v5217_v27  ;;  %v2238_v28 = vmul.u32 %v2231_v49, %v2222_v21  ;;  %v105_v22 = vsub.f32 0.0, %v9195_v35  ;;  %v9206_v60 = vshrl.u32 %v10957_v61, 7 }
 0x26f   :  { %v3800_v0 = vsub.s32 32, %v3799_v50  ;;  %v3801_v53 = vshll.u32 %v9143_v63, %v3799_v50  ;;  %v3804_v8 = vsub.s32 4294967266, %v3799_v50  ;;  %vm2240_vm1 = vc.u32 %v9182_v20, %v9188_v10 }
 0x270   :  { %11215 = vst [vmem:[#allocation10_spill] sm:$0xff] %v9206_v60  ;;  %v2241_v51 = vadd.s32 1, %v9189_v31  ;;  %vm9213_vm6 = vcmp.le.f32.partialorder %v3728_v23, 0.7853982  ;;  %vm3730_vm7 = vcmp.lt.s32.totalorder %v8439_v29, 0  ;;  %vm2172_vm13 = vweird.f32 %v11194_v36 }
 0x271   :  { %v3802_v63 = vshrl.u32 %v3784_v39, %v3800_v0  ;;  %v3805_v14 = vadd.s32 127, %v3804_v8  ;;  %v2173_v12 = vand.u32 3, %v2169_v41  ;;  %v9222_v1 = vsel %vm3730_vm7, %v3814_v32, %v9132_v40  ;;  %v5894_v32 = vld [vmem:[%s10776_s2 + $0x78] sm:$0xff] }
 0x272   :  { %v2242_v15 = vsel %vm2240_vm1, %v2241_v51, %v9189_v31  ;;  %v2293_v23 = vand.u32 8388607, %v2286_v52  ;;  %v2306_v42 = vshll.u32 %v11053_v16, %v11218_v13  ;;  %v2303_v21 = vshll.u32 %v11049_v3, %v11218_v13 }
 0x273   :  { %v3803_v43 = vor.u32 %v3802_v63, %v3801_v53  ;;  %v3806_v45 = vshll.u32 %v3805_v14, 23  ;;  %v2243_v49 = vadd.s32 %v2242_v15, %v2238_v28  ;;  %v2304_v27 = vshrl.u32 %v11053_v16, %v11219_v34  ;;  %v11220_v28 = vld [vmem:[#allocation72_spill] sm:$0xff] }
 0x274   :  { %v2307_v40 = vshrl.u32 %v11050_v7, %v11219_v34  ;;  %v2309_v44 = vshll.u32 %v11050_v7, %v11218_v13  ;;  %v2310_v41 = vshrl.u32 %v11002_v48, %v11219_v34  ;;  %vm2174_vm14 = vcmp.lt.s32.totalorder %v2173_v12, 2 }
 0x275   :  { %v3807_v6 = vor.u32 4788187, %v3806_v45  ;;  %v3810_v46 = vcvt.s32.f32 %v3803_v43  ;;  %v2244_v31 = vadd.s32 536870912, %v2243_v49  ;;  %vm2175_vm2 = vcmp.eq.s32.totalorder %v2173_v12, 0 }
 0x276   :  { %vm2178_vm12 = vcmp.eq.s32.totalorder %v2173_v12, 2  ;;  %v2308_v39 = vor.u32 %v2307_v40, %v2306_v42  ;;  %v5760_v50 = vpop.eup %5759  ;;  %vm453_vm15 = vcmp.lt.f32.partialorder %v5894_v32, 6.0  ;;  %v2311_v8 = vor.u32 %v2310_v41, %v2309_v44 }
 0x277   :  { %v3808_v0 = vand.u32 2147483647, %v3807_v6  ;;  %v9242_v53 = vshrl.u32 %v2244_v31, 30  ;;  %vm2320_vm4 = vcmp.lt.s32.totalorder %v11220_v28, 3  ;;  %v5762_v51 = vpop.eup %5761  ;;  %v2179_v63 = vxor.u32 2147483648, %v5760_v50  ;;  %v11221_v6 = vld [vmem:[#allocation83_spill] sm:$0xff] }
 0x278   :  { %v3817_v14 = vsel %vm9213_vm6, 0, %v9222_v1  ;;  %v2305_v15 = vor.u32 %v2304_v27, %v2303_v21  ;;  %vm2318_vm8 = vcmp.lt.s32.totalorder %v11220_v28, 1  ;;  %v2176_v43 = vxor.u32 2147483648, %v5762_v51  ;;  %v11222_v31 = vld [vmem:[#allocation80_spill] sm:$0xff] }
 0x279   :  { %v3811_v45 = vmul.f32 %v3810_v46, %v3808_v0  ;;  %v2246_v13 = vshll.u32 %v9242_v53, 30  ;;  %v2294_v42 = vor.u32 8388608, %v2293_v23  ;;  %v2180_v40 = vsel %vm2178_vm12, %v2179_v63, %v5762_v51  ;;  %v11224_v51 = vld [vmem:[#allocation82_spill] sm:$0xff] }
 0x27a   :  { %v2302_v44 = vshrl.u32 %v11049_v3, %v11219_v34  ;;  %vm2319_vm3 = vcmp.lt.s32.totalorder %v11220_v28, 2  ;;  %v2332_v1 = vsel %vm2320_vm4, %v11222_v31, %v11221_v6  ;;  %v2177_v21 = vsel %vm2175_vm2, %v5760_v50, %v2176_v43 }
 0x27b   :  { %v3812_v27 = vxor.u32 2147483648, %v3811_v45  ;;  %v9259_v41 = vsub.s32 %v2243_v49, %v2246_v13  ;;  %v2330_v23 = vsel %vm2318_vm8, %v2308_v39, %v2311_v8  ;;  %v2181_v46 = vsel %vm2174_vm14, %v2177_v21, %v2180_v40  ;;  %v9274_v49 = vld [vmem:[%s10777_s3] ss:$0 sm:$0xff]  ;;  %v119_v21 = vpop.permute.xlu1 %118 }
 0x27c   :  { %vm11223_vm5 = vcmp.lt.s32.totalorder %v11220_v28, 4  ;;  %v2326_v0 = vsel %vm2318_vm8, %v2305_v15, %v2308_v39  ;;  %v2328_v63 = vsel %vm2320_vm4, %v2311_v8, %v11224_v51  ;;  %v2182_v50 = vsel %vm2172_vm13, nan, %v2181_v46 }
 0x27d   :  { %v2323_v34 = vsel %vm11223_vm5, %v2311_v8, 2102212464  ;;  %v3813_v12 = vsel %vm3730_vm7, %v3812_v27, %v3811_v45  ;;  %v2249_v43 = vsub.s32 0, %v9259_v41  ;;  %v2334_v13 = vshll.u32 %v2294_v42, 8 }
 0x27e   :  { %v3846_v40 = vadd.f32 1.0, %v2182_v50  ;;  %v3816_v6 = vsel %vm9213_vm6, %v8439_v29, %v3813_v12  ;;  %v2322_v8 = vsel %vm2318_vm8, %v2302_v44, %v2305_v15  ;;  %v2333_v31 = vsel %vm2319_vm3, %v2330_v23, %v2332_v1 }
 0x27f   :  { %5763 = vcosq.f32 %v3816_v6  ;;  %v5156_v36 = vmin.u32 %v2249_v43, %v9259_v41  ;;  %v2324_v45 = vsel %vm2320_vm4, %v2308_v39, %v2323_v34  ;;  %v2329_v42 = vsel %vm2319_vm3, %v2326_v0, %v2328_v63 }
 0x280   :  { %v10958_v27 = vsub.s32 0, %v9206_v60  ;;  %v274_v4 = vsub.f32 %v119_v21, %v9274_v49  ;;  %v3878_v46 = vmul.f32 0.5, %v3846_v40  ;;  %5765 = vsinq.f32 %v3816_v6  ;;  %v11225_v6 = vld [vmem:[#allocation53_spill] sm:$0xff] }
 0x281   :  { %v3821_v15 = vand.u32 3, %v3817_v14  ;;  %v2251_v44 = vclz %v5156_v36  ;;  %v9295_v51 = vmul.u32.u64.low %v2334_v13, %v2333_v31  ;;  %v9296_v1 = vmul.u32.u64.high %v2334_v13, %v2333_v31, %v9295_v51  ;;  %v5895_v36 = vld [vmem:[%s10776_s2 + $0xf8] sm:$0xff] }
 0x282   :  { %v3910_v23 = vsel %vm453_vm15, %v3878_v46, 0.0  ;;  %v2325_v50 = vsel %vm2319_vm3, %v2322_v8, %v2324_v45  ;;  %v9301_v39 = vmul.u32.u64.low %v2334_v13, %v2329_v42  ;;  %v9302_v34 = vmul.u32.u64.high %v2334_v13, %v2329_v42, %v9301_v39 }
 0x283   :  { %v9310_v0 = vsel %vm3145_vm10, %v3141_v33, 1326507024  ;;  %v9313_v14 = vshrl.u32 %v8413_v24, 5  ;;  %v9317_v32 = vor.u32 %v9101_v56, %v9093_v5  ;;  %4004 = vperm.xlu0 %5677, %v3910_v23   ;;  %v5157_v28 = vadd.s32 4294967294, %v2251_v44 }
 0x284   :  { %v3244_v63 = vor.u32 %v9105_v26, %v9097_v47  ;;  %v9322_v12 = vsub.s32 32, %v9108_v55  ;;  %v9328_v2 = vrot.slane %v105_v22, %v10958_v27  ;;  %v9330_v24 = vmul.f32 %v274_v4, %v274_v4  ;;  %v11228_v27 = vld [vmem:[#allocation85_spill] sm:$0xff] }
 0x285   :  { %v2239_v18 = vadd.s32 %v9188_v10, %v9182_v20  ;;  %vm5158_vm1 = vcmp.lt.s32.totalorder %v5157_v28, 0  ;;  %v2341_v33 = vmul.u32 %v2334_v13, %v2325_v50  ;;  %vm2343_vm6 = vc.u32 %v9296_v1, %v9301_v39  ;;  %v11226_v20 = vld [vmem:[#allocation81_spill] sm:$0xff]  ;;  %v11227_v13 = vld [vmem:[#allocation84_spill] sm:$0xff] }
 0x286   :  { %vm3822_vm7 = vcmp.lt.s32.totalorder %v3821_v15, 2  ;;  %vm3823_vm13 = vcmp.eq.s32.totalorder %v3821_v15, 0  ;;  %v2254_v5 = vsel %vm5158_vm1, 0, %v5157_v28  ;;  %v2344_v56 = vadd.s32 1, %v9302_v34 }
 0x287   :  { %vm3826_vm14 = vcmp.eq.s32.totalorder %v3821_v15, 2  ;;  %v2255_v43 = vsub.s32 32, %v2254_v5  ;;  %v2256_v35 = vshll.u32 %v9259_v41, %v2254_v5  ;;  %v2259_v22 = vsub.s32 4294967266, %v2254_v5 }
 0x288   :  { %v2345_v40 = vsel %vm2343_vm6, %v2344_v56, %v9302_v34  ;;  %v2389_v8 = vand.u32 2147483647, %v11225_v6  ;;  %v2406_v10 = vshll.u32 %v11049_v3, %v11226_v20  ;;  %v2407_v31 = vshrl.u32 %v11053_v16, %v11227_v13 }
 0x289   :  { %v5764_v21 = vpop.eup %5763  ;;  %vm469_vm2 = vcmp.lt.f32.partialorder %v5895_v36, 6.0  ;;  %v2257_v45 = vshrl.u32 %v2239_v18, %v2255_v43  ;;  %v2260_v42 = vadd.s32 127, %v2259_v22  ;;  %v2346_v41 = vadd.s32 %v2345_v40, %v2341_v33 }
 0x28a   :  { %v2409_v4 = vshll.u32 %v11053_v16, %v11226_v20  ;;  %v5766_v46 = vpop.eup %5765  ;;  %v3827_v44 = vxor.u32 2147483648, %v5764_v21  ;;  %v2410_v51 = vshrl.u32 %v11050_v7, %v11227_v13  ;;  %v2412_v23 = vshll.u32 %v11050_v7, %v11226_v20 }
 0x28b   :  { %v2413_v50 = vshrl.u32 %v11002_v48, %v11227_v13  ;;  %v3824_v34 = vxor.u32 2147483648, %v5766_v46  ;;  %v2258_v28 = vor.u32 %v2257_v45, %v2256_v35  ;;  %v2261_v5 = vshll.u32 %v2260_v42, 23 }
 0x28c   :  { %v2347_v18 = vadd.s32 536870912, %v2346_v41  ;;  %vm3820_vm12 = vweird.f32 %v8439_v29  ;;  %v3828_v33 = vsel %vm3826_vm14, %v3827_v44, %v5766_v46  ;;  %v2396_v56 = vand.u32 8388607, %v2389_v8 }
 0x28d   :  { %v2408_v43 = vor.u32 %v2407_v31, %v2406_v10  ;;  %v3825_v22 = vsel %vm3823_vm13, %v5764_v21, %v3824_v34  ;;  %v2262_v40 = vor.u32 4788187, %v2261_v5  ;;  %v2265_v61 = vcvt.s32.f32 %v2258_v28  ;;  %v11230_v28 = vld [vmem:[#allocation89_spill] sm:$0xff] }
 0x28e   :  { %v9360_v20 = vshrl.u32 %v2347_v18, 30  ;;  %vm3248_vm15 = vcmp.lt.s32.totalorder %v9313_v14, 4  ;;  %v3829_v35 = vsel %vm3822_vm7, %v3825_v22, %v3828_v33  ;;  %v2411_v45 = vor.u32 %v2410_v51, %v2409_v4  ;;  %v124_v18 = vpop.permute.xlu1 %123 }
 0x28f   :  { %v2414_v42 = vor.u32 %v2413_v50, %v2412_v23  ;;  %vm2421_vm4 = vcmp.lt.s32.totalorder %v11228_v27, 1  ;;  %v3830_v29 = vsel %vm3820_vm12, nan, %v3829_v35  ;;  %v2263_v46 = vand.u32 2147483647, %v2262_v40  ;;  %v11233_v40 = vld [vmem:[#allocation90_spill] sm:$0xff]  ;;  %v11234_v35 = vld [vmem:[#allocation88_spill] sm:$0xff] }
 0x290   :  { %v2349_v44 = vshll.u32 %v9360_v20, 30  ;;  %vm2423_vm8 = vcmp.lt.s32.totalorder %v11228_v27, 3  ;;  %v3862_v10 = vadd.f32 1.0, %v3830_v29  ;;  %vm2185_vm3 = vcmp.lt.s32.totalorder %v11204_v19, 0 }
 0x291   :  { %v2397_v31 = vor.u32 8388608, %v2396_v56  ;;  %v2405_v21 = vshrl.u32 %v11049_v3, %v11227_v13  ;;  %v2266_v34 = vmul.f32 %v2265_v61, %v2263_v46  ;;  %v2269_v15 = vsub.s32 4, %v9242_v53 }
 0x292   :  { %v9371_v4 = vsub.s32 %v2346_v41, %v2349_v44  ;;  %vm2422_vm5 = vcmp.lt.s32.totalorder %v11228_v27, 2  ;;  %v3894_v51 = vmul.f32 0.5, %v3862_v10  ;;  %vm11229_vm1 = vcmp.lt.s32.totalorder %v11228_v27, 4 }
 0x293   :  { %v2426_v23 = vsel %vm11229_vm1, %v2414_v42, 2102212464  ;;  %v2429_v50 = vsel %vm2421_vm4, %v2408_v43, %v2411_v45  ;;  %v2431_v5 = vsel %vm2423_vm8, %v2414_v42, %v11230_v28  ;;  %vm9383_vm6 = vcmp.le.f32.partialorder %v2183_v58, 0.7853982 }
 0x294   :  { %v2267_v13 = vxor.u32 2147483648, %v2266_v34  ;;  %v2352_v41 = vsub.s32 0, %v9371_v4  ;;  %v2433_v33 = vsel %vm2421_vm4, %v2411_v45, %v2414_v42  ;;  %v3926_v56 = vsel %vm469_vm2, %v3894_v51, 0.0 }
 0x295   :  { %v2425_v22 = vsel %vm2421_vm4, %v2405_v21, %v2408_v43  ;;  %v2435_v29 = vsel %vm2423_vm8, %v11234_v35, %v11233_v40  ;;  %v2437_v58 = vshll.u32 %v2397_v31, 8  ;;  %4084 = vperm.xlu1 %5678, %v3926_v56   ;;  %v2427_v42 = vsel %vm2423_vm8, %v2411_v45, %v2426_v23 }
 0x296   :  { %v2268_v46 = vsel %vm2185_vm3, %v2267_v13, %v2266_v34  ;;  %v5160_v44 = vmin.u32 %v2352_v41, %v9371_v4  ;;  %v2432_v36 = vsel %vm2422_vm5, %v2429_v50, %v2431_v5  ;;  %v275_v43 = vsub.f32 %v124_v18, %v9274_v49  ;;  %v134_v5 = vpop.permute.xlu1 %133 }
 0x297   :  { %v2270_v10 = vsel %vm2185_vm3, %v2269_v15, %v9242_v53  ;;  %v2271_v31 = vsel %vm9383_vm6, %v11204_v19, %v2268_v46  ;;  %v2436_v21 = vsel %vm2422_vm5, %v2433_v33, %v2435_v29  ;;  %v2428_v23 = vsel %vm2422_vm5, %v2425_v22, %v2427_v42 }
 0x298   :  { %5767 = vcosq.f32 %v2271_v31  ;;  %v2354_v34 = vclz %v5160_v44  ;;  %v9413_v51 = vmul.u32.u64.low %v2437_v58, %v2436_v21  ;;  %v9414_v45 = vmul.u32.u64.high %v2437_v58, %v2436_v21, %v9413_v51 }
 0x299   :  { %5769 = vsinq.f32 %v2271_v31  ;;  %v9418_v50 = vmul.u32.u64.low %v2437_v58, %v2432_v36  ;;  %v9419_v28 = vmul.u32.u64.high %v2437_v58, %v2432_v36, %v9418_v50  ;;  %v9425_v53 = vsel %vm3248_vm15, %v9317_v32, 920167782 }
 0x29a   :  { %v9432_v15 = vsel %vm3248_vm15, %v3244_v63, 1326507024  ;;  %v5161_v18 = vadd.s32 4294967294, %v2354_v34  ;;  %v3651_v27 = vshll.u32 %v11002_v48, %v9108_v55  ;;  %v3652_v13 = vshrl.u32 %v11006_v62, %v9322_v12  ;;  %v144_v42 = vpop.permute.xlu1 %143 }
 0x29b   :  { %v344_v41 = vmul.f32 %v9328_v2, %v9330_v24  ;;  %v2272_v33 = vsel %vm9383_vm6, 0, %v2270_v10  ;;  %v2342_v47 = vadd.s32 %v9301_v39, %v9296_v1  ;;  %v2444_v26 = vmul.u32 %v2437_v58, %v2428_v23 }
 0x29c   :  { %vm5162_vm7 = vcmp.lt.s32.totalorder %v5161_v18, 0  ;;  %vm2446_vm13 = vc.u32 %v9414_v45, %v9418_v50  ;;  %v307_v63 = vmul.f32 %v275_v43, %v275_v43  ;;  %v277_v56 = vsub.f32 %v134_v5, %v9274_v49 }
 0x29d   :  { %v2357_v22 = vsel %vm5162_vm7, 0, %v5161_v18  ;;  %v2447_v40 = vadd.s32 1, %v9419_v28  ;;  %v2276_v35 = vand.u32 3, %v2272_v33  ;;  %v9450_v46 = vshrl.u32 %v9073_v59, 5 }
 0x29e   :  { %v2358_v29 = vsub.s32 32, %v2357_v22  ;;  %v2359_v24 = vshll.u32 %v9371_v4, %v2357_v22  ;;  %v2362_v61 = vsub.s32 4294967266, %v2357_v22  ;;  %v9454_v1 = vshll.u32 %v11006_v62, %v9108_v55 }
 0x29f   :  { %v378_v39 = vmul.f32 1.442695, %v344_v41  ;;  %v2448_v58 = vsel %vm2446_vm13, %v2447_v40, %v9419_v28  ;;  %v9459_v44 = vshrl.u32 %v11008_v9, %v9322_v12  ;;  %v9461_v4 = vor.u32 %v3652_v13, %v3651_v27 }
 0x2a0   :  { %v2360_v36 = vshrl.u32 %v2342_v47, %v2358_v29  ;;  %v2363_v43 = vadd.s32 127, %v2362_v61  ;;  %v2449_v10 = vadd.s32 %v2448_v58, %v2444_v26  ;;  %v345_v59 = vmul.f32 %v9328_v2, %v307_v63 }
 0x2a1   :  { %11235 = vst [vmem:[#allocation22_spill] sm:$0xff] %v9461_v4  ;;  %v309_v31 = vmul.f32 %v277_v56, %v277_v56  ;;  %v279_v21 = vsub.f32 %v144_v42, %v9274_v49  ;;  %vm2281_vm14 = vcmp.eq.s32.totalorder %v2276_v35, 2  ;;  %5771 = vpow2.f32 %v378_v39 }
 0x2a2   :  { %v5768_v34 = vpop.eup %5767  ;;  %v2361_v51 = vor.u32 %v2360_v36, %v2359_v24  ;;  %v2364_v23 = vshll.u32 %v2363_v43, 23  ;;  %v2450_v28 = vadd.s32 536870912, %v2449_v10  ;;  %vm2277_vm2 = vcmp.lt.s32.totalorder %v2276_v35, 2  ;;  %v5896_v24 = vld [vmem:[%s10776_s2 + $0x80] sm:$0xff] }
 0x2a3   :  { %v5770_v5 = vpop.eup %5769  ;;  %vm2278_vm12 = vcmp.eq.s32.totalorder %v2276_v35, 0  ;;  %v2282_v18 = vxor.u32 2147483648, %v5768_v34  ;;  %v380_v13 = vmul.f32 1.442695, %v345_v59  ;;  %v347_v26 = vmul.f32 %v9328_v2, %v309_v31  ;;  %v11238_v59 = vld [vmem:[#allocation87_spill] sm:$0xff] }
 0x2a4   :  { %v2279_v41 = vxor.u32 2147483648, %v5770_v5  ;;  %v2365_v33 = vor.u32 4788187, %v2364_v23  ;;  %v2368_v47 = vcvt.s32.f32 %v2361_v51  ;;  %v9465_v27 = vshrl.u32 %v2450_v28, 30 }
 0x2a5   :  { %vm2275_vm4 = vweird.f32 %v11204_v19  ;;  %v2283_v63 = vsel %vm2281_vm14, %v2282_v18, %v5770_v5  ;;  %v311_v56 = vmul.f32 %v279_v21, %v279_v21  ;;  %vm454_vm8 = vcmp.lt.f32.partialorder %v5896_v24, 6.0  ;;  %v11239_v21 = vld [vmem:[#allocation25_spill] sm:$0xff]  ;;  %v9521_v24 = vld [vmem:[%s10776_s2 + $0xc0] sm:$0xff] }
 0x2a6   :  { %v2280_v22 = vsel %vm2278_vm12, %v5768_v34, %v2279_v41  ;;  %v2366_v40 = vand.u32 2147483647, %v2365_v33  ;;  %v2452_v29 = vshll.u32 %v9465_v27, 30  ;;  %vm9477_vm3 = vcmp.le.f32.partialorder %v2286_v52, 0.7853982 }
 0x2a7   :  { %v2284_v61 = vsel %vm2277_vm2, %v2280_v22, %v2283_v63  ;;  %vm2288_vm5 = vcmp.lt.s32.totalorder %v11214_v30, 0  ;;  %v2372_v42 = vsub.s32 4, %v9360_v20  ;;  %v10960_v31 = vand.u32 2147483647, %v11238_v59 }
 0x2a8   :  { %v2285_v19 = vsel %vm2275_vm4, nan, %v2284_v61  ;;  %v2369_v58 = vmul.f32 %v2368_v47, %v2366_v40  ;;  %v9483_v36 = vsub.s32 %v2449_v10, %v2452_v29  ;;  %v2612_v35 = vshll.u32 %v11049_v3, %v7183_v54 }
 0x2a9   :  { %v3847_v43 = vadd.f32 1.0, %v2285_v19  ;;  %v2613_v52 = vshrl.u32 %v11053_v16, %v11239_v21  ;;  %v2615_v23 = vshll.u32 %v11053_v16, %v7183_v54  ;;  %v2616_v28 = vshrl.u32 %v11050_v7, %v11239_v21 }
 0x2aa   :  { %v2370_v34 = vxor.u32 2147483648, %v2369_v58  ;;  %v2455_v51 = vsub.s32 0, %v9483_v36  ;;  %5773 = vpow2.f32 %v380_v13  ;;  %v9495_v10 = vmul.f32 1.442695, %v347_v26 }
 0x2ab   :  { %v9498_v5 = vmul.f32 %v9328_v2, %v311_v56  ;;  %v3879_v18 = vmul.f32 0.5, %v3847_v43  ;;  %v2618_v47 = vshll.u32 %v11050_v7, %v7183_v54  ;;  %v2619_v63 = vshrl.u32 %v11002_v48, %v11239_v21  ;;  %v9507_v22 = vpop.eup %5771  ;;  %v154_v54 = vpop.permute.xlu1 %153 }
 0x2ac   :  { %v2371_v41 = vsel %vm2288_vm5, %v2370_v34, %v2369_v58  ;;  %v5164_v33 = vmin.u32 %v2455_v51, %v9483_v36  ;;  %11240 = vst [vmem:[#allocation27_spill] sm:$0xff] %v9507_v22  ;;  %v2373_v26 = vsel %vm2288_vm5, %v2372_v42, %v9360_v20  ;;  %v2602_v40 = vand.u32 8388607, %v10960_v31  ;;  %v11241_v42 = vld [vmem:[#allocation20_spill] sm:$0xff] }
 0x2ad   :  { %v3911_v13 = vsel %vm454_vm8, %v3879_v18, 0.0  ;;  %v2374_v56 = vsel %vm9477_vm3, %v11214_v30, %v2371_v41  ;;  %v2614_v61 = vor.u32 %v2613_v52, %v2612_v35  ;;  %v2617_v19 = vor.u32 %v2616_v28, %v2615_v23  ;;  %v11242_v28 = vld [vmem:[#allocation13_spill] sm:$0xff] }
 0x2ae   :  { %4009 = vperm.xlu0 %5677, %v3911_v13   ;;  %5775 = vcosq.f32 %v2374_v56  ;;  %v2457_v29 = vclz %v5164_v33  ;;  %v9524_v20 = vsub.f32 %v154_v54, %v9274_v49  ;;  %v2611_v58 = vshrl.u32 %v11049_v3, %v11239_v21 }
 0x2af   :  { %5777 = vsinq.f32 %v2374_v56  ;;  %vm2627_vm1 = vcmp.lt.s32.totalorder %v11241_v42, 1  ;;  %v2375_v43 = vsel %vm9477_vm3, 0, %v2373_v26  ;;  %v2620_v51 = vor.u32 %v2619_v63, %v2618_v47 }
 0x2b0   :  { %v5165_v34 = vadd.s32 4294967294, %v2457_v29  ;;  %vm2629_vm6 = vcmp.lt.s32.totalorder %v11241_v42, 3  ;;  %v2445_v35 = vadd.s32 %v9418_v50, %v9414_v45  ;;  %v494_v52 = vmul.f32 3.1415927, %v9521_v24  ;;  %v11244_v29 = vld [vmem:[#allocation16_spill] sm:$0xff] }
 0x2b1   :  { %v2603_v23 = vor.u32 8388608, %v2602_v40  ;;  %vm2628_vm7 = vcmp.lt.s32.totalorder %v11241_v42, 2  ;;  %v2632_v21 = vsel %vm2630_vm9, %v2620_v51, 2102212464  ;;  %v2635_v39 = vsel %vm2627_vm1, %v2614_v61, %v2617_v19 }
 0x2b2   :  { %vm5166_vm13 = vcmp.lt.s32.totalorder %v5165_v34, 0  ;;  %v2637_v18 = vsel %vm2629_vm6, %v2620_v51, %v11242_v28  ;;  %vm2378_vm14 = vweird.f32 %v11214_v30  ;;  %v2631_v45 = vsel %vm2627_vm1, %v2611_v58, %v2614_v61  ;;  %v11245_v61 = vld [vmem:[#allocation8_spill] sm:$0xff] }
 0x2b3   :  { %v2460_v41 = vsel %vm5166_vm13, 0, %v5165_v34  ;;  %v2633_v50 = vsel %vm2629_vm6, %v2617_v19, %v2632_v21  ;;  %v2639_v33 = vsel %vm2627_vm1, %v2617_v19, %v2620_v51  ;;  %v2379_v47 = vand.u32 3, %v2375_v43 }
 0x2b4   :  { %v2461_v63 = vsub.s32 32, %v2460_v41  ;;  %v2462_v13 = vshll.u32 %v9483_v36, %v2460_v41  ;;  %v2465_v26 = vsub.s32 4294967266, %v2460_v41  ;;  %v9551_v56 = vpop.eup %5773  ;;  %v9553_v40 = vmul.f32 0.16666667, %v494_v52 }
 0x2b5   :  { %11243 = vst [vmem:[#allocation32_spill] sm:$0xff] %v9551_v56  ;;  %v2638_v54 = vsel %vm2628_vm7, %v2635_v39, %v2637_v18  ;;  %v2641_v58 = vsel %vm2629_vm6, %v11245_v61, %v11244_v29  ;;  %v2643_v34 = vshll.u32 %v2603_v23, 8  ;;  %v2634_v43 = vsel %vm2628_vm7, %v2631_v45, %v2633_v50 }
 0x2b6   :  { %v2463_v21 = vshrl.u32 %v2445_v35, %v2461_v63  ;;  %v2466_v19 = vadd.s32 127, %v2465_v26  ;;  %v2642_v36 = vsel %vm2628_vm7, %v2639_v33, %v2641_v58  ;;  %vm2380_vm9 = vcmp.lt.s32.totalorder %v2379_v47, 2  ;;  %v11246_v58 = vld [vmem:[#allocation94_spill] sm:$0xff] }
 0x2b7   :  { %v9565_v51 = vmul.u32.u64.low %v2643_v34, %v2642_v36  ;;  %v9566_v52 = vmul.u32.u64.high %v2643_v34, %v2642_v36, %v9565_v51  ;;  %v9568_v28 = vmul.u32.u64.low %v2643_v34, %v2638_v54  ;;  %v9569_v41 = vmul.u32.u64.high %v2643_v34, %v2638_v54, %v9568_v28 }
 0x2b8   :  { %v5776_v39 = vpop.eup %5775  ;;  %vm2384_vm2 = vcmp.eq.s32.totalorder %v2379_v47, 2  ;;  %v2464_v18 = vor.u32 %v2463_v21, %v2462_v13  ;;  %v2467_v23 = vshll.u32 %v2466_v19, 23  ;;  %vm2381_vm12 = vcmp.eq.s32.totalorder %v2379_v47, 0  ;;  %v5897_v21 = vld [vmem:[%s10776_s2 + $0x88] sm:$0xff] }
 0x2b9   :  { %v5778_v35 = vpop.eup %5777  ;;  %v2385_v63 = vxor.u32 2147483648, %v5776_v39  ;;  %v2475_v45 = vsub.s32 4, %v9465_v27  ;;  %v3010_v42 = vand.u32 2139095040, %v9553_v40  ;;  %v2650_v29 = vmul.u32 %v2643_v34, %v2634_v43 }
 0x2ba   :  { %v2382_v50 = vxor.u32 2147483648, %v5778_v35  ;;  %v2468_v33 = vor.u32 4788187, %v2467_v23  ;;  %v2471_v26 = vcvt.s32.f32 %v2464_v18  ;;  %vm2652_vm4 = vc.u32 %v9566_v52, %v9568_v28 }
 0x2bb   :  { %v2386_v61 = vsel %vm2384_vm2, %v2385_v63, %v5778_v35  ;;  %v2653_v54 = vadd.s32 1, %v9569_v41  ;;  %v10959_v13 = vand.u32 2147483647, %v11246_v58  ;;  %vm455_vm8 = vcmp.lt.f32.partialorder %v5897_v21, 6.0 }
 0x2bc   :  { %v2383_v19 = vsel %vm2381_vm12, %v5776_v39, %v2382_v50  ;;  %vm2391_vm3 = vcmp.lt.s32.totalorder %v11225_v6, 0  ;;  %v2469_v36 = vand.u32 2147483647, %v2468_v33  ;;  %vm9586_vm5 = vcmp.le.f32.partialorder %v2389_v8, 0.7853982  ;;  %v11249_v8 = vld [vmem:[#allocation28_spill] sm:$0xff] }
 0x2bd   :  { %v2387_v34 = vsel %vm2380_vm9, %v2383_v19, %v2386_v61  ;;  %v3011_v51 = vshrl.u32 %v3010_v42, 23  ;;  %v2654_v18 = vsel %vm2652_vm4, %v2653_v54, %v9569_v41  ;;  %v2476_v39 = vsel %vm2391_vm3, %v2475_v45, %v9465_v27  ;;  %v11250_v61 = vld [vmem:[#allocation21_spill] sm:$0xff] }
 0x2be   :  { %v2388_v23 = vsel %vm2378_vm14, nan, %v2387_v34  ;;  %v2472_v35 = vmul.f32 %v2471_v26, %v2469_v36  ;;  %v2655_v63 = vadd.s32 %v2654_v18, %v2650_v29  ;;  %v2705_v50 = vand.u32 8388607, %v10959_v13 }
 0x2bf   :  { %v3848_v47 = vadd.f32 1.0, %v2388_v23  ;;  %v2715_v33 = vshll.u32 %v11049_v3, %v11249_v8  ;;  %v2716_v42 = vshrl.u32 %v11053_v16, %v11250_v61  ;;  %v2718_v30 = vshll.u32 %v11053_v16, %v11249_v8  ;;  %v11251_v23 = vld [vmem:[#allocation26_spill] sm:$0xff] }
 0x2c0   :  { %v2473_v41 = vxor.u32 2147483648, %v2472_v35  ;;  %v2656_v54 = vadd.s32 536870912, %v2655_v63  ;;  %v2719_v26 = vshrl.u32 %v11050_v7, %v11250_v61  ;;  %vm3660_vm1 = vcmp.lt.s32.totalorder %v9450_v46, 4 }
 0x2c1   :  { %v3880_v27 = vmul.f32 0.5, %v3848_v47  ;;  %v2717_v45 = vor.u32 %v2716_v42, %v2715_v33  ;;  %v2721_v29 = vshll.u32 %v11050_v7, %v11249_v8  ;;  %v2722_v19 = vshrl.u32 %v11002_v48, %v11250_v61 }
 0x2c2   :  { %v2474_v36 = vsel %vm2391_vm3, %v2473_v41, %v2472_v35  ;;  %v9613_v34 = vshrl.u32 %v2656_v54, 30  ;;  %v2720_v18 = vor.u32 %v2719_v26, %v2718_v30  ;;  %vm2730_vm6 = vcmp.lt.s32.totalorder %v11251_v23, 1  ;;  %v11252_v30 = vld [vmem:[#allocation93_spill] sm:$0xff] }
 0x2c3   :  { %v3912_v13 = vsel %vm455_vm8, %v3880_v27, 0.0  ;;  %v2477_v47 = vsel %vm9586_vm5, %v11225_v6, %v2474_v36  ;;  %v2714_v8 = vshrl.u32 %v11049_v3, %v11250_v61  ;;  %v2723_v33 = vor.u32 %v2722_v19, %v2721_v29  ;;  %v11254_v36 = vld [vmem:[#allocation75_spill] sm:$0xff] }
 0x2c4   :  { %4014 = vperm.xlu0 %5677, %v3912_v13   ;;  %5779 = vcosq.f32 %v2477_v47  ;;  %v2658_v42 = vshll.u32 %v9613_v34, 30  ;;  %v2706_v35 = vor.u32 8388608, %v2705_v50  ;;  %vm2732_vm7 = vcmp.lt.s32.totalorder %v11251_v23, 3 }
 0x2c5   :  { %5781 = vsinq.f32 %v2477_v47  ;;  %vm2731_vm13 = vcmp.lt.s32.totalorder %v11251_v23, 2  ;;  %v2735_v21 = vsel %vm2733_vm11, %v2723_v33, 2102212464  ;;  %v2738_v41 = vsel %vm2730_vm6, %v2717_v45, %v2720_v18 }
 0x2c6   :  { %v388_v54 = vmul.f32 1.442695, %v9498_v5  ;;  %v2478_v13 = vsel %vm9586_vm5, 0, %v2476_v39  ;;  %v9632_v61 = vsub.s32 %v2655_v63, %v2658_v42  ;;  %v2740_v50 = vsel %vm2732_vm7, %v2723_v33, %v11252_v30  ;;  %v159_v5 = vpop.permute.xlu1 %158  ;;  %v11253_v63 = vld [vmem:[#allocation14_spill] sm:$0xff] }
 0x2c7   :  { %v5187_v26 = vadd.s32 4294967169, %v3011_v51  ;;  %v2734_v27 = vsel %vm2730_vm6, %v2714_v8, %v2717_v45  ;;  %v2736_v29 = vsel %vm2732_vm7, %v2720_v18, %v2735_v21  ;;  %v2742_v19 = vsel %vm2730_vm6, %v2720_v18, %v2723_v33 }
 0x2c8   :  { %v2661_v43 = vsub.s32 0, %v9632_v61  ;;  %v2741_v39 = vsel %vm2731_vm13, %v2738_v41, %v2740_v50  ;;  %v2744_v51 = vsel %vm2732_vm7, %v11254_v36, %v11253_v63  ;;  %v2746_v47 = vshll.u32 %v2706_v35, 8  ;;  %v11255_v36 = vld [vmem:[#allocation18_spill] sm:$0xff] }
 0x2c9   :  { %v313_v45 = vmul.f32 %v9524_v20, %v9524_v20  ;;  %v282_v8 = vsub.f32 %v159_v5, %v9274_v49  ;;  %v2482_v42 = vand.u32 3, %v2478_v13  ;;  %v2745_v18 = vsel %vm2731_vm13, %v2742_v19, %v2744_v51 }
 0x2ca   :  { %5783 = vpow2.f32 %v9495_v10  ;;  %v5172_v21 = vmin.u32 %v2661_v43, %v9632_v61  ;;  %v2737_v41 = vsel %vm2731_vm13, %v2734_v27, %v2736_v29  ;;  %v9671_v13 = vsel %vm3660_vm1, %v9461_v4, 920167782  ;;  %v5898_v29 = vld [vmem:[%s10776_s2 + $0x90] sm:$0xff] }
 0x2cb   :  { %v9661_v35 = vmul.u32.u64.low %v2746_v47, %v2745_v18  ;;  %v9662_v30 = vmul.u32.u64.high %v2746_v47, %v2745_v18, %v9661_v35  ;;  %v9664_v20 = vmul.u32.u64.low %v2746_v47, %v2741_v39  ;;  %v9665_v50 = vmul.u32.u64.high %v2746_v47, %v2741_v39, %v9664_v20  ;;  %v11256_v18 = vld [vmem:[#allocation65_spill] sm:$0xff] }
 0x2cc   :  { %5785 = vpow2.f32 %v388_v54  ;;  %v9673_v19 = vadd.s32 1, %v5187_v26  ;;  %v2663_v10 = vclz %v5172_v21  ;;  %v9676_v5 = vmul.f32 %v9328_v2, %v313_v45 }
 0x2cd   :  { %v9678_v23 = vmul.f32 %v282_v8, %v282_v8  ;;  %vm2481_vm11 = vweird.f32 %v11225_v6  ;;  %vm2483_vm14 = vcmp.lt.s32.totalorder %v2482_v42, 2  ;;  %vm456_vm9 = vcmp.lt.f32.partialorder %v5898_v29, 6.0 }
 0x2ce   :  { %v5780_v27 = vpop.eup %5779  ;;  %vm2484_vm2 = vcmp.eq.s32.totalorder %v2482_v42, 0  ;;  %vm2487_vm12 = vcmp.eq.s32.totalorder %v2482_v42, 2  ;;  %v5173_v54 = vadd.s32 4294967294, %v2663_v10  ;;  %v2753_v26 = vmul.u32 %v2746_v47, %v2737_v41  ;;  %v11257_v10 = vld [vmem:[#allocation91_spill] sm:$0xff] }
 0x2cf   :  { %v5782_v43 = vpop.eup %5781  ;;  %v2488_v39 = vxor.u32 2147483648, %v5780_v27  ;;  %vm2755_vm4 = vc.u32 %v9662_v30, %v9664_v20  ;;  %v2756_v63 = vadd.s32 1, %v9665_v50  ;;  %vm3018_vm8 = vcmp.gt.s32.totalorder %v9673_v19, 0 }
 0x2d0   :  { %v2485_v45 = vxor.u32 2147483648, %v5782_v43  ;;  %v2651_v8 = vadd.s32 %v9568_v28, %v9566_v52  ;;  %vm5174_vm3 = vcmp.lt.s32.totalorder %v5173_v54, 0  ;;  %v2818_v21 = vshll.u32 %v11049_v3, %v11256_v18 }
 0x2d1   :  { %v2489_v47 = vsel %vm2487_vm12, %v2488_v39, %v5782_v43  ;;  %v2666_v41 = vsel %vm5174_vm3, 0, %v5173_v54  ;;  %v2757_v35 = vsel %vm2755_vm4, %v2756_v63, %v9665_v50  ;;  %v2819_v33 = vshrl.u32 %v11053_v16, %v11257_v10 }
 0x2d2   :  { %v2486_v31 = vsel %vm2484_vm2, %v5780_v27, %v2485_v45  ;;  %v2667_v51 = vsub.s32 32, %v2666_v41  ;;  %v2668_v60 = vshll.u32 %v9632_v61, %v2666_v41  ;;  %v2671_v56 = vsub.s32 4294967266, %v2666_v41 }
 0x2d3   :  { %v2490_v22 = vsel %vm2483_vm14, %v2486_v31, %v2489_v47  ;;  %v2758_v52 = vadd.s32 %v2757_v35, %v2753_v26  ;;  %v11258_v28 = vand.u32 2147483647, %v11255_v36  ;;  %v2821_v54 = vshll.u32 %v11053_v16, %v11256_v18 }
 0x2d4   :  { %v9703_v43 = vpop.eup %5783  ;;  %v2491_v50 = vsel %vm2481_vm11, nan, %v2490_v22  ;;  %v2669_v39 = vshrl.u32 %v2651_v8, %v2667_v51  ;;  %v2672_v27 = vadd.s32 127, %v2671_v56  ;;  %v2822_v61 = vshrl.u32 %v11050_v7, %v11257_v10 }
 0x2d5   :  { %v2808_v4 = vand.u32 8388607, %v11258_v28  ;;  %11259 = vst [vmem:[#allocation42_spill] sm:$0xff] %v9703_v43  ;;  %v3849_v63 = vadd.f32 1.0, %v2491_v50  ;;  %v2759_v42 = vadd.s32 536870912, %v2758_v52  ;;  %v2824_v31 = vshll.u32 %v11050_v7, %v11256_v18  ;;  %v164_v28 = vpop.permute.xlu1 %163  ;;  %v11261_v18 = vld [vmem:[#allocation17_spill] sm:$0xff] }
 0x2d6   :  { %v2825_v26 = vshrl.u32 %v11002_v48, %v11257_v10  ;;  %v9713_v45 = vpop.eup %5785  ;;  %v2670_v47 = vor.u32 %v2669_v39, %v2668_v60  ;;  %v2673_v41 = vshll.u32 %v2672_v27, 23  ;;  %v2817_v6 = vshrl.u32 %v11049_v3, %v11257_v10 }
 0x2d7   :  { %11260 = vst [vmem:[#allocation43_spill] sm:$0xff] %v9713_v45  ;;  %v2820_v22 = vor.u32 %v2819_v33, %v2818_v21  ;;  %v3881_v56 = vmul.f32 0.5, %v3849_v63  ;;  %v9717_v51 = vshrl.u32 %v2759_v42, 30  ;;  %v2823_v8 = vor.u32 %v2822_v61, %v2821_v54  ;;  %v11262_v61 = vld [vmem:[#allocation29_spill] sm:$0xff] }
 0x2d8   :  { %v2826_v35 = vor.u32 %v2825_v26, %v2824_v31  ;;  %v2674_v50 = vor.u32 4788187, %v2673_v41  ;;  %v2677_v43 = vcvt.s32.f32 %v2670_v47  ;;  %vm2833_vm5 = vcmp.lt.s32.totalorder %v11261_v18, 1  ;;  %v11263_v26 = vld [vmem:[#allocation23_spill] sm:$0xff] }
 0x2d9   :  { %vm2835_vm6 = vcmp.lt.s32.totalorder %v11261_v18, 3  ;;  %v3913_v45 = vsel %vm456_vm9, %v3881_v56, 0.0  ;;  %v283_v60 = vsub.f32 %v164_v28, %v9274_v49  ;;  %v2761_v39 = vshll.u32 %v9717_v51, 30 }
 0x2da   :  { %v2809_v10 = vor.u32 8388608, %v2808_v4  ;;  %4019 = vperm.xlu0 %5677, %v3913_v45   ;;  %vm2597_vm7 = vcmp.lt.s32.totalorder %v11238_v59, 0  ;;  %v2675_v33 = vand.u32 2147483647, %v2674_v50  ;;  %vm2834_vm13 = vcmp.lt.s32.totalorder %v11261_v18, 2  ;;  %v11264_v45 = vld [vmem:[#allocation19_spill] sm:$0xff] }
 0x2db   :  { %v2838_v21 = vsel %vm2836_vm0, %v2826_v35, 2102212464  ;;  %v3019_v54 = vsel %vm3018_vm8, %v9673_v19, 0  ;;  %v9731_v29 = vsub.s32 %v2758_v52, %v2761_v39  ;;  %v2841_v27 = vsel %vm2833_vm5, %v2820_v22, %v2823_v8 }
 0x2dc   :  { %v2843_v4 = vsel %vm2835_vm6, %v2826_v35, %v11262_v61  ;;  %v2678_v63 = vmul.f32 %v2677_v43, %v2675_v33  ;;  %v2837_v42 = vsel %vm2833_vm5, %v2817_v6, %v2820_v22  ;;  %v2845_v31 = vsel %vm2833_vm5, %v2823_v8, %v2826_v35 }
 0x2dd   :  { %v2847_v19 = vsel %vm2835_vm6, %v11264_v45, %v11263_v26  ;;  %v2764_v52 = vsub.s32 0, %v9731_v29  ;;  %v2839_v47 = vsel %vm2835_vm6, %v2823_v8, %v2838_v21  ;;  %v2849_v43 = vshll.u32 %v2809_v10, 8 }
 0x2de   :  { %v2848_v41 = vsel %vm2834_vm13, %v2845_v31, %v2847_v19  ;;  %228 = vperm.xlu0 %5677, %v9521_v24   ;;  %v11265_v6 = vand.u32 2147483647, %v11238_v59  ;;  %v2679_v56 = vxor.u32 2147483648, %v2678_v63  ;;  %v2681_v35 = vsub.s32 4, %v9613_v34  ;;  %v169_v31 = vpop.permute.xlu1 %168 }
 0x2df   :  { %v2844_v28 = vsel %vm2834_vm13, %v2841_v27, %v2843_v4  ;;  %v352_v8 = vmul.f32 %v9328_v2, %v9678_v23  ;;  %v315_v50 = vmul.f32 %v283_v60, %v283_v60  ;;  %v9763_v39 = vand.u32 31, %v3019_v54 }
 0x2e0   :  { %vm9754_vm0 = vcmp.le.f32.partialorder %v11265_v6, 0.7853982  ;;  %v5176_v24 = vmin.u32 %v2764_v52, %v9731_v29  ;;  %v2680_v10 = vsel %vm2597_vm7, %v2679_v56, %v2678_v63  ;;  %v2840_v33 = vsel %vm2834_vm13, %v2837_v42, %v2839_v47 }
 0x2e1   :  { %v9770_v21 = vmul.u32.u64.low %v2849_v43, %v2848_v41  ;;  %v9771_v61 = vmul.u32.u64.high %v2849_v43, %v2848_v41, %v9770_v21  ;;  %v2683_v27 = vsel %vm9754_vm0, %v11238_v59, %v2680_v10  ;;  %v392_v26 = vmul.f32 1.442695, %v9676_v5 }
 0x2e2   :  { %v2766_v23 = vclz %v5176_v24  ;;  %v9776_v60 = vmul.u32.u64.low %v2849_v43, %v2844_v28  ;;  %v9777_v4 = vmul.u32.u64.high %v2849_v43, %v2844_v28, %v9776_v60  ;;  %v284_v63 = vsub.f32 %v169_v31, %v9274_v49 }
 0x2e3   :  { %v2682_v18 = vsel %vm2597_vm7, %v2681_v35, %v9613_v34  ;;  %5787 = vcosq.f32 %v2683_v27  ;;  %v11268_v42 = vor.u32 %v9459_v44, %v9454_v1  ;;  %v394_v19 = vmul.f32 1.442695, %v352_v8 }
 0x2e4   :  { %5789 = vsinq.f32 %v2683_v27  ;;  %v5177_v52 = vadd.s32 4294967294, %v2766_v23  ;;  %v353_v47 = vmul.f32 %v9328_v2, %v315_v50  ;;  %v9794_v5 = vsub.s32 32, %v9763_v39 }
 0x2e5   :  { %v9790_v45 = vsel %vm3660_vm1, %v11268_v42, 1326507024  ;;  %v2856_v49 = vmul.u32 %v2849_v43, %v2840_v33  ;;  %vm2858_vm11 = vc.u32 %v9771_v61, %v9776_v60  ;;  %v2684_v34 = vsel %vm9754_vm0, 0, %v2682_v18  ;;  %v5899_v18 = vld [vmem:[%s10776_s2 + $0xa0] sm:$0xff] }
 0x2e6   :  { %v2754_v1 = vadd.s32 %v9664_v20, %v9662_v30  ;;  %vm5178_vm14 = vcmp.lt.s32.totalorder %v5177_v52, 0  ;;  %v2859_v44 = vadd.s32 1, %v9777_v4  ;;  %5791 = vpow2.f32 %v392_v26 }
 0x2e7   :  { %v9803_v41 = vshrl.u32 %v3019_v54, 5  ;;  %v316_v6 = vmul.f32 %v284_v63, %v284_v63  ;;  %v2769_v56 = vsel %vm5178_vm14, 0, %v5177_v52  ;;  %v3033_v22 = vshll.u32 %v11002_v48, %v9763_v39 }
 0x2e8   :  { %v2770_v35 = vsub.s32 32, %v2769_v56  ;;  %v2771_v43 = vshll.u32 %v9731_v29, %v2769_v56  ;;  %v2774_v28 = vsub.s32 4294967266, %v2769_v56  ;;  %v2860_v8 = vsel %vm2858_vm11, %v2859_v44, %v9777_v4 }
 0x2e9   :  { %v3034_v30 = vshrl.u32 %v11006_v62, %v9794_v5  ;;  %v2688_v20 = vand.u32 3, %v2684_v34  ;;  %v2861_v50 = vadd.s32 %v2860_v8, %v2856_v49  ;;  %5793 = vpow2.f32 %v394_v19 }
 0x2ea   :  { %v396_v24 = vmul.f32 1.442695, %v353_v47  ;;  %v2772_v54 = vshrl.u32 %v2754_v1, %v2770_v35  ;;  %v2775_v10 = vadd.s32 127, %v2774_v28  ;;  %v3036_v33 = vshll.u32 %v11006_v62, %v9763_v39 }
 0x2eb   :  { %v3037_v29 = vshrl.u32 %v11008_v9, %v9794_v5  ;;  %v9816_v21 = vmul.f32 %v9328_v2, %v316_v6  ;;  %v2862_v31 = vadd.s32 536870912, %v2861_v50  ;;  %vm3042_vm9 = vcmp.lt.s32.totalorder %v9803_v41, 4 }
 0x2ec   :  { %v2773_v27 = vor.u32 %v2772_v54, %v2771_v43  ;;  %v2776_v23 = vshll.u32 %v2775_v10, 23  ;;  %v2784_v4 = vsub.s32 4, %v9717_v51  ;;  %v9820_v63 = vor.u32 %v3034_v30, %v3033_v22 }
 0x2ed   :  { %v5788_v26 = vpop.eup %5787  ;;  %vm458_vm2 = vcmp.lt.f32.partialorder %v5899_v18, 6.0  ;;  %vm2693_vm12 = vcmp.eq.s32.totalorder %v2688_v20, 2  ;;  %vm2700_vm4 = vcmp.lt.s32.totalorder %v11246_v58, 0  ;;  %v9826_v42 = vshrl.u32 %v2862_v31, 30 }
 0x2ee   :  { %v5790_v19 = vpop.eup %5789  ;;  %vm2690_vm8 = vcmp.eq.s32.totalorder %v2688_v20, 0  ;;  %v2694_v52 = vxor.u32 2147483648, %v5788_v26  ;;  %v2777_v47 = vor.u32 4788187, %v2776_v23  ;;  %v2780_v49 = vcvt.s32.f32 %v2773_v27  ;;  %v174_v27 = vpop.permute.xlu1 %173 }
 0x2ef   :  { %vm2689_vm3 = vcmp.lt.s32.totalorder %v2688_v20, 2  ;;  %v2691_v34 = vxor.u32 2147483648, %v5790_v19  ;;  %v2864_v1 = vshll.u32 %v9826_v42, 30  ;;  %v3007_v44 = vand.u32 2147483647, %v9553_v40 }
 0x2f0   :  { %vm2687_vm5 = vweird.f32 %v11238_v59  ;;  %v2695_v6 = vsel %vm2693_vm12, %v2694_v52, %v5790_v19  ;;  %v2778_v56 = vand.u32 2147483647, %v2777_v47  ;;  %v2785_v35 = vsel %vm2700_vm4, %v2784_v4, %v9717_v51  ;;  %v9834_v43 = vpop.eup %5791  ;;  %v9863_v52 = vld [vmem:[%s10777_s3] ss:$0 sm:$0xff] }
 0x2f1   :  { %11269 = vst [vmem:[#allocation38_spill] sm:$0xff] %v9834_v43  ;;  %5795 = vpow2.f32 %v396_v24  ;;  %v3038_v28 = vor.u32 %v3037_v29, %v3036_v33  ;;  %v2692_v8 = vsel %vm2690_vm8, %v5788_v26, %v2691_v34  ;;  %v9836_v22 = vsub.s32 %v2861_v50, %v2864_v1 }
 0x2f2   :  { %v3048_v30 = vsel %vm3042_vm9, %v9820_v63, 920167782  ;;  %v2696_v20 = vsel %vm2689_vm3, %v2692_v8, %v2695_v6  ;;  %v11270_v59 = vand.u32 2147483647, %v11246_v58  ;;  %v2781_v10 = vmul.f32 %v2780_v49, %v2778_v56 }
 0x2f3   :  { %v2697_v51 = vsel %vm2687_vm5, nan, %v2696_v20  ;;  %v2867_v33 = vsub.s32 0, %v9836_v22  ;;  %v3014_v50 = vand.u32 8388607, %v3007_v44  ;;  %v9852_v29 = vpop.eup %5793  ;;  %v3024_v4 = vshll.u32 %v11049_v3, %v9763_v39  ;;  %v9881_v20 = vld [vmem:[%s10776_s2 + $0xe0] sm:$0xff] }
 0x2f4   :  { %vm9843_vm6 = vcmp.le.f32.partialorder %v11270_v59, 0.7853982  ;;  %11273 = vst [vmem:[#allocation11_spill] sm:$0xff] %v9852_v29  ;;  %v3851_v31 = vadd.f32 1.0, %v2697_v51  ;;  %v2782_v23 = vxor.u32 2147483648, %v2781_v10  ;;  %v3025_v26 = vshrl.u32 %v11053_v16, %v9794_v5 }
 0x2f5   :  { %v2787_v24 = vsel %vm9843_vm6, 0, %v2785_v35  ;;  %v3052_v19 = vsel %vm3042_vm9, %v3038_v28, 1326507024  ;;  %v285_v47 = vsub.f32 %v174_v27, %v9863_v52  ;;  %v5180_v49 = vmin.u32 %v2867_v33, %v9836_v22 }
 0x2f6   :  { %v3027_v34 = vshll.u32 %v11053_v16, %v9763_v39  ;;  %v3883_v1 = vmul.f32 0.5, %v3851_v31  ;;  %v2783_v6 = vsel %vm2700_vm4, %v2782_v23, %v2781_v10  ;;  %v9871_v56 = vand.u32 3, %v2787_v24 }
 0x2f7   :  { %v3023_v35 = vshrl.u32 %v11049_v3, %v9794_v5  ;;  %v2786_v28 = vsel %vm9843_vm6, %v11246_v58, %v2783_v6  ;;  %v2869_v8 = vclz %v5180_v49  ;;  %v3028_v59 = vshrl.u32 %v11050_v7, %v9794_v5 }
 0x2f8   :  { %v3030_v10 = vshll.u32 %v11050_v7, %v9763_v39  ;;  %v3915_v51 = vsel %vm458_vm2, %v3883_v1, 0.0  ;;  %5797 = vcosq.f32 %v2786_v28  ;;  %v3015_v24 = vor.u32 8388608, %v3014_v50 }
 0x2f9   :  { %v3026_v33 = vor.u32 %v3025_v26, %v3024_v4  ;;  %4029 = vperm.xlu0 %5677, %v3915_v51   ;;  %5799 = vsinq.f32 %v2786_v28  ;;  %v5181_v54 = vadd.s32 4294967294, %v2869_v8  ;;  %v3029_v31 = vor.u32 %v3028_v59, %v3027_v34 }
 0x2fa   :  { %v3031_v27 = vshrl.u32 %v11002_v48, %v9794_v5  ;;  %v2857_v23 = vadd.s32 %v9776_v60, %v9771_v61  ;;  %v498_v49 = vmul.f32 3.1415927, %v9881_v20  ;;  %vm3039_vm7 = vcmp.lt.s32.totalorder %v9803_v41, 1 }
 0x2fb   :  { %vm3041_vm13 = vcmp.lt.s32.totalorder %v9803_v41, 3  ;;  %v9895_v39 = vpop.eup %5795  ;;  %vm5182_vm0 = vcmp.lt.s32.totalorder %v5181_v54, 0  ;;  %vm3040_vm11 = vcmp.lt.s32.totalorder %v9803_v41, 2  ;;  %v3043_v50 = vsel %vm3039_vm7, %v3023_v35, %v3026_v33 }
 0x2fc   :  { %11274 = vst [vmem:[#allocation24_spill] sm:$0xff] %v9895_v39  ;;  %v3032_v18 = vor.u32 %v3031_v27, %v3030_v10  ;;  %v2872_v4 = vsel %vm5182_vm0, 0, %v5181_v54  ;;  %v3047_v5 = vsel %vm3039_vm7, %v3026_v33, %v3029_v31  ;;  %v3053_v61 = vsel %vm3041_vm13, %v9820_v63, %v3052_v19 }
 0x2fd   :  { %v3055_v60 = vshll.u32 %v3015_v24, 8  ;;  %v2873_v26 = vsub.s32 32, %v2872_v4  ;;  %v2874_v34 = vshll.u32 %v9836_v22, %v2872_v4  ;;  %v2877_v1 = vsub.s32 4294967266, %v2872_v4 }
 0x2fe   :  { %v3044_v6 = vsel %vm3042_vm9, %v3032_v18, 2102212464  ;;  %v9908_v28 = vmul.f32 0.16666667, %v498_v49  ;;  %v3049_v8 = vsel %vm3041_vm13, %v3032_v18, %v3048_v30  ;;  %v3051_v59 = vsel %vm3039_vm7, %v3029_v31, %v3032_v18 }
 0x2ff   :  { %v3045_v35 = vsel %vm3041_vm13, %v3029_v31, %v3044_v6  ;;  %v9917_v63 = vmul.f32 1.442695, %v9816_v21  ;;  %v2875_v19 = vshrl.u32 %v2857_v23, %v2873_v26  ;;  %v2878_v22 = vadd.s32 127, %v2877_v1  ;;  %v11275_v1 = vld [vmem:[#allocation92_spill] sm:$0xff] }
 0x300   :  { %v3050_v10 = vsel %vm3040_vm11, %v3047_v5, %v3049_v8  ;;  %v3046_v51 = vsel %vm3040_vm11, %v3043_v50, %v3045_v35  ;;  %v3054_v24 = vsel %vm3040_vm11, %v3051_v59, %v3053_v61  ;;  %v317_v49 = vmul.f32 %v285_v47, %v285_v47 }
 0x301   :  { %v9925_v33 = vmul.u32.u64.low %v3055_v60, %v3050_v10  ;;  %v9926_v54 = vmul.u32.u64.high %v3055_v60, %v3050_v10, %v9925_v33  ;;  %v2876_v30 = vor.u32 %v2875_v19, %v2874_v34  ;;  %v2879_v31 = vshll.u32 %v2878_v22, 23  ;;  %v9945_v22 = vpop.permute.xlu0 %108  ;;  %v5901_v10 = vld [vmem:[%s10776_s2 + $0xa8] sm:$0xff] }
 0x302   :  { %v9929_v27 = vmul.u32.u64.low %v3055_v60, %v3054_v24  ;;  %v9930_v21 = vmul.u32.u64.high %v3055_v60, %v3054_v24, %v9929_v27  ;;  %v5798_v23 = vpop.eup %5797  ;;  %vm2793_vm14 = vcmp.eq.s32.totalorder %v9871_v56, 0  ;;  %vm2796_vm9 = vcmp.eq.s32.totalorder %v9871_v56, 2 }
 0x303   :  { %v3422_v18 = vand.u32 2139095040, %v9908_v28  ;;  %v5800_v50 = vpop.eup %5799  ;;  %v2797_v41 = vxor.u32 2147483648, %v5798_v23  ;;  %v2880_v4 = vor.u32 4788187, %v2879_v31  ;;  %v2883_v5 = vcvt.s32.f32 %v2876_v30 }
 0x304   :  { %v3062_v61 = vmul.u32 %v3055_v60, %v3046_v51  ;;  %vm2792_vm2 = vcmp.lt.s32.totalorder %v9871_v56, 2  ;;  %v2794_v26 = vxor.u32 2147483648, %v5800_v50  ;;  %v3065_v34 = vadd.s32 1, %v9926_v54 }
 0x305   :  { %v10965_v6 = vand.u32 2147483647, %v11275_v1  ;;  %vm2790_vm12 = vweird.f32 %v11246_v58  ;;  %v2798_v47 = vsel %vm2796_vm9, %v2797_v41, %v5800_v50  ;;  %v2881_v35 = vand.u32 2147483647, %v2880_v4 }
 0x306   :  { %vm3064_vm4 = vc.u32 %v9930_v21, %v9925_v33  ;;  %v2795_v8 = vsel %vm2793_vm14, %v5798_v23, %v2794_v26  ;;  %v2887_v59 = vsub.s32 4, %v9826_v42  ;;  %v3423_v60 = vshrl.u32 %v3422_v18, 23 }
 0x307   :  { %v3066_v19 = vsel %vm3064_vm4, %v3065_v34, %v9926_v54  ;;  %vm459_vm8 = vcmp.lt.f32.partialorder %v5901_v10, 6.0  ;;  %v2799_v58 = vsel %vm2792_vm2, %v2795_v8, %v2798_v47  ;;  %v2884_v51 = vmul.f32 %v2883_v5, %v2881_v35  ;;  %v11279_v5 = vld [vmem:[#allocation31_spill] sm:$0xff] }
 0x308   :  { %v3067_v24 = vadd.s32 %v3066_v19, %v3062_v61  ;;  %v355_v30 = vmul.f32 %v9328_v2, %v317_v49  ;;  %v2800_v31 = vsel %vm2790_vm12, nan, %v2799_v58  ;;  %vm2803_vm3 = vcmp.lt.s32.totalorder %v11255_v36, 0 }
 0x309   :  { %v3117_v56 = vand.u32 8388607, %v10965_v6  ;;  %v3852_v27 = vadd.f32 1.0, %v2800_v31  ;;  %v11276_v54 = vand.u32 2147483647, %v11255_v36  ;;  %v2885_v18 = vxor.u32 2147483648, %v2884_v51 }
 0x30a   :  { %v3068_v50 = vadd.s32 536870912, %v3067_v24  ;;  %v2888_v41 = vsel %vm2803_vm3, %v2887_v59, %v9826_v42  ;;  %v5203_v4 = vadd.s32 4294967169, %v3423_v60  ;;  %v3127_v49 = vshll.u32 %v11049_v3, %v11279_v5  ;;  %v9976_v60 = vpop.permute.xlu0 %113 }
 0x30b   :  { %vm9956_vm5 = vcmp.le.f32.partialorder %v11276_v54, 0.7853982  ;;  %v3128_v61 = vshrl.u32 %v11053_v16, %v8298_v57  ;;  %v3884_v26 = vmul.f32 0.5, %v3852_v27  ;;  %v2886_v34 = vsel %vm2803_vm3, %v2885_v18, %v2884_v51 }
 0x30c   :  { %v9965_v47 = vshrl.u32 %v3068_v50, 30  ;;  %v3130_v35 = vshll.u32 %v11053_v16, %v11279_v5  ;;  %v2889_v8 = vsel %vm9956_vm5, %v11255_v36, %v2886_v34  ;;  %v3118_v19 = vor.u32 8388608, %v3117_v56 }
 0x30d   :  { %v3131_v42 = vshrl.u32 %v11050_v7, %v8298_v57  ;;  %v3133_v59 = vshll.u32 %v11050_v7, %v11279_v5  ;;  %v3916_v58 = vsel %vm459_vm8, %v3884_v26, 0.0  ;;  %5801 = vcosq.f32 %v2889_v8 }
 0x30e   :  { %v3070_v51 = vshll.u32 %v9965_v47, 30  ;;  %v3129_v31 = vor.u32 %v3128_v61, %v3127_v49  ;;  %4034 = vperm.xlu0 %5677, %v3916_v58   ;;  %5803 = vsinq.f32 %v2889_v8  ;;  %v3134_v56 = vshrl.u32 %v11002_v48, %v8298_v57  ;;  %v179_v61 = vpop.permute.xlu1 %178 }
 0x30f   :  { %v3132_v27 = vor.u32 %v3131_v42, %v3130_v35  ;;  %vm3142_vm6 = vcmp.lt.s32.totalorder %v8395_v17, 1  ;;  %v400_v54 = vmul.f32 1.442695, %v355_v30  ;;  %v3126_v50 = vshrl.u32 %v11049_v3, %v8298_v57  ;;  %v10006_v35 = vpop.permute.xlu0 %128 }
 0x310   :  { %v9983_v18 = vsub.s32 %v3067_v24, %v3070_v51  ;;  %vm3144_vm7 = vcmp.lt.s32.totalorder %v8395_v17, 3  ;;  %v2890_v10 = vsel %vm9956_vm5, 0, %v2888_v41  ;;  %v3429_v5 = vadd.s32 1, %v5203_v4 }
 0x311   :  { %v3135_v49 = vor.u32 %v3134_v56, %v3133_v59  ;;  %vm3143_vm13 = vcmp.lt.s32.totalorder %v8395_v17, 2  ;;  %v3150_v30 = vsel %vm3142_vm6, %v3129_v31, %v3132_v27  ;;  %v3156_v57 = vsel %vm3144_vm7, %v8615_v25, %v9310_v0 }
 0x312   :  { %v3073_v26 = vsub.s32 0, %v9983_v18  ;;  %v3158_v24 = vshll.u32 %v3118_v19, 8  ;;  %v286_v34 = vsub.f32 %v179_v61, %v9863_v52  ;;  %5805 = vpow2.f32 %v9917_v63 }
 0x313   :  { %v3147_v23 = vsel %vm3145_vm10, %v3135_v49, 2102212464  ;;  %v3152_v41 = vsel %vm3144_vm7, %v3135_v49, %v9085_v11  ;;  %v3154_v4 = vsel %vm3142_vm6, %v3132_v27, %v3135_v49  ;;  %v2894_v8 = vand.u32 3, %v2890_v10  ;;  %v5902_v10 = vld [vmem:[%s10776_s2 + $0xb0] sm:$0xff] }
 0x314   :  { %v5188_v25 = vmin.u32 %v3073_v26, %v9983_v18  ;;  %v3146_v0 = vsel %vm3142_vm6, %v3126_v50, %v3129_v31  ;;  %vm3430_vm0 = vcmp.gt.s32.totalorder %v3429_v5, 0  ;;  %v3148_v19 = vsel %vm3144_vm7, %v3132_v27, %v3147_v23 }
 0x315   :  { %v3153_v11 = vsel %vm3143_vm13, %v3150_v30, %v3152_v41  ;;  %v3157_v42 = vsel %vm3143_vm13, %v3154_v4, %v3156_v57  ;;  %5807 = vpow2.f32 %v400_v54  ;;  %v318_v51 = vmul.f32 %v286_v34, %v286_v34  ;;  %v10035_v30 = vpop.permute.xlu0 %138 }
 0x316   :  { %v3075_v59 = vclz %v5188_v25  ;;  %v10018_v58 = vmul.u32.u64.low %v3158_v24, %v3157_v42  ;;  %v10019_v63 = vmul.u32.u64.high %v3158_v24, %v3157_v42, %v10018_v58  ;;  %v3149_v56 = vsel %vm3143_vm13, %v3146_v0, %v3148_v19  ;;  %v11280_v42 = vld [vmem:[#allocation9_spill] sm:$0xff] }
 0x317   :  { %v10023_v31 = vmul.u32.u64.low %v3158_v24, %v3153_v11  ;;  %v10024_v50 = vmul.u32.u64.high %v3158_v24, %v3153_v11, %v10023_v31  ;;  %v5802_v27 = vpop.eup %5801  ;;  %vm460_vm10 = vcmp.lt.f32.partialorder %v5902_v10, 6.0  ;;  %vm2893_vm11 = vweird.f32 %v11255_v36 }
 0x318   :  { %vm2899_vm14 = vcmp.eq.s32.totalorder %v2894_v8, 2  ;;  %v10031_v54 = vsel %vm3430_vm0, %v3429_v5, 0  ;;  %v5189_v49 = vadd.s32 4294967294, %v3075_v59  ;;  %v5804_v61 = vpop.eup %5803  ;;  %vm2895_vm9 = vcmp.lt.s32.totalorder %v2894_v8, 2 }
 0x319   :  { %vm2896_vm2 = vcmp.eq.s32.totalorder %v2894_v8, 0  ;;  %v2900_v17 = vxor.u32 2147483648, %v5802_v27  ;;  %v3063_v26 = vadd.s32 %v9925_v33, %v9930_v21  ;;  %v2897_v57 = vxor.u32 2147483648, %v5804_v61 }
 0x31a   :  { %vm5190_vm12 = vcmp.lt.s32.totalorder %v5189_v49, 0  ;;  %v3165_v34 = vmul.u32 %v3158_v24, %v3149_v56  ;;  %vm3167_vm4 = vc.u32 %v10019_v63, %v10023_v31  ;;  %v10040_v5 = vand.u32 31, %v10031_v54 }
 0x31b   :  { %v2901_v23 = vsel %vm2899_vm14, %v2900_v17, %v5804_v61  ;;  %v3078_v41 = vsel %vm5190_vm12, 0, %v5189_v49  ;;  %v3168_v4 = vadd.s32 1, %v10024_v50  ;;  %v2898_v25 = vsel %vm2896_vm2, %v5802_v27, %v2897_v57  ;;  %v184_v49 = vpop.permute.xlu1 %183 }
 0x31c   :  { %v3079_v0 = vsub.s32 32, %v3078_v41  ;;  %v3080_v19 = vshll.u32 %v9983_v18, %v3078_v41  ;;  %v3083_v33 = vsub.s32 4294967266, %v3078_v41  ;;  %v10045_v21 = vmul.f32 %v9328_v2, %v318_v51  ;;  %v10050_v58 = vpop.eup %5805  ;;  %v10061_v51 = vpop.permute.xlu0 %148 }
 0x31d   :  { %v2902_v24 = vsel %vm2895_vm9, %v2898_v25, %v2901_v23  ;;  %v3169_v11 = vsel %vm3167_vm4, %v3168_v4, %v10024_v50  ;;  %v10964_v59 = vand.u32 2147483647, %v11280_v42  ;;  %11281 = vst [vmem:[#allocation30_spill] sm:$0xff] %v10050_v58  ;;  %v10055_v57 = vsub.f32 %v184_v49, %v9863_v52 }
 0x31e   :  { %v2903_v56 = vsel %vm2893_vm11, nan, %v2902_v24  ;;  %v3081_v27 = vshrl.u32 %v3063_v26, %v3079_v0  ;;  %v3084_v61 = vadd.s32 127, %v3083_v33  ;;  %v3170_v17 = vadd.s32 %v3169_v11, %v3165_v34 }
 0x31f   :  { %v3853_v18 = vadd.f32 1.0, %v2903_v56  ;;  %v10058_v8 = vsub.s32 32, %v10040_v5  ;;  %vm3009_vm8 = vcmp.lt.s32.totalorder %v9553_v40, 0  ;;  %v10063_v50 = vpop.eup %5807  ;;  %vm10067_vm3 = vcmp.le.f32.partialorder %v3007_v44, 0.7853982 }
 0x320   :  { %11282 = vst [vmem:[#allocation35_spill] sm:$0xff] %v10063_v50  ;;  %v3082_v26 = vor.u32 %v3081_v27, %v3080_v19  ;;  %v3085_v34 = vshll.u32 %v3084_v61, 23  ;;  %v3171_v23 = vadd.s32 536870912, %v3170_v17  ;;  %v3230_v41 = vshll.u32 %v11049_v3, %v8624_v38 }
 0x321   :  { %v3885_v4 = vmul.f32 0.5, %v3853_v18  ;;  %v3445_v25 = vshll.u32 %v11002_v48, %v10040_v5  ;;  %v3220_v0 = vand.u32 8388607, %v10964_v59  ;;  %v3231_v33 = vshrl.u32 %v11053_v16, %v9070_v37  ;;  %v10092_v18 = vpop.permute.xlu0 %3929 }
 0x322   :  { %v3086_v44 = vor.u32 4788187, %v3085_v34  ;;  %v3089_v24 = vcvt.s32.f32 %v3082_v26  ;;  %v10079_v11 = vshrl.u32 %v3171_v23, 30  ;;  %v3233_v19 = vshll.u32 %v11053_v16, %v8624_v38  ;;  %v4119_v26 = vld [vmem:[%s10781_s7] sm:$0xff] }
 0x323   :  { %v3917_v56 = vsel %vm460_vm10, %v3885_v4, 0.0  ;;  %v3446_v49 = vshrl.u32 %v11006_v62, %v10058_v8  ;;  %v10088_v27 = vshll.u32 %v11006_v62, %v10040_v5  ;;  %v3234_v61 = vshrl.u32 %v11050_v7, %v9070_v37  ;;  %5393 = vmatprep.subr.mxu0 %v4119_v26 }
 0x324   :  { %4039 = vperm.xlu0 %5677, %v3917_v56   ;;  %v3087_v34 = vand.u32 2147483647, %v3086_v44  ;;  %v3173_v10 = vshll.u32 %v10079_v11, 30  ;;  %v3232_v23 = vor.u32 %v3231_v33, %v3230_v41  ;;  %v3236_v4 = vshll.u32 %v11050_v7, %v8624_v38  ;;  %5394 = vmatpush3.msra.mxu0 %v4119_v26 }
 0x325   :  { %v3221_v62 = vor.u32 8388608, %v3220_v0  ;;  %v3235_v59 = vor.u32 %v3234_v61, %v3233_v19  ;;  %v3237_v6 = vshrl.u32 %v11002_v48, %v9070_v37  ;;  %vm3245_vm5 = vcmp.lt.s32.totalorder %v9313_v14, 1  ;;  %v10112_v33 = vpop.permute.xlu0 %3934 }
 0x326   :  { %v3090_v50 = vmul.f32 %v3089_v24, %v3087_v34  ;;  %v3093_v39 = vsub.s32 4, %v9965_v47  ;;  %v10104_v56 = vsub.s32 %v3170_v17, %v3173_v10  ;;  %vm3247_vm6 = vcmp.lt.s32.totalorder %v9313_v14, 3 }
 0x327   :  { %v3449_v41 = vshrl.u32 %v11008_v9, %v10058_v8  ;;  %v3229_v38 = vshrl.u32 %v11049_v3, %v9070_v37  ;;  %v3238_v0 = vor.u32 %v3237_v6, %v3236_v4  ;;  %vm3246_vm7 = vcmp.lt.s32.totalorder %v9313_v14, 2 }
 0x328   :  { %248 = vperm.xlu0 %5677, %v9881_v20   ;;  %v3091_v44 = vxor.u32 2147483648, %v3090_v50  ;;  %v3176_v24 = vsub.s32 0, %v10104_v56  ;;  %v3253_v17 = vsel %vm3245_vm5, %v3232_v23, %v3235_v59  ;;  %v3259_v9 = vsel %vm3247_vm6, %v9317_v32, %v9432_v15 }
 0x329   :  { %v3250_v37 = vsel %vm3248_vm15, %v3238_v0, 2102212464  ;;  %v3255_v6 = vsel %vm3247_vm6, %v3238_v0, %v9425_v53  ;;  %v3257_v20 = vsel %vm3245_vm5, %v3235_v59, %v3238_v0  ;;  %v3261_v19 = vshll.u32 %v3221_v62, 8  ;;  %v10146_v4 = vpop.permute.xlu0 %3939 }
 0x32a   :  { %v3092_v61 = vsel %vm3009_vm8, %v3091_v44, %v3090_v50  ;;  %v3094_v26 = vsel %vm3009_vm8, %v3093_v39, %v9965_v47  ;;  %v272_v32 = vsub.f32 %v9945_v22, %v9863_v52  ;;  %v5192_v15 = vmin.u32 %v3176_v24, %v10104_v56 }
 0x32b   :  { %v3095_v53 = vsel %vm10067_vm3, %v9553_v40, %v3092_v61  ;;  %v3249_v34 = vsel %vm3245_vm5, %v3229_v38, %v3232_v23  ;;  %v3251_v10 = vsel %vm3247_vm6, %v3235_v59, %v3250_v37  ;;  %v3256_v50 = vsel %vm3246_vm7, %v3253_v17, %v3255_v6 }
 0x32c   :  { %v10149_v39 = vshrl.u32 %v10031_v54, 5  ;;  %5809 = vcosq.f32 %v3095_v53  ;;  %v3178_v22 = vclz %v5192_v15  ;;  %v3260_v47 = vsel %vm3246_vm7, %v3257_v20, %v3259_v9 }
 0x32d   :  { %v3096_v62 = vsel %vm10067_vm3, 0, %v3094_v26  ;;  %5811 = vsinq.f32 %v3095_v53  ;;  %v10155_v23 = vmul.u32.u64.low %v3261_v19, %v3260_v47  ;;  %v10156_v38 = vmul.u32.u64.high %v3261_v19, %v3260_v47, %v10155_v23  ;;  %v10170_v37 = vpop.permute.xlu0 %3944 }
 0x32e   :  { %v5193_v59 = vadd.s32 4294967294, %v3178_v22  ;;  %v3252_v0 = vsel %vm3246_vm7, %v3249_v34, %v3251_v10  ;;  %v10160_v44 = vmul.u32.u64.low %v3261_v19, %v3256_v50  ;;  %v10161_v24 = vmul.u32.u64.high %v3261_v19, %v3256_v50, %v10160_v44  ;;  %v5903_v10 = vld [vmem:[%s10776_s2 + $0xc0] sm:$0xff]  ;;  %v189_v22 = vpop.permute.xlu1 %188 }
 0x32f   :  { %v10165_v54 = vmul.f32 1.442695, %v10045_v21  ;;  %v10167_v17 = vor.u32 %v3446_v49, %v3445_v25  ;;  %v3450_v36 = vor.u32 %v3449_v41, %v10088_v27  ;;  %v304_v9 = vmul.f32 %v272_v32, %v272_v32 }
 0x330   :  { %vm3454_vm15 = vcmp.lt.s32.totalorder %v10149_v39, 4  ;;  %v3100_v6 = vand.u32 3, %v3096_v62  ;;  %v3166_v14 = vadd.s32 %v10023_v31, %v10019_v63  ;;  %vm5194_vm13 = vcmp.lt.s32.totalorder %v5193_v59, 0 }
 0x331   :  { %v10177_v20 = vmul.f32 %v10055_v57, %v10055_v57  ;;  %v3181_v21 = vsel %vm5194_vm13, 0, %v5193_v59  ;;  %v3268_v61 = vmul.u32 %v3261_v19, %v3252_v0  ;;  %vm3270_vm0 = vc.u32 %v10156_v38, %v10160_v44  ;;  %v10196_v19 = vpop.permute.xlu0 %3949 }
 0x332   :  { %v3182_v25 = vsub.s32 32, %v3181_v21  ;;  %v3183_v49 = vshll.u32 %v10104_v56, %v3181_v21  ;;  %v3186_v27 = vsub.s32 4294967266, %v3181_v21  ;;  %v3271_v41 = vadd.s32 1, %v10161_v24 }
 0x333   :  { %v10186_v63 = vsel %vm3454_vm15, %v10167_v17, 920167782  ;;  %v10190_v31 = vsel %vm3454_vm15, %v3450_v36, 1326507024  ;;  %vm3099_vm10 = vweird.f32 %v9553_v40  ;;  %v10194_v57 = vmul.f32 %v9328_v2, %v304_v9 }
 0x334   :  { %vm3101_vm11 = vcmp.lt.s32.totalorder %v3100_v6, 2  ;;  %v3184_v56 = vshrl.u32 %v3166_v14, %v3182_v25  ;;  %v3187_v26 = vadd.s32 127, %v3186_v27  ;;  %v3272_v32 = vsel %vm3270_vm0, %v3271_v41, %v10161_v24 }
 0x335   :  { %vm3102_vm14 = vcmp.eq.s32.totalorder %v3100_v6, 0  ;;  %vm3105_vm9 = vcmp.eq.s32.totalorder %v3100_v6, 2  ;;  %vm3112_vm2 = vcmp.lt.s32.totalorder %v11275_v1, 0  ;;  %v273_v15 = vsub.f32 %v9976_v60, %v9863_v52  ;;  %v10218_v14 = vpop.permute.xlu0 %3954 }
 0x336   :  { %v3273_v53 = vadd.s32 %v3272_v32, %v3268_v61  ;;  %v5810_v34 = vpop.eup %5809  ;;  %vm462_vm12 = vcmp.lt.f32.partialorder %v5903_v10, 6.0  ;;  %v11285_v50 = vand.u32 2147483647, %v11275_v1  ;;  %v3185_v47 = vor.u32 %v3184_v56, %v3183_v49 }
 0x337   :  { %v3188_v62 = vshll.u32 %v3187_v26, 23  ;;  %v3436_v60 = vshll.u32 %v11049_v3, %v10040_v5  ;;  %v5812_v59 = vpop.eup %5811  ;;  %v3106_v0 = vxor.u32 2147483648, %v5810_v34  ;;  %v3437_v36 = vshrl.u32 %v11053_v16, %v10058_v8 }
 0x338   :  { %vm10207_vm4 = vcmp.le.f32.partialorder %v11285_v50, 0.7853982  ;;  %v3274_v24 = vadd.s32 536870912, %v3273_v53  ;;  %v3439_v9 = vshll.u32 %v11053_v16, %v10040_v5  ;;  %v3103_v21 = vxor.u32 2147483648, %v5812_v59 }
 0x339   :  { %v3189_v61 = vor.u32 4788187, %v3188_v62  ;;  %v3192_v25 = vcvt.s32.f32 %v3185_v47  ;;  %v3440_v49 = vshrl.u32 %v11050_v7, %v10058_v8  ;;  %v3107_v27 = vsel %vm3105_vm9, %v3106_v0, %v5812_v59 }
 0x33a   :  { %v305_v41 = vmul.f32 %v273_v15, %v273_v15  ;;  %v10223_v56 = vshrl.u32 %v3274_v24, 30  ;;  %v3442_v26 = vshll.u32 %v11050_v7, %v10040_v5  ;;  %v3104_v32 = vsel %vm3102_vm14, %v5810_v34, %v3103_v21  ;;  %v10237_v21 = vpop.permute.xlu0 %3959 }
 0x33b   :  { %v3190_v50 = vand.u32 2147483647, %v3189_v61  ;;  %v3196_v23 = vsub.s32 4, %v10079_v11  ;;  %v3443_v62 = vshrl.u32 %v11002_v48, %v10058_v8  ;;  %v3108_v47 = vsel %vm3101_vm11, %v3104_v32, %v3107_v27 }
 0x33c   :  { %v3276_v58 = vshll.u32 %v10223_v56, 30  ;;  %v11288_v59 = vand.u32 2147483647, %v9908_v28  ;;  %v3438_v0 = vor.u32 %v3437_v36, %v3436_v60  ;;  %v3109_v24 = vsel %vm3099_vm10, nan, %v3108_v47 }
 0x33d   :  { %v3193_v5 = vmul.f32 %v3192_v25, %v3190_v50  ;;  %v3441_v29 = vor.u32 %v3440_v49, %v3439_v9  ;;  %v3444_v34 = vor.u32 %v3443_v62, %v3442_v26  ;;  %v3855_v61 = vadd.f32 1.0, %v3109_v24 }
 0x33e   :  { %v3426_v15 = vand.u32 8388607, %v11288_v59  ;;  %v10239_v43 = vsub.s32 %v3273_v53, %v3276_v58  ;;  %vm3451_vm8 = vcmp.lt.s32.totalorder %v10149_v39, 1  ;;  %vm3453_vm3 = vcmp.lt.s32.totalorder %v10149_v39, 3  ;;  %v10273_v62 = vpop.permute.xlu0 %3964 }
 0x33f   :  { %v3194_v6 = vxor.u32 2147483648, %v3193_v5  ;;  %v343_v27 = vmul.f32 %v9328_v2, %v305_v41  ;;  %v276_v60 = vsub.f32 %v10006_v35, %v9863_v52  ;;  %v3435_v40 = vshrl.u32 %v11049_v3, %v10058_v8 }
 0x340   :  { %v3887_v36 = vmul.f32 0.5, %v3855_v61  ;;  %v3279_v9 = vsub.s32 0, %v10239_v43  ;;  %vm3452_vm5 = vcmp.lt.s32.totalorder %v10149_v39, 2  ;;  %v3456_v58 = vsel %vm3454_vm15, %v3444_v34, 2102212464 }
 0x341   :  { %v3195_v53 = vsel %vm3112_vm2, %v3194_v6, %v3193_v5  ;;  %v3427_v25 = vor.u32 8388608, %v3426_v15  ;;  %v3459_v49 = vsel %vm3451_vm8, %v3438_v0, %v3441_v29  ;;  %v3461_v35 = vsel %vm3453_vm3, %v3444_v34, %v10186_v63 }
 0x342   :  { %v3919_v8 = vsel %vm462_vm12, %v3887_v36, 0.0  ;;  %v3197_v41 = vsel %vm3112_vm2, %v3196_v23, %v10079_v11  ;;  %v3198_v26 = vsel %vm10207_vm4, %v11275_v1, %v3195_v53  ;;  %v5196_v32 = vmin.u32 %v3279_v9, %v10239_v43 }
 0x343   :  { %4049 = vperm.xlu0 %5677, %v3919_v8   ;;  %5813 = vcosq.f32 %v3198_v26  ;;  %v3455_v50 = vsel %vm3451_vm8, %v3435_v40, %v3438_v0  ;;  %v3457_v63 = vsel %vm3453_vm3, %v3441_v29, %v3456_v58  ;;  %v3462_v10 = vsel %vm3452_vm5, %v3459_v49, %v3461_v35  ;;  %v10306_v58 = vpop.permute.xlu0 %3969  ;;  %v5904_v8 = vld [vmem:[%s10776_s2 + $0xc8] sm:$0xff] }
 0x344   :  { %5815 = vsinq.f32 %v3198_v26  ;;  %v3281_v11 = vclz %v5196_v32  ;;  %v3463_v23 = vsel %vm3451_vm8, %v3441_v29, %v3444_v34  ;;  %v3465_v47 = vsel %vm3453_vm3, %v10167_v17, %v10190_v31 }
 0x345   :  { %v3199_v59 = vsel %vm10207_vm4, 0, %v3197_v41  ;;  %v308_v15 = vmul.f32 %v276_v60, %v276_v60  ;;  %v3466_v0 = vsel %vm3452_vm5, %v3463_v23, %v3465_v47  ;;  %v3467_v24 = vshll.u32 %v3427_v25, 8 }
 0x346   :  { %5817 = vpow2.f32 %v10165_v54  ;;  %v374_v5 = vmul.f32 1.442695, %v10194_v57  ;;  %v5197_v61 = vadd.s32 4294967294, %v3281_v11  ;;  %v3458_v29 = vsel %vm3452_vm5, %v3455_v50, %v3457_v63 }
 0x347   :  { %v10289_v34 = vmul.u32.u64.low %v3467_v24, %v3466_v0  ;;  %v10290_v6 = vmul.u32.u64.high %v3467_v24, %v3466_v0, %v10289_v34  ;;  %v10292_v17 = vmul.u32.u64.low %v3467_v24, %v3462_v10  ;;  %v10293_v31 = vmul.u32.u64.high %v3467_v24, %v3462_v10, %v10292_v17 }
 0x348   :  { %v3203_v60 = vand.u32 3, %v3199_v59  ;;  %v376_v40 = vmul.f32 1.442695, %v343_v27  ;;  %v3269_v36 = vadd.s32 %v10160_v44, %v10156_v38  ;;  %vm5198_vm6 = vcmp.lt.s32.totalorder %v5197_v61, 0 }
 0x349   :  { %v10300_v54 = vmul.f32 %v9328_v2, %v10177_v20  ;;  %v10303_v39 = vsub.f32 %v189_v22, %v9863_v52  ;;  %v3284_v57 = vsel %vm5198_vm6, 0, %v5197_v61  ;;  %v346_v9 = vmul.f32 %v9328_v2, %v308_v15  ;;  %v11292_v15 = vld [vmem:[#allocation86_spill] sm:$0xff] }
 0x34a   :  { %v3285_v53 = vsub.s32 32, %v3284_v57  ;;  %v3286_v25 = vshll.u32 %v10239_v43, %v3284_v57  ;;  %v3289_v27 = vsub.s32 4294967266, %v3284_v57  ;;  %v3474_v49 = vmul.u32 %v3467_v24, %v3458_v29 }
 0x34b   :  { %5819 = vpow2.f32 %v374_v5  ;;  %vm3202_vm7 = vweird.f32 %v11275_v1  ;;  %vm3476_vm15 = vc.u32 %v10290_v6, %v10292_v17  ;;  %v3477_v38 = vadd.s32 1, %v10293_v31  ;;  %v10331_v5 = vpop.permute.xlu0 %3974 }
 0x34c   :  { %vm3204_vm13 = vcmp.lt.s32.totalorder %v3203_v60, 2  ;;  %5821 = vpow2.f32 %v376_v40  ;;  %v3287_v44 = vshrl.u32 %v3269_v36, %v3285_v53  ;;  %v3290_v20 = vadd.s32 127, %v3289_v27 }
 0x34d   :  { %v5814_v35 = vpop.eup %5813  ;;  %vm463_vm0 = vcmp.lt.f32.partialorder %v5904_v8, 6.0  ;;  %vm3205_vm10 = vcmp.eq.s32.totalorder %v3203_v60, 0  ;;  %vm3208_vm11 = vcmp.eq.s32.totalorder %v3203_v60, 2  ;;  %vm3215_vm14 = vcmp.lt.s32.totalorder %v11280_v42, 0 }
 0x34e   :  { %v10317_v43 = vmul.f32 1.442695, %v346_v9  ;;  %v3478_v41 = vsel %vm3476_vm15, %v3477_v38, %v10293_v31  ;;  %v5816_v26 = vpop.eup %5815  ;;  %v3209_v32 = vxor.u32 2147483648, %v5814_v35  ;;  %v11289_v50 = vand.u32 2147483647, %v11280_v42  ;;  %v10343_v9 = vpop.permute.xlu1 %193 }
 0x34f   :  { %v3288_v10 = vor.u32 %v3287_v44, %v3286_v25  ;;  %v3291_v11 = vshll.u32 %v3290_v20, 23  ;;  %v3479_v23 = vadd.s32 %v3478_v41, %v3474_v49  ;;  %v3206_v47 = vxor.u32 2147483648, %v5816_v26 }
 0x350   :  { %vm10322_vm9 = vcmp.le.f32.partialorder %v11289_v50, 0.7853982  ;;  %v278_v59 = vsub.f32 %v10035_v30, %v9863_v52  ;;  %v3625_v0 = vand.u32 2147483647, %v11292_v15  ;;  %v3642_v24 = vshll.u32 %v11049_v3, %v9108_v55  ;;  %v10333_v61 = vpop.eup %5817 }
 0x351   :  { %v3210_v29 = vsel %vm3208_vm11, %v3209_v32, %v5816_v26  ;;  %v3292_v34 = vor.u32 4788187, %v3291_v11  ;;  %v3295_v31 = vcvt.s32.f32 %v3288_v10  ;;  %v3480_v22 = vadd.s32 536870912, %v3479_v23 }
 0x352   :  { %v3207_v40 = vsel %vm3205_vm10, %v5814_v35, %v3206_v47  ;;  %v3643_v36 = vshrl.u32 %v11053_v16, %v9322_v12  ;;  %v3645_v30 = vshll.u32 %v11053_v16, %v9108_v55  ;;  %v3646_v57 = vshrl.u32 %v11050_v7, %v9322_v12 }
 0x353   :  { %v3211_v53 = vsel %vm3204_vm13, %v3207_v40, %v3210_v29  ;;  %v3293_v25 = vand.u32 2147483647, %v3292_v34  ;;  %v10346_v27 = vshrl.u32 %v3480_v22, 30  ;;  %v3648_v49 = vshll.u32 %v11050_v7, %v9108_v55  ;;  %v10359_v55 = vpop.permute.xlu0 %3979 }
 0x354   :  { %v3212_v38 = vsel %vm3202_vm7, nan, %v3211_v53  ;;  %v3299_v44 = vsub.s32 4, %v10223_v56  ;;  %v3632_v16 = vand.u32 8388607, %v3625_v0  ;;  %v3649_v20 = vshrl.u32 %v11002_v48, %v9322_v12 }
 0x355   :  { %v3856_v35 = vadd.f32 1.0, %v3212_v38  ;;  %v3296_v60 = vmul.f32 %v3295_v31, %v3293_v25  ;;  %v3482_v41 = vshll.u32 %v10346_v27, 30  ;;  %v310_v26 = vmul.f32 %v278_v59, %v278_v59  ;;  %v5820_v32 = vpop.eup %5819  ;;  %v10371_v31 = vpop.permute.xlu1 %198 }
 0x356   :  { %v3644_v50 = vor.u32 %v3643_v36, %v3642_v24  ;;  %v3647_v10 = vor.u32 %v3646_v57, %v3645_v30  ;;  %v3650_v7 = vor.u32 %v3649_v20, %v3648_v49  ;;  %vm3657_vm2 = vcmp.lt.s32.totalorder %v9450_v46, 1  ;;  %v5822_v1 = vpop.eup %5821 }
 0x357   :  { %v3888_v11 = vmul.f32 0.5, %v3856_v35  ;;  %v3297_v47 = vxor.u32 2147483648, %v3296_v60  ;;  %v10361_v29 = vsub.s32 %v3479_v23, %v3482_v41  ;;  %vm3659_vm12 = vcmp.lt.s32.totalorder %v9450_v46, 3  ;;  %v10400_v38 = vpop.permute.xlu0 %3989 }
 0x358   :  { %v3300_v48 = vsel %vm3215_vm14, %v3299_v44, %v10223_v56  ;;  %v3633_v59 = vor.u32 8388608, %v3632_v16  ;;  %v3641_v24 = vshrl.u32 %v11049_v3, %v9322_v12  ;;  %vm3658_vm4 = vcmp.lt.s32.totalorder %v9450_v46, 2 }
 0x359   :  { %v3920_v34 = vsel %vm463_vm0, %v3888_v11, 0.0  ;;  %v3298_v23 = vsel %vm3215_vm14, %v3297_v47, %v3296_v60  ;;  %v3485_v22 = vsub.s32 0, %v10361_v29  ;;  %v3662_v40 = vsel %vm3660_vm1, %v3650_v7, 2102212464 }
 0x35a   :  { %4054 = vperm.xlu0 %5677, %v3920_v34   ;;  %v3301_v56 = vsel %vm10322_vm9, %v11280_v42, %v3298_v23  ;;  %v3665_v3 = vsel %vm3657_vm2, %v3644_v50, %v3647_v10  ;;  %v3667_v12 = vsel %vm3659_vm12, %v3650_v7, %v9671_v13  ;;  %v3669_v8 = vsel %vm3657_vm2, %v3647_v10, %v3650_v7  ;;  %v11293_v13 = vld [vmem:[#allocation22_spill] sm:$0xff] }
 0x35b   :  { %v3302_v36 = vsel %vm10322_vm9, 0, %v3300_v48  ;;  %5823 = vcosq.f32 %v3301_v56  ;;  %v5204_v30 = vmin.u32 %v3485_v22, %v10361_v29  ;;  %v348_v57 = vmul.f32 %v9328_v2, %v310_v26  ;;  %v204_v26 = vpop.permute.xlu1 %203 }
 0x35c   :  { %5825 = vsinq.f32 %v3301_v56  ;;  %v3661_v53 = vsel %vm3657_vm2, %v3641_v24, %v3644_v50  ;;  %v3663_v25 = vsel %vm3659_vm12, %v3647_v10, %v3662_v40  ;;  %v3671_v49 = vsel %vm3659_vm12, %v11293_v13, %v9790_v45  ;;  %v11294_v56 = vld [vmem:[#allocation27_spill] sm:$0xff] }
 0x35d   :  { %v3487_v63 = vclz %v5204_v30  ;;  %v3668_v44 = vsel %vm3658_vm4, %v3665_v3, %v3667_v12  ;;  %v3672_v16 = vsel %vm3658_vm4, %v3669_v8, %v3671_v49  ;;  %v3673_v20 = vshll.u32 %v3633_v59, 8  ;;  %v10429_v59 = vpop.permute.xlu0 %3999 }
 0x35e   :  { %v3306_v35 = vand.u32 3, %v3302_v36  ;;  %5827 = vpow2.f32 %v10317_v43  ;;  %v280_v60 = vsub.f32 %v10061_v51, %v9863_v52  ;;  %v4087_v41 = vmul.f32 %v5820_v32, %v10092_v18 }
 0x35f   :  { %v3475_v45 = vadd.s32 %v10292_v17, %v10290_v6  ;;  %v5205_v50 = vadd.s32 4294967294, %v3487_v63  ;;  %v10412_v10 = vmul.u32.u64.low %v3673_v20, %v3672_v16  ;;  %v10413_v7 = vmul.u32.u64.high %v3673_v20, %v3672_v16, %v10412_v10  ;;  %v209_v40 = vpop.permute.xlu1 %208 }
 0x360   :  { %v3664_v11 = vsel %vm3658_vm4, %v3661_v53, %v3663_v25  ;;  %v10417_v47 = vmul.u32.u64.low %v3673_v20, %v3668_v44  ;;  %v10418_v48 = vmul.u32.u64.high %v3673_v20, %v3668_v44, %v10417_v47  ;;  %v312_v43 = vmul.f32 %v280_v60, %v280_v60 }
 0x361   :  { %vm5206_vm1 = vcmp.lt.s32.totalorder %v5205_v50, 0  ;;  %v386_v51 = vmul.f32 1.442695, %v348_v57  ;;  %vm4153_vm8 = vcmask 64512   ;;  %v4088_v18 = vmul.f32 %v5822_v1, %v10112_v33  ;;  %v10446_v44 = vpop.permute.xlu0 %4004 }
 0x362   :  { %v10423_v32 = vmul.f32 1.442695, %v10300_v54  ;;  %v320_v6 = vmul.f32 %v10303_v39, %v10303_v39  ;;  %v3490_v17 = vsel %vm5206_vm1, 0, %v5205_v50  ;;  %v350_v46 = vmul.f32 %v9328_v2, %v312_v43  ;;  %5395 = vmatprep.mubr.msk.f32.mxu0 %vm4153_vm8, %v4087_v41  ;;  %v10452_v50 = vld [vmem:[%s10777_s3] ss:$0 sm:$0xff] }
 0x363   :  { %v3491_v24 = vsub.s32 32, %v3490_v17  ;;  %v3492_v34 = vshll.u32 %v10361_v29, %v3490_v17  ;;  %v3495_v23 = vsub.s32 4294967266, %v3490_v17  ;;  %v3680_v22 = vmul.u32 %v3673_v20, %v3664_v11  ;;  %5396 = vmatmul.mubr.msk.f32.vlgmr.msra.gmra.mrb[0].mxu0 %vm4153_vm8, %v4088_v18  ;;  %v214_v43 = vpop.permute.xlu1 %213 }
 0x364   :  { %vm3307_vm3 = vcmp.lt.s32.totalorder %v3306_v35, 2  ;;  %vm3311_vm5 = vcmp.eq.s32.totalorder %v3306_v35, 2  ;;  %vm3682_vm6 = vc.u32 %v10413_v7, %v10417_v47  ;;  %v3683_v33 = vadd.s32 1, %v10418_v48 }
 0x365   :  { %v5824_v54 = vpop.eup %5823  ;;  %v3493_v39 = vshrl.u32 %v3475_v45, %v3491_v24  ;;  %v3496_v1 = vadd.s32 127, %v3495_v23  ;;  %5829 = vpow2.f32 %v386_v51  ;;  %v4089_v3 = vmul.f32 %v11294_v56, %v10146_v4  ;;  %v11296_v23 = vld [vmem:[#allocation42_spill] sm:$0xff] }
 0x366   :  { %v5826_v29 = vpop.eup %5825  ;;  %vm3308_vm7 = vcmp.eq.s32.totalorder %v3306_v35, 0  ;;  %v3312_v12 = vxor.u32 2147483648, %v5824_v54  ;;  %v3684_v8 = vsel %vm3682_vm6, %v3683_v33, %v10418_v48  ;;  %v390_v36 = vmul.f32 1.442695, %v350_v46  ;;  %v10471_v33 = vpop.permute.xlu0 %4009 }
 0x367   :  { %v3309_v30 = vxor.u32 2147483648, %v5826_v29  ;;  %v3494_v57 = vor.u32 %v3493_v39, %v3492_v34  ;;  %v3497_v53 = vshll.u32 %v3496_v1, 23  ;;  %v3685_v25 = vadd.s32 %v3684_v8, %v3680_v22  ;;  %5398 = vmatprep.mubr.msk.f32.mxu0 %vm4153_vm8, %v4089_v3  ;;  %v3985_v3 = vpop.permute.xlu1 %3984 }
 0x368   :  { %v5828_v13 = vpop.eup %5827  ;;  %v289_v49 = vsub.f32 %v10343_v9, %v9863_v52  ;;  %v290_v63 = vsub.f32 %v10371_v31, %v9863_v52  ;;  %vm3305_vm15 = vweird.f32 %v11280_v42  ;;  %v3313_v4 = vsel %vm3311_vm5, %v3312_v12, %v5826_v29  ;;  %v11295_v52 = vld [vmem:[#allocation32_spill] sm:$0xff] }
 0x369   :  { %v3310_v16 = vsel %vm3308_vm7, %v5824_v54, %v3309_v30  ;;  %v3498_v20 = vor.u32 4788187, %v3497_v53  ;;  %v3501_v60 = vcvt.s32.f32 %v3494_v57  ;;  %v3686_v41 = vadd.s32 536870912, %v3685_v25 }
 0x36a   :  { %v3314_v45 = vsel %vm3307_vm3, %v3310_v16, %v3313_v4  ;;  %v291_v9 = vsub.f32 %v204_v26, %v10452_v50  ;;  %5831 = vpow2.f32 %v390_v36  ;;  %v4090_v42 = vmul.f32 %v11295_v52, %v10170_v37  ;;  %v5906_v37 = vld [vmem:[%s10776_s2 + $0xd0] sm:$0xff] }
 0x36b   :  { %v358_v31 = vmul.f32 %v9328_v2, %v320_v6  ;;  %v3315_v10 = vsel %vm3305_vm15, nan, %v3314_v45  ;;  %v3499_v11 = vand.u32 2147483647, %v3498_v20  ;;  %v10458_v48 = vshrl.u32 %v3686_v41, 30  ;;  %v3995_v45 = vpop.permute.xlu1 %3994 }
 0x36c   :  { %v321_v35 = vmul.f32 %v289_v49, %v289_v49  ;;  %v3857_v51 = vadd.f32 1.0, %v3315_v10  ;;  %v292_v18 = vsub.f32 %v209_v40, %v10452_v50  ;;  %5399 = vmatmul.mubr.msk.f32.gmra.mrb[2].mxu0 %vm4153_vm8, %v4090_v42  ;;  %v4091_v17 = vmul.f32 %v5828_v13, %v10196_v19  ;;  %v11300_v13 = vld [vmem:[#allocation43_spill] sm:$0xff]  ;;  %v11301_v42 = vld [vmem:[#allocation38_spill] sm:$0xff] }
 0x36d   :  { %v322_v26 = vmul.f32 %v290_v63, %v290_v63  ;;  %vm464_vm13 = vcmp.lt.f32.partialorder %v5906_v37, 6.0  ;;  %v3502_v6 = vmul.f32 %v3501_v60, %v3499_v11  ;;  %v3688_v46 = vshll.u32 %v10458_v48, 30  ;;  %v10504_v60 = vpop.permute.xlu0 %4014  ;;  %v11302_v10 = vld [vmem:[#allocation11_spill] sm:$0xff]  ;;  %v11304_v37 = vld [vmem:[#allocation24_spill] sm:$0xff] }
 0x36e   :  { %v3889_v24 = vmul.f32 0.5, %v3857_v51  ;;  %v323_v34 = vmul.f32 %v291_v9, %v291_v9  ;;  %vm3421_vm0 = vcmp.lt.s32.totalorder %v9908_v28, 0  ;;  %5401 = vmatprep.mubr.msk.f32.mxu0 %vm4153_vm8, %v4091_v17  ;;  %v4092_v22 = vmul.f32 %v11296_v23, %v10218_v14 }
 0x36f   :  { %v5830_v19 = vpop.eup %5829  ;;  %v11297_v54 = vand.u32 2147483647, %v9908_v28  ;;  %v3503_v1 = vxor.u32 2147483648, %v3502_v6  ;;  %v3505_v40 = vsub.s32 4, %v10346_v27  ;;  %v10480_v56 = vsub.s32 %v3685_v25, %v3688_v46 }
 0x370   :  { %v359_v29 = vmul.f32 %v9328_v2, %v321_v35  ;;  %v3921_v12 = vsel %vm464_vm13, %v3889_v24, 0.0  ;;  %v324_v14 = vmul.f32 %v292_v18, %v292_v18  ;;  %5402 = vmatmul.mubr.msk.f32.gmra.mrb[4].mxu0 %vm4153_vm8, %v4092_v22  ;;  %v4093_v8 = vmul.f32 %v5830_v19, %v10237_v21  ;;  %v10523_v22 = vpop.permute.xlu1 %218 }
 0x371   :  { %vm10475_vm10 = vcmp.le.f32.partialorder %v11297_v54, 0.7853982  ;;  %v406_v36 = vmul.f32 1.442695, %v358_v31  ;;  %v360_v30 = vmul.f32 %v9328_v2, %v322_v26  ;;  %4059 = vperm.xlu0 %5677, %v3921_v12   ;;  %v3504_v57 = vsel %vm3421_vm0, %v3503_v1, %v3502_v6  ;;  %v4020_v46 = vpop.permute.xlu0 %4019 }
 0x372   :  { %v3691_v53 = vsub.s32 0, %v10480_v56  ;;  %5833 = vpow2.f32 %v10423_v32  ;;  %v3507_v25 = vsel %vm10475_vm10, %v9908_v28, %v3504_v57  ;;  %5404 = vmatprep.mubr.msk.f32.mxu0 %vm4153_vm8, %v4093_v8  ;;  %v4094_v21 = vmul.f32 %v11300_v13, %v10273_v62 }
 0x373   :  { %v361_v49 = vmul.f32 %v9328_v2, %v323_v34  ;;  %v3506_v63 = vsel %vm3421_vm0, %v3505_v40, %v10346_v27  ;;  %5835 = vcosq.f32 %v3507_v25  ;;  %v408_v32 = vmul.f32 1.442695, %v359_v29 }
 0x374   :  { %v5212_v4 = vmin.u32 %v3691_v53, %v10480_v56  ;;  %v5832_v16 = vpop.eup %5831  ;;  %5837 = vsinq.f32 %v3507_v25  ;;  %v362_v20 = vmul.f32 %v9328_v2, %v324_v14  ;;  %5405 = vmatmul.mubr.msk.f32.gmra.mrb[6].mxu0 %vm4153_vm8, %v4094_v21  ;;  %v410_v62 = vmul.f32 1.442695, %v360_v30  ;;  %v224_v25 = vpop.permute.xlu1 %223 }
 0x375   :  { %5839 = vpow2.f32 %v406_v36  ;;  %v4095_v9 = vmul.f32 %v5832_v16, %v10306_v58  ;;  %v3508_v27 = vsel %vm10475_vm10, 0, %v3506_v63  ;;  %v293_v52 = vsub.f32 %v214_v43, %v10452_v50 }
 0x376   :  { %v3693_v41 = vclz %v5212_v4  ;;  %v4096_v31 = vmul.f32 %v11301_v42, %v10331_v5  ;;  %v4097_v11 = vmul.f32 %v11302_v10, %v10359_v55  ;;  %v412_v35 = vmul.f32 1.442695, %v361_v49  ;;  %v11303_v5 = vld [vmem:[#allocation30_spill] sm:$0xff] }
 0x377   :  { %5407 = vmatprep.mubr.msk.f32.mxu0 %vm4153_vm8, %v4095_v9  ;;  %5841 = vpow2.f32 %v408_v32  ;;  %v414_v18 = vmul.f32 1.442695, %v362_v20  ;;  %v3512_v58 = vand.u32 3, %v3508_v27  ;;  %v3681_v17 = vadd.s32 %v10417_v47, %v10413_v7 }
 0x378   :  { %v5213_v51 = vadd.s32 4294967294, %v3693_v41  ;;  %5408 = vmatmul.mubr.msk.f32.gmra.mrb[8].mxu0 %vm4153_vm8, %v4096_v31  ;;  %v4099_v43 = vmul.f32 %v11303_v5, %v10400_v38  ;;  %5843 = vpow2.f32 %v410_v62  ;;  %v325_v26 = vmul.f32 %v293_v52, %v293_v52  ;;  %v5907_v62 = vld [vmem:[%s10776_s2 + $0xe0] sm:$0xff]  ;;  %v4025_v31 = vpop.permute.xlu1 %4024 }
 0x379   :  { %5410 = vmatprep.mubr.msk.f32.mxu0 %vm4153_vm8, %v4097_v11  ;;  %v4098_v6 = vmul.f32 %v11304_v37, %v3985_v3  ;;  %5845 = vpow2.f32 %v412_v35  ;;  %vm3517_vm14 = vcmp.eq.s32.totalorder %v3512_v58, 2  ;;  %v4101_v54 = vmul.f32 %v10333_v61, %v10429_v59  ;;  %v10535_v59 = vpop.permute.xlu0 %228 }
 0x37a   :  { %vm5214_vm11 = vcmp.lt.s32.totalorder %v5213_v51, 0  ;;  %5847 = vpow2.f32 %v414_v18  ;;  %vm3514_vm9 = vcmp.eq.s32.totalorder %v3512_v58, 0  ;;  %v363_v40 = vmul.f32 %v9328_v2, %v325_v26 }
 0x37b   :  { %v3696_v55 = vsel %vm5214_vm11, 0, %v5213_v51  ;;  %vm3513_vm2 = vcmp.lt.s32.totalorder %v3512_v58, 2  ;;  %vm3511_vm12 = vweird.f32 %v9908_v28  ;;  %vm466_vm4 = vcmp.lt.f32.partialorder %v5907_v62, 6.0 }
 0x37c   :  { %v3697_v24 = vsub.s32 32, %v3696_v55  ;;  %v3698_v34 = vshll.u32 %v10480_v56, %v3696_v55  ;;  %v3701_v23 = vsub.s32 4294967266, %v3696_v55  ;;  %v5834_v7 = vpop.eup %5833  ;;  %5411 = vmatmul.mubr.msk.f32.gmra.mrb[10].mxu0 %vm4153_vm8, %v4098_v6  ;;  %v11305_v56 = vld [vmem:[#allocation35_spill] sm:$0xff]  ;;  %v416_v28 = vmul.f32 1.442695, %v363_v40 }
 0x37d   :  { %v5836_v47 = vpop.eup %5835  ;;  %5413 = vmatprep.mubr.msk.f32.mxu0 %vm4153_vm8, %v4099_v43  ;;  %v4100_v3 = vmul.f32 %v11305_v56, %v3995_v45  ;;  %v4102_v61 = vmul.f32 %v5834_v7, %v10446_v44  ;;  %vm3627_vm1 = vcmp.lt.s32.totalorder %v11292_v15, 0  ;;  %v4030_v27 = vpop.permute.xlu0 %4029  ;;  %vm10549_vm3 = vcmp.le.f32.partialorder %v3625_v0, 0.7853982 }
 0x37e   :  { %v3699_v38 = vshrl.u32 %v3681_v17, %v3697_v24  ;;  %v3702_v19 = vadd.s32 127, %v3701_v23  ;;  %v5838_v39 = vpop.eup %5837  ;;  %v3518_v1 = vxor.u32 2147483648, %v5836_v47  ;;  %5849 = vpow2.f32 %v416_v28  ;;  %v234_v24 = vpop.permute.xlu1 %233 }
 0x37f   :  { %v5840_v29 = vpop.eup %5839  ;;  %v3515_v12 = vxor.u32 2147483648, %v5838_v39  ;;  %v3711_v42 = vsub.s32 4, %v10458_v48  ;;  %v295_v51 = vsub.f32 %v224_v25, %v10452_v50  ;;  %v294_v17 = vsub.f32 %v10523_v22, %v10452_v50 }
 0x380   :  { %v3700_v14 = vor.u32 %v3699_v38, %v3698_v34  ;;  %v3703_v8 = vshll.u32 %v3702_v19, 23  ;;  %v3519_v36 = vsel %vm3517_vm14, %v3518_v1, %v5838_v39  ;;  %5414 = vmatmul.mubr.msk.f32.gmra.mrb[12].mxu0 %vm4153_vm8, %v4100_v3  ;;  %v4103_v13 = vmul.f32 %v5840_v29, %v10471_v33  ;;  %v5908_v29 = vld [vmem:[%s10776_s2 + $0xf0] sm:$0xff] }
 0x381   :  { %v3516_v30 = vsel %vm3514_vm9, %v5836_v47, %v3515_v12  ;;  %5416 = vmatprep.mubr.msk.f32.mxu0 %vm4153_vm8, %v4101_v54  ;;  %v5842_v21 = vpop.eup %5841  ;;  %v3712_v58 = vsel %vm3627_vm1, %v3711_v42, %v10458_v48  ;;  %v327_v43 = vmul.f32 %v295_v51, %v295_v51  ;;  %v326_v55 = vmul.f32 %v294_v17, %v294_v17 }
 0x382   :  { %v3704_v57 = vor.u32 4788187, %v3703_v8  ;;  %v3707_v53 = vcvt.s32.f32 %v3700_v14  ;;  %v3520_v49 = vsel %vm3513_vm2, %v3516_v30, %v3519_v36  ;;  %v5844_v16 = vpop.eup %5843  ;;  %v4104_v44 = vmul.f32 %v5842_v21, %v10504_v60  ;;  %v239_v39 = vpop.permute.xlu1 %238  ;;  %v4875_v36 = vld [vmem:[#allocation6] sm:$0x1] }
 0x383   :  { %v3521_v63 = vsel %vm3511_vm12, nan, %v3520_v49  ;;  %v5846_v20 = vpop.eup %5845  ;;  %v4105_v33 = vmul.f32 %v5844_v16, %v4020_v46  ;;  %v3714_v5 = vsel %vm10549_vm3, 0, %v3712_v58  ;;  %v365_v48 = vmul.f32 %v9328_v2, %v327_v43 }
 0x384   :  { %v3705_v4 = vand.u32 2147483647, %v3704_v57  ;;  %v3859_v32 = vadd.f32 1.0, %v3521_v63  ;;  %5417 = vmatmul.mubr.msk.f32.gmra.mrb[14].mxu0 %vm4153_vm8, %v4102_v61  ;;  %v5848_v45 = vpop.eup %5847  ;;  %v4106_v18 = vmul.f32 %v5846_v20, %v4025_v31  ;;  %v3718_v6 = vand.u32 3, %v3714_v5  ;;  %v5679_v63 = vld [vmem:[%s10783_s9] sm:$0xff]  }
 0x385   :  { %5419 = vmatprep.mubr.msk.f32.mxu0 %vm4153_vm8, %v4103_v13  ;;  %v4107_v35 = vmul.f32 %v5848_v45, %v4030_v27  ;;  %v364_v34 = vmul.f32 %v9328_v2, %v326_v55  ;;  %v420_v47 = vmul.f32 1.442695, %v365_v48  ;;  %vm3717_vm15 = vweird.f32 %v11292_v15  ;;  %5443 = vmatprep.subr.bf16.mxu1 %v5679_v63  ;;  %v5682_v45 = vld [vmem:[%s10783_s9 + $0x18] sm:$0xff]  }
 0x386   :  { %v3708_v41 = vmul.f32 %v3707_v53, %v3705_v4  ;;  %v3891_v9 = vmul.f32 0.5, %v3859_v32  ;;  %vm3723_vm5 = vcmp.eq.s32.totalorder %v3718_v6, 2  ;;  %vm3720_vm6 = vcmp.eq.s32.totalorder %v3718_v6, 0  ;;  %v244_v14 = vpop.permute.xlu1 %243  ;;  %v5680_v4 = vld [vmem:[%s10783_s9 + $0x8] sm:$0xff]   ;;  %5444 = vmatpush3.bf16.msra.mxu1 %v5679_v63 }
 0x387   :  { %vm3719_vm7 = vcmp.lt.s32.totalorder %v3718_v6, 2  ;;  %v418_v19 = vmul.f32 1.442695, %v364_v34  ;;  %vm468_vm13 = vcmp.lt.f32.partialorder %v5908_v29, 6.0  ;;  %v296_v13 = vsub.f32 %v10535_v59, %v10452_v50  ;;  %5445 = vmatprep.subr.bf16.mxu1 %v5680_v4 }
 0x388   :  { %v3709_v52 = vxor.u32 2147483648, %v3708_v41  ;;  %v3923_v10 = vsel %vm466_vm4, %v3891_v9, 0.0  ;;  %5420 = vmatmul.mubr.msk.f32.gmra.mrb[16].mxu0 %vm4153_vm8, %v4104_v44  ;;  %v5850_v26 = vpop.eup %5849  ;;  %v297_v59 = vsub.f32 %v234_v24, %v10452_v50  ;;  %v299_v27 = vsub.f32 %v244_v14, %v10452_v50 }
 0x389   :  { %4069 = vperm.xlu0 %5677, %v3923_v10   ;;  %5422 = vmatprep.mubr.msk.f32.mxu0 %vm4153_vm8, %v4105_v33  ;;  %v328_v21 = vmul.f32 %v296_v13, %v296_v13  ;;  %v5681_v33 = vld [vmem:[%s10783_s9 + $0x10] sm:$0xff]   ;;  %v298_v60 = vsub.f32 %v239_v39, %v10452_v50  ;;  %vm4632_vm0 = vcmask 523264  }
 0x38a   :  { %v3710_v11 = vsel %vm3627_vm1, %v3709_v52, %v3708_v41  ;;  %v329_v44 = vmul.f32 %v297_v59, %v297_v59  ;;  %5446 = vmatpush3.bf16.msra.mxu1 %v5680_v4  ;;  %v331_v42 = vmul.f32 %v299_v27, %v299_v27 }
 0x38b   :  { %v3713_v0 = vsel %vm10549_vm3, %v11292_v15, %v3710_v11  ;;  %v4045_v15 = vpop.permute.xlu1 %4044  ;;  %v366_v49 = vmul.f32 %v9328_v2, %v328_v21  ;;  %5447 = vmatprep.subr.bf16.mxu1 %v5681_v33  ;;  %v330_v10 = vmul.f32 %v298_v60, %v298_v60  ;;  %v4122_v21 = vld [vmem:[#allocation2 + $0x8] sm:$0xff] }
 0x38c   :  { %5851 = vcosq.f32 %v3713_v0  ;;  %5423 = vmatmul.mubr.msk.f32.gmra.mrb[18].mxu0 %vm4153_vm8, %v4106_v18  ;;  %v367_v41 = vmul.f32 %v9328_v2, %v329_v44 }
 0x38d   :  { %5853 = vsinq.f32 %v3713_v0  ;;  %5425 = vmatprep.mubr.msk.f32.mxu0 %vm4153_vm8, %v4107_v35  ;;  %v4035_v37 = vpop.permute.xlu0 %4034  ;;  %v422_v28 = vmul.f32 1.442695, %v366_v49  ;;  %v369_v35 = vmul.f32 %v9328_v2, %v331_v42  ;;  %v368_v51 = vmul.f32 %v9328_v2, %v330_v10  ;;  %v4121_v49 = vld [vmem:[#allocation2] sm:$0xff] }
 0x38e   :  { %v4108_v46 = vmul.f32 %v5850_v26, %v4035_v37  ;;  %5855 = vpow2.f32 %v420_v47  ;;  %5448 = vmatpush3.bf16.msra.mxu1 %v5681_v33  ;;  %v424_v9 = vmul.f32 1.442695, %v367_v41  ;;  %v4123_v41 = vld [vmem:[#allocation2 + $0x10] sm:$0xff] }
 0x38f   :  { %5857 = vpow2.f32 %v418_v19  ;;  %5449 = vmatprep.subr.bf16.mxu1 %v5682_v45  ;;  %v254_v0 = vpop.permute.xlu1 %253  ;;  %v428_v18 = vmul.f32 1.442695, %v369_v35  ;;  %v426_v58 = vmul.f32 1.442695, %v368_v51 }
 0x390   :  { %5426 = vmatmul.mubr.msk.f32.gmra.mrb[20].mxu0 %vm4153_vm8, %v4108_v46  ;;  %5859 = vpow2.f32 %v422_v28  ;;  %v301_v55 = vsub.f32 %v254_v0, %v10452_v50 }
 0x391   :  { %5861 = vpow2.f32 %v424_v9 }
 0x392   :  { %5450 = vmatpush3.bf16.msra.mxu1 %v5682_v45  ;;  %5863 = vpow2.f32 %v428_v18  ;;  %v333_v24 = vmul.f32 %v301_v55, %v301_v55 }
 0x393   :  { %v259_v17 = vpop.permute.xlu1 %258  ;;  %5865 = vpow2.f32 %v426_v58 }
 0x394   :  { %v302_v39 = vsub.f32 %v259_v17, %v10452_v50  ;;  %v4128_v17 = vld [vmem:[#allocation2 + $0x38] sm:$0xff] }
 0x396   :  { %v5852_v23 = vpop.eup %5851 }
 0x397   :  { %v5854_v22 = vpop.eup %5853  ;;  %v3724_v7 = vxor.u32 2147483648, %v5852_v23  ;;  %v264_v5 = vpop.permute.xlu1 %263 }
 0x398   :  { %v3721_v38 = vxor.u32 2147483648, %v5854_v22  ;;  %v5856_v61 = vpop.eup %5855  ;;  %v303_v19 = vsub.f32 %v264_v5, %v10452_v50 }
 0x399   :  { %v3725_v54 = vsel %vm3723_vm5, %v3724_v7, %v5854_v22  ;;  %v5858_v30 = vpop.eup %5857  ;;  %v4110_v25 = vmul.f32 %v5856_v61, %v4045_v15  ;;  %v371_v7 = vmul.f32 %v9328_v2, %v333_v24 }
 0x39a   :  { %v3722_v1 = vsel %vm3720_vm6, %v5852_v23, %v3721_v38  ;;  %v5860_v32 = vpop.eup %5859 }
 0x39b   :  { %v3726_v40 = vsel %vm3719_vm7, %v3722_v1, %v3725_v54  ;;  %v5862_v52 = vpop.eup %5861  ;;  %v4065_v37 = vpop.permute.xlu1 %4064  ;;  %v432_v38 = vmul.f32 1.442695, %v371_v7  ;;  %v4129_v7 = vld [vmem:[#allocation2 + $0x40] sm:$0xff] }
 0x39c   :  { %v3727_v56 = vsel %vm3717_vm15, nan, %v3726_v40  ;;  %v5864_v26 = vpop.eup %5863 }
 0x39d   :  { %v3861_v3 = vadd.f32 1.0, %v3727_v56  ;;  %v5866_v6 = vpop.eup %5865  ;;  %v4114_v23 = vmul.f32 %v5864_v26, %v4065_v37  ;;  %v335_v56 = vmul.f32 %v303_v19, %v303_v19 }
 0x39f   :  { %v3893_v12 = vmul.f32 0.5, %v3861_v3  ;;  %v4075_v3 = vpop.permute.xlu1 %4074 }
 0x3a1   :  { %v3925_v8 = vsel %vm468_vm13, %v3893_v12, 0.0  ;;  %v334_v12 = vmul.f32 %v302_v39, %v302_v39 }
 0x3a2   :  { %4079 = vperm.xlu0 %5677, %v3925_v8   ;;  %v373_v8 = vmul.f32 %v9328_v2, %v335_v56 }
 0x3a3   :  { %v4040_v57 = vpop.permute.xlu0 %4039 }
 0x3a4   :  { %v4109_v53 = vmul.f32 %v5858_v30, %v4040_v57  ;;  %v436_v61 = vmul.f32 1.442695, %v373_v8 }
 0x3a6   :  { %4878 = vperm.xlu0 %5677, %v4875_v36   ;;  %5428 = vmatprep.mubr.msk.f32.mxu0 %vm4153_vm8, %v4109_v53  ;;  %v372_v36 = vmul.f32 %v9328_v2, %v334_v12  ;;  %v4085_v53 = vpop.permute.xlu1 %4084  ;;  %v4131_v12 = vld [vmem:[#allocation2 + $0x50] sm:$0xff] }
 0x3a7   :  { %5429 = vmatmul.mubr.msk.f32.gmra.mrb[22].mxu0 %vm4153_vm8, %v4110_v25  ;;  %v249_v16 = vpop.permute.xlu0 %248 }
 0x3a8   :  { %v300_v43 = vsub.f32 %v249_v16, %v10452_v50  ;;  %v434_v15 = vmul.f32 1.442695, %v372_v36 }
 0x3aa   :  { %v332_v46 = vmul.f32 %v300_v43, %v300_v43  ;;  %v4127_v43 = vld [vmem:[#allocation2 + $0x30] sm:$0xff] }
 0x3ac   :  { %v370_v22 = vmul.f32 %v9328_v2, %v332_v46  ;;  %v10620_v2 = vld [vmem:[%s10782_s8] ss:$0 sm:$0xff] }
 0x3ae   :  { %v430_v47 = vmul.f32 1.442695, %v370_v22 }
 0x3b0   :  { %5867 = vpow2.f32 %v430_v47 }
 0x3b1   :  { %5869 = vpow2.f32 %v432_v38 }
 0x3b2   :  { %5871 = vpow2.f32 %v436_v61 }
 0x3b3   :  { %5873 = vpow2.f32 %v434_v15 }
 0x3ba   :  { %v5868_v54 = vpop.eup %5867 }
 0x3bb   :  { %v5870_v1 = vpop.eup %5869 }
 0x3bc   :  { %v4116_v14 = vmul.f32 %v5870_v1, %v4075_v3  ;;  %v5872_v50 = vpop.eup %5871  ;;  %v4132_v3 = vld [vmem:[#allocation2 + $0x58] sm:$0xff] }
 0x3bd   :  { %v5874_v30 = vpop.eup %5873  ;;  %v4118_v13 = vmul.f32 %v5872_v50, %v4085_v53  ;;  %v4134_v53 = vld [vmem:[#allocation2 + $0x68] sm:$0xff] }
 0x3c2   :  { %v4050_v20 = vpop.permute.xlu0 %4049 }
 0x3c3   :  { %v4111_v62 = vmul.f32 %v5860_v32, %v4050_v20 }
 0x3c5   :  { %5431 = vmatprep.mubr.msk.f32.mxu0 %vm4153_vm8, %v4111_v62  ;;  %v4124_v62 = vld [vmem:[#allocation2 + $0x18] sm:$0xff] }
 0x3d9   :  { %v4055_v31 = vpop.permute.xlu0 %4054 }
 0x3da   :  { %v4112_v11 = vmul.f32 %v5862_v52, %v4055_v31  ;;  %v4126_v52 = vld [vmem:[#allocation2 + $0x28] sm:$0xff]  ;;  %v4125_v31 = vld [vmem:[#allocation2 + $0x20] sm:$0xff] }
 0x3dc   :  { %5432 = vmatmul.mubr.msk.f32.gmra.mrb[24].mxu0 %vm4153_vm8, %v4112_v11 }
 0x3f0   :  { %v4060_v48 = vpop.permute.xlu0 %4059 }
 0x3f1   :  { %v4113_v34 = vmul.f32 %v5866_v6, %v4060_v48 }
 0x3f3   :  { %5434 = vmatprep.mubr.msk.f32.mxu0 %vm4153_vm8, %v4113_v34 }
 0x3f4   :  { %5435 = vmatmul.mubr.msk.f32.gmra.mrb[26].mxu0 %vm4153_vm8, %v4114_v23  ;;  %v4130_v23 = vld [vmem:[#allocation2 + $0x48] sm:$0xff] }
 0x408   :  { %v4070_v40 = vpop.permute.xlu0 %4069 }
 0x409   :  { %v4115_v29 = vmul.f32 %v5868_v54, %v4070_v40 }
 0x40b   :  { %5437 = vmatprep.mubr.msk.f32.mxu0 %vm4153_vm8, %v4115_v29 }
 0x40c   :  { %5438 = vmatmul.mubr.msk.f32.gmra.mrb[28].mxu0 %vm4153_vm8, %v4116_v14 }
 0x421   :  { %v4080_v57 = vpop.permute.xlu0 %4079 }
 0x422   :  { %v4117_v25 = vmul.f32 %v5874_v30, %v4080_v57 }
 0x424   :  { %5440 = vmatprep.mubr.msk.f32.mxu0 %vm4153_vm8, %v4117_v25 }
 0x425   :  { %5441 = vmatmul.mubr.msk.f32.gmra.mrb[30].mxu0 %vm4153_vm8, %v4118_v13  ;;  %v4133_v13 = vld [vmem:[#allocation2 + $0x60] sm:$0xff]  ;;  %vm10709_vm8 = vmpackc.low %vm4632_vm0, %vm4632_vm0 }
 0x436   :  { %v5397_v28 = vpop.f32.mrb[0].mxu0 }
 0x437   :  { %v4476_v63 = vadd.f32 %v5397_v28, %v4122_v21  ;;  %v4316_v4 = vpop.f32.mrb[1].mxu0 }
 0x438   :  { %v4475_v16 = vadd.f32 %v4316_v4, %v4121_v49 }
 0x439   :  { %v4514_v59 = vadd.f32 %v10620_v2, %v4476_v63 }
 0x43a   :  { %v4513_v32 = vadd.f32 %v10620_v2, %v4475_v16 }
 0x43b   :  { %v4546_v44 = vmax.f32 %v4514_v59, 0.0 }
 0x43c   :  { %v4545_v20 = vmax.f32 %v4513_v32, 0.0 }
 0x43e   :  { %v4586_v33 = vpack.c.bf16 %v4546_v44, %v4545_v20  ;;  %v4136_v44 = vld [vmem:[#allocation2 + $0x78] sm:$0xff] }
 0x43f   :  { %v5400_v45 = vpop.f32.mrb[2].mxu0 }
 0x440   :  { %v4478_v9 = vadd.f32 %v5400_v45, %v4124_v62  ;;  %v4326_v27 = vpop.f32.mrb[3].mxu0  ;;  %5451 = vmatprep.mubr.msk.bf16.mxu1 %vm4632_vm0, %v4586_v33  ;;  %v4135_v62 = vld [vmem:[#allocation2 + $0x70] sm:$0xff] }
 0x441   :  { %v4477_v60 = vadd.f32 %v4326_v27, %v4123_v41 }
 0x442   :  { %v4516_v42 = vadd.f32 %v10620_v2, %v4478_v9 }
 0x443   :  { %v4515_v10 = vadd.f32 %v10620_v2, %v4477_v60  ;;  %v5403_v11 = vpop.f32.mrb[4].mxu0 }
 0x444   :  { %v4548_v35 = vmax.f32 %v4516_v42, 0.0  ;;  %v4480_v0 = vadd.f32 %v5403_v11, %v4126_v52  ;;  %v4336_v51 = vpop.f32.mrb[5].mxu0  ;;  %v4137_v11 = vld [vmem:[#allocation2 + $0x80] sm:$0xff] }
 0x445   :  { %v4547_v18 = vmax.f32 %v4515_v10, 0.0  ;;  %v4479_v58 = vadd.f32 %v4336_v51, %v4125_v31  ;;  %v4138_v31 = vld [vmem:[#allocation2 + $0x88] sm:$0xff] }
 0x446   :  { %v4518_v5 = vadd.f32 %v10620_v2, %v4480_v0 }
 0x447   :  { %v4587_v55 = vpack.c.bf16 %v4548_v35, %v4547_v18  ;;  %v4517_v26 = vadd.f32 %v10620_v2, %v4479_v58  ;;  %v5406_v37 = vpop.f32.mrb[6].mxu0 }
 0x448   :  { %v4550_v6 = vmax.f32 %v4518_v5, 0.0  ;;  %v4482_v46 = vadd.f32 %v5406_v37, %v4128_v17  ;;  %v4346_v48 = vpop.f32.mrb[7].mxu0  ;;  %v4139_v37 = vld [vmem:[#allocation2 + $0x90] sm:$0xff] }
 0x449   :  { %v4549_v24 = vmax.f32 %v4517_v26, 0.0  ;;  %5452 = vmatmul.mubr.msk.bf16.vlgmr.msra.gmra.mrb[0].mxu1 %vm4632_vm0, %v4587_v55  ;;  %v4481_v34 = vadd.f32 %v4346_v48, %v4127_v43  ;;  %v4140_v55 = vld [vmem:[#allocation2 + $0x98] sm:$0xff] }
 0x44a   :  { %v4520_v22 = vadd.f32 %v10620_v2, %v4482_v46 }
 0x44b   :  { %v4588_v47 = vpack.c.bf16 %v4550_v6, %v4549_v24  ;;  %v4519_v38 = vadd.f32 %v10620_v2, %v4481_v34  ;;  %v5409_v19 = vpop.f32.mrb[8].mxu0 }
 0x44c   :  { %v4552_v54 = vmax.f32 %v4520_v22, 0.0  ;;  %v4484_v39 = vadd.f32 %v5409_v19, %v4130_v23  ;;  %v4356_v1 = vpop.f32.mrb[9].mxu0 }
 0x44d   :  { %v4551_v40 = vmax.f32 %v4519_v38, 0.0  ;;  %5455 = vmatprep.mubr.msk.bf16.mxu1 %vm4632_vm0, %v4588_v47  ;;  %v4483_v56 = vadd.f32 %v4356_v1, %v4129_v7 }
 0x44e   :  { %v4522_v29 = vadd.f32 %v10620_v2, %v4484_v39  ;;  %v4142_v39 = vld [vmem:[#allocation2 + $0xa8] sm:$0xff] }
 0x44f   :  { %v4589_v14 = vpack.c.bf16 %v4552_v54, %v4551_v40  ;;  %v4521_v8 = vadd.f32 %v10620_v2, %v4483_v56  ;;  %v5412_v36 = vpop.f32.mrb[10].mxu0  ;;  %v4141_v40 = vld [vmem:[#allocation2 + $0xa0] sm:$0xff] }
 0x450   :  { %v4554_v61 = vmax.f32 %v4522_v29, 0.0  ;;  %v4486_v15 = vadd.f32 %v5412_v36, %v4132_v3  ;;  %v4366_v50 = vpop.f32.mrb[11].mxu0 }
 0x451   :  { %v4553_v30 = vmax.f32 %v4521_v8, 0.0  ;;  %5456 = vmatmul.mubr.msk.bf16.gmra.mrb[4].mxu1 %vm4632_vm0, %v4589_v14  ;;  %v4485_v57 = vadd.f32 %v4366_v50, %v4131_v12 }
 0x452   :  { %v4524_v25 = vadd.f32 %v10620_v2, %v4486_v15 }
 0x453   :  { %v4590_v21 = vpack.c.bf16 %v4554_v61, %v4553_v30  ;;  %v4523_v49 = vadd.f32 %v10620_v2, %v4485_v57  ;;  %v5415_v28 = vpop.f32.mrb[12].mxu0  ;;  %v4144_v30 = vld [vmem:[#allocation2 + $0xb8] sm:$0xff]  ;;  %v4143_v57 = vld [vmem:[#allocation2 + $0xb0] sm:$0xff] }
 0x454   :  { %v4556_v63 = vmax.f32 %v4524_v25, 0.0  ;;  %v4488_v4 = vadd.f32 %v5415_v28, %v4134_v53  ;;  %v4376_v16 = vpop.f32.mrb[13].mxu0 }
 0x455   :  { %v4555_v59 = vmax.f32 %v4523_v49, 0.0  ;;  %v4487_v32 = vadd.f32 %v4376_v16, %v4133_v13  ;;  %5459 = vmatprep.mubr.msk.bf16.mxu1 %vm4632_vm0, %v4590_v21 }
 0x456   :  { %v4526_v20 = vadd.f32 %v10620_v2, %v4488_v4 }
 0x457   :  { %v4591_v41 = vpack.c.bf16 %v4556_v63, %v4555_v59  ;;  %v4525_v33 = vadd.f32 %v10620_v2, %v4487_v32  ;;  %v5418_v45 = vpop.f32.mrb[14].mxu0  ;;  %v4146_v59 = vld [vmem:[#allocation2 + $0xc8] sm:$0xff]  ;;  %v4145_v32 = vld [vmem:[#allocation2 + $0xc0] sm:$0xff] }
 0x458   :  { %v4558_v9 = vmax.f32 %v4526_v20, 0.0  ;;  %v4490_v27 = vadd.f32 %v5418_v45, %v4136_v44  ;;  %v4386_v60 = vpop.f32.mrb[15].mxu0 }
 0x459   :  { %v4557_v52 = vmax.f32 %v4525_v33, 0.0  ;;  %5460 = vmatmul.mubr.msk.bf16.gmra.mrb[8].mxu1 %vm4632_vm0, %v4591_v41  ;;  %v4489_v42 = vadd.f32 %v4386_v60, %v4135_v62 }
 0x45a   :  { %v4528_v10 = vadd.f32 %v10620_v2, %v4490_v27 }
 0x45b   :  { %v4592_v35 = vpack.c.bf16 %v4558_v9, %v4557_v52  ;;  %v4527_v0 = vadd.f32 %v10620_v2, %v4489_v42  ;;  %v5421_v51 = vpop.f32.mrb[16].mxu0  ;;  %v4148_v52 = vld [vmem:[#allocation2 + $0xd8] sm:$0xff]  ;;  %v4147_v42 = vld [vmem:[#allocation2 + $0xd0] sm:$0xff] }
 0x45c   :  { %v4560_v18 = vmax.f32 %v4528_v10, 0.0  ;;  %v4492_v58 = vadd.f32 %v5421_v51, %v4138_v31  ;;  %v4396_v17 = vpop.f32.mrb[17].mxu0 }
 0x45d   :  { %v4559_v5 = vmax.f32 %v4527_v0, 0.0  ;;  %5463 = vmatprep.mubr.msk.bf16.mxu1 %vm4632_vm0, %v4592_v35  ;;  %v4491_v43 = vadd.f32 %v4396_v17, %v4137_v11 }
 0x45e   :  { %v4530_v26 = vadd.f32 %v10620_v2, %v4492_v58 }
 0x45f   :  { %v4593_v6 = vpack.c.bf16 %v4560_v18, %v4559_v5  ;;  %v4529_v46 = vadd.f32 %v10620_v2, %v4491_v43  ;;  %v5424_v48 = vpop.f32.mrb[18].mxu0  ;;  %v4150_v5 = vld [vmem:[#allocation2 + $0xe8] sm:$0xff]  ;;  %v4149_v43 = vld [vmem:[#allocation2 + $0xe0] sm:$0xff] }
 0x460   :  { %v4562_v24 = vmax.f32 %v4530_v26, 0.0  ;;  %v4494_v34 = vadd.f32 %v5424_v48, %v4140_v55  ;;  %v4406_v23 = vpop.f32.mrb[19].mxu0 }
 0x461   :  { %v4561_v22 = vmax.f32 %v4529_v46, 0.0  ;;  %5464 = vmatmul.mubr.msk.bf16.gmra.mrb[12].mxu1 %vm4632_vm0, %v4593_v6  ;;  %v4493_v7 = vadd.f32 %v4406_v23, %v4139_v37 }
 0x462   :  { %v4532_v47 = vadd.f32 %v10620_v2, %v4494_v34 }
 0x463   :  { %v4594_v38 = vpack.c.bf16 %v4562_v24, %v4561_v22  ;;  %v4531_v19 = vadd.f32 %v10620_v2, %v4493_v7  ;;  %v5427_v56 = vpop.f32.mrb[20].mxu0  ;;  %v4152_v22 = vld [vmem:[#allocation2 + $0xf8] sm:$0xff]  ;;  %v4151_v7 = vld [vmem:[#allocation2 + $0xf0] sm:$0xff] }
 0x464   :  { %v4564_v54 = vmax.f32 %v4532_v47, 0.0  ;;  %v4496_v29 = vadd.f32 %v5427_v56, %v4142_v39  ;;  %v4416_v12 = vpop.f32.mrb[21].mxu0 }
 0x465   :  { %v4563_v1 = vmax.f32 %v4531_v19, 0.0  ;;  %5467 = vmatprep.mubr.msk.bf16.mxu1 %vm4632_vm0, %v4594_v38  ;;  %v4495_v14 = vadd.f32 %v4416_v12, %v4141_v40 }
 0x466   :  { %v4534_v8 = vadd.f32 %v10620_v2, %v4496_v29  ;;  %v10673_v29 = vld [vmem:[%s10784_s10] ss:$0 sm:$0xff] }
 0x467   :  { %v4595_v3 = vpack.c.bf16 %v4564_v54, %v4563_v1  ;;  %v4533_v36 = vadd.f32 %v10620_v2, %v4495_v14 }
 0x468   :  { %v4566_v61 = vmax.f32 %v4534_v8, 0.0 }
 0x469   :  { %5468 = vmatmul.mubr.msk.bf16.gmra.mrb[16].mxu1 %vm4632_vm0, %v4595_v3  ;;  %v4565_v15 = vmax.f32 %v4533_v36, 0.0 }
 0x46b   :  { %v4596_v50 = vpack.c.bf16 %v4566_v61, %v4565_v15 }
 0x46d   :  { %5471 = vmatprep.mubr.msk.bf16.mxu1 %vm4632_vm0, %v4596_v50 }
 0x47a   :  { %v5430_v53 = vpop.f32.mrb[22].mxu0 }
 0x47b   :  { %v4498_v25 = vadd.f32 %v5430_v53, %v4144_v30  ;;  %v4426_v13 = vpop.f32.mrb[23].mxu0 }
 0x47c   :  { %v4497_v21 = vadd.f32 %v4426_v13, %v4143_v57 }
 0x47d   :  { %v4536_v49 = vadd.f32 %v10620_v2, %v4498_v25 }
 0x47e   :  { %v4535_v28 = vadd.f32 %v10620_v2, %v4497_v21 }
 0x47f   :  { %v4568_v63 = vmax.f32 %v4536_v49, 0.0 }
 0x480   :  { %v4567_v4 = vmax.f32 %v4535_v28, 0.0 }
 0x482   :  { %v4597_v16 = vpack.c.bf16 %v4568_v63, %v4567_v4 }
 0x484   :  { %5472 = vmatmul.mubr.msk.bf16.gmra.mrb[20].mxu1 %vm4632_vm0, %v4597_v16 }
 0x4af   :  { %v5433_v44 = vpop.f32.mrb[24].mxu0 }
 0x4b0   :  { %v4500_v20 = vadd.f32 %v5433_v44, %v4146_v59  ;;  %v4436_v62 = vpop.f32.mrb[25].mxu0 }
 0x4b1   :  { %v4499_v41 = vadd.f32 %v4436_v62, %v4145_v32 }
 0x4b2   :  { %v4538_v33 = vadd.f32 %v10620_v2, %v4500_v20 }
 0x4b3   :  { %v4537_v45 = vadd.f32 %v10620_v2, %v4499_v41 }
 0x4b4   :  { %v4570_v9 = vmax.f32 %v4538_v33, 0.0 }
 0x4b5   :  { %v4569_v27 = vmax.f32 %v4537_v45, 0.0 }
 0x4b7   :  { %v4598_v60 = vpack.c.bf16 %v4570_v9, %v4569_v27 }
 0x4b9   :  { %5475 = vmatprep.mubr.msk.bf16.mxu1 %vm4632_vm0, %v4598_v60 }
 0x4c7   :  { %v5436_v31 = vpop.f32.mrb[26].mxu0 }
 0x4c8   :  { %v4502_v10 = vadd.f32 %v5436_v31, %v4148_v52  ;;  %v4446_v11 = vpop.f32.mrb[27].mxu0 }
 0x4c9   :  { %v4501_v35 = vadd.f32 %v4446_v11, %v4147_v42 }
 0x4ca   :  { %v4540_v0 = vadd.f32 %v10620_v2, %v4502_v10 }
 0x4cb   :  { %v4539_v51 = vadd.f32 %v10620_v2, %v4501_v35 }
 0x4cc   :  { %v4572_v18 = vmax.f32 %v4540_v0, 0.0 }
 0x4cd   :  { %v4571_v58 = vmax.f32 %v4539_v51, 0.0 }
 0x4cf   :  { %v4599_v17 = vpack.c.bf16 %v4572_v18, %v4571_v58 }
 0x4d1   :  { %5476 = vmatmul.mubr.msk.bf16.gmra.mrb[24].mxu1 %vm4632_vm0, %v4599_v17 }
 0x4df   :  { %v5439_v55 = vpop.f32.mrb[28].mxu0 }
 0x4e0   :  { %v4504_v26 = vadd.f32 %v5439_v55, %v4150_v5  ;;  %v4456_v37 = vpop.f32.mrb[29].mxu0 }
 0x4e1   :  { %v4503_v6 = vadd.f32 %v4456_v37, %v4149_v43 }
 0x4e2   :  { %v4542_v46 = vadd.f32 %v10620_v2, %v4504_v26 }
 0x4e3   :  { %v4541_v48 = vadd.f32 %v10620_v2, %v4503_v6 }
 0x4e4   :  { %v4574_v24 = vmax.f32 %v4542_v46, 0.0 }
 0x4e5   :  { %v4573_v34 = vmax.f32 %v4541_v48, 0.0 }
 0x4e7   :  { %v4600_v23 = vpack.c.bf16 %v4574_v24, %v4573_v34 }
 0x4e9   :  { %5479 = vmatprep.mubr.msk.bf16.mxu1 %vm4632_vm0, %v4600_v23 }
 0x4f8   :  { %v5442_v47 = vpop.f32.mrb[30].mxu0 }
 0x4f9   :  { %v4506_v38 = vadd.f32 %v5442_v47, %v4152_v22  ;;  %v4466_v19 = vpop.f32.mrb[31].mxu0 }
 0x4fa   :  { %v4505_v54 = vadd.f32 %v4466_v19, %v4151_v7 }
 0x4fb   :  { %v4544_v39 = vadd.f32 %v10620_v2, %v4506_v38 }
 0x4fc   :  { %v4543_v1 = vadd.f32 %v10620_v2, %v4505_v54 }
 0x4fd   :  { %v4576_v40 = vmax.f32 %v4544_v39, 0.0 }
 0x4fe   :  { %v4575_v56 = vmax.f32 %v4543_v1, 0.0 }
 0x500   :  { %v4601_v3 = vpack.c.bf16 %v4576_v40, %v4575_v56 }
 0x502   :  { %5480 = vmatmul.mubr.msk.bf16.gmra.mrb[28].mxu1 %vm4632_vm0, %v4601_v3 }
 0x51c   :  { %v5453_v12 = vpop.f32.mrb[0].mxu1 }
 0x51d   :  { %v4724_v14 = vadd.f32 %v5453_v12, %v10673_v29  ;;  %v4715_v8 = vpop.f32.mrb[1].mxu1 }
 0x51e   :  { %v4716_v36 = vadd.f32 %v10673_v29, %v4715_v8  ;;  %v5454_v61 = vpop.f32.mrb[2].mxu1 }
 0x51f   :  { %v4727_v15 = vadd.f32 %v5454_v61, %v10673_v29  ;;  %v4718_v2 = vpop.f32.mrb[3].mxu1  ;;  %v4844_v30 = vmax.f32 %v4724_v14, 0.0 }
 0x520   :  { %v4719_v50 = vadd.f32 %v10673_v29, %v4718_v2  ;;  %v4842_v53 = vmax.f32 %v4716_v36, 0.0 }
 0x521   :  { %v4845_v57 = vmax.f32 %v4727_v15, 0.0 }
 0x522   :  { %v4843_v25 = vmax.f32 %v4719_v50, 0.0 }
 0x523   :  { %v5492_v13 = vpack.c.bf16 %v4845_v57, %v4844_v30 }
 0x524   :  { %v5486_v21 = vpack.c.bf16 %v4843_v25, %v4842_v53  ;;  %v5457_v49 = vpop.f32.mrb[4].mxu1 }
 0x525   :  { %v4740_v28 = vadd.f32 %v5457_v49, %v10673_v29  ;;  %v4731_v63 = vpop.f32.mrb[5].mxu1 }
 0x526   :  { %v4732_v4 = vadd.f32 %v10673_v29, %v4731_v63  ;;  %v5458_v16 = vpop.f32.mrb[6].mxu1 }
 0x527   :  { %v4743_v59 = vadd.f32 %v5458_v16, %v10673_v29  ;;  %v4734_v32 = vpop.f32.mrb[7].mxu1  ;;  %v4848_v20 = vmax.f32 %v4740_v28, 0.0 }
 0x528   :  { %v4735_v44 = vadd.f32 %v10673_v29, %v4734_v32  ;;  %v4846_v41 = vmax.f32 %v4732_v4, 0.0 }
 0x529   :  { %v4849_v62 = vmax.f32 %v4743_v59, 0.0 }
 0x52a   :  { %v4847_v33 = vmax.f32 %v4735_v44, 0.0 }
 0x52b   :  { %v10683_v45 = vpack.c.bf16 %v4849_v62, %v4848_v20 }
 0x52c   :  { %v10685_v9 = vpack.c.bf16 %v4847_v33, %v4846_v41  ;;  %v5461_v27 = vpop.f32.mrb[8].mxu1 }
 0x52d   :  { %v4756_v60 = vadd.f32 %v5461_v27, %v10673_v29  ;;  %v4747_v52 = vpop.f32.mrb[9].mxu1 }
 0x52e   :  { %v4748_v42 = vadd.f32 %v10673_v29, %v4747_v52  ;;  %v5462_v31 = vpop.f32.mrb[10].mxu1 }
 0x52f   :  { %v4759_v10 = vadd.f32 %v5462_v31, %v10673_v29  ;;  %v4750_v11 = vpop.f32.mrb[11].mxu1  ;;  %v4852_v0 = vmax.f32 %v4756_v60, 0.0 }
 0x530   :  { %v4751_v35 = vadd.f32 %v10673_v29, %v4750_v11  ;;  %v4850_v18 = vmax.f32 %v4748_v42, 0.0 }
 0x531   :  { %v4853_v51 = vmax.f32 %v4759_v10, 0.0 }
 0x532   :  { %v4851_v58 = vmax.f32 %v4751_v35, 0.0 }
 0x533   :  { %v10691_v17 = vpack.c.bf16 %v4853_v51, %v4852_v0 }
 0x534   :  { %v10693_v5 = vpack.c.bf16 %v4851_v58, %v4850_v18  ;;  %v5465_v43 = vpop.f32.mrb[12].mxu1 }
 0x535   :  { %v4772_v55 = vadd.f32 %v5465_v43, %v10673_v29  ;;  %v4763_v26 = vpop.f32.mrb[13].mxu1 }
 0x536   :  { %v4764_v37 = vadd.f32 %v10673_v29, %v4763_v26  ;;  %v5466_v6 = vpop.f32.mrb[14].mxu1 }
 0x537   :  { %v4775_v46 = vadd.f32 %v5466_v6, %v10673_v29  ;;  %v4766_v48 = vpop.f32.mrb[15].mxu1  ;;  %v4856_v34 = vmax.f32 %v4772_v55, 0.0 }
 0x538   :  { %v4767_v24 = vadd.f32 %v10673_v29, %v4766_v48  ;;  %v4854_v22 = vmax.f32 %v4764_v37, 0.0 }
 0x539   :  { %v4857_v23 = vmax.f32 %v4775_v46, 0.0 }
 0x53a   :  { %v4855_v7 = vmax.f32 %v4767_v24, 0.0 }
 0x53b   :  { %v10699_v47 = vpack.c.bf16 %v4857_v23, %v4856_v34 }
 0x53c   :  { %v10701_v38 = vpack.c.bf16 %v4855_v7, %v4854_v22  ;;  %v5469_v19 = vpop.f32.mrb[16].mxu1  ;;  %v4879_v22 = vpop.permute.xlu0 %4878 }
 0x53d   :  { %v4788_v54 = vadd.f32 %v5469_v19, %v10673_v29  ;;  %v4779_v39 = vpop.f32.mrb[17].mxu1  ;;  %v11310_v19 = vld [vmem:[#allocation10_spill] sm:$0xff] }
 0x53e   :  { %v4780_v1 = vadd.f32 %v10673_v29, %v4779_v39  ;;  %v5470_v40 = vpop.f32.mrb[18].mxu1 }
 0x53f   :  { %v4791_v56 = vadd.f32 %v5470_v40, %v10673_v29  ;;  %v4782_v3 = vpop.f32.mrb[19].mxu1  ;;  %v4860_v14 = vmax.f32 %v4788_v54, 0.0  ;;  %v11311_v54 = vsub.s32 0, %v11310_v19 }
 0x540   :  { %v4783_v12 = vadd.f32 %v10673_v29, %v4782_v3  ;;  %v4858_v36 = vmax.f32 %v4780_v1, 0.0 }
 0x541   :  { %v4861_v8 = vmax.f32 %v4791_v56, 0.0  ;;  %v4884_v39 = vrot.slane %v4879_v22, %v11311_v54 }
 0x542   :  { %v4859_v61 = vmax.f32 %v4783_v12, 0.0 }
 0x543   :  { %v5489_v15 = vpack.c.bf16 %v4861_v8, %v4860_v14  ;;  %v11312_v8 = vlaneseq }
 0x544   :  { %v5483_v50 = vpack.c.bf16 %v4859_v61, %v4858_v36 }
 0x545   :  { %vm5075_vm10 = vcmp.lt.s32.totalorder %v11312_v8, 256 }
 0x546   :  { %5485 = vmatprep.subr.msk.bf16.mxu0 %vm10709_vm8, %v5483_v50 }
 0x547   :  { %5488 = vmatpush3.bf16.xpose.msk.msra.mxu0 %vm10709_vm8, %v5486_v21 }
 0x548   :  { %5491 = vmatprep.subr.msk.bf16.mxu0 %vm10709_vm8, %v5489_v15 }
 0x54f   :  { %5494 = vmatpush3.bf16.xpose.msk.msra.mxu0 %vm10709_vm8, %v5492_v13  ;;  %v4874_v13 = vld [vmem:[%s10785_s11] sm:$0x1] }
 0x550   :  { %5391 = vmatprep.mubr.msk.f32.mxu0 %vm4632_vm0, %v4874_v13 }
 0x557   :  { %v5473_v30 = vpop.f32.mrb[20].mxu1 }
 0x558   :  { %v4804_v57 = vadd.f32 %v5473_v30, %v10673_v29  ;;  %v4795_v53 = vpop.f32.mrb[21].mxu1 }
 0x559   :  { %v4796_v25 = vadd.f32 %v10673_v29, %v4795_v53  ;;  %v5474_v49 = vpop.f32.mrb[22].mxu1 }
 0x55a   :  { %v4807_v28 = vadd.f32 %v5474_v49, %v10673_v29  ;;  %v4798_v63 = vpop.f32.mrb[23].mxu1  ;;  %v4864_v16 = vmax.f32 %v4804_v57, 0.0 }
 0x55b   :  { %v4799_v4 = vadd.f32 %v10673_v29, %v4798_v63  ;;  %v4862_v59 = vmax.f32 %v4796_v25, 0.0 }
 0x55c   :  { %v4865_v21 = vmax.f32 %v4807_v28, 0.0 }
 0x55d   :  { %v4863_v32 = vmax.f32 %v4799_v4, 0.0 }
 0x55e   :  { %v5501_v44 = vpack.c.bf16 %v4865_v21, %v4864_v16 }
 0x55f   :  { %v5495_v20 = vpack.c.bf16 %v4863_v32, %v4862_v59 }
 0x561   :  { %5497 = vmatprep.subr.msk.bf16.mxu0 %vm10709_vm8, %v5495_v20 }
 0x562   :  { %5500 = vmatpush3.bf16.xpose.msk.msra.mxu0 %vm10709_vm8, %v10685_v9 }
 0x563   :  { %5503 = vmatprep.subr.msk.bf16.mxu0 %vm10709_vm8, %v5501_v44 }
 0x56a   :  { %5506 = vmatpush3.bf16.xpose.msk.msra.mxu0 %vm10709_vm8, %v10683_v45 }
 0x5a4   :  { %v5477_v62 = vpop.f32.mrb[24].mxu1 }
 0x5a5   :  { %v4820_v41 = vadd.f32 %v5477_v62, %v10673_v29  ;;  %v4811_v33 = vpop.f32.mrb[25].mxu1 }
 0x5a6   :  { %v4812_v27 = vadd.f32 %v10673_v29, %v4811_v33  ;;  %v5478_v9 = vpop.f32.mrb[26].mxu1 }
 0x5a7   :  { %v4823_v60 = vadd.f32 %v5478_v9, %v10673_v29  ;;  %v4814_v52 = vpop.f32.mrb[27].mxu1  ;;  %v4868_v31 = vmax.f32 %v4820_v41, 0.0 }
 0x5a8   :  { %v4815_v42 = vadd.f32 %v10673_v29, %v4814_v52  ;;  %v4866_v11 = vmax.f32 %v4812_v27, 0.0 }
 0x5a9   :  { %v4869_v10 = vmax.f32 %v4823_v60, 0.0 }
 0x5aa   :  { %v4867_v35 = vmax.f32 %v4815_v42, 0.0 }
 0x5ab   :  { %v5513_v0 = vpack.c.bf16 %v4869_v10, %v4868_v31 }
 0x5ac   :  { %v5507_v51 = vpack.c.bf16 %v4867_v35, %v4866_v11 }
 0x5ae   :  { %5509 = vmatprep.subr.msk.bf16.mxu0 %vm10709_vm8, %v5507_v51 }
 0x5af   :  { %5512 = vmatpush3.bf16.xpose.msk.msra.mxu0 %vm10709_vm8, %v10693_v5 }
 0x5b0   :  { %5515 = vmatprep.subr.msk.bf16.mxu0 %vm10709_vm8, %v5513_v0 }
 0x5b7   :  { %5518 = vmatpush3.bf16.xpose.msk.msra.mxu0 %vm10709_vm8, %v10691_v17 }
 0x5d5   :  { %v5481_v45 = vpop.f32.mrb[28].mxu1 }
 0x5d6   :  { %v4836_v18 = vadd.f32 %v5481_v45, %v10673_v29  ;;  %v4827_v58 = vpop.f32.mrb[29].mxu1 }
 0x5d7   :  { %v4828_v43 = vadd.f32 %v10673_v29, %v4827_v58  ;;  %v5482_v55 = vpop.f32.mrb[30].mxu1 }
 0x5d8   :  { %v4839_v26 = vadd.f32 %v5482_v55, %v10673_v29  ;;  %v4830_v37 = vpop.f32.mrb[31].mxu1  ;;  %v4872_v5 = vmax.f32 %v4836_v18, 0.0 }
 0x5d9   :  { %v4831_v6 = vadd.f32 %v10673_v29, %v4830_v37  ;;  %v4870_v48 = vmax.f32 %v4828_v43, 0.0  ;;  %v5952_v29 = vmov 1966171168  }
 0x5da   :  { %v4873_v46 = vmax.f32 %v4839_v26, 0.0  ;;  %v5059_v17 = vunpack.c.l.s4 %v5952_v29 }
 0x5db   :  { %v4871_v24 = vmax.f32 %v4831_v6, 0.0 }
 0x5dc   :  { %v5525_v34 = vpack.c.bf16 %v4873_v46, %v4872_v5  ;;  %v5060_v7 = vunpack.c.0.s8 %v5059_v17 }
 0x5dd   :  { %v5519_v23 = vpack.c.bf16 %v4871_v24, %v4870_v48 }
 0x5de   :  { %v5063_v3 = vsub.s32 %v5060_v7, %v11310_v19 }
 0x5df   :  { %5521 = vmatprep.subr.msk.bf16.mxu0 %vm10709_vm8, %v5519_v23 }
 0x5e0   :  { %5524 = vmatpush3.bf16.xpose.msk.msra.mxu0 %vm10709_vm8, %v10701_v38 }
 0x5e1   :  { %5527 = vmatprep.subr.msk.bf16.mxu0 %vm10709_vm8, %v5525_v34 }
 0x5e8   :  { %5530 = vmatpush3.bf16.xpose.msk.msra.mxu0 %vm10709_vm8, %v10699_v47 }
 0x5ef   :  { %5392 = vmatmul.mubr.msk.f32.vlgmr.msra.gmra.mrb[32].mxu0 %vm4632_vm0, %v4874_v13 }
 0x6c2   :  { %v5050_v1 = vpop.f32.mrb[32].mxu0 }
 0x6c3   :  { %v5051_v40 = vadd.f32 %v5050_v1, %v4884_v39  ;;  %v5052_v56 = vpop.f32.mrb[33].mxu0 }
 0x6c4   :  { %v5053_v38 = vadd.f32 %v5052_v56, %v4884_v39 }
 0x6c6   :  { %v5057_v12 = vcombine.low %v5051_v40, %v5053_v38 }
 0x6c8   :  { %v5064_v14 = vrot.slane %v5057_v12, %v5063_v3 }
 0x6ca   :  { %v5071_v47 = vrot.slane %v5064_v14, %v5063_v3 }
 0x6cc   :  { %5077 = vst.msk [vmem:[%s10786_s13] sm:$0x3] %vm5075_vm10, %v5071_v47 }

</bundles_post_ra>
